<compile_context>
chip_gen: v7x
topology: tpu7x:2x2x1
jax: 0.10.0
libtpu: 0.0.40
codegen_flags: <defaults>
</compile_context>

<pallas_src>
import functools

import jax
import jax.numpy as jnp
from jax.experimental import pallas as pl
from jax.experimental.pallas import tpu as pltpu

BN_EPS = 1e-5
LRELU_SLOPE = 0.2
_VMEM_LIMIT = 48 * 1024 * 1024  # headroom under v7x's 64 MiB physical VMEM


# ----------------------------------------------------------------------------
# Pallas kernels
# ----------------------------------------------------------------------------
def conv_stats_kernel(p_ref, w_ref, y_ref, sum_ref, ssq_ref):
    """Pass 1: conv-as-matmul (bf16 in, f32 acc) + per-channel moment accumulation.

    p_ref:   (tm, K)  bf16 im2col patch tile
    w_ref:   (K, C)   bf16 weight matrix (resident across the grid)
    y_ref:   (tm, C)  bf16 pre-BN activations (written per tile)
    sum_ref: (1, C)   f32 running sum   (VMEM-resident accumulator across M tiles)
    ssq_ref: (1, C)   f32 running sumsq (VMEM-resident accumulator across M tiles)
    """
    @pl.when(pl.program_id(0) == 0)
    def _():
        sum_ref[...] = jnp.zeros_like(sum_ref)
        ssq_ref[...] = jnp.zeros_like(ssq_ref)

    y = jnp.dot(p_ref[...], w_ref[...], preferred_element_type=jnp.float32)
    y_ref[...] = y.astype(y_ref.dtype)
    sum_ref[...] += jnp.sum(y, axis=0, keepdims=True)
    ssq_ref[...] += jnp.sum(y * y, axis=0, keepdims=True)


def bn_lrelu_kernel(y_ref, scale_ref, shift_ref, o_ref):
    """Pass 2: fused BN affine (precomputed scale/shift) + LeakyReLU(0.2).

    All refs are the lane-packed (rows, 128) view; scale/shift are channel
    vectors tiled to the packed width, so this is a pure FMA + select pass.
    """
    z = y_ref[...].astype(jnp.float32) * scale_ref[...] + shift_ref[...]
    o_ref[...] = jnp.where(z > 0.0, z, LRELU_SLOPE * z).astype(o_ref.dtype)


def heads_sigmoid_kernel(p_ref, w_ref, o_ref):
    """Both 4x4 valid-conv heads as one (M, K) @ (K, 2) matmul + sigmoid."""
    y = jnp.dot(p_ref[...], w_ref[...], preferred_element_type=jnp.float32)
    # sigmoid = 1 / (1 + exp(-y)); exp and approx reciprocal both ride the EUP slot.
    o_ref[...] = pl.reciprocal(1.0 + jnp.exp(-y), approx=True)


# ----------------------------------------------------------------------------
# pallas_call wrappers
# ----------------------------------------------------------------------------
def _tile_target():
    """M-tile target (rows). Halved on v7x (64 MiB VMEM/TC) and on v5e (small
    scoped VMEM, 128-wide MXU); 1024 on v6e."""
    try:
        kind = jax.devices()[0].device_kind.lower()
    except Exception:
        return 512
    if "v7" in kind or "v5" in kind:
        return 512
    return 1024


def _pick_tile(m, target):
    """Largest divisor of m <= target, preferring multiples of 16 (bf16 sublane
    tiling), then multiples of 8, else m itself (full-extent block)."""
    t = min(target, m)
    best8 = None
    for cand in range(t, 0, -1):
        if m % cand:
            continue
        if cand % 16 == 0:
            return cand
        if best8 is None and cand % 8 == 0:
            best8 = cand
    return best8 if best8 is not None else m


def _pack_factor(m, c):
    """Row-pack factor r so that r*c == 128 lanes (free row-major re-view)."""
    if c >= 128 or 128 % c != 0:
        return 1
    r = 128 // c
    while r > 1 and m % r != 0:
        r //= 2
    return r


def conv_stats(patches, w_mat, tm):
    M, K = patches.shape
    C = w_mat.shape[1]
    return pl.pallas_call(
        conv_stats_kernel,
        out_shape=(
            jax.ShapeDtypeStruct((M, C), jnp.bfloat16),
            jax.ShapeDtypeStruct((1, C), jnp.float32),
            jax.ShapeDtypeStruct((1, C), jnp.float32),
        ),
        grid=(M // tm,),
        in_specs=[
            pl.BlockSpec((tm, K), lambda i: (i, 0)),
            pl.BlockSpec((K, C), lambda i: (0, 0)),
        ],
        out_specs=(
            pl.BlockSpec((tm, C), lambda i: (i, 0)),
            pl.BlockSpec((1, C), lambda i: (0, 0)),   # resident accumulator
            pl.BlockSpec((1, C), lambda i: (0, 0)),   # resident accumulator
        ),
        compiler_params=pltpu.CompilerParams(
            dimension_semantics=("arbitrary",),       # stats carried across M tiles
            vmem_limit_bytes=_VMEM_LIMIT,
        ),
        cost_estimate=pl.CostEstimate(
            flops=2 * M * K * C,
            transcendentals=0,
            bytes_accessed=2 * M * K + 2 * K * C + 2 * M * C + 8 * C,
        ),
    )(patches, w_mat)


def bn_lrelu(y_packed, scale_packed, shift_packed, tm, out_dtype=jnp.bfloat16):
    Mp, W = y_packed.shape
    return pl.pallas_call(
        bn_lrelu_kernel,
        out_shape=jax.ShapeDtypeStruct((Mp, W), out_dtype),
        grid=(Mp // tm,),
        in_specs=[
            pl.BlockSpec((tm, W), lambda i: (i, 0)),
            pl.BlockSpec((1, W), lambda i: (0, 0)),
            pl.BlockSpec((1, W), lambda i: (0, 0)),
        ],
        out_specs=pl.BlockSpec((tm, W), lambda i: (i, 0)),
        compiler_params=pltpu.CompilerParams(
            dimension_semantics=("parallel",),        # independent row tiles
            vmem_limit_bytes=_VMEM_LIMIT,
        ),
        cost_estimate=pl.CostEstimate(
            flops=4 * Mp * W,
            transcendentals=0,
            bytes_accessed=2 * Mp * W + 2 * Mp * W + 8 * W,
        ),
    )(y_packed, scale_packed, shift_packed)


def heads_sigmoid(patches, w_mat):
    M, K = patches.shape
    C = w_mat.shape[1]  # = 2 (dis, aux)
    return pl.pallas_call(
        heads_sigmoid_kernel,
        out_shape=jax.ShapeDtypeStruct((M, C), jnp.float32),
        grid=(1,),
        in_specs=[
            pl.BlockSpec((M, K), lambda i: (0, 0)),
            pl.BlockSpec((K, C), lambda i: (0, 0)),
        ],
        out_specs=pl.BlockSpec((M, C), lambda i: (0, 0)),
        compiler_params=pltpu.CompilerParams(
            dimension_semantics=("arbitrary",),
            vmem_limit_bytes=_VMEM_LIMIT,
        ),
        cost_estimate=pl.CostEstimate(
            flops=2 * M * K * C,
            transcendentals=M * C,
            bytes_accessed=2 * M * K + 2 * K * C + 4 * M * C,
        ),
    )(patches, w_mat)


# ----------------------------------------------------------------------------
# Glue: NHWC im2col and weight reshape (activations never go back to NCHW)
# ----------------------------------------------------------------------------
def im2col_nhwc(x, k, stride, pad):
    """x: (N, H, W, C) -> patches (N*Ho*Wo, k*k*C); column order = (kh, kw, C)."""
    # TODO(synk): fold this k*k gather into the matmul kernel via shifted strided
    # BlockSpecs so the 4x-expanded patch matrix is never materialized in HBM.
    n, h, w, c = x.shape
    xp = jnp.pad(x, ((0, 0), (pad, pad), (pad, pad), (0, 0)))
    ho = (h + 2 * pad - k) // stride + 1
    wo = (w + 2 * pad - k) // stride + 1
    cols = []
    for i in range(k):
        for j in range(k):
            cols.append(xp[:, i:i + stride * ho:stride, j:j + stride * wo:stride, :])
    p = jnp.stack(cols, axis=3)                      # (N, Ho, Wo, k*k, C)
    return p.reshape(n * ho * wo, k * k * c), (n, ho, wo)


def weight_to_matrix(w):
    """PyTorch conv weight (Cout, Cin, kh, kw) -> (kh*kw*Cin, Cout), matching
    the (kh, kw, C) im2col column order above."""
    cout = w.shape[0]
    return jnp.transpose(w, (2, 3, 1, 0)).reshape(-1, cout)


def pad_k_to_lanes(patches, w_mat, mult=128):
    """Zero-pad the contraction axis to a multiple of 128 (lane-dense loads);
    matching zero rows on the weight keep the result exact."""
    k = patches.shape[1]
    kp = -(-k // mult) * mult
    if kp != k:
        patches = jnp.pad(patches, ((0, 0), (0, kp - k)))
        w_mat = jnp.pad(w_mat, ((0, kp - k), (0, 0)))
    return patches, w_mat


# ----------------------------------------------------------------------------
# Full forward pass
# ----------------------------------------------------------------------------
def ac_discriminator_forward(x, params):
    """x: (N, 3, 64, 64) f32 NCHW -> (out_dis, out_aux), each (N, 1, 1, 1)."""
    tm_target = _tile_target()
    # single layout change; everything downstream stays NHWC / (M, C), bf16.
    h = jnp.transpose(x, (0, 2, 3, 1)).astype(jnp.bfloat16)

    for (w, g, b) in params["main"]:
        patches, (n, ho, wo) = im2col_nhwc(h, k=4, stride=2, pad=1)
        w_mat = weight_to_matrix(w)
        patches, w_mat = pad_k_to_lanes(patches, w_mat)
        patches = patches.astype(jnp.bfloat16)
        w_mat = w_mat.astype(jnp.bfloat16)

        M = patches.shape[0]
        C = w_mat.shape[1]
        tm1 = _pick_tile(M, tm_target)
        y, s, ss = conv_stats(patches, w_mat, tm1)           # pass 1 (MXU + moments)

        # Finalize BatchNorm batch statistics (biased var, eps=1e-5) once on the
        # tiny (1, C) vectors; pass only fused scale/shift to the memory-bound pass.
        mean = s * (1.0 / M)
        var = jnp.maximum(ss * (1.0 / M) - mean * mean, 0.0)
        scale = g.reshape(1, C).astype(jnp.float32) * jax.lax.rsqrt(var + BN_EPS)
        shift = b.reshape(1, C).astype(jnp.float32) - mean * scale

        # Lane-pack the (M, C) intermediate to (M//r, r*C == 128): free re-view,
        # makes pass-2 loads/stores unmasked even for narrow early-layer channels.
        r = _pack_factor(M, C)
        y_packed = y.reshape(M // r, r * C)
        scale_p = jnp.tile(scale, (1, r))
        shift_p = jnp.tile(shift, (1, r))
        tm2 = _pick_tile(M // r, tm_target)
        out = bn_lrelu(y_packed, scale_p, shift_p, tm2)      # pass 2 (normalize)
        h = out.reshape(n, ho, wo, C)                        # zero-cost, stays NHWC

    # heads: k=4, stride=1, pad=0 over the 4x4 map -> 1x1 output per head.
    n = h.shape[0]
    assert h.shape[1] == 4 and h.shape[2] == 4, "ACDiscriminator expects 64x64 input"
    patches = h.reshape(n, 4 * 4 * h.shape[3])               # (kh, kw, C) order
    w_heads = jnp.concatenate(
        [weight_to_matrix(params["out_dis_w"]), weight_to_matrix(params["out_aux_w"])],
        axis=1,                                              # (K, 2)
    )
    patches, w_heads = pad_k_to_lanes(patches, w_heads)
    out = heads_sigmoid(patches.astype(jnp.bfloat16), w_heads.astype(jnp.bfloat16))
    out_dis = out[:, 0].reshape(n, 1, 1, 1)
    out_aux = out[:, 1].reshape(n, 1, 1, 1)
    return out_dis, out_aux


def init_params(key, ndf):
    """Deterministic DCGAN-style init (conv ~ N(0, 0.02), BN gamma ~ N(1, 0.02))."""
    chans = [(3, ndf), (ndf, 2 * ndf), (2 * ndf, 4 * ndf), (4 * ndf, 8 * ndf)]
    main = []
    for cin, cout in chans:
        key, kw, kg, kb = jax.random.split(key, 4)
        w = 0.02 * jax.random.normal(kw, (cout, cin, 4, 4), jnp.float32)
        g = 1.0 + 0.02 * jax.random.normal(kg, (cout,), jnp.float32)
        b = 0.01 * jax.random.normal(kb, (cout,), jnp.float32)
        main.append((w, g, b))
    key, kd, ka = jax.random.split(key, 3)
    out_dis_w = 0.02 * jax.random.normal(kd, (1, 8 * ndf, 4, 4), jnp.float32)
    out_aux_w = 0.02 * jax.random.normal(ka, (1, 8 * ndf, 4, 4), jnp.float32)
    return {"main": main, "out_dis_w": out_dis_w, "out_aux_w": out_aux_w}


if __name__ == "__main__":
    ndf = 16          # small ndf for a quick synthetic run (module default is 64)
    batch = 2
    key = jax.random.PRNGKey(0)
    key, kx = jax.random.split(key)
    # 64x64 spatial input is required so the final 4x4 valid conv reduces to 1x1.
    x = jax.random.normal(kx, (batch, 3, 64, 64), jnp.float32)  # NCHW like PyTorch

    params = init_params(key, ndf)

    fwd = jax.jit(functools.partial(ac_discriminator_forward, params=params))
    out_dis, out_aux = fwd(x)
    jax.block_until_ready((out_dis, out_aux))

    assert out_dis.shape == (batch, 1, 1, 1), out_dis.shape
    assert out_aux.shape == (batch, 1, 1, 1), out_aux.shape
    for y in (out_dis, out_aux):
        assert bool(jnp.all(jnp.isfinite(y)))
        assert bool(jnp.all((y > 0) & (y < 1)))
    print("KERNEL_OK")
</pallas_src>

<mosaic_0001>
module attributes {stable_mosaic.version = 11 : i64} {
  func.func @conv_stats_kernel(%arg0: i32, %arg1: memref<1024x128xbf16, #tpu.memory_space<vmem>>, %arg2: memref<128x16xbf16, #tpu.memory_space<vmem>>, %arg3: memref<1024x16xbf16, #tpu.memory_space<vmem>>, %arg4: memref<1x16xf32, #tpu.memory_space<vmem>>, %arg5: memref<1x16xf32, #tpu.memory_space<vmem>>) attributes {dimension_semantics = [#tpu.dimension_semantics<arbitrary>], iteration_bounds = array<i64: 2>, scalar_prefetch = 0 : i64, scratch_operands = 0 : i64, tpu.core_type = #tpu.core_type<tc>, window_params = [{transform_indices = @transform_0, window_bounds = array<i64: 1024, 128>}, {pipeline_mode = #tpu.pipeline_mode<synchronous>, transform_indices = @transform_1, window_bounds = array<i64: 128, 16>}, {transform_indices = @transform_2, window_bounds = array<i64: 1024, 16>}, {pipeline_mode = #tpu.pipeline_mode<synchronous>, transform_indices = @transform_3, window_bounds = array<i64: 1, 16>}, {pipeline_mode = #tpu.pipeline_mode<synchronous>, transform_indices = @transform_4, window_bounds = array<i64: 1, 16>}]} {
    %c0_i32 = arith.constant 0 : i32
    %0 = arith.cmpi eq, %arg0, %c0_i32 : i32
    %1 = arith.extui %0 : i1 to i32
    %c0_i32_0 = arith.constant 0 : i32
    %2 = arith.cmpi ne, %1, %c0_i32_0 : i32
    scf.if %2 {
      %cst_16 = arith.constant 0.000000e+00 : f32
      %19 = vector.broadcast %cst_16 : f32 to vector<1x16xf32>
      %c0_17 = arith.constant 0 : index
      %c0_18 = arith.constant 0 : index
      %20 = vector.load %arg4[%c0_17, %c0_18] : memref<1x16xf32, #tpu.memory_space<vmem>>, vector<1x16xf32>
      tpu.vector_store %arg4[%c0_17, %c0_18], %19 {strides = array<i32>} : memref<1x16xf32, #tpu.memory_space<vmem>>, vector<1x16xf32>,
      %cst_19 = arith.constant 0.000000e+00 : f32
      %21 = vector.broadcast %cst_19 : f32 to vector<1x16xf32>
      %c0_20 = arith.constant 0 : index
      %c0_21 = arith.constant 0 : index
      %22 = vector.load %arg5[%c0_20, %c0_21] : memref<1x16xf32, #tpu.memory_space<vmem>>, vector<1x16xf32>
      tpu.vector_store %arg5[%c0_20, %c0_21], %21 {strides = array<i32>} : memref<1x16xf32, #tpu.memory_space<vmem>>, vector<1x16xf32>,
    } else {
    }
    %c0 = arith.constant 0 : index
    %c0_1 = arith.constant 0 : index
    %3 = vector.load %arg1[%c0, %c0_1] : memref<1024x128xbf16, #tpu.memory_space<vmem>>, vector<1024x128xbf16>
    %c0_2 = arith.constant 0 : index
    %c0_3 = arith.constant 0 : index
    %4 = vector.load %arg2[%c0_2, %c0_3] : memref<128x16xbf16, #tpu.memory_space<vmem>>, vector<128x16xbf16>
    %cst = arith.constant dense<0.000000e+00> : vector<1024x16xf32>
    %5 = tpu.matmul %3, %4, %cst {dimension_numbers = #tpu.dot_dimension_numbers<[1], [0], [0], [1], [0, 0, 1, 1], [], []>} : vector<1024x128xbf16>, vector<128x16xbf16>, vector<1024x16xf32> -> vector<1024x16xf32>
    %6 = arith.truncf %5 : vector<1024x16xf32> to vector<1024x16xbf16>
    %c0_4 = arith.constant 0 : index
    %c0_5 = arith.constant 0 : index
    %7 = vector.load %arg3[%c0_4, %c0_5] : memref<1024x16xbf16, #tpu.memory_space<vmem>>, vector<1024x16xbf16>
    tpu.vector_store %arg3[%c0_4, %c0_5], %6 {strides = array<i32>} : memref<1024x16xbf16, #tpu.memory_space<vmem>>, vector<1024x16xbf16>,
    %c0_6 = arith.constant 0 : index
    %c0_7 = arith.constant 0 : index
    %8 = vector.load %arg4[%c0_6, %c0_7] : memref<1x16xf32, #tpu.memory_space<vmem>>, vector<1x16xf32>
    %cst_8 = arith.constant dense<0.000000e+00> : vector<16xf32>
    %9 = vector.multi_reduction <add>, %5, %cst_8 [0] : vector<1024x16xf32> to vector<16xf32>
    %10 = vector.shape_cast %9 : vector<16xf32> to vector<1x16xf32>
    %11 = arith.addf %8, %10 : vector<1x16xf32>
    %c0_9 = arith.constant 0 : index
    %c0_10 = arith.constant 0 : index
    %12 = vector.load %arg4[%c0_9, %c0_10] : memref<1x16xf32, #tpu.memory_space<vmem>>, vector<1x16xf32>
    tpu.vector_store %arg4[%c0_9, %c0_10], %11 {strides = array<i32>} : memref<1x16xf32, #tpu.memory_space<vmem>>, vector<1x16xf32>,
    %c0_11 = arith.constant 0 : index
    %c0_12 = arith.constant 0 : index
    %13 = vector.load %arg5[%c0_11, %c0_12] : memref<1x16xf32, #tpu.memory_space<vmem>>, vector<1x16xf32>
    %14 = arith.mulf %5, %5 : vector<1024x16xf32>
    %cst_13 = arith.constant dense<0.000000e+00> : vector<16xf32>
    %15 = vector.multi_reduction <add>, %14, %cst_13 [0] : vector<1024x16xf32> to vector<16xf32>
    %16 = vector.shape_cast %15 : vector<16xf32> to vector<1x16xf32>
    %17 = arith.addf %13, %16 : vector<1x16xf32>
    %c0_14 = arith.constant 0 : index
    %c0_15 = arith.constant 0 : index
    %18 = vector.load %arg5[%c0_14, %c0_15] : memref<1x16xf32, #tpu.memory_space<vmem>>, vector<1x16xf32>
    tpu.vector_store %arg5[%c0_14, %c0_15], %17 {strides = array<i32>} : memref<1x16xf32, #tpu.memory_space<vmem>>, vector<1x16xf32>,
    return
  }
  func.func @transform_0(%arg0: i32) -> (i32, i32) {
    %c0_i32 = arith.constant 0 : i32
    %c0_i32_0 = arith.constant 0 : i32
    return %arg0, %c0_i32 : i32, i32
  }
  func.func @transform_1(%arg0: i32) -> (i32, i32) {
    %c0_i32 = arith.constant 0 : i32
    %c0_i32_0 = arith.constant 0 : i32
    %c0_i32_1 = arith.constant 0 : i32
    return %c0_i32, %c0_i32_0 : i32, i32
  }
  func.func @transform_2(%arg0: i32) -> (i32, i32) {
    %c0_i32 = arith.constant 0 : i32
    %c0_i32_0 = arith.constant 0 : i32
    return %arg0, %c0_i32 : i32, i32
  }
  func.func @transform_3(%arg0: i32) -> (i32, i32) {
    %c0_i32 = arith.constant 0 : i32
    %c0_i32_0 = arith.constant 0 : i32
    %c0_i32_1 = arith.constant 0 : i32
    return %c0_i32, %c0_i32_0 : i32, i32
  }
  func.func @transform_4(%arg0: i32) -> (i32, i32) {
    %c0_i32 = arith.constant 0 : i32
    %c0_i32_0 = arith.constant 0 : i32
    %c0_i32_1 = arith.constant 0 : i32
    return %c0_i32, %c0_i32_0 : i32, i32
  }
}

module attributes {stable_mosaic.version = 11 : i64} {
  func.func @bn_lrelu_kernel(%arg0: i32, %arg1: memref<256x128xbf16, #tpu.memory_space<vmem>>, %arg2: memref<1x128xf32, #tpu.memory_space<vmem>>, %arg3: memref<1x128xf32, #tpu.memory_space<vmem>>, %arg4: memref<256x128xbf16, #tpu.memory_space<vmem>>) attributes {dimension_semantics = [#tpu.dimension_semantics<parallel>], iteration_bounds = array<i64: 1>, scalar_prefetch = 0 : i64, scratch_operands = 0 : i64, tpu.core_type = #tpu.core_type<tc>, window_params = [{transform_indices = @transform_0, window_bounds = array<i64: 256, 128>}, {pipeline_mode = #tpu.pipeline_mode<synchronous>, transform_indices = @transform_1, window_bounds = array<i64: 1, 128>}, {pipeline_mode = #tpu.pipeline_mode<synchronous>, transform_indices = @transform_2, window_bounds = array<i64: 1, 128>}, {transform_indices = @transform_3, window_bounds = array<i64: 256, 128>}]} {
    %c0 = arith.constant 0 : index
    %c0_0 = arith.constant 0 : index
    %0 = vector.load %arg1[%c0, %c0_0] : memref<256x128xbf16, #tpu.memory_space<vmem>>, vector<256x128xbf16>
    %1 = arith.extf %0 : vector<256x128xbf16> to vector<256x128xf32>
    %c0_1 = arith.constant 0 : index
    %c0_2 = arith.constant 0 : index
    %2 = vector.load %arg2[%c0_1, %c0_2] : memref<1x128xf32, #tpu.memory_space<vmem>>, vector<1x128xf32>
    %3 = vector.broadcast %2 : vector<1x128xf32> to vector<256x128xf32>
    %4 = arith.mulf %1, %3 : vector<256x128xf32>
    %c0_3 = arith.constant 0 : index
    %c0_4 = arith.constant 0 : index
    %5 = vector.load %arg3[%c0_3, %c0_4] : memref<1x128xf32, #tpu.memory_space<vmem>>, vector<1x128xf32>
    %6 = vector.broadcast %5 : vector<1x128xf32> to vector<256x128xf32>
    %7 = arith.addf %4, %6 : vector<256x128xf32>
    %cst = arith.constant 0.000000e+00 : f32
    %8 = vector.broadcast %cst : f32 to vector<256x128xf32>
    %9 = arith.cmpf ogt, %7, %8 : vector<256x128xf32>
    %cst_5 = arith.constant 2.000000e-01 : f32
    %10 = vector.broadcast %cst_5 : f32 to vector<256x128xf32>
    %11 = arith.mulf %10, %7 : vector<256x128xf32>
    %12 = arith.select %9, %7, %11 : vector<256x128xi1>, vector<256x128xf32>
    %13 = arith.truncf %12 : vector<256x128xf32> to vector<256x128xbf16>
    %c0_6 = arith.constant 0 : index
    %c0_7 = arith.constant 0 : index
    %14 = vector.load %arg4[%c0_6, %c0_7] : memref<256x128xbf16, #tpu.memory_space<vmem>>, vector<256x128xbf16>
    tpu.vector_store %arg4[%c0_6, %c0_7], %13 {strides = array<i32>} : memref<256x128xbf16, #tpu.memory_space<vmem>>, vector<256x128xbf16>,
    return
  }
  func.func @transform_0(%arg0: i32) -> (i32, i32) {
    %c0_i32 = arith.constant 0 : i32
    %c0_i32_0 = arith.constant 0 : i32
    return %arg0, %c0_i32 : i32, i32
  }
  func.func @transform_1(%arg0: i32) -> (i32, i32) {
    %c0_i32 = arith.constant 0 : i32
    %c0_i32_0 = arith.constant 0 : i32
    %c0_i32_1 = arith.constant 0 : i32
    return %c0_i32, %c0_i32_0 : i32, i32
  }
  func.func @transform_2(%arg0: i32) -> (i32, i32) {
    %c0_i32 = arith.constant 0 : i32
    %c0_i32_0 = arith.constant 0 : i32
    %c0_i32_1 = arith.constant 0 : i32
    return %c0_i32, %c0_i32_0 : i32, i32
  }
  func.func @transform_3(%arg0: i32) -> (i32, i32) {
    %c0_i32 = arith.constant 0 : i32
    %c0_i32_0 = arith.constant 0 : i32
    return %arg0, %c0_i32 : i32, i32
  }
}

module attributes {stable_mosaic.version = 11 : i64} {
  func.func @conv_stats_kernel(%arg0: i32, %arg1: memref<512x256xbf16, #tpu.memory_space<vmem>>, %arg2: memref<256x32xbf16, #tpu.memory_space<vmem>>, %arg3: memref<512x32xbf16, #tpu.memory_space<vmem>>, %arg4: memref<1x32xf32, #tpu.memory_space<vmem>>, %arg5: memref<1x32xf32, #tpu.memory_space<vmem>>) attributes {dimension_semantics = [#tpu.dimension_semantics<arbitrary>], iteration_bounds = array<i64: 1>, scalar_prefetch = 0 : i64, scratch_operands = 0 : i64, tpu.core_type = #tpu.core_type<tc>, window_params = [{transform_indices = @transform_0, window_bounds = array<i64: 512, 256>}, {pipeline_mode = #tpu.pipeline_mode<synchronous>, transform_indices = @transform_1, window_bounds = array<i64: 256, 32>}, {transform_indices = @transform_2, window_bounds = array<i64: 512, 32>}, {pipeline_mode = #tpu.pipeline_mode<synchronous>, transform_indices = @transform_3, window_bounds = array<i64: 1, 32>}, {pipeline_mode = #tpu.pipeline_mode<synchronous>, transform_indices = @transform_4, window_bounds = array<i64: 1, 32>}]} {
    %c0_i32 = arith.constant 0 : i32
    %0 = arith.cmpi eq, %arg0, %c0_i32 : i32
    %1 = arith.extui %0 : i1 to i32
    %c0_i32_0 = arith.constant 0 : i32
    %2 = arith.cmpi ne, %1, %c0_i32_0 : i32
    scf.if %2 {
      %cst_16 = arith.constant 0.000000e+00 : f32
      %19 = vector.broadcast %cst_16 : f32 to vector<1x32xf32>
      %c0_17 = arith.constant 0 : index
      %c0_18 = arith.constant 0 : index
      %20 = vector.load %arg4[%c0_17, %c0_18] : memref<1x32xf32, #tpu.memory_space<vmem>>, vector<1x32xf32>
      tpu.vector_store %arg4[%c0_17, %c0_18], %19 {strides = array<i32>} : memref<1x32xf32, #tpu.memory_space<vmem>>, vector<1x32xf32>,
      %cst_19 = arith.constant 0.000000e+00 : f32
      %21 = vector.broadcast %cst_19 : f32 to vector<1x32xf32>
      %c0_20 = arith.constant 0 : index
      %c0_21 = arith.constant 0 : index
      %22 = vector.load %arg5[%c0_20, %c0_21] : memref<1x32xf32, #tpu.memory_space<vmem>>, vector<1x32xf32>
      tpu.vector_store %arg5[%c0_20, %c0_21], %21 {strides = array<i32>} : memref<1x32xf32, #tpu.memory_space<vmem>>, vector<1x32xf32>,
    } else {
    }
    %c0 = arith.constant 0 : index
    %c0_1 = arith.constant 0 : index
    %3 = vector.load %arg1[%c0, %c0_1] : memref<512x256xbf16, #tpu.memory_space<vmem>>, vector<512x256xbf16>
    %c0_2 = arith.constant 0 : index
    %c0_3 = arith.constant 0 : index
    %4 = vector.load %arg2[%c0_2, %c0_3] : memref<256x32xbf16, #tpu.memory_space<vmem>>, vector<256x32xbf16>
    %cst = arith.constant dense<0.000000e+00> : vector<512x32xf32>
    %5 = tpu.matmul %3, %4, %cst {dimension_numbers = #tpu.dot_dimension_numbers<[1], [0], [0], [1], [0, 0, 1, 1], [], []>} : vector<512x256xbf16>, vector<256x32xbf16>, vector<512x32xf32> -> vector<512x32xf32>
    %6 = arith.truncf %5 : vector<512x32xf32> to vector<512x32xbf16>
    %c0_4 = arith.constant 0 : index
    %c0_5 = arith.constant 0 : index
    %7 = vector.load %arg3[%c0_4, %c0_5] : memref<512x32xbf16, #tpu.memory_space<vmem>>, vector<512x32xbf16>
    tpu.vector_store %arg3[%c0_4, %c0_5], %6 {strides = array<i32>} : memref<512x32xbf16, #tpu.memory_space<vmem>>, vector<512x32xbf16>,
    %c0_6 = arith.constant 0 : index
    %c0_7 = arith.constant 0 : index
    %8 = vector.load %arg4[%c0_6, %c0_7] : memref<1x32xf32, #tpu.memory_space<vmem>>, vector<1x32xf32>
    %cst_8 = arith.constant dense<0.000000e+00> : vector<32xf32>
    %9 = vector.multi_reduction <add>, %5, %cst_8 [0] : vector<512x32xf32> to vector<32xf32>
    %10 = vector.shape_cast %9 : vector<32xf32> to vector<1x32xf32>
    %11 = arith.addf %8, %10 : vector<1x32xf32>
    %c0_9 = arith.constant 0 : index
    %c0_10 = arith.constant 0 : index
    %12 = vector.load %arg4[%c0_9, %c0_10] : memref<1x32xf32, #tpu.memory_space<vmem>>, vector<1x32xf32>
    tpu.vector_store %arg4[%c0_9, %c0_10], %11 {strides = array<i32>} : memref<1x32xf32, #tpu.memory_space<vmem>>, vector<1x32xf32>,
    %c0_11 = arith.constant 0 : index
    %c0_12 = arith.constant 0 : index
    %13 = vector.load %arg5[%c0_11, %c0_12] : memref<1x32xf32, #tpu.memory_space<vmem>>, vector<1x32xf32>
    %14 = arith.mulf %5, %5 : vector<512x32xf32>
    %cst_13 = arith.constant dense<0.000000e+00> : vector<32xf32>
    %15 = vector.multi_reduction <add>, %14, %cst_13 [0] : vector<512x32xf32> to vector<32xf32>
    %16 = vector.shape_cast %15 : vector<32xf32> to vector<1x32xf32>
    %17 = arith.addf %13, %16 : vector<1x32xf32>
    %c0_14 = arith.constant 0 : index
    %c0_15 = arith.constant 0 : index
    %18 = vector.load %arg5[%c0_14, %c0_15] : memref<1x32xf32, #tpu.memory_space<vmem>>, vector<1x32xf32>
    tpu.vector_store %arg5[%c0_14, %c0_15], %17 {strides = array<i32>} : memref<1x32xf32, #tpu.memory_space<vmem>>, vector<1x32xf32>,
    return
  }
  func.func @transform_0(%arg0: i32) -> (i32, i32) {
    %c0_i32 = arith.constant 0 : i32
    %c0_i32_0 = arith.constant 0 : i32
    return %arg0, %c0_i32 : i32, i32
  }
  func.func @transform_1(%arg0: i32) -> (i32, i32) {
    %c0_i32 = arith.constant 0 : i32
    %c0_i32_0 = arith.constant 0 : i32
    %c0_i32_1 = arith.constant 0 : i32
    return %c0_i32, %c0_i32_0 : i32, i32
  }
  func.func @transform_2(%arg0: i32) -> (i32, i32) {
    %c0_i32 = arith.constant 0 : i32
    %c0_i32_0 = arith.constant 0 : i32
    return %arg0, %c0_i32 : i32, i32
  }
  func.func @transform_3(%arg0: i32) -> (i32, i32) {
    %c0_i32 = arith.constant 0 : i32
    %c0_i32_0 = arith.constant 0 : i32
    %c0_i32_1 = arith.constant 0 : i32
    return %c0_i32, %c0_i32_0 : i32, i32
  }
  func.func @transform_4(%arg0: i32) -> (i32, i32) {
    %c0_i32 = arith.constant 0 : i32
    %c0_i32_0 = arith.constant 0 : i32
    %c0_i32_1 = arith.constant 0 : i32
    return %c0_i32, %c0_i32_0 : i32, i32
  }
}

module attributes {stable_mosaic.version = 11 : i64} {
  func.func @bn_lrelu_kernel(%arg0: i32, %arg1: memref<128x128xbf16, #tpu.memory_space<vmem>>, %arg2: memref<1x128xf32, #tpu.memory_space<vmem>>, %arg3: memref<1x128xf32, #tpu.memory_space<vmem>>, %arg4: memref<128x128xbf16, #tpu.memory_space<vmem>>) attributes {dimension_semantics = [#tpu.dimension_semantics<parallel>], iteration_bounds = array<i64: 1>, scalar_prefetch = 0 : i64, scratch_operands = 0 : i64, tpu.core_type = #tpu.core_type<tc>, window_params = [{transform_indices = @transform_0, window_bounds = array<i64: 128, 128>}, {pipeline_mode = #tpu.pipeline_mode<synchronous>, transform_indices = @transform_1, window_bounds = array<i64: 1, 128>}, {pipeline_mode = #tpu.pipeline_mode<synchronous>, transform_indices = @transform_2, window_bounds = array<i64: 1, 128>}, {transform_indices = @transform_3, window_bounds = array<i64: 128, 128>}]} {
    %c0 = arith.constant 0 : index
    %c0_0 = arith.constant 0 : index
    %0 = vector.load %arg1[%c0, %c0_0] : memref<128x128xbf16, #tpu.memory_space<vmem>>, vector<128x128xbf16>
    %1 = arith.extf %0 : vector<128x128xbf16> to vector<128x128xf32>
    %c0_1 = arith.constant 0 : index
    %c0_2 = arith.constant 0 : index
    %2 = vector.load %arg2[%c0_1, %c0_2] : memref<1x128xf32, #tpu.memory_space<vmem>>, vector<1x128xf32>
    %3 = vector.broadcast %2 : vector<1x128xf32> to vector<128x128xf32>
    %4 = arith.mulf %1, %3 : vector<128x128xf32>
    %c0_3 = arith.constant 0 : index
    %c0_4 = arith.constant 0 : index
    %5 = vector.load %arg3[%c0_3, %c0_4] : memref<1x128xf32, #tpu.memory_space<vmem>>, vector<1x128xf32>
    %6 = vector.broadcast %5 : vector<1x128xf32> to vector<128x128xf32>
    %7 = arith.addf %4, %6 : vector<128x128xf32>
    %cst = arith.constant 0.000000e+00 : f32
    %8 = vector.broadcast %cst : f32 to vector<128x128xf32>
    %9 = arith.cmpf ogt, %7, %8 : vector<128x128xf32>
    %cst_5 = arith.constant 2.000000e-01 : f32
    %10 = vector.broadcast %cst_5 : f32 to vector<128x128xf32>
    %11 = arith.mulf %10, %7 : vector<128x128xf32>
    %12 = arith.select %9, %7, %11 : vector<128x128xi1>, vector<128x128xf32>
    %13 = arith.truncf %12 : vector<128x128xf32> to vector<128x128xbf16>
    %c0_6 = arith.constant 0 : index
    %c0_7 = arith.constant 0 : index
    %14 = vector.load %arg4[%c0_6, %c0_7] : memref<128x128xbf16, #tpu.memory_space<vmem>>, vector<128x128xbf16>
    tpu.vector_store %arg4[%c0_6, %c0_7], %13 {strides = array<i32>} : memref<128x128xbf16, #tpu.memory_space<vmem>>, vector<128x128xbf16>,
    return
  }
  func.func @transform_0(%arg0: i32) -> (i32, i32) {
    %c0_i32 = arith.constant 0 : i32
    %c0_i32_0 = arith.constant 0 : i32
    return %arg0, %c0_i32 : i32, i32
  }
  func.func @transform_1(%arg0: i32) -> (i32, i32) {
    %c0_i32 = arith.constant 0 : i32
    %c0_i32_0 = arith.constant 0 : i32
    %c0_i32_1 = arith.constant 0 : i32
    return %c0_i32, %c0_i32_0 : i32, i32
  }
  func.func @transform_2(%arg0: i32) -> (i32, i32) {
    %c0_i32 = arith.constant 0 : i32
    %c0_i32_0 = arith.constant 0 : i32
    %c0_i32_1 = arith.constant 0 : i32
    return %c0_i32, %c0_i32_0 : i32, i32
  }
  func.func @transform_3(%arg0: i32) -> (i32, i32) {
    %c0_i32 = arith.constant 0 : i32
    %c0_i32_0 = arith.constant 0 : i32
    return %arg0, %c0_i32 : i32, i32
  }
}

module attributes {stable_mosaic.version = 11 : i64} {
  func.func @conv_stats_kernel(%arg0: i32, %arg1: memref<128x512xbf16, #tpu.memory_space<vmem>>, %arg2: memref<512x64xbf16, #tpu.memory_space<vmem>>, %arg3: memref<128x64xbf16, #tpu.memory_space<vmem>>, %arg4: memref<1x64xf32, #tpu.memory_space<vmem>>, %arg5: memref<1x64xf32, #tpu.memory_space<vmem>>) attributes {dimension_semantics = [#tpu.dimension_semantics<arbitrary>], iteration_bounds = array<i64: 1>, scalar_prefetch = 0 : i64, scratch_operands = 0 : i64, tpu.core_type = #tpu.core_type<tc>, window_params = [{transform_indices = @transform_0, window_bounds = array<i64: 128, 512>}, {pipeline_mode = #tpu.pipeline_mode<synchronous>, transform_indices = @transform_1, window_bounds = array<i64: 512, 64>}, {transform_indices = @transform_2, window_bounds = array<i64: 128, 64>}, {pipeline_mode = #tpu.pipeline_mode<synchronous>, transform_indices = @transform_3, window_bounds = array<i64: 1, 64>}, {pipeline_mode = #tpu.pipeline_mode<synchronous>, transform_indices = @transform_4, window_bounds = array<i64: 1, 64>}]} {
    %c0_i32 = arith.constant 0 : i32
    %0 = arith.cmpi eq, %arg0, %c0_i32 : i32
    %1 = arith.extui %0 : i1 to i32
    %c0_i32_0 = arith.constant 0 : i32
    %2 = arith.cmpi ne, %1, %c0_i32_0 : i32
    scf.if %2 {
      %cst_16 = arith.constant 0.000000e+00 : f32
      %19 = vector.broadcast %cst_16 : f32 to vector<1x64xf32>
      %c0_17 = arith.constant 0 : index
      %c0_18 = arith.constant 0 : index
      %20 = vector.load %arg4[%c0_17, %c0_18] : memref<1x64xf32, #tpu.memory_space<vmem>>, vector<1x64xf32>
      tpu.vector_store %arg4[%c0_17, %c0_18], %19 {strides = array<i32>} : memref<1x64xf32, #tpu.memory_space<vmem>>, vector<1x64xf32>,
      %cst_19 = arith.constant 0.000000e+00 : f32
      %21 = vector.broadcast %cst_19 : f32 to vector<1x64xf32>
      %c0_20 = arith.constant 0 : index
      %c0_21 = arith.constant 0 : index
      %22 = vector.load %arg5[%c0_20, %c0_21] : memref<1x64xf32, #tpu.memory_space<vmem>>, vector<1x64xf32>
      tpu.vector_store %arg5[%c0_20, %c0_21], %21 {strides = array<i32>} : memref<1x64xf32, #tpu.memory_space<vmem>>, vector<1x64xf32>,
    } else {
    }
    %c0 = arith.constant 0 : index
    %c0_1 = arith.constant 0 : index
    %3 = vector.load %arg1[%c0, %c0_1] : memref<128x512xbf16, #tpu.memory_space<vmem>>, vector<128x512xbf16>
    %c0_2 = arith.constant 0 : index
    %c0_3 = arith.constant 0 : index
    %4 = vector.load %arg2[%c0_2, %c0_3] : memref<512x64xbf16, #tpu.memory_space<vmem>>, vector<512x64xbf16>
    %cst = arith.constant dense<0.000000e+00> : vector<128x64xf32>
    %5 = tpu.matmul %3, %4, %cst {dimension_numbers = #tpu.dot_dimension_numbers<[1], [0], [0], [1], [0, 0, 1, 1], [], []>} : vector<128x512xbf16>, vector<512x64xbf16>, vector<128x64xf32> -> vector<128x64xf32>
    %6 = arith.truncf %5 : vector<128x64xf32> to vector<128x64xbf16>
    %c0_4 = arith.constant 0 : index
    %c0_5 = arith.constant 0 : index
    %7 = vector.load %arg3[%c0_4, %c0_5] : memref<128x64xbf16, #tpu.memory_space<vmem>>, vector<128x64xbf16>
    tpu.vector_store %arg3[%c0_4, %c0_5], %6 {strides = array<i32>} : memref<128x64xbf16, #tpu.memory_space<vmem>>, vector<128x64xbf16>,
    %c0_6 = arith.constant 0 : index
    %c0_7 = arith.constant 0 : index
    %8 = vector.load %arg4[%c0_6, %c0_7] : memref<1x64xf32, #tpu.memory_space<vmem>>, vector<1x64xf32>
    %cst_8 = arith.constant dense<0.000000e+00> : vector<64xf32>
    %9 = vector.multi_reduction <add>, %5, %cst_8 [0] : vector<128x64xf32> to vector<64xf32>
    %10 = vector.shape_cast %9 : vector<64xf32> to vector<1x64xf32>
    %11 = arith.addf %8, %10 : vector<1x64xf32>
    %c0_9 = arith.constant 0 : index
    %c0_10 = arith.constant 0 : index
    %12 = vector.load %arg4[%c0_9, %c0_10] : memref<1x64xf32, #tpu.memory_space<vmem>>, vector<1x64xf32>
    tpu.vector_store %arg4[%c0_9, %c0_10], %11 {strides = array<i32>} : memref<1x64xf32, #tpu.memory_space<vmem>>, vector<1x64xf32>,
    %c0_11 = arith.constant 0 : index
    %c0_12 = arith.constant 0 : index
    %13 = vector.load %arg5[%c0_11, %c0_12] : memref<1x64xf32, #tpu.memory_space<vmem>>, vector<1x64xf32>
    %14 = arith.mulf %5, %5 : vector<128x64xf32>
    %cst_13 = arith.constant dense<0.000000e+00> : vector<64xf32>
    %15 = vector.multi_reduction <add>, %14, %cst_13 [0] : vector<128x64xf32> to vector<64xf32>
    %16 = vector.shape_cast %15 : vector<64xf32> to vector<1x64xf32>
    %17 = arith.addf %13, %16 : vector<1x64xf32>
    %c0_14 = arith.constant 0 : index
    %c0_15 = arith.constant 0 : index
    %18 = vector.load %arg5[%c0_14, %c0_15] : memref<1x64xf32, #tpu.memory_space<vmem>>, vector<1x64xf32>
    tpu.vector_store %arg5[%c0_14, %c0_15], %17 {strides = array<i32>} : memref<1x64xf32, #tpu.memory_space<vmem>>, vector<1x64xf32>,
    return
  }
  func.func @transform_0(%arg0: i32) -> (i32, i32) {
    %c0_i32 = arith.constant 0 : i32
    %c0_i32_0 = arith.constant 0 : i32
    return %arg0, %c0_i32 : i32, i32
  }
  func.func @transform_1(%arg0: i32) -> (i32, i32) {
    %c0_i32 = arith.constant 0 : i32
    %c0_i32_0 = arith.constant 0 : i32
    %c0_i32_1 = arith.constant 0 : i32
    return %c0_i32, %c0_i32_0 : i32, i32
  }
  func.func @transform_2(%arg0: i32) -> (i32, i32) {
    %c0_i32 = arith.constant 0 : i32
    %c0_i32_0 = arith.constant 0 : i32
    return %arg0, %c0_i32 : i32, i32
  }
  func.func @transform_3(%arg0: i32) -> (i32, i32) {
    %c0_i32 = arith.constant 0 : i32
    %c0_i32_0 = arith.constant 0 : i32
    %c0_i32_1 = arith.constant 0 : i32
    return %c0_i32, %c0_i32_0 : i32, i32
  }
  func.func @transform_4(%arg0: i32) -> (i32, i32) {
    %c0_i32 = arith.constant 0 : i32
    %c0_i32_0 = arith.constant 0 : i32
    %c0_i32_1 = arith.constant 0 : i32
    return %c0_i32, %c0_i32_0 : i32, i32
  }
}

module attributes {stable_mosaic.version = 11 : i64} {
  func.func @bn_lrelu_kernel(%arg0: i32, %arg1: memref<64x128xbf16, #tpu.memory_space<vmem>>, %arg2: memref<1x128xf32, #tpu.memory_space<vmem>>, %arg3: memref<1x128xf32, #tpu.memory_space<vmem>>, %arg4: memref<64x128xbf16, #tpu.memory_space<vmem>>) attributes {dimension_semantics = [#tpu.dimension_semantics<parallel>], iteration_bounds = array<i64: 1>, scalar_prefetch = 0 : i64, scratch_operands = 0 : i64, tpu.core_type = #tpu.core_type<tc>, window_params = [{transform_indices = @transform_0, window_bounds = array<i64: 64, 128>}, {pipeline_mode = #tpu.pipeline_mode<synchronous>, transform_indices = @transform_1, window_bounds = array<i64: 1, 128>}, {pipeline_mode = #tpu.pipeline_mode<synchronous>, transform_indices = @transform_2, window_bounds = array<i64: 1, 128>}, {transform_indices = @transform_3, window_bounds = array<i64: 64, 128>}]} {
    %c0 = arith.constant 0 : index
    %c0_0 = arith.constant 0 : index
    %0 = vector.load %arg1[%c0, %c0_0] : memref<64x128xbf16, #tpu.memory_space<vmem>>, vector<64x128xbf16>
    %1 = arith.extf %0 : vector<64x128xbf16> to vector<64x128xf32>
    %c0_1 = arith.constant 0 : index
    %c0_2 = arith.constant 0 : index
    %2 = vector.load %arg2[%c0_1, %c0_2] : memref<1x128xf32, #tpu.memory_space<vmem>>, vector<1x128xf32>
    %3 = vector.broadcast %2 : vector<1x128xf32> to vector<64x128xf32>
    %4 = arith.mulf %1, %3 : vector<64x128xf32>
    %c0_3 = arith.constant 0 : index
    %c0_4 = arith.constant 0 : index
    %5 = vector.load %arg3[%c0_3, %c0_4] : memref<1x128xf32, #tpu.memory_space<vmem>>, vector<1x128xf32>
    %6 = vector.broadcast %5 : vector<1x128xf32> to vector<64x128xf32>
    %7 = arith.addf %4, %6 : vector<64x128xf32>
    %cst = arith.constant 0.000000e+00 : f32
    %8 = vector.broadcast %cst : f32 to vector<64x128xf32>
    %9 = arith.cmpf ogt, %7, %8 : vector<64x128xf32>
    %cst_5 = arith.constant 2.000000e-01 : f32
    %10 = vector.broadcast %cst_5 : f32 to vector<64x128xf32>
    %11 = arith.mulf %10, %7 : vector<64x128xf32>
    %12 = arith.select %9, %7, %11 : vector<64x128xi1>, vector<64x128xf32>
    %13 = arith.truncf %12 : vector<64x128xf32> to vector<64x128xbf16>
    %c0_6 = arith.constant 0 : index
    %c0_7 = arith.constant 0 : index
    %14 = vector.load %arg4[%c0_6, %c0_7] : memref<64x128xbf16, #tpu.memory_space<vmem>>, vector<64x128xbf16>
    tpu.vector_store %arg4[%c0_6, %c0_7], %13 {strides = array<i32>} : memref<64x128xbf16, #tpu.memory_space<vmem>>, vector<64x128xbf16>,
    return
  }
  func.func @transform_0(%arg0: i32) -> (i32, i32) {
    %c0_i32 = arith.constant 0 : i32
    %c0_i32_0 = arith.constant 0 : i32
    return %arg0, %c0_i32 : i32, i32
  }
  func.func @transform_1(%arg0: i32) -> (i32, i32) {
    %c0_i32 = arith.constant 0 : i32
    %c0_i32_0 = arith.constant 0 : i32
    %c0_i32_1 = arith.constant 0 : i32
    return %c0_i32, %c0_i32_0 : i32, i32
  }
  func.func @transform_2(%arg0: i32) -> (i32, i32) {
    %c0_i32 = arith.constant 0 : i32
    %c0_i32_0 = arith.constant 0 : i32
    %c0_i32_1 = arith.constant 0 : i32
    return %c0_i32, %c0_i32_0 : i32, i32
  }
  func.func @transform_3(%arg0: i32) -> (i32, i32) {
    %c0_i32 = arith.constant 0 : i32
    %c0_i32_0 = arith.constant 0 : i32
    return %arg0, %c0_i32 : i32, i32
  }
}

module attributes {stable_mosaic.version = 11 : i64} {
  func.func @bn_lrelu_kernel(%arg0: i32, %arg1: memref<32x128xbf16, #tpu.memory_space<vmem>>, %arg2: memref<1x128xf32, #tpu.memory_space<vmem>>, %arg3: memref<1x128xf32, #tpu.memory_space<vmem>>, %arg4: memref<32x128xbf16, #tpu.memory_space<vmem>>) attributes {dimension_semantics = [#tpu.dimension_semantics<parallel>], iteration_bounds = array<i64: 1>, scalar_prefetch = 0 : i64, scratch_operands = 0 : i64, tpu.core_type = #tpu.core_type<tc>, window_params = [{transform_indices = @transform_0, window_bounds = array<i64: 32, 128>}, {pipeline_mode = #tpu.pipeline_mode<synchronous>, transform_indices = @transform_1, window_bounds = array<i64: 1, 128>}, {pipeline_mode = #tpu.pipeline_mode<synchronous>, transform_indices = @transform_2, window_bounds = array<i64: 1, 128>}, {transform_indices = @transform_3, window_bounds = array<i64: 32, 128>}]} {
    %c0 = arith.constant 0 : index
    %c0_0 = arith.constant 0 : index
    %0 = vector.load %arg1[%c0, %c0_0] : memref<32x128xbf16, #tpu.memory_space<vmem>>, vector<32x128xbf16>
    %1 = arith.extf %0 : vector<32x128xbf16> to vector<32x128xf32>
    %c0_1 = arith.constant 0 : index
    %c0_2 = arith.constant 0 : index
    %2 = vector.load %arg2[%c0_1, %c0_2] : memref<1x128xf32, #tpu.memory_space<vmem>>, vector<1x128xf32>
    %3 = vector.broadcast %2 : vector<1x128xf32> to vector<32x128xf32>
    %4 = arith.mulf %1, %3 : vector<32x128xf32>
    %c0_3 = arith.constant 0 : index
    %c0_4 = arith.constant 0 : index
    %5 = vector.load %arg3[%c0_3, %c0_4] : memref<1x128xf32, #tpu.memory_space<vmem>>, vector<1x128xf32>
    %6 = vector.broadcast %5 : vector<1x128xf32> to vector<32x128xf32>
    %7 = arith.addf %4, %6 : vector<32x128xf32>
    %cst = arith.constant 0.000000e+00 : f32
    %8 = vector.broadcast %cst : f32 to vector<32x128xf32>
    %9 = arith.cmpf ogt, %7, %8 : vector<32x128xf32>
    %cst_5 = arith.constant 2.000000e-01 : f32
    %10 = vector.broadcast %cst_5 : f32 to vector<32x128xf32>
    %11 = arith.mulf %10, %7 : vector<32x128xf32>
    %12 = arith.select %9, %7, %11 : vector<32x128xi1>, vector<32x128xf32>
    %13 = arith.truncf %12 : vector<32x128xf32> to vector<32x128xbf16>
    %c0_6 = arith.constant 0 : index
    %c0_7 = arith.constant 0 : index
    %14 = vector.load %arg4[%c0_6, %c0_7] : memref<32x128xbf16, #tpu.memory_space<vmem>>, vector<32x128xbf16>
    tpu.vector_store %arg4[%c0_6, %c0_7], %13 {strides = array<i32>} : memref<32x128xbf16, #tpu.memory_space<vmem>>, vector<32x128xbf16>,
    return
  }
  func.func @transform_0(%arg0: i32) -> (i32, i32) {
    %c0_i32 = arith.constant 0 : i32
    %c0_i32_0 = arith.constant 0 : i32
    return %arg0, %c0_i32 : i32, i32
  }
  func.func @transform_1(%arg0: i32) -> (i32, i32) {
    %c0_i32 = arith.constant 0 : i32
    %c0_i32_0 = arith.constant 0 : i32
    %c0_i32_1 = arith.constant 0 : i32
    return %c0_i32, %c0_i32_0 : i32, i32
  }
  func.func @transform_2(%arg0: i32) -> (i32, i32) {
    %c0_i32 = arith.constant 0 : i32
    %c0_i32_0 = arith.constant 0 : i32
    %c0_i32_1 = arith.constant 0 : i32
    return %c0_i32, %c0_i32_0 : i32, i32
  }
  func.func @transform_3(%arg0: i32) -> (i32, i32) {
    %c0_i32 = arith.constant 0 : i32
    %c0_i32_0 = arith.constant 0 : i32
    return %arg0, %c0_i32 : i32, i32
  }
}

module attributes {stable_mosaic.version = 11 : i64} {
  func.func @conv_stats_kernel(%arg0: i32, %arg1: memref<32x1024xbf16, #tpu.memory_space<vmem>>, %arg2: memref<1024x128xbf16, #tpu.memory_space<vmem>>, %arg3: memref<32x128xbf16, #tpu.memory_space<vmem>>, %arg4: memref<1x128xf32, #tpu.memory_space<vmem>>, %arg5: memref<1x128xf32, #tpu.memory_space<vmem>>) attributes {dimension_semantics = [#tpu.dimension_semantics<arbitrary>], iteration_bounds = array<i64: 1>, scalar_prefetch = 0 : i64, scratch_operands = 0 : i64, tpu.core_type = #tpu.core_type<tc>, window_params = [{transform_indices = @transform_0, window_bounds = array<i64: 32, 1024>}, {pipeline_mode = #tpu.pipeline_mode<synchronous>, transform_indices = @transform_1, window_bounds = array<i64: 1024, 128>}, {transform_indices = @transform_2, window_bounds = array<i64: 32, 128>}, {pipeline_mode = #tpu.pipeline_mode<synchronous>, transform_indices = @transform_3, window_bounds = array<i64: 1, 128>}, {pipeline_mode = #tpu.pipeline_mode<synchronous>, transform_indices = @transform_4, window_bounds = array<i64: 1, 128>}]} {
    %c0_i32 = arith.constant 0 : i32
    %0 = arith.cmpi eq, %arg0, %c0_i32 : i32
    %1 = arith.extui %0 : i1 to i32
    %c0_i32_0 = arith.constant 0 : i32
    %2 = arith.cmpi ne, %1, %c0_i32_0 : i32
    scf.if %2 {
      %cst_16 = arith.constant 0.000000e+00 : f32
      %19 = vector.broadcast %cst_16 : f32 to vector<1x128xf32>
      %c0_17 = arith.constant 0 : index
      %c0_18 = arith.constant 0 : index
      %20 = vector.load %arg4[%c0_17, %c0_18] : memref<1x128xf32, #tpu.memory_space<vmem>>, vector<1x128xf32>
      tpu.vector_store %arg4[%c0_17, %c0_18], %19 {strides = array<i32>} : memref<1x128xf32, #tpu.memory_space<vmem>>, vector<1x128xf32>,
      %cst_19 = arith.constant 0.000000e+00 : f32
      %21 = vector.broadcast %cst_19 : f32 to vector<1x128xf32>
      %c0_20 = arith.constant 0 : index
      %c0_21 = arith.constant 0 : index
      %22 = vector.load %arg5[%c0_20, %c0_21] : memref<1x128xf32, #tpu.memory_space<vmem>>, vector<1x128xf32>
      tpu.vector_store %arg5[%c0_20, %c0_21], %21 {strides = array<i32>} : memref<1x128xf32, #tpu.memory_space<vmem>>, vector<1x128xf32>,
    } else {
    }
    %c0 = arith.constant 0 : index
    %c0_1 = arith.constant 0 : index
    %3 = vector.load %arg1[%c0, %c0_1] : memref<32x1024xbf16, #tpu.memory_space<vmem>>, vector<32x1024xbf16>
    %c0_2 = arith.constant 0 : index
    %c0_3 = arith.constant 0 : index
    %4 = vector.load %arg2[%c0_2, %c0_3] : memref<1024x128xbf16, #tpu.memory_space<vmem>>, vector<1024x128xbf16>
    %cst = arith.constant dense<0.000000e+00> : vector<32x128xf32>
    %5 = tpu.matmul %3, %4, %cst {dimension_numbers = #tpu.dot_dimension_numbers<[1], [0], [0], [1], [0, 0, 1, 1], [], []>} : vector<32x1024xbf16>, vector<1024x128xbf16>, vector<32x128xf32> -> vector<32x128xf32>
    %6 = arith.truncf %5 : vector<32x128xf32> to vector<32x128xbf16>
    %c0_4 = arith.constant 0 : index
    %c0_5 = arith.constant 0 : index
    %7 = vector.load %arg3[%c0_4, %c0_5] : memref<32x128xbf16, #tpu.memory_space<vmem>>, vector<32x128xbf16>
    tpu.vector_store %arg3[%c0_4, %c0_5], %6 {strides = array<i32>} : memref<32x128xbf16, #tpu.memory_space<vmem>>, vector<32x128xbf16>,
    %c0_6 = arith.constant 0 : index
    %c0_7 = arith.constant 0 : index
    %8 = vector.load %arg4[%c0_6, %c0_7] : memref<1x128xf32, #tpu.memory_space<vmem>>, vector<1x128xf32>
    %cst_8 = arith.constant dense<0.000000e+00> : vector<128xf32>
    %9 = vector.multi_reduction <add>, %5, %cst_8 [0] : vector<32x128xf32> to vector<128xf32>
    %10 = vector.shape_cast %9 : vector<128xf32> to vector<1x128xf32>
    %11 = arith.addf %8, %10 : vector<1x128xf32>
    %c0_9 = arith.constant 0 : index
    %c0_10 = arith.constant 0 : index
    %12 = vector.load %arg4[%c0_9, %c0_10] : memref<1x128xf32, #tpu.memory_space<vmem>>, vector<1x128xf32>
    tpu.vector_store %arg4[%c0_9, %c0_10], %11 {strides = array<i32>} : memref<1x128xf32, #tpu.memory_space<vmem>>, vector<1x128xf32>,
    %c0_11 = arith.constant 0 : index
    %c0_12 = arith.constant 0 : index
    %13 = vector.load %arg5[%c0_11, %c0_12] : memref<1x128xf32, #tpu.memory_space<vmem>>, vector<1x128xf32>
    %14 = arith.mulf %5, %5 : vector<32x128xf32>
    %cst_13 = arith.constant dense<0.000000e+00> : vector<128xf32>
    %15 = vector.multi_reduction <add>, %14, %cst_13 [0] : vector<32x128xf32> to vector<128xf32>
    %16 = vector.shape_cast %15 : vector<128xf32> to vector<1x128xf32>
    %17 = arith.addf %13, %16 : vector<1x128xf32>
    %c0_14 = arith.constant 0 : index
    %c0_15 = arith.constant 0 : index
    %18 = vector.load %arg5[%c0_14, %c0_15] : memref<1x128xf32, #tpu.memory_space<vmem>>, vector<1x128xf32>
    tpu.vector_store %arg5[%c0_14, %c0_15], %17 {strides = array<i32>} : memref<1x128xf32, #tpu.memory_space<vmem>>, vector<1x128xf32>,
    return
  }
  func.func @transform_0(%arg0: i32) -> (i32, i32) {
    %c0_i32 = arith.constant 0 : i32
    %c0_i32_0 = arith.constant 0 : i32
    return %arg0, %c0_i32 : i32, i32
  }
  func.func @transform_1(%arg0: i32) -> (i32, i32) {
    %c0_i32 = arith.constant 0 : i32
    %c0_i32_0 = arith.constant 0 : i32
    %c0_i32_1 = arith.constant 0 : i32
    return %c0_i32, %c0_i32_0 : i32, i32
  }
  func.func @transform_2(%arg0: i32) -> (i32, i32) {
    %c0_i32 = arith.constant 0 : i32
    %c0_i32_0 = arith.constant 0 : i32
    return %arg0, %c0_i32 : i32, i32
  }
  func.func @transform_3(%arg0: i32) -> (i32, i32) {
    %c0_i32 = arith.constant 0 : i32
    %c0_i32_0 = arith.constant 0 : i32
    %c0_i32_1 = arith.constant 0 : i32
    return %c0_i32, %c0_i32_0 : i32, i32
  }
  func.func @transform_4(%arg0: i32) -> (i32, i32) {
    %c0_i32 = arith.constant 0 : i32
    %c0_i32_0 = arith.constant 0 : i32
    %c0_i32_1 = arith.constant 0 : i32
    return %c0_i32, %c0_i32_0 : i32, i32
  }
}

module attributes {stable_mosaic.version = 11 : i64} {
  func.func @heads_sigmoid_kernel(%arg0: i32, %arg1: memref<2x2048xbf16, #tpu.memory_space<vmem>>, %arg2: memref<2048x2xbf16, #tpu.memory_space<vmem>>, %arg3: memref<2x2xf32, #tpu.memory_space<vmem>>) attributes {dimension_semantics = [#tpu.dimension_semantics<arbitrary>], iteration_bounds = array<i64: 1>, scalar_prefetch = 0 : i64, scratch_operands = 0 : i64, tpu.core_type = #tpu.core_type<tc>, window_params = [{pipeline_mode = #tpu.pipeline_mode<synchronous>, transform_indices = @transform_0, window_bounds = array<i64: 2, 2048>}, {pipeline_mode = #tpu.pipeline_mode<synchronous>, transform_indices = @transform_1, window_bounds = array<i64: 2048, 2>}, {pipeline_mode = #tpu.pipeline_mode<synchronous>, transform_indices = @transform_2, window_bounds = array<i64: 2, 2>}]} {
    %c0 = arith.constant 0 : index
    %c0_0 = arith.constant 0 : index
    %0 = vector.load %arg1[%c0, %c0_0] : memref<2x2048xbf16, #tpu.memory_space<vmem>>, vector<2x2048xbf16>
    %c0_1 = arith.constant 0 : index
    %c0_2 = arith.constant 0 : index
    %1 = vector.load %arg2[%c0_1, %c0_2] : memref<2048x2xbf16, #tpu.memory_space<vmem>>, vector<2048x2xbf16>
    %cst = arith.constant dense<0.000000e+00> : vector<2x2xf32>
    %2 = tpu.matmul %0, %1, %cst {dimension_numbers = #tpu.dot_dimension_numbers<[1], [0], [0], [1], [0, 0, 1, 1], [], []>} : vector<2x2048xbf16>, vector<2048x2xbf16>, vector<2x2xf32> -> vector<2x2xf32>
    %cst_3 = arith.constant 0.000000e+00 : f32
    %3 = vector.broadcast %cst_3 : f32 to vector<2x2xf32>
    %4 = arith.subf %3, %2 : vector<2x2xf32>
    %5 = math.exp %4 : vector<2x2xf32>
    %cst_4 = arith.constant 1.000000e+00 : f32
    %6 = vector.broadcast %cst_4 : f32 to vector<2x2xf32>
    %7 = arith.addf %6, %5 : vector<2x2xf32>
    %8 = tpu.reciprocal %7 {approx = true} : vector<2x2xf32> -> vector<2x2xf32>
    %c0_5 = arith.constant 0 : index
    %c0_6 = arith.constant 0 : index
    %9 = vector.load %arg3[%c0_5, %c0_6] : memref<2x2xf32, #tpu.memory_space<vmem>>, vector<2x2xf32>
    tpu.vector_store %arg3[%c0_5, %c0_6], %8 {strides = array<i32>} : memref<2x2xf32, #tpu.memory_space<vmem>>, vector<2x2xf32>,
    return
  }
  func.func @transform_0(%arg0: i32) -> (i32, i32) {
    %c0_i32 = arith.constant 0 : i32
    %c0_i32_0 = arith.constant 0 : i32
    %c0_i32_1 = arith.constant 0 : i32
    return %c0_i32, %c0_i32_0 : i32, i32
  }
  func.func @transform_1(%arg0: i32) -> (i32, i32) {
    %c0_i32 = arith.constant 0 : i32
    %c0_i32_0 = arith.constant 0 : i32
    %c0_i32_1 = arith.constant 0 : i32
    return %c0_i32, %c0_i32_0 : i32, i32
  }
  func.func @transform_2(%arg0: i32) -> (i32, i32) {
    %c0_i32 = arith.constant 0 : i32
    %c0_i32_0 = arith.constant 0 : i32
    %c0_i32_1 = arith.constant 0 : i32
    return %c0_i32, %c0_i32_0 : i32, i32
  }
}

</mosaic_0001>

<bundles_post_ra>
// kernel: ac_discriminator_forward.10
= control target key start
LH: loop header
LB: loop body
LE: loop exit
PB: predicated region body
PF: predicated region fallthrough
CT: control target
= control target key end

     0   :  { %s847_s0 = inlined_call_operand.vmem [shape: bf16[256,128], index: 0, kind: input, shape index: {}]   ;;  %s848_s1 = inlined_call_operand.vmem [shape: f32[1,128], index: 1, kind: input, shape index: {}]   ;;  %s849_s2 = inlined_call_operand.vmem [shape: f32[1,128], index: 2, kind: input, shape index: {}]   ;;  %s850_s3 = inlined_call_operand.vmem [shape: bf16[256,128], index: 3, kind: output, shape index: {}]  }
   0x1   :  { %v483_v0 = vld [vmem:[%s847_s0] sm:$0xff]   ;;  %v626_v4 = vld [vmem:[%s847_s0 + $0x8] sm:$0xff]   ;;  %v627_v5 = vld [vmem:[%s847_s0 + $0x10] sm:$0xff]  }
   0x2   :  { %v682_v1 = vld [vmem:[%s848_s1] ss:$0 sm:$0xff]  ;;  %v484_v2 = vunpack.c.l.bf16 %v483_v0  ;;  %v485_v3 = vunpack.c.h.bf16 %v483_v0  ;;  %v628_v6 = vld [vmem:[%s847_s0 + $0x18] sm:$0xff]   ;;  %v488_v8 = vunpack.c.l.bf16 %v626_v4  ;;  %v489_v9 = vunpack.c.h.bf16 %v626_v4  ;;  %v630_v35 = vld [vmem:[%s847_s0 + $0x28] sm:$0xff]  }
   0x3   :  { %v696_v7 = vld [vmem:[%s849_s2] ss:$0 sm:$0xff]  ;;  %v492_v10 = vunpack.c.l.bf16 %v627_v5  ;;  %v493_v11 = vunpack.c.h.bf16 %v627_v5  ;;  %v496_v14 = vunpack.c.l.bf16 %v628_v6  ;;  %v497_v15 = vunpack.c.h.bf16 %v628_v6  ;;  %v631_v48 = vld [vmem:[%s847_s0 + $0x30] sm:$0xff]   ;;  %v632_v4 = vld [vmem:[%s847_s0 + $0x38] sm:$0xff]  }
   0x4   :  { %v85_v12 = vmul.f32 %v484_v2, %v682_v1  ;;  %v86_v13 = vmul.f32 %v485_v3, %v682_v1  ;;  %v87_v16 = vmul.f32 %v488_v8, %v682_v1  ;;  %v88_v17 = vmul.f32 %v489_v9, %v682_v1  ;;  %v629_v34 = vld [vmem:[%s847_s0 + $0x20] sm:$0xff]  }
   0x5   :  { %v89_v18 = vmul.f32 %v492_v10, %v682_v1  ;;  %v90_v19 = vmul.f32 %v493_v11, %v682_v1  ;;  %v91_v22 = vmul.f32 %v496_v14, %v682_v1  ;;  %v92_v23 = vmul.f32 %v497_v15, %v682_v1  ;;  %v633_v15 = vld [vmem:[%s847_s0 + $0x40] sm:$0xff]  }
   0x6   :  { %v124_v20 = vadd.f32 %v696_v7, %v85_v12  ;;  %v125_v21 = vadd.f32 %v696_v7, %v86_v13  ;;  %v126_v24 = vadd.f32 %v696_v7, %v87_v16  ;;  %v127_v25 = vadd.f32 %v696_v7, %v88_v17 }
   0x7   :  { %v128_v26 = vadd.f32 %v696_v7, %v89_v18  ;;  %v129_v27 = vadd.f32 %v696_v7, %v90_v19  ;;  %v130_v42 = vadd.f32 %v696_v7, %v91_v22  ;;  %v131_v43 = vadd.f32 %v696_v7, %v92_v23 }
   0x8   :  { %vm156_vm0 = vcmp.gt.f32.partialorder %v124_v20, 0.0  ;;  %vm157_vm1 = vcmp.gt.f32.partialorder %v125_v21, 0.0  ;;  %v188_v28 = vmul.f32 0.2, %v124_v20  ;;  %v189_v29 = vmul.f32 0.2, %v125_v21 }
   0x9   :  { %vm158_vm2 = vcmp.gt.f32.partialorder %v126_v24, 0.0  ;;  %vm159_vm3 = vcmp.gt.f32.partialorder %v127_v25, 0.0  ;;  %v190_v30 = vmul.f32 0.2, %v126_v24  ;;  %v191_v31 = vmul.f32 0.2, %v127_v25 }
   0xa   :  { %v220_v32 = vsel %vm156_vm0, %v124_v20, %v188_v28  ;;  %v221_v33 = vsel %vm157_vm1, %v125_v21, %v189_v29  ;;  %vm160_vm4 = vcmp.gt.f32.partialorder %v128_v26, 0.0  ;;  %vm161_vm5 = vcmp.gt.f32.partialorder %v129_v27, 0.0 }
   0xb   :  { %v549_v36 = vpack.c.bf16 %v221_v33, %v220_v32  ;;  %v222_v37 = vsel %vm158_vm2, %v126_v24, %v190_v30  ;;  %v223_v38 = vsel %vm159_vm3, %v127_v25, %v191_v31  ;;  %v192_v39 = vmul.f32 0.2, %v128_v26 }
   0xc   :  { %v554_v40 = vpack.c.bf16 %v223_v38, %v222_v37  ;;  %v193_v41 = vmul.f32 0.2, %v129_v27  ;;  %v500_v45 = vunpack.c.l.bf16 %v629_v34  ;;  %v501_v46 = vunpack.c.h.bf16 %v629_v34 }
   0xd   :  { %550 = vst [vmem:[%s850_s3] sm:$0xff] %v549_v36   ;;  %v224_v44 = vsel %vm160_vm4, %v128_v26, %v192_v39  ;;  %v504_v47 = vunpack.c.l.bf16 %v630_v35  ;;  %vm162_vm6 = vcmp.gt.f32.partialorder %v130_v42, 0.0  ;;  %vm163_vm7 = vcmp.gt.f32.partialorder %v131_v43, 0.0  ;;  %v634_v26 = vld [vmem:[%s847_s0 + $0x48] sm:$0xff]  }
   0xe   :  { %641 = vst [vmem:[%s850_s3 + $0x8] sm:$0xff] %v554_v40   ;;  %v225_v49 = vsel %vm161_vm5, %v129_v27, %v193_v41  ;;  %v194_v50 = vmul.f32 0.2, %v130_v42  ;;  %v195_v52 = vmul.f32 0.2, %v131_v43  ;;  %v93_v53 = vmul.f32 %v500_v45, %v682_v1  ;;  %v635_v27 = vld [vmem:[%s847_s0 + $0x50] sm:$0xff]  }
   0xf   :  { %v559_v51 = vpack.c.bf16 %v225_v49, %v224_v44  ;;  %v94_v54 = vmul.f32 %v501_v46, %v682_v1  ;;  %v505_v56 = vunpack.c.h.bf16 %v630_v35  ;;  %v95_v57 = vmul.f32 %v504_v47, %v682_v1 }
  0x10   :  { %v226_v55 = vsel %vm162_vm6, %v130_v42, %v194_v50  ;;  %v508_v58 = vunpack.c.l.bf16 %v631_v48  ;;  %v227_v59 = vsel %vm163_vm7, %v131_v43, %v195_v52  ;;  %v132_v60 = vadd.f32 %v696_v7, %v93_v53 }
  0x11   :  { %642 = vst [vmem:[%s850_s3 + $0x10] sm:$0xff] %v559_v51   ;;  %v133_v61 = vadd.f32 %v696_v7, %v94_v54  ;;  %v509_v62 = vunpack.c.h.bf16 %v631_v48  ;;  %v564_v63 = vpack.c.bf16 %v227_v59, %v226_v55  ;;  %v96_v0 = vmul.f32 %v505_v56, %v682_v1  ;;  %v636_v55 = vld [vmem:[%s847_s0 + $0x58] sm:$0xff]  }
  0x12   :  { %v134_v2 = vadd.f32 %v696_v7, %v95_v57  ;;  %v97_v3 = vmul.f32 %v508_v58, %v682_v1  ;;  %vm164_vm8 = vcmp.gt.f32.partialorder %v132_v60, 0.0  ;;  %v196_v5 = vmul.f32 0.2, %v132_v60 }
  0x13   :  { %vm165_vm9 = vcmp.gt.f32.partialorder %v133_v61, 0.0  ;;  %v197_v6 = vmul.f32 0.2, %v133_v61  ;;  %643 = vst [vmem:[%s850_s3 + $0x18] sm:$0xff] %v564_v63   ;;  %v135_v8 = vadd.f32 %v696_v7, %v96_v0  ;;  %v98_v10 = vmul.f32 %v509_v62, %v682_v1 }
  0x14   :  { %vm166_vm10 = vcmp.gt.f32.partialorder %v134_v2, 0.0  ;;  %v198_v9 = vmul.f32 0.2, %v134_v2  ;;  %v228_v11 = vsel %vm164_vm8, %v132_v60, %v196_v5  ;;  %v136_v13 = vadd.f32 %v696_v7, %v97_v3  ;;  %v637_v60 = vld [vmem:[%s847_s0 + $0x60] sm:$0xff]  }
  0x15   :  { %v229_v12 = vsel %vm165_vm9, %v133_v61, %v197_v6  ;;  %v512_v14 = vunpack.c.l.bf16 %v632_v4  ;;  %vm167_vm11 = vcmp.gt.f32.partialorder %v135_v8, 0.0  ;;  %v199_v17 = vmul.f32 0.2, %v135_v8 }
  0x16   :  { %v569_v16 = vpack.c.bf16 %v229_v12, %v228_v11  ;;  %v230_v18 = vsel %vm166_vm10, %v134_v2, %v198_v9  ;;  %v137_v19 = vadd.f32 %v696_v7, %v98_v10  ;;  %vm168_vm12 = vcmp.gt.f32.partialorder %v136_v13, 0.0  ;;  %v638_v9 = vld [vmem:[%s847_s0 + $0x68] sm:$0xff]  }
  0x17   :  { %v200_v20 = vmul.f32 0.2, %v136_v13  ;;  %v513_v21 = vunpack.c.h.bf16 %v632_v4  ;;  %v231_v22 = vsel %vm167_vm11, %v135_v8, %v199_v17  ;;  %v99_v23 = vmul.f32 %v512_v14, %v682_v1 }
  0x18   :  { %644 = vst [vmem:[%s850_s3 + $0x20] sm:$0xff] %v569_v16   ;;  %v516_v24 = vunpack.c.l.bf16 %v633_v15  ;;  %v517_v25 = vunpack.c.h.bf16 %v633_v15  ;;  %v574_v28 = vpack.c.bf16 %v231_v22, %v230_v18  ;;  %vm169_vm13 = vcmp.gt.f32.partialorder %v137_v19, 0.0 }
  0x19   :  { %v201_v29 = vmul.f32 0.2, %v137_v19  ;;  %v232_v30 = vsel %vm168_vm12, %v136_v13, %v200_v20  ;;  %v100_v31 = vmul.f32 %v513_v21, %v682_v1  ;;  %v138_v32 = vadd.f32 %v696_v7, %v99_v23 }
  0x1a   :  { %v101_v33 = vmul.f32 %v516_v24, %v682_v1  ;;  %v102_v34 = vmul.f32 %v517_v25, %v682_v1  ;;  %645 = vst [vmem:[%s850_s3 + $0x28] sm:$0xff] %v574_v28   ;;  %v520_v36 = vunpack.c.l.bf16 %v634_v26  ;;  %v521_v37 = vunpack.c.h.bf16 %v634_v26  ;;  %v639_v28 = vld [vmem:[%s847_s0 + $0x70] sm:$0xff]  }
  0x1b   :  { %v233_v35 = vsel %vm169_vm13, %v137_v19, %v201_v29  ;;  %v524_v38 = vunpack.c.l.bf16 %v635_v27  ;;  %v139_v40 = vadd.f32 %v696_v7, %v100_v31  ;;  %vm170_vm14 = vcmp.gt.f32.partialorder %v138_v32, 0.0 }
  0x1c   :  { %v579_v39 = vpack.c.bf16 %v233_v35, %v232_v30  ;;  %v202_v41 = vmul.f32 0.2, %v138_v32  ;;  %v140_v42 = vadd.f32 %v696_v7, %v101_v33  ;;  %v141_v43 = vadd.f32 %v696_v7, %v102_v34 }
  0x1d   :  { %v103_v44 = vmul.f32 %v520_v36, %v682_v1  ;;  %v104_v45 = vmul.f32 %v521_v37, %v682_v1  ;;  %vm171_vm15 = vcmp.gt.f32.partialorder %v139_v40, 0.0  ;;  %v203_v46 = vmul.f32 0.2, %v139_v40  ;;  %v640_v37 = vld [vmem:[%s847_s0 + $0x78] sm:$0xff]  }
  0x1e   :  { %646 = vst [vmem:[%s850_s3 + $0x30] sm:$0xff] %v579_v39   ;;  %v234_v47 = vsel %vm170_vm14, %v138_v32, %v202_v41  ;;  %v525_v48 = vunpack.c.h.bf16 %v635_v27  ;;  %vm172_vm0 = vcmp.gt.f32.partialorder %v140_v42, 0.0  ;;  %vm173_vm1 = vcmp.gt.f32.partialorder %v141_v43, 0.0 }
  0x1f   :  { %v204_v49 = vmul.f32 0.2, %v140_v42  ;;  %v205_v50 = vmul.f32 0.2, %v141_v43  ;;  %v235_v51 = vsel %vm171_vm15, %v139_v40, %v203_v46  ;;  %v142_v52 = vadd.f32 %v696_v7, %v103_v44 }
  0x20   :  { %v143_v53 = vadd.f32 %v696_v7, %v104_v45  ;;  %v105_v54 = vmul.f32 %v524_v38, %v682_v1  ;;  %v584_v56 = vpack.c.bf16 %v235_v51, %v234_v47  ;;  %v106_v59 = vmul.f32 %v525_v48, %v682_v1 }
  0x21   :  { %v236_v57 = vsel %vm172_vm0, %v140_v42, %v204_v49  ;;  %v237_v58 = vsel %vm173_vm1, %v141_v43, %v205_v50  ;;  %vm174_vm2 = vcmp.gt.f32.partialorder %v142_v52, 0.0  ;;  %v206_v62 = vmul.f32 0.2, %v142_v52 }
  0x22   :  { %v589_v61 = vpack.c.bf16 %v237_v58, %v236_v57  ;;  %vm175_vm3 = vcmp.gt.f32.partialorder %v143_v53, 0.0  ;;  %647 = vst [vmem:[%s850_s3 + $0x38] sm:$0xff] %v584_v56   ;;  %v207_v63 = vmul.f32 0.2, %v143_v53  ;;  %v144_v0 = vadd.f32 %v696_v7, %v105_v54 }
  0x23   :  { %v145_v2 = vadd.f32 %v696_v7, %v106_v59  ;;  %v528_v3 = vunpack.c.l.bf16 %v636_v55  ;;  %v238_v4 = vsel %vm174_vm2, %v142_v52, %v206_v62  ;;  %v529_v5 = vunpack.c.h.bf16 %v636_v55 }
  0x24   :  { %648 = vst [vmem:[%s850_s3 + $0x40] sm:$0xff] %v589_v61   ;;  %v532_v6 = vunpack.c.l.bf16 %v637_v60  ;;  %v533_v8 = vunpack.c.h.bf16 %v637_v60  ;;  %v239_v10 = vsel %vm175_vm3, %v143_v53, %v207_v63  ;;  %vm176_vm4 = vcmp.gt.f32.partialorder %v144_v0, 0.0 }
  0x25   :  { %vm177_vm5 = vcmp.gt.f32.partialorder %v145_v2, 0.0  ;;  %v208_v11 = vmul.f32 0.2, %v144_v0  ;;  %v594_v12 = vpack.c.bf16 %v239_v10, %v238_v4  ;;  %v209_v13 = vmul.f32 0.2, %v145_v2 }
  0x26   :  { %v107_v14 = vmul.f32 %v528_v3, %v682_v1  ;;  %v108_v15 = vmul.f32 %v529_v5, %v682_v1  ;;  %v109_v17 = vmul.f32 %v532_v6, %v682_v1  ;;  %v110_v18 = vmul.f32 %v533_v8, %v682_v1 }
  0x27   :  { %v240_v16 = vsel %vm176_vm4, %v144_v0, %v208_v11  ;;  %v536_v19 = vunpack.c.l.bf16 %v638_v9  ;;  %649 = vst [vmem:[%s850_s3 + $0x48] sm:$0xff] %v594_v12   ;;  %v241_v20 = vsel %vm177_vm5, %v145_v2, %v209_v13  ;;  %v537_v23 = vunpack.c.h.bf16 %v638_v9 }
  0x28   :  { %v146_v21 = vadd.f32 %v696_v7, %v107_v14  ;;  %v147_v22 = vadd.f32 %v696_v7, %v108_v15  ;;  %v599_v24 = vpack.c.bf16 %v241_v20, %v240_v16  ;;  %v148_v25 = vadd.f32 %v696_v7, %v109_v17 }
  0x29   :  { %v149_v26 = vadd.f32 %v696_v7, %v110_v18  ;;  %v111_v27 = vmul.f32 %v536_v19, %v682_v1  ;;  %v112_v35 = vmul.f32 %v537_v23, %v682_v1  ;;  %v540_v41 = vunpack.c.l.bf16 %v639_v28 }
  0x2a   :  { %vm178_vm6 = vcmp.gt.f32.partialorder %v146_v21, 0.0  ;;  %vm179_vm7 = vcmp.gt.f32.partialorder %v147_v22, 0.0  ;;  %v210_v29 = vmul.f32 0.2, %v146_v21  ;;  %v211_v30 = vmul.f32 0.2, %v147_v22 }
  0x2b   :  { %650 = vst [vmem:[%s850_s3 + $0x50] sm:$0xff] %v599_v24   ;;  %vm180_vm8 = vcmp.gt.f32.partialorder %v148_v25, 0.0  ;;  %vm181_vm9 = vcmp.gt.f32.partialorder %v149_v26, 0.0  ;;  %v212_v31 = vmul.f32 0.2, %v148_v25  ;;  %v150_v36 = vadd.f32 %v696_v7, %v111_v27 }
  0x2c   :  { %v213_v32 = vmul.f32 0.2, %v149_v26  ;;  %v242_v33 = vsel %vm178_vm6, %v146_v21, %v210_v29  ;;  %v243_v34 = vsel %vm179_vm7, %v147_v22, %v211_v30  ;;  %v151_v43 = vadd.f32 %v696_v7, %v112_v35 }
  0x2d   :  { %v604_v38 = vpack.c.bf16 %v243_v34, %v242_v33  ;;  %v244_v39 = vsel %vm180_vm8, %v148_v25, %v212_v31  ;;  %vm182_vm10 = vcmp.gt.f32.partialorder %v150_v36, 0.0  ;;  %v214_v44 = vmul.f32 0.2, %v150_v36 }
  0x2e   :  { %v245_v40 = vsel %vm181_vm9, %v149_v26, %v213_v32  ;;  %v541_v45 = vunpack.c.h.bf16 %v639_v28  ;;  %v113_v46 = vmul.f32 %v540_v41, %v682_v1  ;;  %v544_v47 = vunpack.c.l.bf16 %v640_v37 }
  0x2f   :  { %v609_v42 = vpack.c.bf16 %v245_v40, %v244_v39  ;;  %651 = vst [vmem:[%s850_s3 + $0x58] sm:$0xff] %v604_v38   ;;  %v545_v48 = vunpack.c.h.bf16 %v640_v37  ;;  %vm183_vm11 = vcmp.gt.f32.partialorder %v151_v43, 0.0  ;;  %v215_v49 = vmul.f32 0.2, %v151_v43 }
  0x30   :  { %v246_v50 = vsel %vm182_vm10, %v150_v36, %v214_v44  ;;  %v114_v51 = vmul.f32 %v541_v45, %v682_v1  ;;  %v152_v52 = vadd.f32 %v696_v7, %v113_v46  ;;  %v115_v53 = vmul.f32 %v544_v47, %v682_v1 }
  0x31   :  { %652 = vst [vmem:[%s850_s3 + $0x60] sm:$0xff] %v609_v42   ;;  %v116_v54 = vmul.f32 %v545_v48, %v682_v1  ;;  %v247_v55 = vsel %vm183_vm11, %v151_v43, %v215_v49 }
  0x32   :  { %v614_v56 = vpack.c.bf16 %v247_v55, %v246_v50  ;;  %v153_v57 = vadd.f32 %v696_v7, %v114_v51  ;;  %vm184_vm12 = vcmp.gt.f32.partialorder %v152_v52, 0.0  ;;  %v216_v58 = vmul.f32 0.2, %v152_v52 }
  0x33   :  { %v154_v59 = vadd.f32 %v696_v7, %v115_v53  ;;  %v155_v60 = vadd.f32 %v696_v7, %v116_v54 }
  0x34   :  { %653 = vst [vmem:[%s850_s3 + $0x68] sm:$0xff] %v614_v56   ;;  %vm185_vm13 = vcmp.gt.f32.partialorder %v153_v57, 0.0  ;;  %v217_v61 = vmul.f32 0.2, %v153_v57  ;;  %v248_v62 = vsel %vm184_vm12, %v152_v52, %v216_v58 }
  0x35   :  { %vm186_vm14 = vcmp.gt.f32.partialorder %v154_v59, 0.0  ;;  %vm187_vm15 = vcmp.gt.f32.partialorder %v155_v60, 0.0  ;;  %v218_v1 = vmul.f32 0.2, %v154_v59  ;;  %v219_v63 = vmul.f32 0.2, %v155_v60 }
  0x36   :  { %v249_v0 = vsel %vm185_vm13, %v153_v57, %v217_v61 }
  0x37   :  { %v619_v2 = vpack.c.bf16 %v249_v0, %v248_v62  ;;  %v250_v3 = vsel %vm186_vm14, %v154_v59, %v218_v1  ;;  %v251_v4 = vsel %vm187_vm15, %v155_v60, %v219_v63 }
  0x38   :  { %v624_v5 = vpack.c.bf16 %v251_v4, %v250_v3 }
  0x39   :  { %654 = vst [vmem:[%s850_s3 + $0x70] sm:$0xff] %v619_v2  }
  0x3a   :  { %655 = vst [vmem:[%s850_s3 + $0x78] sm:$0xff] %v624_v5  }

// kernel: ac_discriminator_forward.9
= control target key start
LH: loop header
LB: loop body
LE: loop exit
PB: predicated region body
PF: predicated region fallthrough
CT: control target
= control target key end

     0   :  { %s3379_s15 = smov 0   ;;  %s4466_s0 = inlined_call_operand.vmem [shape: bf16[2048,128], index: 0, kind: input, shape index: {}]   ;;  %s4467_s1 = inlined_call_operand.vmem [shape: bf16[128,16], index: 1, kind: input, shape index: {}]   ;;  %s4468_s2 = inlined_call_operand.vmem [shape: bf16[2048,16], index: 2, kind: output, shape index: {0}]   ;;  %s4469_s3 = inlined_call_operand.vmem [shape: f32[1,16], index: 3, kind: output, shape index: {1}]   ;;  %s4470_s4 = inlined_call_operand.vmem [shape: f32[1,16], index: 4, kind: output, shape index: {2}]  }
   0x1 LB: > { %s2692_s16 = sadd.s32 4294967295, %s3351_s15   ;;  %p2696_p0 = scmp.ge.s32.totalorder %s3351_s15, 1  ;;  %s3351_s15 = sphi %s3379_s15, %s15_s15  }
   0x2   : > { %p158_p1 = scmp.lt.s32.totalorder %s3351_s15, 3 }
   0x4   : > { %p159_p2 = pnand %p2696_p0, %p158_p1 }
   0x6   : > { %162 = sbr.rel (%p159_p2) target bundleno = 542 (0x21e), region = 28 }
   0xd   : > { %s2697_s17 = sshll.u32 %s2692_s16, 7  ;;  %p2701_p4 = scmp.ne.s32.totalorder %s2692_s16, 0 }
   0xe   : > { %p185_p3 = scmp.lt.s32.totalorder %s2697_s17, 255  ;;  %vm201_vm0 = vcmask (!%p2701_p4), 122880   ;;  %v3353_v0 = vmov (!%p2701_p4), 0.0  }
   0xf   : > { %200 = sbr.rel (%p2701_p4) target bundleno = 22 (0x16), region = 32  ;;  %202 = vst.msk [vmem:[%s4469_s3] sm:$0x1] (!%p2701_p4), %vm201_vm0, %v3353_v0  ;;  %203 = vst.msk [vmem:[%s4470_s4] sm:$0x1] (!%p2701_p4), %vm201_vm0, %v3353_v0 }
  0x10   : > { %s4529_s17 = smov (!%p185_p3, %s2697_s17), 255 }
  0x11   : > { %s2698_s18 = sshll.u32 %s4529_s17, 2 }
  0x12   : > { %s3390_s21 = scalar_lea.vmem %s4466_s0, %s2698_s18  ;;  %s3395_s24 = scalar_lea.vmem %s4468_s2, %s2698_s18 }
  0x16 PF: > { %v3273_v1 = vld [vmem:[%s4467_s1] sm:$0xff]   ;;  %v3274_v2 = vld [vmem:[%s4467_s1 + $0x8] sm:$0xff]   ;;  %v3275_v3 = vld [vmem:[%s4467_s1 + $0x10] sm:$0xff]   ;;  %vm1837_vm1 = vcmask 125952   ;;  %vm1967_vm2 = vcmask 130048   ;;  %vm2230_vm3 = vcmask 122880  }
  0x17   : > { %3104 = vmatprep.subr.bf16.mxu0 %v3273_v1  ;;  %3248 = vmatprep.subr.bf16.mxu1 %v3273_v1  ;;  %v3276_v4 = vld [vmem:[%s4467_s1 + $0x18] sm:$0xff]   ;;  %v3281_v5 = vld [vmem:[%s3390_s21] sm:$0xff]   ;;  %v3278_v7 = vld [vmem:[%s4467_s1 + $0x28] sm:$0xff]  }
  0x18   : > { %3105 = vmatpush3.bf16.msra.mxu0 %v3273_v1  ;;  %3256 = vmatpush3.bf16.msra.mxu1 %v3273_v1  ;;  %v3277_v6 = vld [vmem:[%s4467_s1 + $0x20] sm:$0xff]   ;;  %v3279_v8 = vld [vmem:[%s4467_s1 + $0x30] sm:$0xff]   ;;  %v3280_v9 = vld [vmem:[%s4467_s1 + $0x38] sm:$0xff]  }
  0x19   : > { %3106 = vmatprep.subr.bf16.mxu0 %v3274_v2  ;;  %3249 = vmatprep.subr.bf16.mxu1 %v3274_v2  ;;  %v3282_v10 = vld [vmem:[%s3390_s21 + $0x8] sm:$0xff]   ;;  %v3283_v11 = vld [vmem:[%s3390_s21 + $0x10] sm:$0xff]   ;;  %v3284_v12 = vld [vmem:[%s3390_s21 + $0x18] sm:$0xff]  }
  0x1a   : > { %3120 = vmatprep.mubr.bf16.mxu0 %v3281_v5  ;;  %v3285_v13 = vld [vmem:[%s3390_s21 + $0x20] sm:$0xff]   ;;  %v3314_v15 = vld [vmem:[%s3390_s21 + $0x108] sm:$0xff]   ;;  %v3315_v16 = vld [vmem:[%s3390_s21 + $0x110] sm:$0xff]  }
  0x1b   : > { %v3313_v14 = vld [vmem:[%s3390_s21 + $0x100] sm:$0xff]   ;;  %v3286_v17 = vld [vmem:[%s3390_s21 + $0x28] sm:$0xff]   ;;  %v3287_v18 = vld [vmem:[%s3390_s21 + $0x30] sm:$0xff]  }
  0x1c   : > { %3107 = vmatpush3.bf16.msra.mxu0 %v3274_v2  ;;  %3257 = vmatpush3.bf16.msra.mxu1 %v3274_v2  ;;  %v3316_v19 = vld [vmem:[%s3390_s21 + $0x118] sm:$0xff]   ;;  %v3317_v20 = vld [vmem:[%s3390_s21 + $0x120] sm:$0xff]   ;;  %v3318_v23 = vld [vmem:[%s3390_s21 + $0x128] sm:$0xff]  }
  0x1d   : > { %3108 = vmatprep.subr.bf16.mxu0 %v3275_v3  ;;  %3250 = vmatprep.subr.bf16.mxu1 %v3275_v3  ;;  %v3288_v21 = vld [vmem:[%s3390_s21 + $0x38] sm:$0xff]   ;;  %v3289_v22 = vld [vmem:[%s3390_s21 + $0x40] sm:$0xff]   ;;  %v3319_v24 = vld [vmem:[%s3390_s21 + $0x130] sm:$0xff]  }
  0x1e   : > { %3184 = vmatprep.mubr.bf16.mxu1 %v3313_v14  ;;  %v3290_v25 = vld [vmem:[%s3390_s21 + $0x48] sm:$0xff]   ;;  %v3291_v26 = vld [vmem:[%s3390_s21 + $0x50] sm:$0xff]   ;;  %v3320_v27 = vld [vmem:[%s3390_s21 + $0x138] sm:$0xff]  }
  0x1f   : > { %v3321_v28 = vld [vmem:[%s3390_s21 + $0x140] sm:$0xff]   ;;  %v3292_v29 = vld [vmem:[%s3390_s21 + $0x58] sm:$0xff]   ;;  %v3322_v31 = vld [vmem:[%s3390_s21 + $0x148] sm:$0xff]  }
  0x20   : > { %3109 = vmatpush3.bf16.msra.mxu0 %v3275_v3  ;;  %3258 = vmatpush3.bf16.msra.mxu1 %v3275_v3  ;;  %v3293_v30 = vld [vmem:[%s3390_s21 + $0x60] sm:$0xff]   ;;  %v3323_v32 = vld [vmem:[%s3390_s21 + $0x150] sm:$0xff]   ;;  %v3294_v33 = vld [vmem:[%s3390_s21 + $0x68] sm:$0xff]  }
  0x21   : > { %3110 = vmatprep.subr.bf16.mxu0 %v3276_v4  ;;  %3251 = vmatprep.subr.bf16.mxu1 %v3276_v4  ;;  %v3295_v34 = vld [vmem:[%s3390_s21 + $0x70] sm:$0xff]   ;;  %v3324_v35 = vld [vmem:[%s3390_s21 + $0x158] sm:$0xff]   ;;  %v3325_v36 = vld [vmem:[%s3390_s21 + $0x160] sm:$0xff]  }
  0x22   : > { %v3296_v37 = vld [vmem:[%s3390_s21 + $0x78] sm:$0xff]   ;;  %v3297_v38 = vld [vmem:[%s3390_s21 + $0x80] sm:$0xff]   ;;  %v3326_v39 = vld [vmem:[%s3390_s21 + $0x168] sm:$0xff]  }
  0x23   : > { %v3327_v40 = vld [vmem:[%s3390_s21 + $0x170] sm:$0xff]   ;;  %v3298_v41 = vld [vmem:[%s3390_s21 + $0x88] sm:$0xff]   ;;  %v3328_v43 = vld [vmem:[%s3390_s21 + $0x178] sm:$0xff]  }
  0x24   : > { %3111 = vmatpush3.bf16.msra.mxu0 %v3276_v4  ;;  %3259 = vmatpush3.bf16.msra.mxu1 %v3276_v4  ;;  %v3299_v42 = vld [vmem:[%s3390_s21 + $0x90] sm:$0xff]   ;;  %v3329_v44 = vld [vmem:[%s3390_s21 + $0x180] sm:$0xff]   ;;  %v3300_v45 = vld [vmem:[%s3390_s21 + $0x98] sm:$0xff]  }
  0x25   : > { %3112 = vmatprep.subr.bf16.mxu0 %v3277_v6  ;;  %3252 = vmatprep.subr.bf16.mxu1 %v3277_v6  ;;  %v3301_v46 = vld [vmem:[%s3390_s21 + $0xa0] sm:$0xff]   ;;  %v3330_v47 = vld [vmem:[%s3390_s21 + $0x188] sm:$0xff]   ;;  %v3331_v48 = vld [vmem:[%s3390_s21 + $0x190] sm:$0xff]  }
  0x26   : > { %v3302_v49 = vld [vmem:[%s3390_s21 + $0xa8] sm:$0xff]   ;;  %v3303_v50 = vld [vmem:[%s3390_s21 + $0xb0] sm:$0xff]   ;;  %v3332_v51 = vld [vmem:[%s3390_s21 + $0x198] sm:$0xff]  }
  0x27   : > { %v3333_v52 = vld [vmem:[%s3390_s21 + $0x1a0] sm:$0xff]   ;;  %v3304_v53 = vld [vmem:[%s3390_s21 + $0xb8] sm:$0xff]   ;;  %v3334_v55 = vld [vmem:[%s3390_s21 + $0x1a8] sm:$0xff]  }
  0x28   : > { %3113 = vmatpush3.bf16.msra.mxu0 %v3277_v6  ;;  %3260 = vmatpush3.bf16.msra.mxu1 %v3277_v6  ;;  %v3305_v54 = vld [vmem:[%s3390_s21 + $0xc0] sm:$0xff]   ;;  %v3335_v56 = vld [vmem:[%s3390_s21 + $0x1b0] sm:$0xff]   ;;  %v3306_v57 = vld [vmem:[%s3390_s21 + $0xc8] sm:$0xff]  }
  0x29   : > { %3114 = vmatprep.subr.bf16.mxu0 %v3278_v7  ;;  %3253 = vmatprep.subr.bf16.mxu1 %v3278_v7  ;;  %v3307_v58 = vld [vmem:[%s3390_s21 + $0xd0] sm:$0xff]   ;;  %v3336_v59 = vld [vmem:[%s3390_s21 + $0x1b8] sm:$0xff]   ;;  %v3337_v60 = vld [vmem:[%s3390_s21 + $0x1c0] sm:$0xff]  }
  0x2a   : > { %v3308_v61 = vld [vmem:[%s3390_s21 + $0xd8] sm:$0xff]   ;;  %v3309_v62 = vld [vmem:[%s3390_s21 + $0xe0] sm:$0xff]   ;;  %v3338_v63 = vld [vmem:[%s3390_s21 + $0x1c8] sm:$0xff]  }
  0x2b   : > { %v3339_v0 = vld [vmem:[%s3390_s21 + $0x1d0] sm:$0xff]   ;;  %v3310_v1 = vld [vmem:[%s3390_s21 + $0xe8] sm:$0xff]   ;;  %v3340_v3 = vld [vmem:[%s3390_s21 + $0x1d8] sm:$0xff]  }
  0x2c   : > { %3115 = vmatpush3.bf16.msra.mxu0 %v3278_v7  ;;  %3261 = vmatpush3.bf16.msra.mxu1 %v3278_v7  ;;  %v3311_v2 = vld [vmem:[%s3390_s21 + $0xf0] sm:$0xff]   ;;  %v3341_v4 = vld [vmem:[%s3390_s21 + $0x1e0] sm:$0xff]   ;;  %v3312_v5 = vld [vmem:[%s3390_s21 + $0xf8] sm:$0xff]  }
  0x2d   : > { %3116 = vmatprep.subr.bf16.mxu0 %v3279_v8  ;;  %3254 = vmatprep.subr.bf16.mxu1 %v3279_v8  ;;  %v3342_v6 = vld [vmem:[%s3390_s21 + $0x1e8] sm:$0xff]   ;;  %v3343_v7 = vld [vmem:[%s3390_s21 + $0x1f0] sm:$0xff]  }
  0x30   : > { %3117 = vmatpush3.bf16.msra.mxu0 %v3279_v8  ;;  %3262 = vmatpush3.bf16.msra.mxu1 %v3279_v8  ;;  %v3344_v8 = vld [vmem:[%s3390_s21 + $0x1f8] sm:$0xff]  }
  0x31   : > { %3118 = vmatprep.subr.bf16.mxu0 %v3280_v9  ;;  %3255 = vmatprep.subr.bf16.mxu1 %v3280_v9 }
  0x34   : > { %3119 = vmatpush3.bf16.msra.mxu0 %v3280_v9  ;;  %3263 = vmatpush3.bf16.msra.mxu1 %v3280_v9 }
  0x37   : > { %3121 = vmatmul.mubr.bf16.vlgmr.msra.gmra.mrb[0].mxu0 %v3282_v10  ;;  %3185 = vmatmul.mubr.bf16.vlgmr.msra.gmra.mrb[0].mxu1 %v3314_v15 }
  0x38   : > { %3124 = vmatprep.mubr.bf16.mxu0 %v3283_v11  ;;  %3188 = vmatprep.mubr.bf16.mxu1 %v3315_v16 }
  0x3f   : > { %3125 = vmatmul.mubr.bf16.gmra.mrb[4].mxu0 %v3284_v12  ;;  %3189 = vmatmul.mubr.bf16.gmra.mrb[4].mxu1 %v3316_v19 }
  0x40   : > { %3128 = vmatprep.mubr.bf16.mxu0 %v3285_v13  ;;  %3192 = vmatprep.mubr.bf16.mxu1 %v3317_v20 }
  0x47   : > { %3129 = vmatmul.mubr.bf16.gmra.mrb[8].mxu0 %v3286_v17  ;;  %3193 = vmatmul.mubr.bf16.gmra.mrb[8].mxu1 %v3318_v23 }
  0x48   : > { %3132 = vmatprep.mubr.bf16.mxu0 %v3287_v18  ;;  %3196 = vmatprep.mubr.bf16.mxu1 %v3319_v24 }
  0x4f   : > { %3133 = vmatmul.mubr.bf16.gmra.mrb[12].mxu0 %v3288_v21  ;;  %3197 = vmatmul.mubr.bf16.gmra.mrb[12].mxu1 %v3320_v27 }
  0x50   : > { %3136 = vmatprep.mubr.bf16.mxu0 %v3289_v22  ;;  %3200 = vmatprep.mubr.bf16.mxu1 %v3321_v28 }
  0x57   : > { %3137 = vmatmul.mubr.bf16.gmra.mrb[16].mxu0 %v3290_v25  ;;  %3201 = vmatmul.mubr.bf16.gmra.mrb[16].mxu1 %v3322_v31 }
  0x58   : > { %3140 = vmatprep.mubr.bf16.mxu0 %v3291_v26  ;;  %3204 = vmatprep.mubr.bf16.mxu1 %v3323_v32 }
  0x5f   : > { %3141 = vmatmul.mubr.bf16.gmra.mrb[20].mxu0 %v3292_v29  ;;  %3205 = vmatmul.mubr.bf16.gmra.mrb[20].mxu1 %v3324_v35 }
  0x60   : > { %3144 = vmatprep.mubr.bf16.mxu0 %v3293_v30  ;;  %3208 = vmatprep.mubr.bf16.mxu1 %v3325_v36 }
  0x67   : > { %3145 = vmatmul.mubr.bf16.gmra.mrb[24].mxu0 %v3294_v33  ;;  %3209 = vmatmul.mubr.bf16.gmra.mrb[24].mxu1 %v3326_v39 }
  0x68   : > { %3148 = vmatprep.mubr.bf16.mxu0 %v3295_v34  ;;  %3212 = vmatprep.mubr.bf16.mxu1 %v3327_v40 }
  0x6f   : > { %3149 = vmatmul.mubr.bf16.gmra.mrb[28].mxu0 %v3296_v37  ;;  %3213 = vmatmul.mubr.bf16.gmra.mrb[28].mxu1 %v3328_v43 }
  0x70   : > { %3152 = vmatprep.mubr.bf16.mxu0 %v3297_v38  ;;  %3216 = vmatprep.mubr.bf16.mxu1 %v3329_v44 }
  0x77   : > { %3153 = vmatmul.mubr.bf16.gmra.mrb[32].mxu0 %v3298_v41  ;;  %3217 = vmatmul.mubr.bf16.gmra.mrb[32].mxu1 %v3330_v47 }
  0x78   : > { %3156 = vmatprep.mubr.bf16.mxu0 %v3299_v42  ;;  %3220 = vmatprep.mubr.bf16.mxu1 %v3331_v48 }
  0x7f   : > { %3157 = vmatmul.mubr.bf16.gmra.mrb[36].mxu0 %v3300_v45  ;;  %3221 = vmatmul.mubr.bf16.gmra.mrb[36].mxu1 %v3332_v51 }
  0x80   : > { %3160 = vmatprep.mubr.bf16.mxu0 %v3301_v46  ;;  %3224 = vmatprep.mubr.bf16.mxu1 %v3333_v52 }
  0x87   : > { %3161 = vmatmul.mubr.bf16.gmra.mrb[40].mxu0 %v3302_v49  ;;  %3225 = vmatmul.mubr.bf16.gmra.mrb[40].mxu1 %v3334_v55 }
  0x88   : > { %3164 = vmatprep.mubr.bf16.mxu0 %v3303_v50  ;;  %3228 = vmatprep.mubr.bf16.mxu1 %v3335_v56 }
  0x8f   : > { %3165 = vmatmul.mubr.bf16.gmra.mrb[44].mxu0 %v3304_v53  ;;  %3229 = vmatmul.mubr.bf16.gmra.mrb[44].mxu1 %v3336_v59 }
  0x90   : > { %3168 = vmatprep.mubr.bf16.mxu0 %v3305_v54  ;;  %3232 = vmatprep.mubr.bf16.mxu1 %v3337_v60 }
  0x97   : > { %3169 = vmatmul.mubr.bf16.gmra.mrb[48].mxu0 %v3306_v57  ;;  %3233 = vmatmul.mubr.bf16.gmra.mrb[48].mxu1 %v3338_v63 }
  0x98   : > { %3172 = vmatprep.mubr.bf16.mxu0 %v3307_v58  ;;  %3236 = vmatprep.mubr.bf16.mxu1 %v3339_v0 }
  0x9f   : > { %3173 = vmatmul.mubr.bf16.gmra.mrb[52].mxu0 %v3308_v61  ;;  %3237 = vmatmul.mubr.bf16.gmra.mrb[52].mxu1 %v3340_v3 }
  0xa0   : > { %3176 = vmatprep.mubr.bf16.mxu0 %v3309_v62  ;;  %3240 = vmatprep.mubr.bf16.mxu1 %v3341_v4 }
  0xa7   : > { %3177 = vmatmul.mubr.bf16.gmra.mrb[56].mxu0 %v3310_v1  ;;  %3241 = vmatmul.mubr.bf16.gmra.mrb[56].mxu1 %v3342_v6 }
  0xa8   : > { %3180 = vmatprep.mubr.bf16.mxu0 %v3311_v2  ;;  %3244 = vmatprep.mubr.bf16.mxu1 %v3343_v7 }
  0xaf   : > { %3181 = vmatmul.mubr.bf16.gmra.mrb[60].mxu0 %v3312_v5  ;;  %3245 = vmatmul.mubr.bf16.gmra.mrb[60].mxu1 %v3344_v8 }
 0x10a   : > { %v3122_v9 = vpop.f32.mrb[0].mxu0  ;;  %v3507_v36 = vpop.f32.mrb[0].mxu1 }
 0x10b   : > { %v2906_v10 = vpack.c.bf16 %v3122_v9, %v3122_v9  ;;  %v814_v11 = vpop.f32.mrb[1].mxu0  ;;  %v2235_v15 = vmul.f32 %v3122_v9, %v3122_v9  ;;  %v1971_v24 = vsel %vm1967_vm2, %v3122_v9, 0.0  ;;  %v3510_v42 = vpop.f32.mrb[1].mxu1  ;;  %v2970_v55 = vpack.c.bf16 %v3507_v36, %v3507_v36 }
 0x10c   : > { %v2904_v12 = vpack.c.bf16 %v814_v11, %v814_v11  ;;  %v2233_v13 = vmul.f32 %v814_v11, %v814_v11  ;;  %v3123_v14 = vpop.f32.mrb[2].mxu0  ;;  %v1968_v18 = vsel %vm1967_vm2, %v814_v11, 0.0  ;;  %v3514_v46 = vpop.f32.mrb[2].mxu1  ;;  %v2968_v60 = vpack.c.bf16 %v3510_v42, %v3510_v42 }
 0x10d   : > { %1840 = vst.msk [vmem:[%s3395_s24 + $0x8] sm:$0xf] %vm1837_vm1, %v2906_v10  ;;  %v2907_v16 = vpack.c.bf16 %v3123_v14, %v3123_v14  ;;  %v817_v17 = vpop.f32.mrb[3].mxu0  ;;  %v2236_v22 = vmul.f32 %v3123_v14, %v3123_v14  ;;  %v2364_v29 = vsel %vm1967_vm2, %v2235_v15, 0.0  ;;  %v1973_v31 = vsel %vm1967_vm2, %v3123_v14, 0.0  ;;  %v3519_v51 = vpop.f32.mrb[3].mxu1 }
 0x10e   : > { %1838 = vst.msk [vmem:[%s3395_s24] sm:$0xf] %vm1837_vm1, %v2904_v12  ;;  %v2905_v19 = vpack.c.bf16 %v817_v17, %v817_v17  ;;  %v1969_v20 = vsel %vm1967_vm2, %v817_v17, 0.0  ;;  %v2234_v21 = vmul.f32 %v817_v17, %v817_v17  ;;  %v2361_v25 = vsel %vm1967_vm2, %v2233_v13, 0.0  ;;  %1904 = vst.msk [vmem:[%s3395_s24 + $0x108] sm:$0xf] %vm1837_vm1, %v2970_v55 }
 0x10f   : > { %1841 = vst.msk [vmem:[%s3395_s24 + $0xc] sm:$0xf] %vm1837_vm1, %v2907_v16  ;;  %v1970_v23 = vadd.f32 %v1969_v20, %v1968_v18  ;;  %v2366_v32 = vsel %vm1967_vm2, %v2236_v22, 0.0  ;;  %v2971_v0 = vpack.c.bf16 %v3514_v46, %v3514_v46  ;;  %1902 = vst.msk [vmem:[%s3395_s24 + $0x100] sm:$0xf] %vm1837_vm1, %v2968_v60 }
 0x110   : > { %1839 = vst.msk [vmem:[%s3395_s24 + $0x4] sm:$0xf] %vm1837_vm1, %v2905_v19  ;;  %v2362_v26 = vsel %vm1967_vm2, %v2234_v21, 0.0 }
 0x111   : > { %v1972_v27 = vadd.f32 %v1971_v24, %v1970_v23  ;;  %v2363_v28 = vadd.f32 %v2362_v26, %v2361_v25  ;;  %1905 = vst.msk [vmem:[%s3395_s24 + $0x10c] sm:$0xf] %vm1837_vm1, %v2971_v0 }
 0x112   : > { %v3126_v30 = vpop.f32.mrb[4].mxu0  ;;  %v3540_v5 = vpop.f32.mrb[4].mxu1 }
 0x113   : > { %v2365_v33 = vadd.f32 %v2364_v29, %v2363_v28  ;;  %v2910_v34 = vpack.c.bf16 %v3126_v30, %v3126_v30  ;;  %v830_v35 = vpop.f32.mrb[5].mxu0  ;;  %v1974_v38 = vadd.f32 %v1973_v31, %v1972_v27  ;;  %v2239_v47 = vmul.f32 %v3126_v30, %v3126_v30  ;;  %v3545_v11 = vpop.f32.mrb[5].mxu1 }
 0x114   : > { %v2908_v37 = vpack.c.bf16 %v830_v35, %v830_v35  ;;  %v1975_v39 = vsel %vm1967_vm2, %v830_v35, 0.0  ;;  %v2237_v40 = vmul.f32 %v830_v35, %v830_v35  ;;  %v3127_v41 = vpop.f32.mrb[6].mxu0  ;;  %v1979_v57 = vsel %vm1967_vm2, %v3126_v30, 0.0  ;;  %v3550_v16 = vpop.f32.mrb[6].mxu1 }
 0x115   : > { %1844 = vst.msk [vmem:[%s3395_s24 + $0x18] sm:$0xf] %vm1837_vm1, %v2910_v34  ;;  %v2367_v43 = vadd.f32 %v2366_v32, %v2365_v33  ;;  %v2911_v44 = vpack.c.bf16 %v3127_v41, %v3127_v41  ;;  %v833_v45 = vpop.f32.mrb[7].mxu0  ;;  %v1976_v48 = vadd.f32 %v1975_v39, %v1974_v38  ;;  %v2240_v58 = vmul.f32 %v3127_v41, %v3127_v41  ;;  %v3554_v20 = vpop.f32.mrb[7].mxu1 }
 0x116   : > { %1842 = vst.msk [vmem:[%s3395_s24 + $0x10] sm:$0xf] %vm1837_vm1, %v2908_v37  ;;  %v2368_v49 = vsel %vm1967_vm2, %v2237_v40, 0.0  ;;  %v2909_v50 = vpack.c.bf16 %v833_v45, %v833_v45  ;;  %v1977_v53 = vsel %vm1967_vm2, %v833_v45, 0.0  ;;  %v2238_v54 = vmul.f32 %v833_v45, %v833_v45 }
 0x117   : > { %v2369_v52 = vadd.f32 %v2368_v49, %v2367_v43  ;;  %1845 = vst.msk [vmem:[%s3395_s24 + $0x1c] sm:$0xf] %vm1837_vm1, %v2911_v44  ;;  %v1978_v56 = vadd.f32 %v1977_v53, %v1976_v48  ;;  %v2372_v1 = vsel %vm1967_vm2, %v2239_v47, 0.0  ;;  %v1981_v2 = vsel %vm1967_vm2, %v3127_v41, 0.0 }
 0x118   : > { %1843 = vst.msk [vmem:[%s3395_s24 + $0x14] sm:$0xf] %vm1837_vm1, %v2909_v50  ;;  %v2370_v59 = vsel %vm1967_vm2, %v2238_v54, 0.0  ;;  %v2374_v12 = vsel %vm1967_vm2, %v2240_v58, 0.0  ;;  %v2969_v30 = vpack.c.bf16 %v3519_v51, %v3519_v51  ;;  %v2974_v34 = vpack.c.bf16 %v3540_v5, %v3540_v5 }
 0x119   : > { %v1980_v61 = vadd.f32 %v1979_v57, %v1978_v56  ;;  %v2371_v62 = vadd.f32 %v2370_v59, %v2369_v52 }
 0x11a   : > { %v3130_v63 = vpop.f32.mrb[8].mxu0  ;;  %1903 = vst.msk [vmem:[%s3395_s24 + $0x104] sm:$0xf] %vm1837_vm1, %v2969_v30  ;;  %v3572_v40 = vpop.f32.mrb[8].mxu1  ;;  %1908 = vst.msk [vmem:[%s3395_s24 + $0x118] sm:$0xf] %vm1837_vm1, %v2974_v34 }
 0x11b   : > { %v2914_v3 = vpack.c.bf16 %v3130_v63, %v3130_v63  ;;  %v846_v4 = vpop.f32.mrb[9].mxu0  ;;  %v2373_v6 = vadd.f32 %v2372_v1, %v2371_v62  ;;  %v1982_v8 = vadd.f32 %v1981_v2, %v1980_v61  ;;  %v2243_v21 = vmul.f32 %v3130_v63, %v3130_v63  ;;  %v3577_v48 = vpop.f32.mrb[9].mxu1 }
 0x11c   : > { %v2912_v7 = vpack.c.bf16 %v846_v4, %v846_v4  ;;  %v1983_v9 = vsel %vm1967_vm2, %v846_v4, 0.0  ;;  %v3131_v10 = vpop.f32.mrb[10].mxu0  ;;  %v2241_v13 = vmul.f32 %v846_v4, %v846_v4  ;;  %v1987_v27 = vsel %vm1967_vm2, %v3130_v63, 0.0  ;;  %v3582_v54 = vpop.f32.mrb[10].mxu1 }
 0x11d   : > { %1848 = vst.msk [vmem:[%s3395_s24 + $0x28] sm:$0xf] %vm1837_vm1, %v2914_v3  ;;  %v2915_v14 = vpack.c.bf16 %v3131_v10, %v3131_v10  ;;  %v849_v15 = vpop.f32.mrb[11].mxu0  ;;  %v1984_v17 = vadd.f32 %v1983_v9, %v1982_v8  ;;  %v2375_v18 = vadd.f32 %v2374_v12, %v2373_v6  ;;  %v2244_v28 = vmul.f32 %v3131_v10, %v3131_v10  ;;  %v3586_v58 = vpop.f32.mrb[11].mxu1 }
 0x11e   : > { %1846 = vst.msk [vmem:[%s3395_s24 + $0x20] sm:$0xf] %vm1837_vm1, %v2912_v7  ;;  %v2913_v19 = vpack.c.bf16 %v849_v15, %v849_v15  ;;  %v2376_v22 = vsel %vm1967_vm2, %v2241_v13, 0.0  ;;  %v1985_v23 = vsel %vm1967_vm2, %v849_v15, 0.0  ;;  %v2242_v24 = vmul.f32 %v849_v15, %v849_v15 }
 0x11f   : > { %1849 = vst.msk [vmem:[%s3395_s24 + $0x2c] sm:$0xf] %vm1837_vm1, %v2915_v14  ;;  %v2377_v25 = vadd.f32 %v2376_v22, %v2375_v18  ;;  %v1986_v26 = vadd.f32 %v1985_v23, %v1984_v17  ;;  %v2380_v35 = vsel %vm1967_vm2, %v2243_v21, 0.0  ;;  %v1989_v37 = vsel %vm1967_vm2, %v3131_v10, 0.0 }
 0x120   : > { %1847 = vst.msk [vmem:[%s3395_s24 + $0x24] sm:$0xf] %vm1837_vm1, %v2913_v19  ;;  %v2378_v29 = vsel %vm1967_vm2, %v2242_v24, 0.0  ;;  %v2382_v49 = vsel %vm1967_vm2, %v2244_v28, 0.0  ;;  %v2972_v4 = vpack.c.bf16 %v3545_v11, %v3545_v11  ;;  %v2975_v9 = vpack.c.bf16 %v3550_v16, %v3550_v16 }
 0x121   : > { %v1988_v31 = vadd.f32 %v1987_v27, %v1986_v26  ;;  %v2379_v32 = vadd.f32 %v2378_v29, %v2377_v25 }
 0x122   : > { %v3134_v33 = vpop.f32.mrb[12].mxu0  ;;  %1906 = vst.msk [vmem:[%s3395_s24 + $0x110] sm:$0xf] %vm1837_vm1, %v2972_v4  ;;  %v3604_v15 = vpop.f32.mrb[12].mxu1  ;;  %1909 = vst.msk [vmem:[%s3395_s24 + $0x11c] sm:$0xf] %vm1837_vm1, %v2975_v9 }
 0x123   : > { %v2918_v38 = vpack.c.bf16 %v3134_v33, %v3134_v33  ;;  %v862_v39 = vpop.f32.mrb[13].mxu0  ;;  %v2381_v41 = vadd.f32 %v2380_v35, %v2379_v32  ;;  %v1990_v44 = vadd.f32 %v1989_v37, %v1988_v31  ;;  %v2247_v59 = vmul.f32 %v3134_v33, %v3134_v33  ;;  %v3609_v23 = vpop.f32.mrb[13].mxu1 }
 0x124   : > { %v2916_v43 = vpack.c.bf16 %v862_v39, %v862_v39  ;;  %v1991_v45 = vsel %vm1967_vm2, %v862_v39, 0.0  ;;  %v3135_v47 = vpop.f32.mrb[14].mxu0  ;;  %v2245_v50 = vmul.f32 %v862_v39, %v862_v39  ;;  %v1995_v1 = vsel %vm1967_vm2, %v3134_v33, 0.0  ;;  %v3614_v28 = vpop.f32.mrb[14].mxu1 }
 0x125   : > { %1852 = vst.msk [vmem:[%s3395_s24 + $0x38] sm:$0xf] %vm1837_vm1, %v2918_v38  ;;  %v2919_v52 = vpack.c.bf16 %v3135_v47, %v3135_v47  ;;  %v865_v53 = vpop.f32.mrb[15].mxu0  ;;  %v1992_v55 = vadd.f32 %v1991_v45, %v1990_v44  ;;  %v2383_v56 = vadd.f32 %v2382_v49, %v2381_v41  ;;  %v2248_v2 = vmul.f32 %v3135_v47, %v3135_v47  ;;  %v3618_v32 = vpop.f32.mrb[15].mxu1 }
 0x126   : > { %1850 = vst.msk [vmem:[%s3395_s24 + $0x30] sm:$0xf] %vm1837_vm1, %v2916_v43  ;;  %v2917_v57 = vpack.c.bf16 %v865_v53, %v865_v53  ;;  %v2384_v60 = vsel %vm1967_vm2, %v2245_v50, 0.0  ;;  %v1993_v61 = vsel %vm1967_vm2, %v865_v53, 0.0  ;;  %v2246_v62 = vmul.f32 %v865_v53, %v865_v53 }
 0x127   : > { %1853 = vst.msk [vmem:[%s3395_s24 + $0x3c] sm:$0xf] %vm1837_vm1, %v2919_v52  ;;  %v2385_v63 = vadd.f32 %v2384_v60, %v2383_v56  ;;  %v1994_v0 = vadd.f32 %v1993_v61, %v1992_v55  ;;  %v2388_v10 = vsel %vm1967_vm2, %v2247_v59, 0.0  ;;  %v1997_v12 = vsel %vm1967_vm2, %v3135_v47, 0.0 }
 0x128   : > { %1851 = vst.msk [vmem:[%s3395_s24 + $0x34] sm:$0xf] %vm1837_vm1, %v2917_v57  ;;  %v2386_v3 = vsel %vm1967_vm2, %v2246_v62, 0.0  ;;  %v2390_v24 = vsel %vm1967_vm2, %v2248_v2, 0.0  ;;  %v2973_v45 = vpack.c.bf16 %v3554_v20, %v3554_v20  ;;  %v2978_v52 = vpack.c.bf16 %v3572_v40, %v3572_v40 }
 0x129   : > { %v1996_v6 = vadd.f32 %v1995_v1, %v1994_v0  ;;  %v2387_v7 = vadd.f32 %v2386_v3, %v2385_v63 }
 0x12a   : > { %v3138_v8 = vpop.f32.mrb[16].mxu0  ;;  %1907 = vst.msk [vmem:[%s3395_s24 + $0x114] sm:$0xf] %vm1837_vm1, %v2973_v45  ;;  %v3636_v59 = vpop.f32.mrb[16].mxu1  ;;  %1912 = vst.msk [vmem:[%s3395_s24 + $0x128] sm:$0xf] %vm1837_vm1, %v2978_v52 }
 0x12b   : > { %v2922_v13 = vpack.c.bf16 %v3138_v8, %v3138_v8  ;;  %v878_v14 = vpop.f32.mrb[17].mxu0  ;;  %v2389_v17 = vadd.f32 %v2388_v10, %v2387_v7  ;;  %v1998_v19 = vadd.f32 %v1997_v12, %v1996_v6  ;;  %v2251_v33 = vmul.f32 %v3138_v8, %v3138_v8  ;;  %4498 = vst [vmem:[#allocation2_spill] sm:$0xff] %v3636_v59  ;;  %v3641_v1 = vpop.f32.mrb[17].mxu1 }
 0x12c   : > { %v2920_v18 = vpack.c.bf16 %v878_v14, %v878_v14  ;;  %v1999_v21 = vsel %vm1967_vm2, %v878_v14, 0.0  ;;  %v3139_v22 = vpop.f32.mrb[18].mxu0  ;;  %v2249_v25 = vmul.f32 %v878_v14, %v878_v14  ;;  %v2003_v41 = vsel %vm1967_vm2, %v3138_v8, 0.0  ;;  %v3646_v7 = vpop.f32.mrb[18].mxu1 }
 0x12d   : > { %1856 = vst.msk [vmem:[%s3395_s24 + $0x48] sm:$0xf] %vm1837_vm1, %v2922_v13  ;;  %v2923_v26 = vpack.c.bf16 %v3139_v22, %v3139_v22  ;;  %v881_v27 = vpop.f32.mrb[19].mxu0  ;;  %v2000_v29 = vadd.f32 %v1999_v21, %v1998_v19  ;;  %v2391_v30 = vadd.f32 %v2390_v24, %v2389_v17  ;;  %v2252_v43 = vmul.f32 %v3139_v22, %v3139_v22  ;;  %v3650_v12 = vpop.f32.mrb[19].mxu1 }
 0x12e   : > { %1854 = vst.msk [vmem:[%s3395_s24 + $0x40] sm:$0xf] %vm1837_vm1, %v2920_v18  ;;  %v2921_v31 = vpack.c.bf16 %v881_v27, %v881_v27  ;;  %v2392_v34 = vsel %vm1967_vm2, %v2249_v25, 0.0  ;;  %v2001_v35 = vsel %vm1967_vm2, %v881_v27, 0.0  ;;  %v2250_v37 = vmul.f32 %v881_v27, %v881_v27  ;;  %4499 = vst [vmem:[#allocation3_spill] sm:$0xff] %v3646_v7 }
 0x12f   : > { %1857 = vst.msk [vmem:[%s3395_s24 + $0x4c] sm:$0xf] %vm1837_vm1, %v2923_v26  ;;  %v2393_v38 = vadd.f32 %v2392_v34, %v2391_v30  ;;  %v2002_v39 = vadd.f32 %v2001_v35, %v2000_v29  ;;  %v2396_v53 = vsel %vm1967_vm2, %v2251_v33, 0.0  ;;  %v2005_v55 = vsel %vm1967_vm2, %v3139_v22, 0.0  ;;  %4500 = vst [vmem:[#allocation4_spill] sm:$0xff] %v3650_v12 }
 0x130   : > { %1855 = vst.msk [vmem:[%s3395_s24 + $0x44] sm:$0xf] %vm1837_vm1, %v2921_v31  ;;  %v2394_v44 = vsel %vm1967_vm2, %v2250_v37, 0.0  ;;  %v2398_v2 = vsel %vm1967_vm2, %v2252_v43, 0.0  ;;  %v2976_v26 = vpack.c.bf16 %v3577_v48, %v3577_v48  ;;  %v2979_v31 = vpack.c.bf16 %v3582_v54, %v3582_v54 }
 0x131   : > { %v2004_v47 = vadd.f32 %v2003_v41, %v2002_v39  ;;  %v2395_v49 = vadd.f32 %v2394_v44, %v2393_v38 }
 0x132   : > { %v3142_v50 = vpop.f32.mrb[20].mxu0  ;;  %1910 = vst.msk [vmem:[%s3395_s24 + $0x120] sm:$0xf] %vm1837_vm1, %v2976_v26  ;;  %v3668_v38 = vpop.f32.mrb[20].mxu1  ;;  %1913 = vst.msk [vmem:[%s3395_s24 + $0x12c] sm:$0xf] %vm1837_vm1, %v2979_v31 }
 0x133   : > { %v2926_v56 = vpack.c.bf16 %v3142_v50, %v3142_v50  ;;  %v894_v57 = vpop.f32.mrb[21].mxu0  ;;  %v2397_v60 = vadd.f32 %v2396_v53, %v2395_v49  ;;  %v2006_v62 = vadd.f32 %v2005_v55, %v2004_v47  ;;  %v2255_v13 = vmul.f32 %v3142_v50, %v3142_v50  ;;  %4501 = vst [vmem:[#allocation5_spill] sm:$0xff] %v3668_v38  ;;  %v3673_v47 = vpop.f32.mrb[21].mxu1 }
 0x134   : > { %v2924_v61 = vpack.c.bf16 %v894_v57, %v894_v57  ;;  %v2007_v63 = vsel %vm1967_vm2, %v894_v57, 0.0  ;;  %v3143_v0 = vpop.f32.mrb[22].mxu0  ;;  %v2253_v3 = vmul.f32 %v894_v57, %v894_v57  ;;  %v2011_v22 = vsel %vm1967_vm2, %v3142_v50, 0.0  ;;  %4502 = vst [vmem:[#allocation6_spill] sm:$0xff] %v3673_v47  ;;  %v3678_v55 = vpop.f32.mrb[22].mxu1 }
 0x135   : > { %1860 = vst.msk [vmem:[%s3395_s24 + $0x58] sm:$0xf] %vm1837_vm1, %v2926_v56  ;;  %v2927_v4 = vpack.c.bf16 %v3143_v0, %v3143_v0  ;;  %v897_v6 = vpop.f32.mrb[23].mxu0  ;;  %v2008_v8 = vadd.f32 %v2007_v63, %v2006_v62  ;;  %v2399_v9 = vadd.f32 %v2398_v2, %v2397_v60  ;;  %v2256_v24 = vmul.f32 %v3143_v0, %v3143_v0 }
 0x136   : > { %1858 = vst.msk [vmem:[%s3395_s24 + $0x50] sm:$0xf] %vm1837_vm1, %v2924_v61  ;;  %v2925_v10 = vpack.c.bf16 %v897_v6, %v897_v6  ;;  %v2400_v14 = vsel %vm1967_vm2, %v2253_v3, 0.0  ;;  %v2009_v17 = vsel %vm1967_vm2, %v897_v6, 0.0  ;;  %v2254_v18 = vmul.f32 %v897_v6, %v897_v6  ;;  %4503 = vst [vmem:[#allocation7_spill] sm:$0xff] %v3678_v55  ;;  %v3682_v61 = vpop.f32.mrb[23].mxu1 }
 0x137   : > { %1861 = vst.msk [vmem:[%s3395_s24 + $0x5c] sm:$0xf] %vm1837_vm1, %v2927_v4  ;;  %v2401_v19 = vadd.f32 %v2400_v14, %v2399_v9  ;;  %v2010_v21 = vadd.f32 %v2009_v17, %v2008_v8  ;;  %v2404_v33 = vsel %vm1967_vm2, %v2255_v13, 0.0  ;;  %v2013_v34 = vsel %vm1967_vm2, %v3143_v0, 0.0  ;;  %4504 = vst [vmem:[#allocation8_spill] sm:$0xff] %v3682_v61 }
 0x138   : > { %1859 = vst.msk [vmem:[%s3395_s24 + $0x54] sm:$0xf] %vm1837_vm1, %v2925_v10  ;;  %v2402_v25 = vsel %vm1967_vm2, %v2254_v18, 0.0  ;;  %v2406_v49 = vsel %vm1967_vm2, %v2256_v24, 0.0  ;;  %v2977_v10 = vpack.c.bf16 %v3586_v58, %v3586_v58  ;;  %v2982_v18 = vpack.c.bf16 %v3604_v15, %v3604_v15 }
 0x139   : > { %v2012_v27 = vadd.f32 %v2011_v22, %v2010_v21  ;;  %v2403_v29 = vadd.f32 %v2402_v25, %v2401_v19 }
 0x13a   : > { %v3146_v30 = vpop.f32.mrb[24].mxu0  ;;  %1911 = vst.msk [vmem:[%s3395_s24 + $0x124] sm:$0xf] %vm1837_vm1, %v2977_v10  ;;  %v3700_v25 = vpop.f32.mrb[24].mxu1  ;;  %1916 = vst.msk [vmem:[%s3395_s24 + $0x138] sm:$0xf] %vm1837_vm1, %v2982_v18 }
 0x13b   : > { %v2930_v35 = vpack.c.bf16 %v3146_v30, %v3146_v30  ;;  %v910_v37 = vpop.f32.mrb[25].mxu0  ;;  %v2405_v39 = vadd.f32 %v2404_v33, %v2403_v29  ;;  %v2014_v43 = vadd.f32 %v2013_v34, %v2012_v27  ;;  %v2259_v62 = vmul.f32 %v3146_v30, %v3146_v30  ;;  %4505 = vst [vmem:[#allocation9_spill] sm:$0xff] %v3700_v25  ;;  %v3705_v33 = vpop.f32.mrb[25].mxu1 }
 0x13c   : > { %v2928_v41 = vpack.c.bf16 %v910_v37, %v910_v37  ;;  %v2015_v44 = vsel %vm1967_vm2, %v910_v37, 0.0  ;;  %v3147_v45 = vpop.f32.mrb[26].mxu0  ;;  %v2257_v50 = vmul.f32 %v910_v37, %v910_v37  ;;  %v2019_v6 = vsel %vm1967_vm2, %v3146_v30, 0.0  ;;  %4506 = vst [vmem:[#allocation10_spill] sm:$0xff] %v3705_v33 }
 0x13d   : > { %1864 = vst.msk [vmem:[%s3395_s24 + $0x68] sm:$0xf] %vm1837_vm1, %v2930_v35  ;;  %v2931_v52 = vpack.c.bf16 %v3147_v45, %v3147_v45  ;;  %v913_v53 = vpop.f32.mrb[27].mxu0  ;;  %v2016_v56 = vadd.f32 %v2015_v44, %v2014_v43  ;;  %v2407_v57 = vadd.f32 %v2406_v49, %v2405_v39  ;;  %v2260_v8 = vmul.f32 %v3147_v45, %v3147_v45 }
 0x13e   : > { %1862 = vst.msk [vmem:[%s3395_s24 + $0x60] sm:$0xf] %vm1837_vm1, %v2928_v41  ;;  %v2929_v60 = vpack.c.bf16 %v913_v53, %v913_v53  ;;  %v2408_v63 = vsel %vm1967_vm2, %v2257_v50, 0.0  ;;  %v2017_v0 = vsel %vm1967_vm2, %v913_v53, 0.0  ;;  %v2258_v2 = vmul.f32 %v913_v53, %v913_v53  ;;  %v3710_v41 = vpop.f32.mrb[26].mxu1 }
 0x13f   : > { %1865 = vst.msk [vmem:[%s3395_s24 + $0x6c] sm:$0xf] %vm1837_vm1, %v2931_v52  ;;  %v2409_v3 = vadd.f32 %v2408_v63, %v2407_v57  ;;  %v2018_v4 = vadd.f32 %v2017_v0, %v2016_v56  ;;  %v2412_v19 = vsel %vm1967_vm2, %v2259_v62, 0.0  ;;  %v2021_v21 = vsel %vm1967_vm2, %v3147_v45, 0.0  ;;  %4507 = vst [vmem:[#allocation11_spill] sm:$0xff] %v3710_v41  ;;  %v3714_v49 = vpop.f32.mrb[27].mxu1 }
 0x140   : > { %1863 = vst.msk [vmem:[%s3395_s24 + $0x64] sm:$0xf] %vm1837_vm1, %v2929_v60  ;;  %v2410_v9 = vsel %vm1967_vm2, %v2258_v2, 0.0  ;;  %v2414_v34 = vsel %vm1967_vm2, %v2260_v8, 0.0  ;;  %4508 = vst [vmem:[#allocation12_spill] sm:$0xff] %v3714_v49  ;;  %v2980_v2 = vpack.c.bf16 %v3609_v23, %v3609_v23  ;;  %v2983_v8 = vpack.c.bf16 %v3614_v28, %v3614_v28 }
 0x141   : > { %v2020_v13 = vadd.f32 %v2019_v6, %v2018_v4  ;;  %v2411_v14 = vadd.f32 %v2410_v9, %v2409_v3 }
 0x142   : > { %v3150_v17 = vpop.f32.mrb[28].mxu0  ;;  %1914 = vst.msk [vmem:[%s3395_s24 + $0x130] sm:$0xf] %vm1837_vm1, %v2980_v2  ;;  %1917 = vst.msk [vmem:[%s3395_s24 + $0x13c] sm:$0xf] %vm1837_vm1, %v2983_v8 }
 0x143   : > { %v2934_v22 = vpack.c.bf16 %v3150_v17, %v3150_v17  ;;  %v926_v24 = vpop.f32.mrb[29].mxu0  ;;  %v2413_v26 = vadd.f32 %v2412_v19, %v2411_v14  ;;  %v2022_v29 = vadd.f32 %v2021_v21, %v2020_v13  ;;  %v2263_v50 = vmul.f32 %v3150_v17, %v3150_v17 }
 0x144   : > { %v2932_v27 = vpack.c.bf16 %v926_v24, %v926_v24  ;;  %v2023_v30 = vsel %vm1967_vm2, %v926_v24, 0.0  ;;  %v3151_v31 = vpop.f32.mrb[30].mxu0  ;;  %v2261_v35 = vmul.f32 %v926_v24, %v926_v24  ;;  %v2027_v62 = vsel %vm1967_vm2, %v3150_v17, 0.0  ;;  %v3732_v17 = vpop.f32.mrb[28].mxu1 }
 0x145   : > { %1868 = vst.msk [vmem:[%s3395_s24 + $0x78] sm:$0xf] %vm1837_vm1, %v2934_v22  ;;  %v2935_v37 = vpack.c.bf16 %v3151_v31, %v3151_v31  ;;  %v929_v39 = vpop.f32.mrb[31].mxu0  ;;  %v2024_v43 = vadd.f32 %v2023_v30, %v2022_v29  ;;  %v2415_v44 = vadd.f32 %v2414_v34, %v2413_v26  ;;  %v2264_v63 = vmul.f32 %v3151_v31, %v3151_v31  ;;  %v3737_v26 = vpop.f32.mrb[29].mxu1 }
 0x146   : > { %1866 = vst.msk [vmem:[%s3395_s24 + $0x70] sm:$0xf] %vm1837_vm1, %v2932_v27  ;;  %v2933_v45 = vpack.c.bf16 %v929_v39, %v929_v39  ;;  %v2416_v52 = vsel %vm1967_vm2, %v2261_v35, 0.0  ;;  %v2025_v53 = vsel %vm1967_vm2, %v929_v39, 0.0  ;;  %v2262_v56 = vmul.f32 %v929_v39, %v929_v39  ;;  %4509 = vst [vmem:[#allocation13_spill] sm:$0xff] %v3732_v17  ;;  %v3742_v34 = vpop.f32.mrb[30].mxu1 }
 0x147   : > { %1869 = vst.msk [vmem:[%s3395_s24 + $0x7c] sm:$0xf] %vm1837_vm1, %v2935_v37  ;;  %v2417_v57 = vadd.f32 %v2416_v52, %v2415_v44  ;;  %v2026_v60 = vadd.f32 %v2025_v53, %v2024_v43  ;;  %v2420_v9 = vsel %vm1967_vm2, %v2263_v50, 0.0  ;;  %v2029_v10 = vsel %vm1967_vm2, %v3151_v31, 0.0  ;;  %v3746_v43 = vpop.f32.mrb[31].mxu1 }
 0x148   : > { %1867 = vst.msk [vmem:[%s3395_s24 + $0x74] sm:$0xf] %vm1837_vm1, %v2933_v45  ;;  %v2418_v0 = vsel %vm1967_vm2, %v2262_v56, 0.0  ;;  %v2422_v27 = vsel %vm1967_vm2, %v2264_v63, 0.0  ;;  %v2981_v63 = vpack.c.bf16 %v3618_v32, %v3618_v32 }
 0x149   : > { %v2028_v3 = vadd.f32 %v2027_v62, %v2026_v60  ;;  %v2419_v4 = vadd.f32 %v2418_v0, %v2417_v57 }
 0x14a   : > { %v3154_v6 = vpop.f32.mrb[32].mxu0  ;;  %1915 = vst.msk [vmem:[%s3395_s24 + $0x134] sm:$0xf] %vm1837_vm1, %v2981_v63 }
 0x14b   : > { %v2938_v13 = vpack.c.bf16 %v3154_v6, %v3154_v6  ;;  %v942_v14 = vpop.f32.mrb[33].mxu0  ;;  %v2421_v18 = vadd.f32 %v2420_v9, %v2419_v4  ;;  %v2030_v21 = vadd.f32 %v2029_v10, %v2028_v3  ;;  %v2267_v44 = vmul.f32 %v3154_v6, %v3154_v6 }
 0x14c   : > { %v2936_v19 = vpack.c.bf16 %v942_v14, %v942_v14  ;;  %v2031_v22 = vsel %vm1967_vm2, %v942_v14, 0.0  ;;  %v3155_v24 = vpop.f32.mrb[34].mxu0  ;;  %v2265_v29 = vmul.f32 %v942_v14, %v942_v14  ;;  %v2035_v57 = vsel %vm1967_vm2, %v3154_v6, 0.0 }
 0x14d   : > { %1872 = vst.msk [vmem:[%s3395_s24 + $0x88] sm:$0xf] %vm1837_vm1, %v2938_v13  ;;  %v2939_v30 = vpack.c.bf16 %v3155_v24, %v3155_v24  ;;  %v945_v31 = vpop.f32.mrb[35].mxu0  ;;  %v2032_v35 = vadd.f32 %v2031_v22, %v2030_v21  ;;  %v2423_v37 = vadd.f32 %v2422_v27, %v2421_v18  ;;  %v2268_v60 = vmul.f32 %v3155_v24, %v3155_v24  ;;  %v3764_v13 = vpop.f32.mrb[32].mxu1 }
 0x14e   : > { %1870 = vst.msk [vmem:[%s3395_s24 + $0x80] sm:$0xf] %vm1837_vm1, %v2936_v19  ;;  %v2937_v39 = vpack.c.bf16 %v945_v31, %v945_v31  ;;  %v2424_v45 = vsel %vm1967_vm2, %v2265_v29, 0.0  ;;  %v2033_v50 = vsel %vm1967_vm2, %v945_v31, 0.0  ;;  %v2266_v52 = vmul.f32 %v945_v31, %v945_v31  ;;  %v3769_v27 = vpop.f32.mrb[33].mxu1 }
 0x14f   : > { %1873 = vst.msk [vmem:[%s3395_s24 + $0x8c] sm:$0xf] %vm1837_vm1, %v2939_v30  ;;  %v2425_v53 = vadd.f32 %v2424_v45, %v2423_v37  ;;  %v2034_v56 = vadd.f32 %v2033_v50, %v2032_v35  ;;  %v2986_v4 = vpack.c.bf16 %v3636_v59, %v3636_v59  ;;  %v2428_v8 = vsel %vm1967_vm2, %v2267_v44, 0.0  ;;  %v3774_v35 = vpop.f32.mrb[34].mxu1 }
 0x150   : > { %1871 = vst.msk [vmem:[%s3395_s24 + $0x84] sm:$0xf] %vm1837_vm1, %v2937_v39  ;;  %v2426_v62 = vsel %vm1967_vm2, %v2266_v52, 0.0  ;;  %v2037_v9 = vsel %vm1967_vm2, %v3155_v24, 0.0  ;;  %v2430_v24 = vsel %vm1967_vm2, %v2268_v60, 0.0  ;;  %v3778_v45 = vpop.f32.mrb[35].mxu1 }
 0x151   : > { %v2036_v0 = vadd.f32 %v2035_v57, %v2034_v56  ;;  %v2427_v2 = vadd.f32 %v2426_v62, %v2425_v53  ;;  %1920 = vst.msk [vmem:[%s3395_s24 + $0x148] sm:$0xf] %vm1837_vm1, %v2986_v4 }
 0x152   : > { %v3158_v3 = vpop.f32.mrb[36].mxu0 }
 0x153   : > { %v2942_v10 = vpack.c.bf16 %v3158_v3, %v3158_v3  ;;  %v958_v6 = vpop.f32.mrb[37].mxu0  ;;  %v2429_v14 = vadd.f32 %v2428_v8, %v2427_v2  ;;  %v2038_v19 = vadd.f32 %v2037_v9, %v2036_v0  ;;  %v2271_v50 = vmul.f32 %v3158_v3, %v3158_v3 }
 0x154   : > { %v2940_v18 = vpack.c.bf16 %v958_v6, %v958_v6  ;;  %v2039_v21 = vsel %vm1967_vm2, %v958_v6, 0.0  ;;  %v3159_v22 = vpop.f32.mrb[38].mxu0  ;;  %v2269_v29 = vmul.f32 %v958_v6, %v958_v6  ;;  %v2043_v62 = vsel %vm1967_vm2, %v3158_v3, 0.0 }
 0x155   : > { %1876 = vst.msk [vmem:[%s3395_s24 + $0x98] sm:$0xf] %vm1837_vm1, %v2942_v10  ;;  %v2943_v30 = vpack.c.bf16 %v3159_v22, %v3159_v22  ;;  %v961_v31 = vpop.f32.mrb[39].mxu0  ;;  %v2040_v37 = vadd.f32 %v2039_v21, %v2038_v19  ;;  %v2431_v39 = vadd.f32 %v2430_v24, %v2429_v14  ;;  %v2272_v63 = vmul.f32 %v3159_v22, %v3159_v22  ;;  %v3796_v19 = vpop.f32.mrb[36].mxu1 }
 0x156   : > { %1874 = vst.msk [vmem:[%s3395_s24 + $0x90] sm:$0xf] %vm1837_vm1, %v2940_v18  ;;  %v2941_v44 = vpack.c.bf16 %v961_v31, %v961_v31  ;;  %v2432_v52 = vsel %vm1967_vm2, %v2269_v29, 0.0  ;;  %v2041_v53 = vsel %vm1967_vm2, %v961_v31, 0.0  ;;  %v2270_v56 = vmul.f32 %v961_v31, %v961_v31 }
 0x157   : > { %1877 = vst.msk [vmem:[%s3395_s24 + $0x9c] sm:$0xf] %vm1837_vm1, %v2943_v30  ;;  %v2433_v57 = vadd.f32 %v2432_v52, %v2431_v39  ;;  %v2042_v60 = vadd.f32 %v2041_v53, %v2040_v37  ;;  %v2984_v2 = vpack.c.bf16 %v3641_v1, %v3641_v1  ;;  %v2987_v10 = vpack.c.bf16 %v3646_v7, %v3646_v7  ;;  %v3801_v37 = vpop.f32.mrb[37].mxu1 }
 0x158   : > { %1875 = vst.msk [vmem:[%s3395_s24 + $0x94] sm:$0xf] %vm1837_vm1, %v2941_v44  ;;  %v2434_v0 = vsel %vm1967_vm2, %v2270_v56, 0.0  ;;  %v2436_v6 = vsel %vm1967_vm2, %v2271_v50, 0.0  ;;  %v2045_v14 = vsel %vm1967_vm2, %v3159_v22, 0.0  ;;  %v2438_v22 = vsel %vm1967_vm2, %v2272_v63, 0.0 }
 0x159   : > { %v2044_v4 = vadd.f32 %v2043_v62, %v2042_v60  ;;  %v2435_v8 = vadd.f32 %v2434_v0, %v2433_v57  ;;  %1918 = vst.msk [vmem:[%s3395_s24 + $0x140] sm:$0xf] %vm1837_vm1, %v2984_v2  ;;  %1921 = vst.msk [vmem:[%s3395_s24 + $0x14c] sm:$0xf] %vm1837_vm1, %v2987_v10  ;;  %v3806_v52 = vpop.f32.mrb[38].mxu1 }
 0x15a   : > { %v3162_v9 = vpop.f32.mrb[40].mxu0  ;;  %v3810_v60 = vpop.f32.mrb[39].mxu1 }
 0x15b   : > { %v2946_v18 = vpack.c.bf16 %v3162_v9, %v3162_v9  ;;  %v974_v3 = vpop.f32.mrb[41].mxu0  ;;  %v2437_v21 = vadd.f32 %v2436_v6, %v2435_v8  ;;  %v2046_v29 = vadd.f32 %v2045_v14, %v2044_v4  ;;  %v2275_v62 = vmul.f32 %v3162_v9, %v3162_v9 }
 0x15c   : > { %v2944_v24 = vpack.c.bf16 %v974_v3, %v974_v3  ;;  %v2047_v30 = vsel %vm1967_vm2, %v974_v3, 0.0  ;;  %v3163_v31 = vpop.f32.mrb[42].mxu0  ;;  %v2273_v39 = vmul.f32 %v974_v3, %v974_v3  ;;  %v2051_v10 = vsel %vm1967_vm2, %v3162_v9, 0.0 }
 0x15d   : > { %1880 = vst.msk [vmem:[%s3395_s24 + $0xa8] sm:$0xf] %vm1837_vm1, %v2946_v18  ;;  %v2947_v44 = vpack.c.bf16 %v3163_v31, %v3163_v31  ;;  %v977_v50 = vpop.f32.mrb[43].mxu0  ;;  %v2048_v53 = vadd.f32 %v2047_v30, %v2046_v29  ;;  %v2439_v56 = vadd.f32 %v2438_v22, %v2437_v21  ;;  %v2276_v6 = vmul.f32 %v3163_v31, %v3163_v31 }
 0x15e   : > { %1878 = vst.msk [vmem:[%s3395_s24 + $0xa0] sm:$0xf] %vm1837_vm1, %v2944_v24  ;;  %v2945_v57 = vpack.c.bf16 %v977_v50, %v977_v50  ;;  %v2440_v0 = vsel %vm1967_vm2, %v2273_v39, 0.0  ;;  %v2049_v63 = vsel %vm1967_vm2, %v977_v50, 0.0  ;;  %v2274_v2 = vmul.f32 %v977_v50, %v977_v50 }
 0x15f   : > { %1881 = vst.msk [vmem:[%s3395_s24 + $0xac] sm:$0xf] %vm1837_vm1, %v2947_v44  ;;  %v2441_v4 = vadd.f32 %v2440_v0, %v2439_v56  ;;  %v2050_v8 = vadd.f32 %v2049_v63, %v2048_v53  ;;  %v2985_v18 = vpack.c.bf16 %v3650_v12, %v3650_v12  ;;  %v2990_v29 = vpack.c.bf16 %v3668_v38, %v3668_v38  ;;  %v3828_v44 = vpop.f32.mrb[40].mxu1 }
 0x160   : > { %1879 = vst.msk [vmem:[%s3395_s24 + $0xa4] sm:$0xf] %vm1837_vm1, %v2945_v57  ;;  %v2442_v14 = vsel %vm1967_vm2, %v2274_v2, 0.0  ;;  %v2444_v30 = vsel %vm1967_vm2, %v2275_v62, 0.0  ;;  %v2053_v22 = vsel %vm1967_vm2, %v3163_v31, 0.0  ;;  %v3833_v63 = vpop.f32.mrb[41].mxu1 }
 0x161   : > { %v2052_v3 = vadd.f32 %v2051_v10, %v2050_v8  ;;  %v2443_v21 = vadd.f32 %v2442_v14, %v2441_v4  ;;  %1919 = vst.msk [vmem:[%s3395_s24 + $0x144] sm:$0xf] %vm1837_vm1, %v2985_v18  ;;  %1924 = vst.msk [vmem:[%s3395_s24 + $0x158] sm:$0xf] %vm1837_vm1, %v2990_v29  ;;  %v2446_v31 = vsel %vm1967_vm2, %v2276_v6, 0.0  ;;  %v3838_v8 = vpop.f32.mrb[42].mxu1 }
 0x162   : > { %v3166_v24 = vpop.f32.mrb[44].mxu0 }
 0x163   : > { %v2950_v39 = vpack.c.bf16 %v3166_v24, %v3166_v24  ;;  %v990_v9 = vpop.f32.mrb[45].mxu0  ;;  %v2445_v50 = vadd.f32 %v2444_v30, %v2443_v21  ;;  %v2054_v56 = vadd.f32 %v2053_v22, %v2052_v3  ;;  %v3842_v3 = vpop.f32.mrb[43].mxu1  ;;  %v2279_v21 = vmul.f32 %v3166_v24, %v3166_v24 }
 0x164   : > { %v2948_v53 = vpack.c.bf16 %v990_v9, %v990_v9  ;;  %v2055_v57 = vsel %vm1967_vm2, %v990_v9, 0.0  ;;  %v3167_v0 = vpop.f32.mrb[46].mxu0  ;;  %v2277_v62 = vmul.f32 %v990_v9, %v990_v9  ;;  %v2059_v9 = vsel %vm1967_vm2, %v3166_v24, 0.0 }
 0x165   : > { %1884 = vst.msk [vmem:[%s3395_s24 + $0xb8] sm:$0xf] %vm1837_vm1, %v2950_v39  ;;  %v2951_v2 = vpack.c.bf16 %v3167_v0, %v3167_v0  ;;  %v993_v4 = vpop.f32.mrb[47].mxu0  ;;  %v2056_v10 = vadd.f32 %v2055_v57, %v2054_v56  ;;  %v2447_v14 = vadd.f32 %v2446_v31, %v2445_v50  ;;  %v2988_v56 = vpack.c.bf16 %v3673_v47, %v3673_v47 }
 0x166   : > { %1882 = vst.msk [vmem:[%s3395_s24 + $0xb0] sm:$0xf] %vm1837_vm1, %v2948_v53  ;;  %v2949_v18 = vpack.c.bf16 %v993_v4, %v993_v4  ;;  %v2448_v29 = vsel %vm1967_vm2, %v2277_v62, 0.0  ;;  %v2057_v6 = vsel %vm1967_vm2, %v993_v4, 0.0  ;;  %v2278_v30 = vmul.f32 %v993_v4, %v993_v4 }
 0x167   : > { %1885 = vst.msk [vmem:[%s3395_s24 + $0xbc] sm:$0xf] %vm1837_vm1, %v2951_v2  ;;  %v2449_v22 = vadd.f32 %v2448_v29, %v2447_v14  ;;  %v2058_v39 = vadd.f32 %v2057_v6, %v2056_v10  ;;  %v2280_v53 = vmul.f32 %v3167_v0, %v3167_v0  ;;  %v2991_v2 = vpack.c.bf16 %v3678_v55, %v3678_v55 }
 0x168   : > { %1883 = vst.msk [vmem:[%s3395_s24 + $0xb4] sm:$0xf] %vm1837_vm1, %v2949_v18  ;;  %v2450_v50 = vsel %vm1967_vm2, %v2278_v30, 0.0  ;;  %v2452_v4 = vsel %vm1967_vm2, %v2279_v21, 0.0  ;;  %v2061_v10 = vsel %vm1967_vm2, %v3167_v0, 0.0  ;;  %v3860_v18 = vpop.f32.mrb[44].mxu1 }
 0x169   : > { %v2060_v57 = vadd.f32 %v2059_v9, %v2058_v39  ;;  %v2451_v31 = vadd.f32 %v2450_v50, %v2449_v22  ;;  %1922 = vst.msk [vmem:[%s3395_s24 + $0x150] sm:$0xf] %vm1837_vm1, %v2988_v56  ;;  %1925 = vst.msk [vmem:[%s3395_s24 + $0x15c] sm:$0xf] %vm1837_vm1, %v2991_v2  ;;  %v3865_v9 = vpop.f32.mrb[45].mxu1  ;;  %v2454_v0 = vsel %vm1967_vm2, %v2280_v53, 0.0 }
 0x16a   : > { %v3170_v62 = vpop.f32.mrb[48].mxu0  ;;  %v3870_v55 = vpop.f32.mrb[46].mxu1 }
 0x16b   : > { %v2954_v14 = vpack.c.bf16 %v3170_v62, %v3170_v62  ;;  %v1006_v24 = vpop.f32.mrb[49].mxu0  ;;  %v2453_v29 = vadd.f32 %v2452_v4, %v2451_v31  ;;  %v2062_v30 = vadd.f32 %v2061_v10, %v2060_v57  ;;  %v3874_v10 = vpop.f32.mrb[47].mxu1  ;;  %v2283_v2 = vmul.f32 %v3170_v62, %v3170_v62 }
 0x16c   : > { %v2952_v6 = vpack.c.bf16 %v1006_v24, %v1006_v24  ;;  %v2063_v22 = vsel %vm1967_vm2, %v1006_v24, 0.0  ;;  %v3171_v39 = vpop.f32.mrb[50].mxu0  ;;  %v2281_v21 = vmul.f32 %v1006_v24, %v1006_v24 }
 0x16d   : > { %1888 = vst.msk [vmem:[%s3395_s24 + $0xc8] sm:$0xf] %vm1837_vm1, %v2954_v14  ;;  %v2955_v50 = vpack.c.bf16 %v3171_v39, %v3171_v39  ;;  %v1009_v56 = vpop.f32.mrb[51].mxu0  ;;  %v2064_v57 = vadd.f32 %v2063_v22, %v2062_v30  ;;  %v2455_v31 = vadd.f32 %v2454_v0, %v2453_v29  ;;  %v2284_v30 = vmul.f32 %v3171_v39, %v3171_v39 }
 0x16e   : > { %1886 = vst.msk [vmem:[%s3395_s24 + $0xc0] sm:$0xf] %vm1837_vm1, %v2952_v6  ;;  %v2953_v4 = vpack.c.bf16 %v1009_v56, %v1009_v56  ;;  %v2456_v38 = vsel %vm1967_vm2, %v2281_v21, 0.0  ;;  %v2065_v53 = vsel %vm1967_vm2, %v1009_v56, 0.0  ;;  %v2282_v14 = vmul.f32 %v1009_v56, %v1009_v56 }
 0x16f   : > { %1889 = vst.msk [vmem:[%s3395_s24 + $0xcc] sm:$0xf] %vm1837_vm1, %v2955_v50  ;;  %v2457_v24 = vadd.f32 %v2456_v38, %v2455_v31  ;;  %v2066_v47 = vadd.f32 %v2065_v53, %v2064_v57  ;;  %v2067_v6 = vsel %vm1967_vm2, %v3170_v62, 0.0  ;;  %v2989_v22 = vpack.c.bf16 %v3682_v61, %v3682_v61 }
 0x170   : > { %1887 = vst.msk [vmem:[%s3395_s24 + $0xc4] sm:$0xf] %vm1837_vm1, %v2953_v4  ;;  %v2458_v29 = vsel %vm1967_vm2, %v2282_v14, 0.0  ;;  %v2994_v56 = vpack.c.bf16 %v3700_v25, %v3700_v25  ;;  %v2460_v38 = vsel %vm1967_vm2, %v2283_v2, 0.0  ;;  %v2069_v57 = vsel %vm1967_vm2, %v3171_v39, 0.0  ;;  %v3892_v4 = vpop.f32.mrb[48].mxu1 }
 0x171   : > { %v2068_v0 = vadd.f32 %v2067_v6, %v2066_v47  ;;  %v2459_v21 = vadd.f32 %v2458_v29, %v2457_v24  ;;  %1923 = vst.msk [vmem:[%s3395_s24 + $0x154] sm:$0xf] %vm1837_vm1, %v2989_v22  ;;  %v3897_v29 = vpop.f32.mrb[49].mxu1  ;;  %v2462_v39 = vsel %vm1967_vm2, %v2284_v30, 0.0 }
 0x172   : > { %v3174_v50 = vpop.f32.mrb[52].mxu0  ;;  %1928 = vst.msk [vmem:[%s3395_s24 + $0x168] sm:$0xf] %vm1837_vm1, %v2994_v56  ;;  %v3902_v61 = vpop.f32.mrb[50].mxu1 }
 0x173   : > { %v2958_v31 = vpack.c.bf16 %v3174_v50, %v3174_v50  ;;  %v1022_v62 = vpop.f32.mrb[53].mxu0  ;;  %v2461_v53 = vadd.f32 %v2460_v38, %v2459_v21  ;;  %v2070_v47 = vadd.f32 %v2069_v57, %v2068_v0  ;;  %v3906_v57 = vpop.f32.mrb[51].mxu1  ;;  %v2287_v56 = vmul.f32 %v3174_v50, %v3174_v50 }
 0x174   : > { %v2956_v14 = vpack.c.bf16 %v1022_v62, %v1022_v62  ;;  %v2071_v24 = vsel %vm1967_vm2, %v1022_v62, 0.0  ;;  %v3175_v6 = vpop.f32.mrb[54].mxu0  ;;  %v2285_v2 = vmul.f32 %v1022_v62, %v1022_v62 }
 0x175   : > { %1892 = vst.msk [vmem:[%s3395_s24 + $0xd8] sm:$0xf] %vm1837_vm1, %v2958_v31  ;;  %v2959_v22 = vpack.c.bf16 %v3175_v6, %v3175_v6  ;;  %v1025_v25 = vpop.f32.mrb[55].mxu0  ;;  %v2072_v0 = vadd.f32 %v2071_v24, %v2070_v47  ;;  %v2463_v21 = vadd.f32 %v2462_v39, %v2461_v53  ;;  %v2288_v47 = vmul.f32 %v3175_v6, %v3175_v6 }
 0x176   : > { %1890 = vst.msk [vmem:[%s3395_s24 + $0xd0] sm:$0xf] %vm1837_vm1, %v2956_v14  ;;  %v2957_v38 = vpack.c.bf16 %v1025_v25, %v1025_v25  ;;  %v2464_v7 = vsel %vm1967_vm2, %v2285_v2, 0.0  ;;  %v2073_v30 = vsel %vm1967_vm2, %v1025_v25, 0.0  ;;  %v2286_v31 = vmul.f32 %v1025_v25, %v1025_v25 }
 0x177   : > { %1893 = vst.msk [vmem:[%s3395_s24 + $0xdc] sm:$0xf] %vm1837_vm1, %v2959_v22  ;;  %v2465_v62 = vadd.f32 %v2464_v7, %v2463_v21  ;;  %v2074_v59 = vadd.f32 %v2073_v30, %v2072_v0  ;;  %v2075_v14 = vsel %vm1967_vm2, %v3174_v50, 0.0  ;;  %v2992_v24 = vpack.c.bf16 %v3705_v33, %v3705_v33 }
 0x178   : > { %1891 = vst.msk [vmem:[%s3395_s24 + $0xd4] sm:$0xf] %vm1837_vm1, %v2957_v38  ;;  %v2466_v53 = vsel %vm1967_vm2, %v2286_v31, 0.0  ;;  %v2995_v25 = vpack.c.bf16 %v3710_v41, %v3710_v41  ;;  %v2468_v7 = vsel %vm1967_vm2, %v2287_v56, 0.0  ;;  %v2077_v0 = vsel %vm1967_vm2, %v3175_v6, 0.0  ;;  %v3924_v38 = vpop.f32.mrb[52].mxu1 }
 0x179   : > { %v2076_v39 = vadd.f32 %v2075_v14, %v2074_v59  ;;  %v2467_v2 = vadd.f32 %v2466_v53, %v2465_v62  ;;  %1926 = vst.msk [vmem:[%s3395_s24 + $0x160] sm:$0xf] %vm1837_vm1, %v2992_v24  ;;  %v3929_v53 = vpop.f32.mrb[53].mxu1  ;;  %v2470_v6 = vsel %vm1967_vm2, %v2288_v47, 0.0 }
 0x17a   : > { %v3178_v22 = vpop.f32.mrb[56].mxu0  ;;  %1929 = vst.msk [vmem:[%s3395_s24 + $0x16c] sm:$0xf] %vm1837_vm1, %v2995_v25  ;;  %v3934_v33 = vpop.f32.mrb[54].mxu1 }
 0x17b   : > { %v2962_v21 = vpack.c.bf16 %v3178_v22, %v3178_v22  ;;  %v1038_v50 = vpop.f32.mrb[57].mxu0  ;;  %v2469_v30 = vadd.f32 %v2468_v7, %v2467_v2  ;;  %v2078_v59 = vadd.f32 %v2077_v0, %v2076_v39  ;;  %4510 = vst [vmem:[#allocation14_spill] sm:$0xff] %v3934_v33  ;;  %v3938_v0 = vpop.f32.mrb[55].mxu1  ;;  %v2291_v25 = vmul.f32 %v3178_v22, %v3178_v22 }
 0x17c   : > { %v2960_v31 = vpack.c.bf16 %v1038_v50, %v1038_v50  ;;  %v2079_v62 = vsel %vm1967_vm2, %v1038_v50, 0.0  ;;  %v3179_v14 = vpop.f32.mrb[58].mxu0  ;;  %v2289_v56 = vmul.f32 %v1038_v50, %v1038_v50 }
 0x17d   : > { %1896 = vst.msk [vmem:[%s3395_s24 + $0xe8] sm:$0xf] %vm1837_vm1, %v2962_v21  ;;  %v2963_v24 = vpack.c.bf16 %v3179_v14, %v3179_v14  ;;  %v1041_v41 = vpop.f32.mrb[59].mxu0  ;;  %v2080_v39 = vadd.f32 %v2079_v62, %v2078_v59  ;;  %v2471_v2 = vadd.f32 %v2470_v6, %v2469_v30  ;;  %v2292_v59 = vmul.f32 %v3179_v14, %v3179_v14 }
 0x17e   : > { %1894 = vst.msk [vmem:[%s3395_s24 + $0xe0] sm:$0xf] %vm1837_vm1, %v2960_v31  ;;  %v2961_v7 = vpack.c.bf16 %v1041_v41, %v1041_v41  ;;  %v2472_v12 = vsel %vm1967_vm2, %v2289_v56, 0.0  ;;  %v2081_v47 = vsel %vm1967_vm2, %v1041_v41, 0.0  ;;  %v2290_v21 = vmul.f32 %v1041_v41, %v1041_v41 }
 0x17f   : > { %1897 = vst.msk [vmem:[%s3395_s24 + $0xec] sm:$0xf] %vm1837_vm1, %v2963_v24  ;;  %v2473_v50 = vadd.f32 %v2472_v12, %v2471_v2  ;;  %v2082_v33 = vadd.f32 %v2081_v47, %v2080_v39  ;;  %v2083_v31 = vsel %vm1967_vm2, %v3178_v22, 0.0  ;;  %v2993_v62 = vpack.c.bf16 %v3714_v49, %v3714_v49 }
 0x180   : > { %1895 = vst.msk [vmem:[%s3395_s24 + $0xe4] sm:$0xf] %vm1837_vm1, %v2961_v7  ;;  %v2474_v30 = vsel %vm1967_vm2, %v2290_v21, 0.0  ;;  %v2998_v41 = vpack.c.bf16 %v3732_v17, %v3732_v17  ;;  %v2476_v12 = vsel %vm1967_vm2, %v2291_v25, 0.0  ;;  %v2085_v39 = vsel %vm1967_vm2, %v3179_v14, 0.0  ;;  %v3956_v7 = vpop.f32.mrb[56].mxu1 }
 0x181   : > { %v2084_v6 = vadd.f32 %v2083_v31, %v2082_v33  ;;  %v2475_v56 = vadd.f32 %v2474_v30, %v2473_v50  ;;  %1927 = vst.msk [vmem:[%s3395_s24 + $0x164] sm:$0xf] %vm1837_vm1, %v2993_v62  ;;  %v3961_v30 = vpop.f32.mrb[57].mxu1  ;;  %v2478_v14 = vsel %vm1967_vm2, %v2292_v59, 0.0 }
 0x182   : > { %v3182_v24 = vpop.f32.mrb[60].mxu0  ;;  %1932 = vst.msk [vmem:[%s3395_s24 + $0x178] sm:$0xf] %vm1837_vm1, %v2998_v41  ;;  %4511 = vst [vmem:[#allocation15_spill] sm:$0xff] %v3961_v30  ;;  %v3966_v49 = vpop.f32.mrb[58].mxu1 }
 0x183   : > { %v2966_v2 = vpack.c.bf16 %v3182_v24, %v3182_v24  ;;  %v1054_v22 = vpop.f32.mrb[61].mxu0  ;;  %v2477_v47 = vadd.f32 %v2476_v12, %v2475_v56  ;;  %v2086_v33 = vadd.f32 %v2085_v39, %v2084_v6  ;;  %4512 = vst [vmem:[#allocation16_spill] sm:$0xff] %v3966_v49  ;;  %v3970_v39 = vpop.f32.mrb[59].mxu1  ;;  %v2295_v41 = vmul.f32 %v3182_v24, %v3182_v24 }
 0x184   : > { %v2964_v21 = vpack.c.bf16 %v1054_v22, %v1054_v22  ;;  %v2087_v50 = vsel %vm1967_vm2, %v1054_v22, 0.0  ;;  %v3183_v31 = vpop.f32.mrb[62].mxu0  ;;  %v2293_v25 = vmul.f32 %v1054_v22, %v1054_v22 }
 0x185   : > { %1900 = vst.msk [vmem:[%s3395_s24 + $0xf8] sm:$0xf] %vm1837_vm1, %v2966_v2  ;;  %v2967_v62 = vpack.c.bf16 %v3183_v31, %v3183_v31  ;;  %v1057_v17 = vpop.f32.mrb[63].mxu0  ;;  %v2088_v6 = vadd.f32 %v2087_v50, %v2086_v33  ;;  %v2479_v56 = vadd.f32 %v2478_v14, %v2477_v47  ;;  %v2091_v47 = vsel %vm1967_vm2, %v3182_v24, 0.0 }
 0x186   : > { %1898 = vst.msk [vmem:[%s3395_s24 + $0xf0] sm:$0xf] %vm1837_vm1, %v2964_v21  ;;  %v2965_v12 = vpack.c.bf16 %v1057_v17, %v1057_v17  ;;  %v2480_v30 = vsel %vm1967_vm2, %v2293_v25, 0.0  ;;  %v2089_v59 = vsel %vm1967_vm2, %v1057_v17, 0.0  ;;  %v2294_v2 = vmul.f32 %v1057_v17, %v1057_v17 }
 0x187   : > { %1901 = vst.msk [vmem:[%s3395_s24 + $0xfc] sm:$0xf] %vm1837_vm1, %v2967_v62  ;;  %v2481_v22 = vadd.f32 %v2480_v30, %v2479_v56  ;;  %v2090_v49 = vadd.f32 %v2089_v59, %v2088_v6  ;;  %v2297_v21 = vmul.f32 %v3510_v42, %v3510_v42  ;;  %v2296_v33 = vmul.f32 %v3183_v31, %v3183_v31 }
 0x188   : > { %1899 = vst.msk [vmem:[%s3395_s24 + $0xf4] sm:$0xf] %vm1837_vm1, %v2965_v12  ;;  %v2482_v50 = vsel %vm1967_vm2, %v2294_v2, 0.0  ;;  %v2996_v14 = vpack.c.bf16 %v3737_v26, %v3737_v26  ;;  %v2999_v17 = vpack.c.bf16 %v3742_v34, %v3742_v34  ;;  %v2484_v30 = vsel %vm1967_vm2, %v2295_v41, 0.0  ;;  %v3994_v12 = vpop.f32.mrb[60].mxu1 }
 0x189   : > { %v2092_v25 = vadd.f32 %v2091_v47, %v2090_v49  ;;  %v2483_v62 = vadd.f32 %v2482_v50, %v2481_v22  ;;  %v2093_v6 = vsel %vm1967_vm2, %v3183_v31, 0.0  ;;  %v2095_v56 = vsel %vm1967_vm2, %v3510_v42, 0.0  ;;  %v3998_v2 = vpop.f32.mrb[61].mxu1 }
 0x18a   : > { %1930 = vst.msk [vmem:[%s3395_s24 + $0x170] sm:$0xf] %vm1837_vm1, %v2996_v14  ;;  %v2997_v24 = vpack.c.bf16 %v3746_v43, %v3746_v43  ;;  %1933 = vst.msk [vmem:[%s3395_s24 + $0x17c] sm:$0xf] %vm1837_vm1, %v2999_v17  ;;  %v2486_v41 = vsel %vm1967_vm2, %v2296_v33, 0.0  ;;  %v2488_v31 = vsel %vm1967_vm2, %v2297_v21, 0.0  ;;  %v2298_v42 = vmul.f32 %v3519_v51, %v3519_v51 }
 0x18b   : > { %v2094_v49 = vadd.f32 %v2093_v6, %v2092_v25  ;;  %v2485_v59 = vadd.f32 %v2484_v30, %v2483_v62  ;;  %v3002_v22 = vpack.c.bf16 %v3764_v13, %v3764_v13  ;;  %v4008_v47 = vpop.f32.mrb[62].mxu1  ;;  %v3000_v25 = vpack.c.bf16 %v3769_v27, %v3769_v27 }
 0x18c   : > { %1931 = vst.msk [vmem:[%s3395_s24 + $0x174] sm:$0xf] %vm1837_vm1, %v2997_v24  ;;  %v4012_v33 = vpop.f32.mrb[63].mxu1  ;;  %v2299_v21 = vmul.f32 %v3507_v36, %v3507_v36  ;;  %v2097_v62 = vsel %vm1967_vm2, %v3519_v51, 0.0  ;;  %v3003_v17 = vpack.c.bf16 %v3774_v35, %v3774_v35  ;;  %v2099_v30 = vsel %vm1967_vm2, %v3507_v36, 0.0 }
 0x18d   : > { %v2487_v50 = vadd.f32 %v2486_v41, %v2485_v59  ;;  %v2096_v14 = vadd.f32 %v2095_v56, %v2094_v49  ;;  %1936 = vst.msk [vmem:[%s3395_s24 + $0x188] sm:$0xf] %vm1837_vm1, %v3002_v22  ;;  %1934 = vst.msk [vmem:[%s3395_s24 + $0x180] sm:$0xf] %vm1837_vm1, %v3000_v25  ;;  %v2300_v24 = vmul.f32 %v3514_v46, %v3514_v46  ;;  %v2490_v49 = vsel %vm1967_vm2, %v2298_v42, 0.0 }
 0x18e   : > { %v2301_v51 = vmul.f32 %v3545_v11, %v3545_v11  ;;  %1937 = vst.msk [vmem:[%s3395_s24 + $0x18c] sm:$0xf] %vm1837_vm1, %v3003_v17  ;;  %v3001_v59 = vpack.c.bf16 %v3778_v45, %v3778_v45  ;;  %v2492_v22 = vsel %vm1967_vm2, %v2299_v21, 0.0  ;;  %v2103_v42 = vsel %vm1967_vm2, %v3545_v11, 0.0 }
 0x18f   : > { %v2489_v6 = vadd.f32 %v2488_v31, %v2487_v50  ;;  %v2098_v56 = vadd.f32 %v2097_v62, %v2096_v14  ;;  %v3006_v31 = vpack.c.bf16 %v3796_v19, %v3796_v19  ;;  %v2101_v50 = vsel %vm1967_vm2, %v3514_v46, 0.0 }
 0x190   : > { %1935 = vst.msk [vmem:[%s3395_s24 + $0x184] sm:$0xf] %vm1837_vm1, %v3001_v59  ;;  %v3004_v14 = vpack.c.bf16 %v3801_v37, %v3801_v37  ;;  %v2494_v17 = vsel %vm1967_vm2, %v2300_v24, 0.0  ;;  %v2496_v21 = vsel %vm1967_vm2, %v2301_v51, 0.0  ;;  %v2302_v46 = vmul.f32 %v3554_v20, %v3554_v20 }
 0x191   : > { %v2100_v36 = vadd.f32 %v2099_v30, %v2098_v56  ;;  %v2491_v41 = vadd.f32 %v2490_v49, %v2489_v6  ;;  %1940 = vst.msk [vmem:[%s3395_s24 + $0x198] sm:$0xf] %vm1837_vm1, %v3006_v31  ;;  %v3007_v11 = vpack.c.bf16 %v3806_v52, %v3806_v52  ;;  %v3005_v56 = vpack.c.bf16 %v3810_v60, %v3810_v60 }
 0x192   : > { %1938 = vst.msk [vmem:[%s3395_s24 + $0x190] sm:$0xf] %vm1837_vm1, %v3004_v14  ;;  %v2303_v49 = vmul.f32 %v3540_v5, %v3540_v5  ;;  %v2105_v24 = vsel %vm1967_vm2, %v3554_v20, 0.0  ;;  %v3010_v51 = vpack.c.bf16 %v3828_v44, %v3828_v44  ;;  %v2107_v59 = vsel %vm1967_vm2, %v3540_v5, 0.0 }
 0x193   : > { %v2493_v25 = vadd.f32 %v2492_v22, %v2491_v41  ;;  %v2102_v62 = vadd.f32 %v2101_v50, %v2100_v36  ;;  %1941 = vst.msk [vmem:[%s3395_s24 + $0x19c] sm:$0xf] %vm1837_vm1, %v3007_v11  ;;  %1939 = vst.msk [vmem:[%s3395_s24 + $0x194] sm:$0xf] %vm1837_vm1, %v3005_v56  ;;  %v2304_v31 = vmul.f32 %v3550_v16, %v3550_v16  ;;  %v2498_v22 = vsel %vm1967_vm2, %v2302_v46, 0.0 }
 0x194   : > { %v2305_v20 = vmul.f32 %v3577_v48, %v3577_v48  ;;  %1944 = vst.msk [vmem:[%s3395_s24 + $0x1a8] sm:$0xf] %vm1837_vm1, %v3010_v51  ;;  %v3008_v50 = vpack.c.bf16 %v3833_v63, %v3833_v63  ;;  %v3011_v14 = vpack.c.bf16 %v3838_v8, %v3838_v8  ;;  %v2307_v51 = vmul.f32 %v3572_v40, %v3572_v40 }
 0x195   : > { %v2104_v30 = vadd.f32 %v2103_v42, %v2102_v62  ;;  %v2495_v6 = vadd.f32 %v2494_v17, %v2493_v25  ;;  %v2500_v25 = vsel %vm1967_vm2, %v2303_v49, 0.0  ;;  %v2109_v62 = vsel %vm1967_vm2, %v3550_v16, 0.0 }
 0x196   : > { %v2111_v17 = vsel %vm1967_vm2, %v3577_v48, 0.0  ;;  %1942 = vst.msk [vmem:[%s3395_s24 + $0x1a0] sm:$0xf] %vm1837_vm1, %v3008_v50  ;;  %1945 = vst.msk [vmem:[%s3395_s24 + $0x1ac] sm:$0xf] %vm1837_vm1, %v3011_v14  ;;  %v2306_v16 = vmul.f32 %v3586_v58, %v3586_v58  ;;  %v3014_v48 = vpack.c.bf16 %v3860_v18, %v3860_v18  ;;  %v3018_v14 = vpack.c.bf16 %v3892_v4, %v3892_v4 }
 0x197   : > { %v2497_v36 = vadd.f32 %v2496_v21, %v2495_v6  ;;  %v2106_v41 = vadd.f32 %v2105_v24, %v2104_v30  ;;  %v3009_v21 = vpack.c.bf16 %v3842_v3, %v3842_v3  ;;  %v2502_v30 = vsel %vm1967_vm2, %v2304_v31, 0.0 }
 0x198   : > { %v2504_v6 = vsel %vm1967_vm2, %v2305_v20, 0.0  ;;  %v3012_v24 = vpack.c.bf16 %v3865_v9, %v3865_v9  ;;  %1948 = vst.msk [vmem:[%s3395_s24 + $0x1b8] sm:$0xf] %vm1837_vm1, %v3014_v48  ;;  %v2308_v20 = vmul.f32 %v3582_v54, %v3582_v54  ;;  %v2506_v50 = vsel %vm1967_vm2, %v2306_v16, 0.0  ;;  %1952 = vst.msk [vmem:[%s3395_s24 + $0x1c8] sm:$0xf] %vm1837_vm1, %v3018_v14 }
 0x199   : > { %v2108_v5 = vadd.f32 %v2107_v59, %v2106_v41  ;;  %v2499_v42 = vadd.f32 %v2498_v22, %v2497_v36  ;;  %1943 = vst.msk [vmem:[%s3395_s24 + $0x1a4] sm:$0xf] %vm1837_vm1, %v3009_v21  ;;  %v2113_v59 = vsel %vm1967_vm2, %v3586_v58, 0.0  ;;  %v3015_v36 = vpack.c.bf16 %v3870_v55, %v3870_v55 }
 0x19a   : > { %v2115_v41 = vsel %vm1967_vm2, %v3572_v40, 0.0  ;;  %1946 = vst.msk [vmem:[%s3395_s24 + $0x1b0] sm:$0xf] %vm1837_vm1, %v3012_v24  ;;  %v2309_v58 = vmul.f32 %v3609_v23, %v3609_v23  ;;  %v3016_v21 = vpack.c.bf16 %v3897_v29, %v3897_v29  ;;  %v2121_v24 = vsel %vm1967_vm2, %v3618_v32, 0.0 }
 0x19b   : > { %v2501_v46 = vadd.f32 %v2500_v25, %v2499_v42  ;;  %v2110_v11 = vadd.f32 %v2109_v62, %v2108_v5  ;;  %1949 = vst.msk [vmem:[%s3395_s24 + $0x1bc] sm:$0xf] %vm1837_vm1, %v3015_v36  ;;  %v3013_v5 = vpack.c.bf16 %v3874_v10, %v3874_v10  ;;  %v2508_v25 = vsel %vm1967_vm2, %v2307_v51, 0.0 }
 0x19c   : > { %v2117_v62 = vsel %vm1967_vm2, %v3582_v54, 0.0  ;;  %v2310_v54 = vmul.f32 %v3618_v32, %v3618_v32  ;;  %1950 = vst.msk [vmem:[%s3395_s24 + $0x1c0] sm:$0xf] %vm1837_vm1, %v3016_v21  ;;  %v3022_v51 = vpack.c.bf16 %v3924_v38, %v3924_v38  ;;  %v2313_v32 = vmul.f32 %v3641_v1, %v3641_v1 }
 0x19d   : > { %v2112_v56 = vadd.f32 %v2111_v17, %v2110_v11  ;;  %v2503_v49 = vadd.f32 %v2502_v30, %v2501_v46  ;;  %v2119_v17 = vsel %vm1967_vm2, %v3609_v23, 0.0  ;;  %1947 = vst.msk [vmem:[%s3395_s24 + $0x1b4] sm:$0xf] %vm1837_vm1, %v3013_v5  ;;  %v2510_v30 = vsel %vm1967_vm2, %v2308_v20, 0.0 }
 0x19e   : > { %v3019_v23 = vpack.c.bf16 %v3902_v61, %v3902_v61  ;;  %1956 = vst.msk [vmem:[%s3395_s24 + $0x1d8] sm:$0xf] %vm1837_vm1, %v3022_v51  ;;  %v3020_v20 = vpack.c.bf16 %v3929_v53, %v3929_v53  ;;  %v2127_v14 = vsel %vm1967_vm2, %v3641_v1, 0.0  ;;  %v3026_v1 = vpack.c.bf16 %v3956_v7, %v3956_v7 }
 0x19f   : > { %v2505_v31 = vadd.f32 %v2504_v6, %v2503_v49  ;;  %v2114_v22 = vadd.f32 %v2113_v59, %v2112_v56  ;;  %v2512_v6 = vsel %vm1967_vm2, %v2309_v58, 0.0  ;;  %v3017_v56 = vpack.c.bf16 %v3906_v57, %v3906_v57  ;;  %v4513_v58 = vld [vmem:[#allocation14_spill] sm:$0xff] }
 0x1a0   : > { %v2311_v49 = vmul.f32 %v3604_v15, %v3604_v15  ;;  %1953 = vst.msk [vmem:[%s3395_s24 + $0x1cc] sm:$0xf] %vm1837_vm1, %v3019_v23  ;;  %v2123_v59 = vsel %vm1967_vm2, %v3604_v15, 0.0  ;;  %v3023_v5 = vpack.c.bf16 %v4513_v58, %v4513_v58  ;;  %1954 = vst.msk [vmem:[%s3395_s24 + $0x1d0] sm:$0xf] %vm1837_vm1, %v3020_v20 }
 0x1a1   : > { %v2116_v40 = vadd.f32 %v2115_v41, %v2114_v22  ;;  %v2507_v42 = vadd.f32 %v2506_v50, %v2505_v31  ;;  %1951 = vst.msk [vmem:[%s3395_s24 + $0x1c4] sm:$0xf] %vm1837_vm1, %v3017_v56  ;;  %v2312_v31 = vmul.f32 %v3614_v28, %v3614_v28  ;;  %v2514_v22 = vsel %vm1967_vm2, %v2310_v54, 0.0  ;;  %v4515_v54 = vld [vmem:[#allocation15_spill] sm:$0xff]  ;;  %1960 = vst.msk [vmem:[%s3395_s24 + $0x1e8] sm:$0xf] %vm1837_vm1, %v3026_v1 }
 0x1a2   : > { %1957 = vst.msk [vmem:[%s3395_s24 + $0x1dc] sm:$0xf] %vm1837_vm1, %v3023_v5  ;;  %v3024_v23 = vpack.c.bf16 %v4515_v54, %v4515_v54 }
 0x1a3   : > { %v2509_v46 = vadd.f32 %v2508_v25, %v2507_v42  ;;  %v2118_v11 = vadd.f32 %v2117_v62, %v2116_v40  ;;  %v2516_v40 = vsel %vm1967_vm2, %v2311_v49, 0.0  ;;  %v2125_v42 = vsel %vm1967_vm2, %v3614_v28, 0.0  ;;  %v4517_v49 = vld [vmem:[#allocation16_spill] sm:$0xff] }
 0x1a4   : > { %v3021_v25 = vpack.c.bf16 %v3938_v0, %v3938_v0  ;;  %v2518_v21 = vsel %vm1967_vm2, %v2312_v31, 0.0  ;;  %1958 = vst.msk [vmem:[%s3395_s24 + $0x1e0] sm:$0xf] %vm1837_vm1, %v3024_v23 }
 0x1a5   : > { %v2120_v16 = vadd.f32 %v2119_v17, %v2118_v11  ;;  %v2511_v48 = vadd.f32 %v2510_v30, %v2509_v46  ;;  %v2520_v46 = vsel %vm1967_vm2, %v2313_v32, 0.0  ;;  %v4514_v11 = vld [vmem:[#allocation4_spill] sm:$0xff]  ;;  %v4519_v32 = vld [vmem:[#allocation6_spill] sm:$0xff] }
 0x1a6   : > { %v2314_v28 = vmul.f32 %v4514_v11, %v4514_v11  ;;  %1955 = vst.msk [vmem:[%s3395_s24 + $0x1d4] sm:$0xf] %vm1837_vm1, %v3021_v25  ;;  %v2129_v56 = vsel %vm1967_vm2, %v4514_v11, 0.0  ;;  %v2317_v20 = vmul.f32 %v4519_v32, %v4519_v32  ;;  %v2135_v25 = vsel %vm1967_vm2, %v4519_v32, 0.0  ;;  %v4523_v32 = vld [vmem:[#allocation10_spill] sm:$0xff] }
 0x1a7   : > { %v2513_v36 = vadd.f32 %v2512_v6, %v2511_v48  ;;  %v2122_v41 = vadd.f32 %v2121_v24, %v2120_v16  ;;  %v4516_v16 = vld [vmem:[#allocation2_spill] sm:$0xff]  ;;  %v3027_v24 = vpack.c.bf16 %v4517_v49, %v4517_v49 }
 0x1a8   : > { %v2315_v48 = vmul.f32 %v4516_v16, %v4516_v16  ;;  %v2131_v51 = vsel %vm1967_vm2, %v4516_v16, 0.0  ;;  %v2528_v11 = vsel %vm1967_vm2, %v2317_v20, 0.0  ;;  %v3029_v16 = vpack.c.bf16 %v4012_v33, %v4012_v33 }
 0x1a9   : > { %v2124_v15 = vadd.f32 %v2123_v59, %v2122_v41  ;;  %v2515_v50 = vadd.f32 %v2514_v22, %v2513_v36  ;;  %v4518_v41 = vld [vmem:[#allocation3_spill] sm:$0xff]  ;;  %v2522_v22 = vsel %vm1967_vm2, %v2314_v28, 0.0  ;;  %1961 = vst.msk [vmem:[%s3395_s24 + $0x1ec] sm:$0xf] %vm1837_vm1, %v3027_v24  ;;  %v4520_v28 = vld [vmem:[#allocation8_spill] sm:$0xff]  ;;  %v2321_v20 = vmul.f32 %v4523_v32, %v4523_v32 }
 0x1aa   : > { %v2316_v31 = vmul.f32 %v4518_v41, %v4518_v41  ;;  %v2318_v1 = vmul.f32 %v4520_v28, %v4520_v28  ;;  %v2137_v24 = vsel %vm1967_vm2, %v4520_v28, 0.0  ;;  %1963 = vst.msk [vmem:[%s3395_s24 + $0x1f4] sm:$0xf] %vm1837_vm1, %v3029_v16 }
 0x1ab   : > { %v2517_v62 = vadd.f32 %v2516_v40, %v2515_v50  ;;  %v2126_v17 = vadd.f32 %v2125_v42, %v2124_v15  ;;  %v3025_v15 = vpack.c.bf16 %v3970_v39, %v3970_v39  ;;  %v3030_v40 = vpack.c.bf16 %v3994_v12, %v3994_v12 }
 0x1ac   : > { %v2524_v42 = vsel %vm1967_vm2, %v2315_v48, 0.0  ;;  %v4521_v48 = vld [vmem:[#allocation5_spill] sm:$0xff] }
 0x1ad   : > { %v2128_v30 = vadd.f32 %v2127_v14, %v2126_v17  ;;  %v2519_v6 = vadd.f32 %v2518_v21, %v2517_v62  ;;  %v2133_v14 = vsel %vm1967_vm2, %v4518_v41, 0.0  ;;  %1959 = vst.msk [vmem:[%s3395_s24 + $0x1e4] sm:$0xf] %vm1837_vm1, %v3025_v15  ;;  %v3028_v62 = vpack.c.bf16 %v3998_v2, %v3998_v2  ;;  %1964 = vst.msk [vmem:[%s3395_s24 + $0x1f8] sm:$0xf] %vm1837_vm1, %v3030_v40  ;;  %v4522_v41 = vld [vmem:[#allocation7_spill] sm:$0xff] }
 0x1ae   : > { %v2141_v40 = vsel %vm1967_vm2, %v4522_v41, 0.0 }
 0x1af   : > { %v2521_v59 = vadd.f32 %v2520_v46, %v2519_v6  ;;  %v2130_v36 = vadd.f32 %v2129_v56, %v2128_v30  ;;  %v2526_v46 = vsel %vm1967_vm2, %v2316_v31, 0.0  ;;  %1962 = vst.msk [vmem:[%s3395_s24 + $0x1f0] sm:$0xf] %vm1837_vm1, %v3028_v62  ;;  %v3031_v30 = vpack.c.bf16 %v4008_v47, %v4008_v47 }
 0x1b0   : > { %v2319_v56 = vmul.f32 %v4521_v48, %v4521_v48  ;;  %v2320_v31 = vmul.f32 %v4522_v41, %v4522_v41 }
 0x1b1   : > { %v2132_v50 = vadd.f32 %v2131_v51, %v2130_v36  ;;  %v2523_v5 = vadd.f32 %v2522_v22, %v2521_v59  ;;  %1965 = vst.msk [vmem:[%s3395_s24 + $0x1fc] sm:$0xf] %vm1837_vm1, %v3031_v30  ;;  %v2139_v36 = vsel %vm1967_vm2, %v4521_v48, 0.0  ;;  %v2530_v22 = vsel %vm1967_vm2, %v2318_v1, 0.0  ;;  %v4525_v1 = vld [vmem:[#allocation9_spill] sm:$0xff] }
 0x1b2   : > { %v2534_v62 = vsel %vm1967_vm2, %v2320_v31, 0.0  ;;  %v2323_v30 = vmul.f32 %v4525_v1, %v4525_v1  ;;  %v2147_v48 = vsel %vm1967_vm2, %v4525_v1, 0.0  ;;  %v2329_v1 = vmul.f32 %v3769_v27, %v3769_v27 }
 0x1b3   : > { %v2525_v17 = vadd.f32 %v2524_v42, %v2523_v5  ;;  %v2134_v21 = vadd.f32 %v2133_v14, %v2132_v50  ;;  %v2532_v5 = vsel %vm1967_vm2, %v2319_v56, 0.0  ;;  %v2143_v42 = vsel %vm1967_vm2, %v4523_v32, 0.0  ;;  %v4526_v56 = vld [vmem:[#allocation11_spill] sm:$0xff] }
 0x1b4   : > { %v2540_v31 = vsel %vm1967_vm2, %v2323_v30, 0.0  ;;  %v2151_v32 = vsel %vm1967_vm2, %v3737_v26, 0.0 }
 0x1b5   : > { %v2136_v6 = vadd.f32 %v2135_v25, %v2134_v21  ;;  %v2527_v23 = vadd.f32 %v2526_v46, %v2525_v17  ;;  %v2536_v17 = vsel %vm1967_vm2, %v2321_v20, 0.0  ;;  %v4524_v21 = vld [vmem:[#allocation12_spill] sm:$0xff] }
 0x1b6   : > { %v2322_v46 = vmul.f32 %v4524_v21, %v4524_v21 }
 0x1b7   : > { %v2529_v51 = vadd.f32 %v2528_v11, %v2527_v23  ;;  %v2138_v59 = vadd.f32 %v2137_v24, %v2136_v6  ;;  %v2145_v6 = vsel %vm1967_vm2, %v4524_v21, 0.0  ;;  %v2324_v24 = vmul.f32 %v4526_v56, %v4526_v56 }
 0x1b9   : > { %v2140_v15 = vadd.f32 %v2139_v36, %v2138_v59  ;;  %v2531_v50 = vadd.f32 %v2530_v22, %v2529_v51  ;;  %v2538_v51 = vsel %vm1967_vm2, %v2322_v46, 0.0  ;;  %v2325_v59 = vmul.f32 %v3737_v26, %v3737_v26 }
 0x1ba   : > { %v2149_v22 = vsel %vm1967_vm2, %v4526_v56, 0.0 }
 0x1bb   : > { %v2533_v14 = vadd.f32 %v2532_v5, %v2531_v50  ;;  %v2142_v25 = vadd.f32 %v2141_v40, %v2140_v15  ;;  %v2542_v50 = vsel %vm1967_vm2, %v2324_v24, 0.0  ;;  %v2544_v5 = vsel %vm1967_vm2, %v2325_v59, 0.0 }
 0x1bc   : > { %v2326_v40 = vmul.f32 %v3746_v43, %v3746_v43  ;;  %v2330_v59 = vmul.f32 %v3778_v45, %v3778_v45 }
 0x1bd   : > { %v2144_v11 = vadd.f32 %v2143_v42, %v2142_v25  ;;  %v2535_v28 = vadd.f32 %v2534_v62, %v2533_v14  ;;  %v4527_v25 = vld [vmem:[#allocation13_spill] sm:$0xff] }
 0x1be   : > { %v2327_v62 = vmul.f32 %v4527_v25, %v4527_v25  ;;  %v2155_v26 = vsel %vm1967_vm2, %v4527_v25, 0.0 }
 0x1bf   : > { %v2537_v23 = vadd.f32 %v2536_v17, %v2535_v28  ;;  %v2146_v16 = vadd.f32 %v2145_v6, %v2144_v11  ;;  %v2153_v17 = vsel %vm1967_vm2, %v3746_v43, 0.0  ;;  %v2328_v11 = vmul.f32 %v3742_v34, %v3742_v34 }
 0x1c0   : > { %v2546_v28 = vsel %vm1967_vm2, %v2326_v40, 0.0  ;;  %v2157_v43 = vsel %vm1967_vm2, %v3742_v34, 0.0  ;;  %v2161_v34 = vsel %vm1967_vm2, %v3778_v45, 0.0  ;;  %v2165_v45 = vsel %vm1967_vm2, %v3774_v35, 0.0 }
 0x1c1   : > { %v2148_v36 = vadd.f32 %v2147_v48, %v2146_v16  ;;  %v2539_v41 = vadd.f32 %v2538_v51, %v2537_v23  ;;  %v2548_v23 = vsel %vm1967_vm2, %v2327_v62, 0.0  ;;  %v2159_v16 = vsel %vm1967_vm2, %v3769_v27, 0.0 }
 0x1c2   : > { %v2550_v24 = vsel %vm1967_vm2, %v2328_v11, 0.0  ;;  %v2552_v51 = vsel %vm1967_vm2, %v2329_v1, 0.0  ;;  %v2163_v27 = vsel %vm1967_vm2, %v3764_v13, 0.0  ;;  %v2335_v11 = vmul.f32 %v3796_v19, %v3796_v19 }
 0x1c3   : > { %v2541_v20 = vadd.f32 %v2540_v31, %v2539_v41  ;;  %v2150_v15 = vadd.f32 %v2149_v22, %v2148_v36  ;;  %v2331_v31 = vmul.f32 %v3764_v13, %v3764_v13 }
 0x1c5   : > { %v2152_v42 = vadd.f32 %v2151_v32, %v2150_v15  ;;  %v2543_v14 = vadd.f32 %v2542_v50, %v2541_v20  ;;  %v2332_v20 = vmul.f32 %v3774_v35, %v3774_v35  ;;  %v2554_v15 = vsel %vm1967_vm2, %v2330_v59, 0.0 }
 0x1c6   : > { %v2333_v50 = vmul.f32 %v3801_v37, %v3801_v37  ;;  %v2169_v35 = vsel %vm1967_vm2, %v3810_v60, 0.0 }
 0x1c7   : > { %v2545_v21 = vadd.f32 %v2544_v5, %v2543_v14  ;;  %v2154_v46 = vadd.f32 %v2153_v17, %v2152_v42  ;;  %v2556_v42 = vsel %vm1967_vm2, %v2331_v31, 0.0  ;;  %v2167_v14 = vsel %vm1967_vm2, %v3801_v37, 0.0 }
 0x1c8   : > { %v2558_v62 = vsel %vm1967_vm2, %v2332_v20, 0.0  ;;  %v2560_v17 = vsel %vm1967_vm2, %v2333_v50, 0.0  ;;  %v2171_v37 = vsel %vm1967_vm2, %v3796_v19, 0.0 }
 0x1c9   : > { %v2156_v30 = vadd.f32 %v2155_v26, %v2154_v46  ;;  %v2547_v6 = vadd.f32 %v2546_v28, %v2545_v21  ;;  %v2334_v21 = vmul.f32 %v3810_v60, %v3810_v60  ;;  %v2173_v60 = vsel %vm1967_vm2, %v3806_v52, 0.0 }
 0x1cb   : > { %v2549_v48 = vadd.f32 %v2548_v23, %v2547_v6  ;;  %v2158_v56 = vadd.f32 %v2157_v43, %v2156_v30  ;;  %v2336_v30 = vmul.f32 %v3806_v52, %v3806_v52  ;;  %v2562_v6 = vsel %vm1967_vm2, %v2334_v21, 0.0 }
 0x1cc   : > { %v2337_v23 = vmul.f32 %v3833_v63, %v3833_v63  ;;  %v2177_v52 = vsel %vm1967_vm2, %v3842_v3, 0.0  ;;  %v2343_v21 = vmul.f32 %v3860_v18, %v3860_v18 }
 0x1cd   : > { %v2160_v36 = vadd.f32 %v2159_v16, %v2158_v56  ;;  %v2551_v41 = vadd.f32 %v2550_v24, %v2549_v48  ;;  %v2564_v48 = vsel %vm1967_vm2, %v2335_v11, 0.0  ;;  %v2175_v56 = vsel %vm1967_vm2, %v3833_v63, 0.0 }
 0x1ce   : > { %v2568_v59 = vsel %vm1967_vm2, %v2337_v23, 0.0  ;;  %v2179_v63 = vsel %vm1967_vm2, %v3828_v44, 0.0  ;;  %v2344_v11 = vmul.f32 %v3870_v55, %v3870_v55 }
 0x1cf   : > { %v2553_v22 = vadd.f32 %v2552_v51, %v2551_v41  ;;  %v2162_v32 = vadd.f32 %v2161_v34, %v2160_v36  ;;  %v2566_v51 = vsel %vm1967_vm2, %v2336_v30, 0.0  ;;  %v2338_v36 = vmul.f32 %v3842_v3, %v3842_v3 }
 0x1d0   : > { %v2339_v34 = vmul.f32 %v3828_v44, %v3828_v44  ;;  %v2181_v3 = vsel %vm1967_vm2, %v3838_v8, 0.0  ;;  %v2580_v30 = vsel %vm1967_vm2, %v2343_v21, 0.0 }
 0x1d1   : > { %v2164_v5 = vadd.f32 %v2163_v27, %v2162_v32  ;;  %v2555_v40 = vadd.f32 %v2554_v15, %v2553_v22  ;;  %v2340_v27 = vmul.f32 %v3838_v8, %v3838_v8  ;;  %v2570_v20 = vsel %vm1967_vm2, %v2338_v36, 0.0 }
 0x1d2   : > { %v2341_v15 = vmul.f32 %v3865_v9, %v3865_v9  ;;  %v2185_v8 = vsel %vm1967_vm2, %v3874_v10, 0.0 }
 0x1d3   : > { %v2557_v25 = vadd.f32 %v2556_v42, %v2555_v40  ;;  %v2166_v13 = vadd.f32 %v2165_v45, %v2164_v5  ;;  %v2572_v40 = vsel %vm1967_vm2, %v2339_v34, 0.0  ;;  %v2183_v42 = vsel %vm1967_vm2, %v3865_v9, 0.0 }
 0x1d4   : > { %v2187_v9 = vsel %vm1967_vm2, %v3860_v18, 0.0 }
 0x1d5   : > { %v2168_v46 = vadd.f32 %v2167_v14, %v2166_v13  ;;  %v2559_v26 = vadd.f32 %v2558_v62, %v2557_v25  ;;  %v2574_v14 = vsel %vm1967_vm2, %v2340_v27, 0.0  ;;  %v2576_v25 = vsel %vm1967_vm2, %v2341_v15, 0.0 }
 0x1d6   : > { %v2342_v13 = vmul.f32 %v3874_v10, %v3874_v10  ;;  %v2189_v10 = vsel %vm1967_vm2, %v3870_v55, 0.0  ;;  %v2193_v55 = vsel %vm1967_vm2, %v3906_v57, 0.0 }
 0x1d7   : > { %v2561_v28 = vadd.f32 %v2560_v17, %v2559_v26  ;;  %v2170_v1 = vadd.f32 %v2169_v35, %v2168_v46 }
 0x1d8   : > { %v2578_v35 = vsel %vm1967_vm2, %v2342_v13, 0.0 }
 0x1d9   : > { %v2172_v43 = vadd.f32 %v2171_v37, %v2170_v1  ;;  %v2563_v16 = vadd.f32 %v2562_v6, %v2561_v28  ;;  %v2345_v28 = vmul.f32 %v3897_v29, %v3897_v29  ;;  %v2191_v6 = vsel %vm1967_vm2, %v3897_v29, 0.0 }
 0x1da   : > { %v2195_v29 = vsel %vm1967_vm2, %v3892_v4, 0.0 }
 0x1db   : > { %v2565_v24 = vadd.f32 %v2564_v48, %v2563_v16  ;;  %v2174_v19 = vadd.f32 %v2173_v60, %v2172_v43  ;;  %v2582_v43 = vsel %vm1967_vm2, %v2344_v11, 0.0  ;;  %v2584_v16 = vsel %vm1967_vm2, %v2345_v28, 0.0 }
 0x1dc   : > { %v2346_v48 = vmul.f32 %v3906_v57, %v3906_v57  ;;  %v2197_v57 = vsel %vm1967_vm2, %v3902_v61, 0.0  ;;  %v2355_v11 = vmul.f32 %v3956_v7, %v3956_v7 }
 0x1dd   : > { %v2176_v41 = vadd.f32 %v2175_v56, %v2174_v19  ;;  %v2567_v31 = vadd.f32 %v2566_v51, %v2565_v24  ;;  %v2347_v24 = vmul.f32 %v3892_v4, %v3892_v4 }
 0x1de   : > { %v2586_v36 = vsel %vm1967_vm2, %v2346_v48, 0.0 }
 0x1df   : > { %v2569_v22 = vadd.f32 %v2568_v59, %v2567_v31  ;;  %v2178_v32 = vadd.f32 %v2177_v52, %v2176_v41  ;;  %v2348_v59 = vmul.f32 %v3902_v61, %v3902_v61  ;;  %v2349_v41 = vmul.f32 %v3929_v53, %v3929_v53 }
 0x1e0   : > { %v2588_v52 = vsel %vm1967_vm2, %v2347_v24, 0.0  ;;  %v2201_v61 = vsel %vm1967_vm2, %v3938_v0, 0.0 }
 0x1e1   : > { %v2180_v50 = vadd.f32 %v2179_v63, %v2178_v32  ;;  %v2571_v5 = vadd.f32 %v2570_v20, %v2569_v22  ;;  %v2199_v22 = vsel %vm1967_vm2, %v3929_v53, 0.0  ;;  %v2590_v63 = vsel %vm1967_vm2, %v2348_v59, 0.0 }
 0x1e2   : > { %v2592_v27 = vsel %vm1967_vm2, %v2349_v41, 0.0  ;;  %v2350_v20 = vmul.f32 %v3938_v0, %v3938_v0  ;;  %v2203_v53 = vsel %vm1967_vm2, %v3924_v38, 0.0  ;;  %v2205_v0 = vsel %vm1967_vm2, %v4513_v58, 0.0 }
 0x1e3   : > { %v2573_v45 = vadd.f32 %v2572_v40, %v2571_v5  ;;  %v2182_v44 = vadd.f32 %v2181_v3, %v2180_v50  ;;  %v2351_v5 = vmul.f32 %v3924_v38, %v3924_v38 }
 0x1e5   : > { %v2184_v62 = vadd.f32 %v2183_v42, %v2182_v44  ;;  %v2575_v17 = vadd.f32 %v2574_v14, %v2573_v45  ;;  %v2352_v42 = vmul.f32 %v4513_v58, %v4513_v58  ;;  %v2594_v45 = vsel %vm1967_vm2, %v2350_v20, 0.0 }
 0x1e6   : > { %v2353_v44 = vmul.f32 %v4515_v54, %v4515_v54  ;;  %v2596_v13 = vsel %vm1967_vm2, %v2351_v5, 0.0  ;;  %v2209_v58 = vsel %vm1967_vm2, %v3970_v39, 0.0 }
 0x1e7   : > { %v2577_v46 = vadd.f32 %v2576_v25, %v2575_v17  ;;  %v2186_v26 = vadd.f32 %v2185_v8, %v2184_v62  ;;  %v2207_v62 = vsel %vm1967_vm2, %v4515_v54, 0.0  ;;  %v2598_v21 = vsel %vm1967_vm2, %v2352_v42, 0.0 }
 0x1e8   : > { %v2600_v8 = vsel %vm1967_vm2, %v2353_v44, 0.0  ;;  %v2211_v54 = vsel %vm1967_vm2, %v3956_v7, 0.0 }
 0x1e9   : > { %v2188_v1 = vadd.f32 %v2187_v9, %v2186_v26  ;;  %v2579_v37 = vadd.f32 %v2578_v35, %v2577_v46  ;;  %v2354_v46 = vmul.f32 %v3970_v39, %v3970_v39  ;;  %v2213_v39 = vsel %vm1967_vm2, %v4517_v49, 0.0 }
 0x1eb   : > { %v2581_v23 = vadd.f32 %v2580_v30, %v2579_v37  ;;  %v2190_v18 = vadd.f32 %v2189_v10, %v2188_v1  ;;  %v2356_v1 = vmul.f32 %v4517_v49, %v4517_v49  ;;  %v2602_v37 = vsel %vm1967_vm2, %v2354_v46, 0.0 }
 0x1ec   : > { %v2357_v30 = vmul.f32 %v3998_v2, %v3998_v2  ;;  %v2217_v49 = vsel %vm1967_vm2, %v4012_v33, 0.0 }
 0x1ed   : > { %v2192_v60 = vadd.f32 %v2191_v6, %v2190_v18  ;;  %v2583_v56 = vadd.f32 %v2582_v43, %v2581_v23  ;;  %v2604_v23 = vsel %vm1967_vm2, %v2355_v11, 0.0  ;;  %v2215_v18 = vsel %vm1967_vm2, %v3998_v2, 0.0 }
 0x1ee   : > { %v2608_v48 = vsel %vm1967_vm2, %v2357_v30, 0.0  ;;  %v2219_v2 = vsel %vm1967_vm2, %v3994_v12, 0.0 }
 0x1ef   : > { %v2585_v19 = vadd.f32 %v2584_v16, %v2583_v56  ;;  %v2194_v51 = vadd.f32 %v2193_v55, %v2192_v60  ;;  %v2606_v16 = vsel %vm1967_vm2, %v2356_v1, 0.0  ;;  %v2358_v60 = vmul.f32 %v4012_v33, %v4012_v33 }
 0x1f0   : > { %v2359_v55 = vmul.f32 %v3994_v12, %v3994_v12 }
 0x1f1   : > { %v2196_v31 = vadd.f32 %v2195_v29, %v2194_v51  ;;  %v2587_v34 = vadd.f32 %v2586_v36, %v2585_v19  ;;  %v2360_v29 = vmul.f32 %v4008_v47, %v4008_v47  ;;  %v2610_v59 = vsel %vm1967_vm2, %v2358_v60, 0.0 }
 0x1f3   : > { %v2589_v32 = vadd.f32 %v2588_v52, %v2587_v34  ;;  %v2198_v4 = vadd.f32 %v2197_v57, %v2196_v31  ;;  %v2612_v31 = vsel %vm1967_vm2, %v2359_v55, 0.0  ;;  %v2221_v34 = vsel %vm1967_vm2, %v4008_v47, 0.0 }
 0x1f4   : > { %v2614_v33 = vsel %vm1967_vm2, %v2360_v29, 0.0 }
 0x1f5   : > { %v2200_v15 = vadd.f32 %v2199_v22, %v2198_v4  ;;  %v2591_v50 = vadd.f32 %v2590_v63, %v2589_v32 }
 0x1f7   : > { %v2593_v40 = vadd.f32 %v2592_v27, %v2591_v50  ;;  %v2202_v3 = vadd.f32 %v2201_v61, %v2200_v15  ;;  %v1966_v61 = vld [vmem:[%s4469_s3] sm:$0x1] }
 0x1f9   : > { %v2204_v14 = vadd.f32 %v2203_v53, %v2202_v3  ;;  %v2595_v25 = vadd.f32 %v2594_v45, %v2593_v40  ;;  %v2232_v3 = vld [vmem:[%s4470_s4] sm:$0x1] }
 0x1fb   : > { %v2597_v17 = vadd.f32 %v2596_v13, %v2595_v25  ;;  %v2206_v38 = vadd.f32 %v2205_v0, %v2204_v14 }
 0x1fd   : > { %v2208_v26 = vadd.f32 %v2207_v62, %v2206_v38  ;;  %v2599_v9 = vadd.f32 %v2598_v21, %v2597_v17 }
 0x1ff   : > { %v2601_v35 = vadd.f32 %v2600_v8, %v2599_v9  ;;  %v2210_v28 = vadd.f32 %v2209_v58, %v2208_v26 }
 0x201   : > { %v2212_v10 = vadd.f32 %v2211_v54, %v2210_v28  ;;  %v2603_v6 = vadd.f32 %v2602_v37, %v2601_v35 }
 0x203   : > { %v2605_v43 = vadd.f32 %v2604_v23, %v2603_v6  ;;  %v2214_v7 = vadd.f32 %v2213_v39, %v2212_v10 }
 0x205   : > { %v2216_v56 = vadd.f32 %v2215_v18, %v2214_v7  ;;  %v2607_v24 = vadd.f32 %v2606_v16, %v2605_v43 }
 0x207   : > { %v2609_v19 = vadd.f32 %v2608_v48, %v2607_v24  ;;  %v2218_v51 = vadd.f32 %v2217_v49, %v2216_v56 }
 0x209   : > { %v2220_v36 = vadd.f32 %v2219_v2, %v2218_v51  ;;  %v2611_v41 = vadd.f32 %v2610_v59, %v2609_v19 }
 0x20b   : > { %v2222_v52 = vadd.f32 %v2221_v34, %v2220_v36  ;;  %v2613_v57 = vadd.f32 %v2612_v31, %v2611_v41 }
 0x20d   : > { %v2223_v22 = vrot.slane %v2222_v52, 4  ;;  %v2615_v32 = vadd.f32 %v2614_v33, %v2613_v57 }
 0x20f   : > { %v2224_v4 = vadd.f32 %v2223_v22, %v2222_v52  ;;  %v2616_v12 = vrot.slane %v2615_v32, 4 }
 0x211   : > { %v2225_v63 = vrot.slane %v2224_v4, 2  ;;  %v2617_v27 = vadd.f32 %v2616_v12, %v2615_v32 }
 0x213   : > { %v2226_v20 = vadd.f32 %v2225_v63, %v2224_v4  ;;  %v2618_v15 = vrot.slane %v2617_v27, 2 }
 0x215   : > { %v2227_v50 = vrot.slane %v2226_v20, 1  ;;  %v2619_v5 = vadd.f32 %v2618_v15, %v2617_v27 }
 0x217   : > { %v2228_v40 = vadd.f32 %v2227_v50, %v2226_v20  ;;  %v2620_v47 = vrot.slane %v2619_v5, 1 }
 0x219   : > { %v2229_v53 = vadd.f32 %v2228_v40, %v1966_v61  ;;  %v2621_v42 = vadd.f32 %v2620_v47, %v2619_v5 }
 0x21b   : > { %2231 = vst.msk [vmem:[%s4469_s3] sm:$0x1] %vm2230_vm3, %v2229_v53  ;;  %v2622_v45 = vadd.f32 %v2621_v42, %v2232_v3 }
 0x21d   : > { %2623 = vst.msk [vmem:[%s4470_s4] sm:$0x1] %vm2230_vm3, %v2622_v45 }
 0x21e PF: > { %s15_s15 = sadd.s32 1, %s3351_s15  }
 0x21f   : > { %p12_p5 = scmp.ge.s32.totalorder %s15_s15, 4  }
 0x221   :  { %14 = sbr.rel (!%p12_p5) target bundleno = 1 (0x1), region = 78 }

// kernel: ac_discriminator_forward.11
= control target key start
LH: loop header
LB: loop body
LE: loop exit
PB: predicated region body
PF: predicated region fallthrough
CT: control target
= control target key end

     0   :  { %v1848_v0 = vmov 0   ;;  %vm1079_vm0 = vcmask 257024   ;;  %vm1145_vm1 = vcmask 261120   ;;  %vm19_vm2 = vcmask 253952   ;;  %s2777_s1 = inlined_call_operand.vmem [shape: bf16[256,32], index: 1, kind: input, shape index: {}]   ;;  %s2778_s0 = inlined_call_operand.vmem [shape: bf16[512,256], index: 0, kind: input, shape index: {}]   ;;  %s2779_s2 = inlined_call_operand.vmem [shape: bf16[512,32], index: 2, kind: output, shape index: {0}]   ;;  %s2780_s3 = inlined_call_operand.vmem [shape: f32[1,32], index: 3, kind: output, shape index: {1}]   ;;  %s2781_s4 = inlined_call_operand.vmem [shape: f32[1,32], index: 4, kind: output, shape index: {2}]  }
   0x1   :  { %534 = vmatprep.subr.bf16.mxu0 %v1848_v0  ;;  %v1736_v1 = vld [vmem:[%s2777_s1] sm:$0xff]   ;;  %1702 = vmatprep.subr.bf16.mxu1 %v1848_v0  ;;  %v1737_v2 = vld [vmem:[%s2777_s1 + $0x8] sm:$0xff]   ;;  %v1738_v3 = vld [vmem:[%s2777_s1 + $0x10] sm:$0xff]  }
   0x2   :  { %535 = vmatpush1.bf16.msra.mxu0 %v1736_v1  ;;  %1718 = vmatpush1.bf16.msra.mxu1 %v1736_v1  ;;  %v1739_v4 = vld [vmem:[%s2777_s1 + $0x18] sm:$0xff]   ;;  %v1740_v5 = vld [vmem:[%s2777_s1 + $0x20] sm:$0xff]   ;;  %v1741_v7 = vld [vmem:[%s2777_s1 + $0x28] sm:$0xff]  }
   0x3   :  { %536 = vmatprep.subr.bf16.mxu0 %v1848_v0  ;;  %1703 = vmatprep.subr.bf16.mxu1 %v1848_v0  ;;  %v1754_v6 = vld [vmem:[%s2778_s0 + $0x4] ss:$8 sps:$4 sm:$0xff]   ;;  %v1742_v8 = vld [vmem:[%s2777_s1 + $0x30] sm:$0xff]   ;;  %v1743_v9 = vld [vmem:[%s2777_s1 + $0x38] sm:$0xff]  }
   0x4   :  { %566 = vmatprep.mubr.bf16.mxu0 %v1754_v6  ;;  %v1778_v10 = vld [vmem:[%s2778_s0 + $0x104] ss:$8 sps:$4 sm:$0xff]   ;;  %v1746_v13 = vld [vmem:[%s2777_s1 + $0x50] sm:$0xff]   ;;  %v1747_v14 = vld [vmem:[%s2777_s1 + $0x58] sm:$0xff]  }
   0x5   :  { %694 = vmatprep.mubr.bf16.mxu1 %v1778_v10  ;;  %v1744_v11 = vld [vmem:[%s2777_s1 + $0x40] sm:$0xff]   ;;  %v1745_v12 = vld [vmem:[%s2777_s1 + $0x48] sm:$0xff]   ;;  %v1750_v17 = vld [vmem:[%s2777_s1 + $0x70] sm:$0xff]  }
   0x6   :  { %537 = vmatpush1.bf16.msra.mxu0 %v1737_v2  ;;  %1719 = vmatpush1.bf16.msra.mxu1 %v1737_v2  ;;  %v1748_v15 = vld [vmem:[%s2777_s1 + $0x60] sm:$0xff]   ;;  %v1749_v16 = vld [vmem:[%s2777_s1 + $0x68] sm:$0xff]   ;;  %v1751_v18 = vld [vmem:[%s2777_s1 + $0x78] sm:$0xff]  }
   0x7   :  { %538 = vmatprep.subr.bf16.mxu0 %v1848_v0  ;;  %1704 = vmatprep.subr.bf16.mxu1 %v1848_v0  ;;  %v1752_v19 = vld [vmem:[%s2778_s0] ss:$8 sps:$4 sm:$0xff]   ;;  %v1755_v21 = vld [vmem:[%s2778_s0 + $0x14] ss:$8 sps:$4 sm:$0xff]   ;;  %v1757_v23 = vld [vmem:[%s2778_s0 + $0x10] ss:$8 sps:$4 sm:$0xff]  }
   0x8   :  { %v1776_v20 = vld [vmem:[%s2778_s0 + $0x100] ss:$8 sps:$4 sm:$0xff]   ;;  %v1782_v22 = vld [vmem:[%s2778_s0 + $0x114] ss:$8 sps:$4 sm:$0xff]   ;;  %v1784_v24 = vld [vmem:[%s2778_s0 + $0x110] ss:$8 sps:$4 sm:$0xff]  }
   0x9   :  { %v1758_v25 = vld [vmem:[%s2778_s0 + $0x24] ss:$8 sps:$4 sm:$0xff]   ;;  %v1760_v27 = vld [vmem:[%s2778_s0 + $0x20] ss:$8 sps:$4 sm:$0xff]   ;;  %v1761_v29 = vld [vmem:[%s2778_s0 + $0x34] ss:$8 sps:$4 sm:$0xff]  }
   0xa   :  { %539 = vmatpush1.bf16.msra.mxu0 %v1738_v3  ;;  %1720 = vmatpush1.bf16.msra.mxu1 %v1738_v3  ;;  %v1788_v26 = vld [vmem:[%s2778_s0 + $0x124] ss:$8 sps:$4 sm:$0xff]   ;;  %v1790_v28 = vld [vmem:[%s2778_s0 + $0x120] ss:$8 sps:$4 sm:$0xff]   ;;  %v1794_v30 = vld [vmem:[%s2778_s0 + $0x134] ss:$8 sps:$4 sm:$0xff]  }
   0xb   :  { %540 = vmatprep.subr.bf16.mxu0 %v1848_v0  ;;  %1705 = vmatprep.subr.bf16.mxu1 %v1848_v0  ;;  %v1763_v31 = vld [vmem:[%s2778_s0 + $0x30] ss:$8 sps:$4 sm:$0xff]   ;;  %v1764_v33 = vld [vmem:[%s2778_s0 + $0x44] ss:$8 sps:$4 sm:$0xff]   ;;  %v1766_v35 = vld [vmem:[%s2778_s0 + $0x40] ss:$8 sps:$4 sm:$0xff]  }
   0xc   :  { %v1796_v32 = vld [vmem:[%s2778_s0 + $0x130] ss:$8 sps:$4 sm:$0xff]   ;;  %v1800_v34 = vld [vmem:[%s2778_s0 + $0x144] ss:$8 sps:$4 sm:$0xff]   ;;  %v1802_v36 = vld [vmem:[%s2778_s0 + $0x140] ss:$8 sps:$4 sm:$0xff]  }
   0xd   :  { %v1767_v37 = vld [vmem:[%s2778_s0 + $0x54] ss:$8 sps:$4 sm:$0xff]   ;;  %v1769_v39 = vld [vmem:[%s2778_s0 + $0x50] ss:$8 sps:$4 sm:$0xff]   ;;  %v1770_v41 = vld [vmem:[%s2778_s0 + $0x64] ss:$8 sps:$4 sm:$0xff]  }
   0xe   :  { %541 = vmatpush1.bf16.msra.mxu0 %v1739_v4  ;;  %1721 = vmatpush1.bf16.msra.mxu1 %v1739_v4  ;;  %v1806_v38 = vld [vmem:[%s2778_s0 + $0x154] ss:$8 sps:$4 sm:$0xff]   ;;  %v1808_v40 = vld [vmem:[%s2778_s0 + $0x150] ss:$8 sps:$4 sm:$0xff]   ;;  %v1812_v42 = vld [vmem:[%s2778_s0 + $0x164] ss:$8 sps:$4 sm:$0xff]  }
   0xf   :  { %542 = vmatprep.subr.bf16.mxu0 %v1848_v0  ;;  %1706 = vmatprep.subr.bf16.mxu1 %v1848_v0  ;;  %v1772_v43 = vld [vmem:[%s2778_s0 + $0x60] ss:$8 sps:$4 sm:$0xff]   ;;  %v1773_v45 = vld [vmem:[%s2778_s0 + $0x74] ss:$8 sps:$4 sm:$0xff]   ;;  %v1775_v47 = vld [vmem:[%s2778_s0 + $0x70] ss:$8 sps:$4 sm:$0xff]  }
  0x10   :  { %v1814_v44 = vld [vmem:[%s2778_s0 + $0x160] ss:$8 sps:$4 sm:$0xff]   ;;  %v1818_v46 = vld [vmem:[%s2778_s0 + $0x174] ss:$8 sps:$4 sm:$0xff]   ;;  %v1820_v48 = vld [vmem:[%s2778_s0 + $0x170] ss:$8 sps:$4 sm:$0xff]  }
  0x11   :  { %v1779_v49 = vld [vmem:[%s2778_s0 + $0x84] ss:$8 sps:$4 sm:$0xff]   ;;  %v1781_v51 = vld [vmem:[%s2778_s0 + $0x80] ss:$8 sps:$4 sm:$0xff]   ;;  %v1785_v53 = vld [vmem:[%s2778_s0 + $0x94] ss:$8 sps:$4 sm:$0xff]  }
  0x12   :  { %543 = vmatpush1.bf16.msra.mxu0 %v1740_v5  ;;  %1722 = vmatpush1.bf16.msra.mxu1 %v1740_v5  ;;  %v1824_v50 = vld [vmem:[%s2778_s0 + $0x184] ss:$8 sps:$4 sm:$0xff]   ;;  %v1826_v52 = vld [vmem:[%s2778_s0 + $0x180] ss:$8 sps:$4 sm:$0xff]   ;;  %v1827_v54 = vld [vmem:[%s2778_s0 + $0x194] ss:$8 sps:$4 sm:$0xff]  }
  0x13   :  { %544 = vmatprep.subr.bf16.mxu0 %v1848_v0  ;;  %1707 = vmatprep.subr.bf16.mxu1 %v1848_v0  ;;  %v1787_v55 = vld [vmem:[%s2778_s0 + $0x90] ss:$8 sps:$4 sm:$0xff]   ;;  %v1791_v57 = vld [vmem:[%s2778_s0 + $0xa4] ss:$8 sps:$4 sm:$0xff]   ;;  %v1793_v59 = vld [vmem:[%s2778_s0 + $0xa0] ss:$8 sps:$4 sm:$0xff]  }
  0x14   :  { %v1829_v56 = vld [vmem:[%s2778_s0 + $0x190] ss:$8 sps:$4 sm:$0xff]   ;;  %v1830_v58 = vld [vmem:[%s2778_s0 + $0x1a4] ss:$8 sps:$4 sm:$0xff]   ;;  %v1832_v60 = vld [vmem:[%s2778_s0 + $0x1a0] ss:$8 sps:$4 sm:$0xff]  }
  0x15   :  { %v1797_v61 = vld [vmem:[%s2778_s0 + $0xb4] ss:$8 sps:$4 sm:$0xff]   ;;  %v1799_v63 = vld [vmem:[%s2778_s0 + $0xb0] ss:$8 sps:$4 sm:$0xff]   ;;  %v1803_v1 = vld [vmem:[%s2778_s0 + $0xc4] ss:$8 sps:$4 sm:$0xff]  }
  0x16   :  { %545 = vmatpush1.bf16.msra.mxu0 %v1741_v7  ;;  %1723 = vmatpush1.bf16.msra.mxu1 %v1741_v7  ;;  %v1833_v62 = vld [vmem:[%s2778_s0 + $0x1b4] ss:$8 sps:$4 sm:$0xff]   ;;  %v1836_v2 = vld [vmem:[%s2778_s0 + $0x1c4] ss:$8 sps:$4 sm:$0xff]   ;;  %v1805_v3 = vld [vmem:[%s2778_s0 + $0xc0] ss:$8 sps:$4 sm:$0xff]  }
  0x17   :  { %546 = vmatprep.subr.bf16.mxu0 %v1848_v0  ;;  %1708 = vmatprep.subr.bf16.mxu1 %v1848_v0  ;;  %v1838_v4 = vld [vmem:[%s2778_s0 + $0x1c0] ss:$8 sps:$4 sm:$0xff]   ;;  %v1809_v5 = vld [vmem:[%s2778_s0 + $0xd4] ss:$8 sps:$4 sm:$0xff]   ;;  %v1811_v7 = vld [vmem:[%s2778_s0 + $0xd0] ss:$8 sps:$4 sm:$0xff]  }
  0x18   :  { %v1839_v6 = vld [vmem:[%s2778_s0 + $0x1d4] ss:$8 sps:$4 sm:$0xff]   ;;  %v1842_v10 = vld [vmem:[%s2778_s0 + $0x1e4] ss:$8 sps:$4 sm:$0xff]  }
  0x1a   :  { %547 = vmatpush1.bf16.msra.mxu0 %v1742_v8  ;;  %1724 = vmatpush1.bf16.msra.mxu1 %v1742_v8  ;;  %v1841_v8 = vld [vmem:[%s2778_s0 + $0x1d0] ss:$8 sps:$4 sm:$0xff]  }
  0x1b   :  { %548 = vmatprep.subr.bf16.mxu0 %v1848_v0  ;;  %1709 = vmatprep.subr.bf16.mxu1 %v1848_v0 }
  0x1e   :  { %549 = vmatpush1.bf16.msra.mxu0 %v1743_v9  ;;  %1725 = vmatpush1.bf16.msra.mxu1 %v1743_v9  ;;  %v1815_v9 = vld [vmem:[%s2778_s0 + $0xe4] ss:$8 sps:$4 sm:$0xff]  }
  0x1f   :  { %550 = vmatprep.subr.bf16.mxu0 %v1848_v0  ;;  %1710 = vmatprep.subr.bf16.mxu1 %v1848_v0 }
  0x22   :  { %551 = vmatpush1.bf16.msra.mxu0 %v1744_v11  ;;  %1726 = vmatpush1.bf16.msra.mxu1 %v1744_v11  ;;  %v1817_v11 = vld [vmem:[%s2778_s0 + $0xe0] ss:$8 sps:$4 sm:$0xff]  }
  0x23   :  { %552 = vmatprep.subr.bf16.mxu0 %v1848_v0  ;;  %1711 = vmatprep.subr.bf16.mxu1 %v1848_v0 }
  0x26   :  { %553 = vmatpush1.bf16.msra.mxu0 %v1745_v12  ;;  %1727 = vmatpush1.bf16.msra.mxu1 %v1745_v12  ;;  %v1844_v12 = vld [vmem:[%s2778_s0 + $0x1e0] ss:$8 sps:$4 sm:$0xff]  }
  0x27   :  { %554 = vmatprep.subr.bf16.mxu0 %v1848_v0  ;;  %1712 = vmatprep.subr.bf16.mxu1 %v1848_v0 }
  0x2a   :  { %555 = vmatpush1.bf16.msra.mxu0 %v1746_v13  ;;  %1728 = vmatpush1.bf16.msra.mxu1 %v1746_v13  ;;  %v1821_v13 = vld [vmem:[%s2778_s0 + $0xf4] ss:$8 sps:$4 sm:$0xff]  }
  0x2b   :  { %556 = vmatprep.subr.bf16.mxu0 %v1848_v0  ;;  %1713 = vmatprep.subr.bf16.mxu1 %v1848_v0 }
  0x2e   :  { %557 = vmatpush1.bf16.msra.mxu0 %v1747_v14  ;;  %1729 = vmatpush1.bf16.msra.mxu1 %v1747_v14  ;;  %v1845_v14 = vld [vmem:[%s2778_s0 + $0x1f4] ss:$8 sps:$4 sm:$0xff]  }
  0x2f   :  { %558 = vmatprep.subr.bf16.mxu0 %v1848_v0  ;;  %1714 = vmatprep.subr.bf16.mxu1 %v1848_v0 }
  0x32   :  { %559 = vmatpush1.bf16.msra.mxu0 %v1748_v15  ;;  %1730 = vmatpush1.bf16.msra.mxu1 %v1748_v15  ;;  %v1823_v15 = vld [vmem:[%s2778_s0 + $0xf0] ss:$8 sps:$4 sm:$0xff]  }
  0x33   :  { %560 = vmatprep.subr.bf16.mxu0 %v1848_v0  ;;  %1715 = vmatprep.subr.bf16.mxu1 %v1848_v0 }
  0x36   :  { %561 = vmatpush1.bf16.msra.mxu0 %v1749_v16  ;;  %1731 = vmatpush1.bf16.msra.mxu1 %v1749_v16  ;;  %v1847_v16 = vld [vmem:[%s2778_s0 + $0x1f0] ss:$8 sps:$4 sm:$0xff]  }
  0x37   :  { %562 = vmatprep.subr.bf16.mxu0 %v1848_v0  ;;  %1716 = vmatprep.subr.bf16.mxu1 %v1848_v0 }
  0x3a   :  { %563 = vmatpush1.bf16.msra.mxu0 %v1750_v17  ;;  %1732 = vmatpush1.bf16.msra.mxu1 %v1750_v17 }
  0x3b   :  { %564 = vmatprep.subr.bf16.mxu0 %v1848_v0  ;;  %1717 = vmatprep.subr.bf16.mxu1 %v1848_v0  ;;  %v1835_v0 = vld [vmem:[%s2778_s0 + $0x1b0] ss:$8 sps:$4 sm:$0xff]  }
  0x3e   :  { %565 = vmatpush1.bf16.msra.mxu0 %v1751_v18  ;;  %1733 = vmatpush1.bf16.msra.mxu1 %v1751_v18 }
  0x41   :  { %567 = vmatmul.mubr.bf16.vlgmr.msra.gmra.mrb[0].mxu0 %v1752_v19  ;;  %695 = vmatmul.mubr.bf16.vlgmr.msra.gmra.mrb[0].mxu1 %v1776_v20 }
  0x42   :  { %574 = vmatprep.mubr.bf16.mxu0 %v1755_v21  ;;  %702 = vmatprep.mubr.bf16.mxu1 %v1782_v22 }
  0x49   :  { %575 = vmatmul.mubr.bf16.gmra.mrb[4].mxu0 %v1757_v23  ;;  %703 = vmatmul.mubr.bf16.gmra.mrb[4].mxu1 %v1784_v24 }
  0x4a   :  { %582 = vmatprep.mubr.bf16.mxu0 %v1758_v25  ;;  %710 = vmatprep.mubr.bf16.mxu1 %v1788_v26 }
  0x51   :  { %583 = vmatmul.mubr.bf16.gmra.mrb[8].mxu0 %v1760_v27  ;;  %711 = vmatmul.mubr.bf16.gmra.mrb[8].mxu1 %v1790_v28 }
  0x52   :  { %590 = vmatprep.mubr.bf16.mxu0 %v1761_v29  ;;  %718 = vmatprep.mubr.bf16.mxu1 %v1794_v30 }
  0x59   :  { %591 = vmatmul.mubr.bf16.gmra.mrb[12].mxu0 %v1763_v31  ;;  %719 = vmatmul.mubr.bf16.gmra.mrb[12].mxu1 %v1796_v32 }
  0x5a   :  { %598 = vmatprep.mubr.bf16.mxu0 %v1764_v33  ;;  %726 = vmatprep.mubr.bf16.mxu1 %v1800_v34 }
  0x61   :  { %599 = vmatmul.mubr.bf16.gmra.mrb[16].mxu0 %v1766_v35  ;;  %727 = vmatmul.mubr.bf16.gmra.mrb[16].mxu1 %v1802_v36 }
  0x62   :  { %606 = vmatprep.mubr.bf16.mxu0 %v1767_v37  ;;  %734 = vmatprep.mubr.bf16.mxu1 %v1806_v38 }
  0x69   :  { %607 = vmatmul.mubr.bf16.gmra.mrb[20].mxu0 %v1769_v39  ;;  %735 = vmatmul.mubr.bf16.gmra.mrb[20].mxu1 %v1808_v40 }
  0x6a   :  { %614 = vmatprep.mubr.bf16.mxu0 %v1770_v41  ;;  %742 = vmatprep.mubr.bf16.mxu1 %v1812_v42 }
  0x71   :  { %615 = vmatmul.mubr.bf16.gmra.mrb[24].mxu0 %v1772_v43  ;;  %743 = vmatmul.mubr.bf16.gmra.mrb[24].mxu1 %v1814_v44 }
  0x72   :  { %622 = vmatprep.mubr.bf16.mxu0 %v1773_v45  ;;  %750 = vmatprep.mubr.bf16.mxu1 %v1818_v46 }
  0x79   :  { %623 = vmatmul.mubr.bf16.gmra.mrb[28].mxu0 %v1775_v47  ;;  %751 = vmatmul.mubr.bf16.gmra.mrb[28].mxu1 %v1820_v48 }
  0x7a   :  { %630 = vmatprep.mubr.bf16.mxu0 %v1779_v49  ;;  %758 = vmatprep.mubr.bf16.mxu1 %v1824_v50 }
  0x81   :  { %631 = vmatmul.mubr.bf16.gmra.mrb[32].mxu0 %v1781_v51  ;;  %759 = vmatmul.mubr.bf16.gmra.mrb[32].mxu1 %v1826_v52 }
  0x82   :  { %638 = vmatprep.mubr.bf16.mxu0 %v1785_v53  ;;  %766 = vmatprep.mubr.bf16.mxu1 %v1827_v54 }
  0x89   :  { %639 = vmatmul.mubr.bf16.gmra.mrb[36].mxu0 %v1787_v55  ;;  %767 = vmatmul.mubr.bf16.gmra.mrb[36].mxu1 %v1829_v56 }
  0x8a   :  { %646 = vmatprep.mubr.bf16.mxu0 %v1791_v57  ;;  %774 = vmatprep.mubr.bf16.mxu1 %v1830_v58 }
  0x91   :  { %647 = vmatmul.mubr.bf16.gmra.mrb[40].mxu0 %v1793_v59  ;;  %775 = vmatmul.mubr.bf16.gmra.mrb[40].mxu1 %v1832_v60 }
  0x92   :  { %654 = vmatprep.mubr.bf16.mxu0 %v1797_v61  ;;  %782 = vmatprep.mubr.bf16.mxu1 %v1833_v62 }
  0x99   :  { %655 = vmatmul.mubr.bf16.gmra.mrb[44].mxu0 %v1799_v63  ;;  %783 = vmatmul.mubr.bf16.gmra.mrb[44].mxu1 %v1835_v0 }
  0x9a   :  { %662 = vmatprep.mubr.bf16.mxu0 %v1803_v1  ;;  %790 = vmatprep.mubr.bf16.mxu1 %v1836_v2 }
  0xa1   :  { %663 = vmatmul.mubr.bf16.gmra.mrb[48].mxu0 %v1805_v3  ;;  %791 = vmatmul.mubr.bf16.gmra.mrb[48].mxu1 %v1838_v4 }
  0xa2   :  { %670 = vmatprep.mubr.bf16.mxu0 %v1809_v5  ;;  %798 = vmatprep.mubr.bf16.mxu1 %v1839_v6 }
  0xa9   :  { %671 = vmatmul.mubr.bf16.gmra.mrb[52].mxu0 %v1811_v7  ;;  %799 = vmatmul.mubr.bf16.gmra.mrb[52].mxu1 %v1841_v8 }
  0xaa   :  { %678 = vmatprep.mubr.bf16.mxu0 %v1815_v9  ;;  %806 = vmatprep.mubr.bf16.mxu1 %v1842_v10 }
  0xb1   :  { %679 = vmatmul.mubr.bf16.gmra.mrb[56].mxu0 %v1817_v11  ;;  %807 = vmatmul.mubr.bf16.gmra.mrb[56].mxu1 %v1844_v12 }
  0xb2   :  { %686 = vmatprep.mubr.bf16.mxu0 %v1821_v13  ;;  %814 = vmatprep.mubr.bf16.mxu1 %v1845_v14 }
  0xb9   :  { %687 = vmatmul.mubr.bf16.gmra.mrb[60].mxu0 %v1823_v15  ;;  %815 = vmatmul.mubr.bf16.gmra.mrb[60].mxu1 %v1847_v16 }
 0x114   :  { %v568_v17 = vpop.f32.mrb[0].mxu0  ;;  %v2147_v18 = vpop.f32.mrb[0].mxu1 }
 0x115   :  { %v1638_v19 = vpack.c.bf16 %v568_v17, %v568_v17  ;;  %v1283_v20 = vmul.f32 %v568_v17, %v568_v17  ;;  %v570_v21 = vpop.f32.mrb[1].mxu0  ;;  %v1670_v22 = vpack.c.bf16 %v2147_v18, %v2147_v18  ;;  %v698_v23 = vpop.f32.mrb[1].mxu1  ;;  %v1146_v26 = vsel %vm1145_vm1, %v568_v17, 0.0 }
 0x116   :  { %v571_v24 = vpop.f32.mrb[2].mxu0  ;;  %v2151_v25 = vpop.f32.mrb[2].mxu1 }
 0x117   :  { %1080 = vst.msk [vmem:[%s2779_s2] sm:$0xf] %vm1079_vm0, %v1638_v19  ;;  %v1639_v27 = vpack.c.bf16 %v571_v24, %v571_v24  ;;  %v1147_v28 = vsel %vm1145_vm1, %v571_v24, 0.0  ;;  %v1284_v29 = vmul.f32 %v571_v24, %v571_v24  ;;  %v573_v30 = vpop.f32.mrb[3].mxu0  ;;  %1112 = vst.msk [vmem:[%s2779_s2 + $0x80] sm:$0xf] %vm1079_vm0, %v1670_v22  ;;  %v1671_v33 = vpack.c.bf16 %v2151_v25, %v2151_v25 }
 0x118   :  { %v701_v31 = vpop.f32.mrb[3].mxu1  ;;  %v1148_v32 = vadd.f32 %v1147_v28, %v1146_v26  ;;  %v1347_v34 = vsel %vm1145_vm1, %v1283_v20, 0.0 }
 0x119   :  { %1081 = vst.msk [vmem:[%s2779_s2 + $0x4] sm:$0xf] %vm1079_vm0, %v1639_v27  ;;  %v1348_v35 = vsel %vm1145_vm1, %v1284_v29, 0.0  ;;  %1113 = vst.msk [vmem:[%s2779_s2 + $0x84] sm:$0xf] %vm1079_vm0, %v1671_v33 }
 0x11a   :  { %v1349_v36 = vadd.f32 %v1348_v35, %v1347_v34 }
 0x11c   :  { %v576_v37 = vpop.f32.mrb[4].mxu0  ;;  %v2175_v38 = vpop.f32.mrb[4].mxu1 }
 0x11d   :  { %v1640_v39 = vpack.c.bf16 %v576_v37, %v576_v37  ;;  %v1149_v40 = vsel %vm1145_vm1, %v576_v37, 0.0  ;;  %v1285_v41 = vmul.f32 %v576_v37, %v576_v37  ;;  %v578_v42 = vpop.f32.mrb[5].mxu0  ;;  %v1672_v43 = vpack.c.bf16 %v2175_v38, %v2175_v38  ;;  %v706_v44 = vpop.f32.mrb[5].mxu1 }
 0x11e   :  { %v1150_v45 = vadd.f32 %v1149_v40, %v1148_v32  ;;  %v579_v46 = vpop.f32.mrb[6].mxu0  ;;  %v2180_v47 = vpop.f32.mrb[6].mxu1 }
 0x11f   :  { %1082 = vst.msk [vmem:[%s2779_s2 + $0x8] sm:$0xf] %vm1079_vm0, %v1640_v39  ;;  %v1350_v48 = vsel %vm1145_vm1, %v1285_v41, 0.0  ;;  %v1641_v49 = vpack.c.bf16 %v579_v46, %v579_v46  ;;  %v1151_v50 = vsel %vm1145_vm1, %v579_v46, 0.0  ;;  %v1286_v51 = vmul.f32 %v579_v46, %v579_v46  ;;  %v581_v52 = vpop.f32.mrb[7].mxu0  ;;  %v709_v53 = vpop.f32.mrb[7].mxu1 }
 0x120   :  { %1114 = vst.msk [vmem:[%s2779_s2 + $0x88] sm:$0xf] %vm1079_vm0, %v1672_v43  ;;  %v1351_v54 = vadd.f32 %v1350_v48, %v1349_v36  ;;  %v1152_v55 = vadd.f32 %v1151_v50, %v1150_v45  ;;  %v1673_v56 = vpack.c.bf16 %v2180_v47, %v2180_v47 }
 0x121   :  { %1083 = vst.msk [vmem:[%s2779_s2 + $0xc] sm:$0xf] %vm1079_vm0, %v1641_v49  ;;  %v1352_v57 = vsel %vm1145_vm1, %v1286_v51, 0.0 }
 0x122   :  { %v1353_v58 = vadd.f32 %v1352_v57, %v1351_v54  ;;  %1115 = vst.msk [vmem:[%s2779_s2 + $0x8c] sm:$0xf] %vm1079_vm0, %v1673_v56 }
 0x124   :  { %v584_v59 = vpop.f32.mrb[8].mxu0  ;;  %v2203_v60 = vpop.f32.mrb[8].mxu1 }
 0x125   :  { %v1642_v61 = vpack.c.bf16 %v584_v59, %v584_v59  ;;  %v1153_v62 = vsel %vm1145_vm1, %v584_v59, 0.0  ;;  %v1287_v63 = vmul.f32 %v584_v59, %v584_v59  ;;  %v586_v0 = vpop.f32.mrb[9].mxu0  ;;  %v1674_v1 = vpack.c.bf16 %v2203_v60, %v2203_v60  ;;  %v714_v2 = vpop.f32.mrb[9].mxu1 }
 0x126   :  { %v1154_v3 = vadd.f32 %v1153_v62, %v1152_v55  ;;  %v587_v4 = vpop.f32.mrb[10].mxu0  ;;  %v2208_v5 = vpop.f32.mrb[10].mxu1 }
 0x127   :  { %1084 = vst.msk [vmem:[%s2779_s2 + $0x10] sm:$0xf] %vm1079_vm0, %v1642_v61  ;;  %v1354_v6 = vsel %vm1145_vm1, %v1287_v63, 0.0  ;;  %v1643_v7 = vpack.c.bf16 %v587_v4, %v587_v4  ;;  %v1155_v8 = vsel %vm1145_vm1, %v587_v4, 0.0  ;;  %v1288_v9 = vmul.f32 %v587_v4, %v587_v4  ;;  %v589_v10 = vpop.f32.mrb[11].mxu0  ;;  %v717_v11 = vpop.f32.mrb[11].mxu1 }
 0x128   :  { %1116 = vst.msk [vmem:[%s2779_s2 + $0x90] sm:$0xf] %vm1079_vm0, %v1674_v1  ;;  %v1355_v12 = vadd.f32 %v1354_v6, %v1353_v58  ;;  %v1156_v13 = vadd.f32 %v1155_v8, %v1154_v3  ;;  %v1675_v14 = vpack.c.bf16 %v2208_v5, %v2208_v5 }
 0x129   :  { %1085 = vst.msk [vmem:[%s2779_s2 + $0x14] sm:$0xf] %vm1079_vm0, %v1643_v7  ;;  %v1356_v15 = vsel %vm1145_vm1, %v1288_v9, 0.0 }
 0x12a   :  { %v1357_v16 = vadd.f32 %v1356_v15, %v1355_v12  ;;  %1117 = vst.msk [vmem:[%s2779_s2 + $0x94] sm:$0xf] %vm1079_vm0, %v1675_v14 }
 0x12c   :  { %v592_v17 = vpop.f32.mrb[12].mxu0  ;;  %v2231_v19 = vpop.f32.mrb[12].mxu1 }
 0x12d   :  { %v1644_v20 = vpack.c.bf16 %v592_v17, %v592_v17  ;;  %v1157_v21 = vsel %vm1145_vm1, %v592_v17, 0.0  ;;  %v1289_v22 = vmul.f32 %v592_v17, %v592_v17  ;;  %v594_v23 = vpop.f32.mrb[13].mxu0  ;;  %v1676_v24 = vpack.c.bf16 %v2231_v19, %v2231_v19  ;;  %v722_v26 = vpop.f32.mrb[13].mxu1 }
 0x12e   :  { %v1158_v27 = vadd.f32 %v1157_v21, %v1156_v13  ;;  %v595_v28 = vpop.f32.mrb[14].mxu0  ;;  %v2236_v29 = vpop.f32.mrb[14].mxu1 }
 0x12f   :  { %1086 = vst.msk [vmem:[%s2779_s2 + $0x18] sm:$0xf] %vm1079_vm0, %v1644_v20  ;;  %v1358_v30 = vsel %vm1145_vm1, %v1289_v22, 0.0  ;;  %v1645_v31 = vpack.c.bf16 %v595_v28, %v595_v28  ;;  %v1159_v32 = vsel %vm1145_vm1, %v595_v28, 0.0  ;;  %v1290_v33 = vmul.f32 %v595_v28, %v595_v28  ;;  %v597_v34 = vpop.f32.mrb[15].mxu0  ;;  %v725_v35 = vpop.f32.mrb[15].mxu1 }
 0x130   :  { %1118 = vst.msk [vmem:[%s2779_s2 + $0x98] sm:$0xf] %vm1079_vm0, %v1676_v24  ;;  %v1359_v36 = vadd.f32 %v1358_v30, %v1357_v16  ;;  %v1160_v37 = vadd.f32 %v1159_v32, %v1158_v27  ;;  %v1677_v39 = vpack.c.bf16 %v2236_v29, %v2236_v29 }
 0x131   :  { %1087 = vst.msk [vmem:[%s2779_s2 + $0x1c] sm:$0xf] %vm1079_vm0, %v1645_v31  ;;  %v1360_v40 = vsel %vm1145_vm1, %v1290_v33, 0.0 }
 0x132   :  { %v1361_v41 = vadd.f32 %v1360_v40, %v1359_v36  ;;  %1119 = vst.msk [vmem:[%s2779_s2 + $0x9c] sm:$0xf] %vm1079_vm0, %v1677_v39 }
 0x134   :  { %v600_v42 = vpop.f32.mrb[16].mxu0  ;;  %v2259_v43 = vpop.f32.mrb[16].mxu1 }
 0x135   :  { %v1646_v44 = vpack.c.bf16 %v600_v42, %v600_v42  ;;  %v1161_v45 = vsel %vm1145_vm1, %v600_v42, 0.0  ;;  %v1291_v46 = vmul.f32 %v600_v42, %v600_v42  ;;  %v602_v48 = vpop.f32.mrb[17].mxu0  ;;  %v1678_v49 = vpack.c.bf16 %v2259_v43, %v2259_v43  ;;  %v730_v50 = vpop.f32.mrb[17].mxu1 }
 0x136   :  { %v1162_v51 = vadd.f32 %v1161_v45, %v1160_v37  ;;  %v603_v52 = vpop.f32.mrb[18].mxu0  ;;  %v2264_v53 = vpop.f32.mrb[18].mxu1 }
 0x137   :  { %1088 = vst.msk [vmem:[%s2779_s2 + $0x20] sm:$0xf] %vm1079_vm0, %v1646_v44  ;;  %v1362_v54 = vsel %vm1145_vm1, %v1291_v46, 0.0  ;;  %v1647_v55 = vpack.c.bf16 %v603_v52, %v603_v52  ;;  %v1163_v56 = vsel %vm1145_vm1, %v603_v52, 0.0  ;;  %v1292_v57 = vmul.f32 %v603_v52, %v603_v52  ;;  %v605_v58 = vpop.f32.mrb[19].mxu0  ;;  %v733_v59 = vpop.f32.mrb[19].mxu1 }
 0x138   :  { %1120 = vst.msk [vmem:[%s2779_s2 + $0xa0] sm:$0xf] %vm1079_vm0, %v1678_v49  ;;  %v1363_v61 = vadd.f32 %v1362_v54, %v1361_v41  ;;  %v1164_v62 = vadd.f32 %v1163_v56, %v1162_v51  ;;  %v1679_v63 = vpack.c.bf16 %v2264_v53, %v2264_v53 }
 0x139   :  { %1089 = vst.msk [vmem:[%s2779_s2 + $0x24] sm:$0xf] %vm1079_vm0, %v1647_v55  ;;  %v1364_v0 = vsel %vm1145_vm1, %v1292_v57, 0.0 }
 0x13a   :  { %v1365_v1 = vadd.f32 %v1364_v0, %v1363_v61  ;;  %1121 = vst.msk [vmem:[%s2779_s2 + $0xa4] sm:$0xf] %vm1079_vm0, %v1679_v63 }
 0x13c   :  { %v608_v2 = vpop.f32.mrb[20].mxu0  ;;  %v2287_v3 = vpop.f32.mrb[20].mxu1 }
 0x13d   :  { %v1648_v4 = vpack.c.bf16 %v608_v2, %v608_v2  ;;  %v1165_v6 = vsel %vm1145_vm1, %v608_v2, 0.0  ;;  %v1293_v7 = vmul.f32 %v608_v2, %v608_v2  ;;  %v610_v8 = vpop.f32.mrb[21].mxu0  ;;  %v1680_v9 = vpack.c.bf16 %v2287_v3, %v2287_v3  ;;  %v738_v10 = vpop.f32.mrb[21].mxu1 }
 0x13e   :  { %v1166_v11 = vadd.f32 %v1165_v6, %v1164_v62  ;;  %v611_v12 = vpop.f32.mrb[22].mxu0  ;;  %v2292_v13 = vpop.f32.mrb[22].mxu1 }
 0x13f   :  { %1090 = vst.msk [vmem:[%s2779_s2 + $0x28] sm:$0xf] %vm1079_vm0, %v1648_v4  ;;  %v1366_v14 = vsel %vm1145_vm1, %v1293_v7, 0.0  ;;  %v1649_v15 = vpack.c.bf16 %v611_v12, %v611_v12  ;;  %v1167_v16 = vsel %vm1145_vm1, %v611_v12, 0.0  ;;  %v1294_v17 = vmul.f32 %v611_v12, %v611_v12  ;;  %v613_v20 = vpop.f32.mrb[23].mxu0  ;;  %v741_v21 = vpop.f32.mrb[23].mxu1 }
 0x140   :  { %1122 = vst.msk [vmem:[%s2779_s2 + $0xa8] sm:$0xf] %vm1079_vm0, %v1680_v9  ;;  %v1367_v22 = vadd.f32 %v1366_v14, %v1365_v1  ;;  %v1168_v23 = vadd.f32 %v1167_v16, %v1166_v11  ;;  %v1681_v24 = vpack.c.bf16 %v2292_v13, %v2292_v13 }
 0x141   :  { %1091 = vst.msk [vmem:[%s2779_s2 + $0x2c] sm:$0xf] %vm1079_vm0, %v1649_v15  ;;  %v1368_v26 = vsel %vm1145_vm1, %v1294_v17, 0.0  ;;  %v1849_v17 = vmov 0.0  }
 0x142   :  { %v1369_v27 = vadd.f32 %v1368_v26, %v1367_v22  ;;  %1123 = vst.msk [vmem:[%s2779_s2 + $0xac] sm:$0xf] %vm1079_vm0, %v1681_v24 }
 0x143   :  { %20 = vst.msk [vmem:[%s2780_s3] sm:$0x1] %vm19_vm2, %v1849_v17  ;;  %21 = vst.msk [vmem:[%s2781_s4] sm:$0x1] %vm19_vm2, %v1849_v17 }
 0x144   :  { %v616_v28 = vpop.f32.mrb[24].mxu0  ;;  %v2315_v30 = vpop.f32.mrb[24].mxu1 }
 0x145   :  { %v1650_v31 = vpack.c.bf16 %v616_v28, %v616_v28  ;;  %v1169_v32 = vsel %vm1145_vm1, %v616_v28, 0.0  ;;  %v1295_v33 = vmul.f32 %v616_v28, %v616_v28  ;;  %v618_v34 = vpop.f32.mrb[25].mxu0  ;;  %v1682_v35 = vpack.c.bf16 %v2315_v30, %v2315_v30  ;;  %v746_v36 = vpop.f32.mrb[25].mxu1 }
 0x146   :  { %v1170_v37 = vadd.f32 %v1169_v32, %v1168_v23  ;;  %v619_v39 = vpop.f32.mrb[26].mxu0  ;;  %v2320_v40 = vpop.f32.mrb[26].mxu1 }
 0x147   :  { %1092 = vst.msk [vmem:[%s2779_s2 + $0x30] sm:$0xf] %vm1079_vm0, %v1650_v31  ;;  %v1370_v41 = vsel %vm1145_vm1, %v1295_v33, 0.0  ;;  %v1651_v42 = vpack.c.bf16 %v619_v39, %v619_v39  ;;  %v1171_v44 = vsel %vm1145_vm1, %v619_v39, 0.0  ;;  %v1296_v45 = vmul.f32 %v619_v39, %v619_v39  ;;  %v621_v46 = vpop.f32.mrb[27].mxu0  ;;  %v749_v48 = vpop.f32.mrb[27].mxu1 }
 0x148   :  { %1124 = vst.msk [vmem:[%s2779_s2 + $0xb0] sm:$0xf] %vm1079_vm0, %v1682_v35  ;;  %v1371_v49 = vadd.f32 %v1370_v41, %v1369_v27  ;;  %v1172_v50 = vadd.f32 %v1171_v44, %v1170_v37  ;;  %v1683_v51 = vpack.c.bf16 %v2320_v40, %v2320_v40 }
 0x149   :  { %1093 = vst.msk [vmem:[%s2779_s2 + $0x34] sm:$0xf] %vm1079_vm0, %v1651_v42  ;;  %v1372_v52 = vsel %vm1145_vm1, %v1296_v45, 0.0 }
 0x14a   :  { %v1373_v54 = vadd.f32 %v1372_v52, %v1371_v49  ;;  %1125 = vst.msk [vmem:[%s2779_s2 + $0xb4] sm:$0xf] %vm1079_vm0, %v1683_v51 }
 0x14c   :  { %v624_v55 = vpop.f32.mrb[28].mxu0  ;;  %v2343_v56 = vpop.f32.mrb[28].mxu1 }
 0x14d   :  { %v1652_v57 = vpack.c.bf16 %v624_v55, %v624_v55  ;;  %v1173_v58 = vsel %vm1145_vm1, %v624_v55, 0.0  ;;  %v1297_v59 = vmul.f32 %v624_v55, %v624_v55  ;;  %v626_v61 = vpop.f32.mrb[29].mxu0  ;;  %v1684_v62 = vpack.c.bf16 %v2343_v56, %v2343_v56  ;;  %v754_v63 = vpop.f32.mrb[29].mxu1 }
 0x14e   :  { %v1174_v0 = vadd.f32 %v1173_v58, %v1172_v50  ;;  %v627_v1 = vpop.f32.mrb[30].mxu0  ;;  %v2348_v2 = vpop.f32.mrb[30].mxu1 }
 0x14f   :  { %1094 = vst.msk [vmem:[%s2779_s2 + $0x38] sm:$0xf] %vm1079_vm0, %v1652_v57  ;;  %v1374_v4 = vsel %vm1145_vm1, %v1297_v59, 0.0  ;;  %v1653_v6 = vpack.c.bf16 %v627_v1, %v627_v1  ;;  %v1175_v7 = vsel %vm1145_vm1, %v627_v1, 0.0  ;;  %v1298_v8 = vmul.f32 %v627_v1, %v627_v1  ;;  %v629_v9 = vpop.f32.mrb[31].mxu0  ;;  %v757_v10 = vpop.f32.mrb[31].mxu1 }
 0x150   :  { %1126 = vst.msk [vmem:[%s2779_s2 + $0xb8] sm:$0xf] %vm1079_vm0, %v1684_v62  ;;  %v1375_v11 = vadd.f32 %v1374_v4, %v1373_v54  ;;  %v1176_v12 = vadd.f32 %v1175_v7, %v1174_v0  ;;  %v1685_v14 = vpack.c.bf16 %v2348_v2, %v2348_v2 }
 0x151   :  { %1095 = vst.msk [vmem:[%s2779_s2 + $0x3c] sm:$0xf] %vm1079_vm0, %v1653_v6  ;;  %v1376_v15 = vsel %vm1145_vm1, %v1298_v8, 0.0 }
 0x152   :  { %v1377_v16 = vadd.f32 %v1376_v15, %v1375_v11  ;;  %1127 = vst.msk [vmem:[%s2779_s2 + $0xbc] sm:$0xf] %vm1079_vm0, %v1685_v14 }
 0x154   :  { %v632_v20 = vpop.f32.mrb[32].mxu0  ;;  %v2379_v21 = vpop.f32.mrb[32].mxu1 }
 0x155   :  { %v1654_v22 = vpack.c.bf16 %v632_v20, %v632_v20  ;;  %v1177_v23 = vsel %vm1145_vm1, %v632_v20, 0.0  ;;  %v1299_v24 = vmul.f32 %v632_v20, %v632_v20  ;;  %v634_v26 = vpop.f32.mrb[33].mxu0  ;;  %v1686_v27 = vpack.c.bf16 %v2379_v21, %v2379_v21  ;;  %v762_v28 = vpop.f32.mrb[33].mxu1 }
 0x156   :  { %v1178_v31 = vadd.f32 %v1177_v23, %v1176_v12  ;;  %v635_v32 = vpop.f32.mrb[34].mxu0  ;;  %v2384_v33 = vpop.f32.mrb[34].mxu1 }
 0x157   :  { %1096 = vst.msk [vmem:[%s2779_s2 + $0x40] sm:$0xf] %vm1079_vm0, %v1654_v22  ;;  %v1378_v34 = vsel %vm1145_vm1, %v1299_v24, 0.0  ;;  %v1655_v35 = vpack.c.bf16 %v635_v32, %v635_v32  ;;  %v1179_v36 = vsel %vm1145_vm1, %v635_v32, 0.0  ;;  %v1300_v37 = vmul.f32 %v635_v32, %v635_v32  ;;  %v637_v39 = vpop.f32.mrb[35].mxu0  ;;  %v765_v41 = vpop.f32.mrb[35].mxu1 }
 0x158   :  { %1128 = vst.msk [vmem:[%s2779_s2 + $0xc0] sm:$0xf] %vm1079_vm0, %v1686_v27  ;;  %v1379_v42 = vadd.f32 %v1378_v34, %v1377_v16  ;;  %v1180_v44 = vadd.f32 %v1179_v36, %v1178_v31  ;;  %v1687_v45 = vpack.c.bf16 %v2384_v33, %v2384_v33 }
 0x159   :  { %1097 = vst.msk [vmem:[%s2779_s2 + $0x44] sm:$0xf] %vm1079_vm0, %v1655_v35  ;;  %v1380_v46 = vsel %vm1145_vm1, %v1300_v37, 0.0 }
 0x15a   :  { %v1381_v48 = vadd.f32 %v1380_v46, %v1379_v42  ;;  %1129 = vst.msk [vmem:[%s2779_s2 + $0xc4] sm:$0xf] %vm1079_vm0, %v1687_v45 }
 0x15c   :  { %v640_v49 = vpop.f32.mrb[36].mxu0  ;;  %v2407_v50 = vpop.f32.mrb[36].mxu1 }
 0x15d   :  { %v1656_v51 = vpack.c.bf16 %v640_v49, %v640_v49  ;;  %v1181_v52 = vsel %vm1145_vm1, %v640_v49, 0.0  ;;  %v1301_v54 = vmul.f32 %v640_v49, %v640_v49  ;;  %v642_v55 = vpop.f32.mrb[37].mxu0  ;;  %v1688_v57 = vpack.c.bf16 %v2407_v50, %v2407_v50  ;;  %v770_v58 = vpop.f32.mrb[37].mxu1 }
 0x15e   :  { %v1182_v59 = vadd.f32 %v1181_v52, %v1180_v44  ;;  %v643_v61 = vpop.f32.mrb[38].mxu0  ;;  %v2412_v62 = vpop.f32.mrb[38].mxu1 }
 0x15f   :  { %1098 = vst.msk [vmem:[%s2779_s2 + $0x48] sm:$0xf] %vm1079_vm0, %v1656_v51  ;;  %v1382_v63 = vsel %vm1145_vm1, %v1301_v54, 0.0  ;;  %v1657_v0 = vpack.c.bf16 %v643_v61, %v643_v61  ;;  %v1183_v1 = vsel %vm1145_vm1, %v643_v61, 0.0  ;;  %v1302_v4 = vmul.f32 %v643_v61, %v643_v61  ;;  %v645_v6 = vpop.f32.mrb[39].mxu0  ;;  %v773_v7 = vpop.f32.mrb[39].mxu1 }
 0x160   :  { %1130 = vst.msk [vmem:[%s2779_s2 + $0xc8] sm:$0xf] %vm1079_vm0, %v1688_v57  ;;  %v1383_v8 = vadd.f32 %v1382_v63, %v1381_v48  ;;  %v1184_v9 = vadd.f32 %v1183_v1, %v1182_v59  ;;  %v1689_v10 = vpack.c.bf16 %v2412_v62, %v2412_v62 }
 0x161   :  { %1099 = vst.msk [vmem:[%s2779_s2 + $0x4c] sm:$0xf] %vm1079_vm0, %v1657_v0  ;;  %v1384_v11 = vsel %vm1145_vm1, %v1302_v4, 0.0 }
 0x162   :  { %v1385_v12 = vadd.f32 %v1384_v11, %v1383_v8  ;;  %1131 = vst.msk [vmem:[%s2779_s2 + $0xcc] sm:$0xf] %vm1079_vm0, %v1689_v10 }
 0x164   :  { %v648_v14 = vpop.f32.mrb[40].mxu0  ;;  %v2435_v15 = vpop.f32.mrb[40].mxu1 }
 0x165   :  { %v1658_v16 = vpack.c.bf16 %v648_v14, %v648_v14  ;;  %v1185_v17 = vsel %vm1145_vm1, %v648_v14, 0.0  ;;  %v1303_v20 = vmul.f32 %v648_v14, %v648_v14  ;;  %v650_v22 = vpop.f32.mrb[41].mxu0  ;;  %v1690_v23 = vpack.c.bf16 %v2435_v15, %v2435_v15  ;;  %v778_v24 = vpop.f32.mrb[41].mxu1 }
 0x166   :  { %v1186_v26 = vadd.f32 %v1185_v17, %v1184_v9  ;;  %v651_v27 = vpop.f32.mrb[42].mxu0  ;;  %v2440_v28 = vpop.f32.mrb[42].mxu1 }
 0x167   :  { %1100 = vst.msk [vmem:[%s2779_s2 + $0x50] sm:$0xf] %vm1079_vm0, %v1658_v16  ;;  %v1386_v31 = vsel %vm1145_vm1, %v1303_v20, 0.0  ;;  %v1659_v32 = vpack.c.bf16 %v651_v27, %v651_v27  ;;  %v1187_v34 = vsel %vm1145_vm1, %v651_v27, 0.0  ;;  %v1304_v35 = vmul.f32 %v651_v27, %v651_v27  ;;  %v653_v36 = vpop.f32.mrb[43].mxu0  ;;  %v781_v37 = vpop.f32.mrb[43].mxu1 }
 0x168   :  { %1132 = vst.msk [vmem:[%s2779_s2 + $0xd0] sm:$0xf] %vm1079_vm0, %v1690_v23  ;;  %v1387_v39 = vadd.f32 %v1386_v31, %v1385_v12  ;;  %v1188_v41 = vadd.f32 %v1187_v34, %v1186_v26  ;;  %v1691_v42 = vpack.c.bf16 %v2440_v28, %v2440_v28 }
 0x169   :  { %1101 = vst.msk [vmem:[%s2779_s2 + $0x54] sm:$0xf] %vm1079_vm0, %v1659_v32  ;;  %v1388_v44 = vsel %vm1145_vm1, %v1304_v35, 0.0 }
 0x16a   :  { %v1389_v45 = vadd.f32 %v1388_v44, %v1387_v39  ;;  %1133 = vst.msk [vmem:[%s2779_s2 + $0xd4] sm:$0xf] %vm1079_vm0, %v1691_v42 }
 0x16c   :  { %v656_v46 = vpop.f32.mrb[44].mxu0  ;;  %v2463_v48 = vpop.f32.mrb[44].mxu1 }
 0x16d   :  { %v1660_v49 = vpack.c.bf16 %v656_v46, %v656_v46  ;;  %v1189_v51 = vsel %vm1145_vm1, %v656_v46, 0.0  ;;  %v1305_v52 = vmul.f32 %v656_v46, %v656_v46  ;;  %v658_v54 = vpop.f32.mrb[45].mxu0  ;;  %v1692_v55 = vpack.c.bf16 %v2463_v48, %v2463_v48  ;;  %v786_v57 = vpop.f32.mrb[45].mxu1 }
 0x16e   :  { %v1190_v58 = vadd.f32 %v1189_v51, %v1188_v41  ;;  %v659_v59 = vpop.f32.mrb[46].mxu0  ;;  %v2468_v61 = vpop.f32.mrb[46].mxu1 }
 0x16f   :  { %1102 = vst.msk [vmem:[%s2779_s2 + $0x58] sm:$0xf] %vm1079_vm0, %v1660_v49  ;;  %v1390_v63 = vsel %vm1145_vm1, %v1305_v52, 0.0  ;;  %v1661_v0 = vpack.c.bf16 %v659_v59, %v659_v59  ;;  %v1191_v1 = vsel %vm1145_vm1, %v659_v59, 0.0  ;;  %v1306_v4 = vmul.f32 %v659_v59, %v659_v59  ;;  %v661_v6 = vpop.f32.mrb[47].mxu0  ;;  %v789_v7 = vpop.f32.mrb[47].mxu1 }
 0x170   :  { %1134 = vst.msk [vmem:[%s2779_s2 + $0xd8] sm:$0xf] %vm1079_vm0, %v1692_v55  ;;  %v1391_v8 = vadd.f32 %v1390_v63, %v1389_v45  ;;  %v1192_v9 = vadd.f32 %v1191_v1, %v1190_v58  ;;  %v1693_v10 = vpack.c.bf16 %v2468_v61, %v2468_v61 }
 0x171   :  { %1103 = vst.msk [vmem:[%s2779_s2 + $0x5c] sm:$0xf] %vm1079_vm0, %v1661_v0  ;;  %v1392_v11 = vsel %vm1145_vm1, %v1306_v4, 0.0 }
 0x172   :  { %v1393_v12 = vadd.f32 %v1392_v11, %v1391_v8  ;;  %1135 = vst.msk [vmem:[%s2779_s2 + $0xdc] sm:$0xf] %vm1079_vm0, %v1693_v10 }
 0x174   :  { %v664_v14 = vpop.f32.mrb[48].mxu0  ;;  %v2491_v16 = vpop.f32.mrb[48].mxu1 }
 0x175   :  { %v1662_v17 = vpack.c.bf16 %v664_v14, %v664_v14  ;;  %v1193_v20 = vsel %vm1145_vm1, %v664_v14, 0.0  ;;  %v1307_v22 = vmul.f32 %v664_v14, %v664_v14  ;;  %v666_v23 = vpop.f32.mrb[49].mxu0  ;;  %v1694_v24 = vpack.c.bf16 %v2491_v16, %v2491_v16  ;;  %v794_v26 = vpop.f32.mrb[49].mxu1 }
 0x176   :  { %v1194_v27 = vadd.f32 %v1193_v20, %v1192_v9  ;;  %v667_v31 = vpop.f32.mrb[50].mxu0  ;;  %v2496_v32 = vpop.f32.mrb[50].mxu1 }
 0x177   :  { %1104 = vst.msk [vmem:[%s2779_s2 + $0x60] sm:$0xf] %vm1079_vm0, %v1662_v17  ;;  %v1394_v34 = vsel %vm1145_vm1, %v1307_v22, 0.0  ;;  %v1663_v35 = vpack.c.bf16 %v667_v31, %v667_v31  ;;  %v1195_v36 = vsel %vm1145_vm1, %v667_v31, 0.0  ;;  %v1308_v37 = vmul.f32 %v667_v31, %v667_v31  ;;  %v669_v39 = vpop.f32.mrb[51].mxu0  ;;  %v797_v41 = vpop.f32.mrb[51].mxu1 }
 0x178   :  { %1136 = vst.msk [vmem:[%s2779_s2 + $0xe0] sm:$0xf] %vm1079_vm0, %v1694_v24  ;;  %v1395_v42 = vadd.f32 %v1394_v34, %v1393_v12  ;;  %v1196_v44 = vadd.f32 %v1195_v36, %v1194_v27  ;;  %v1695_v45 = vpack.c.bf16 %v2496_v32, %v2496_v32 }
 0x179   :  { %1105 = vst.msk [vmem:[%s2779_s2 + $0x64] sm:$0xf] %vm1079_vm0, %v1663_v35  ;;  %v1396_v46 = vsel %vm1145_vm1, %v1308_v37, 0.0 }
 0x17a   :  { %v1397_v49 = vadd.f32 %v1396_v46, %v1395_v42  ;;  %1137 = vst.msk [vmem:[%s2779_s2 + $0xe4] sm:$0xf] %vm1079_vm0, %v1695_v45 }
 0x17c   :  { %v672_v51 = vpop.f32.mrb[52].mxu0  ;;  %v2519_v52 = vpop.f32.mrb[52].mxu1 }
 0x17d   :  { %v1664_v54 = vpack.c.bf16 %v672_v51, %v672_v51  ;;  %v1197_v55 = vsel %vm1145_vm1, %v672_v51, 0.0  ;;  %v1309_v57 = vmul.f32 %v672_v51, %v672_v51  ;;  %v674_v58 = vpop.f32.mrb[53].mxu0  ;;  %v1696_v59 = vpack.c.bf16 %v2519_v52, %v2519_v52  ;;  %v802_v63 = vpop.f32.mrb[53].mxu1 }
 0x17e   :  { %v1198_v0 = vadd.f32 %v1197_v55, %v1196_v44  ;;  %v675_v1 = vpop.f32.mrb[54].mxu0  ;;  %v2524_v4 = vpop.f32.mrb[54].mxu1 }
 0x17f   :  { %1106 = vst.msk [vmem:[%s2779_s2 + $0x68] sm:$0xf] %vm1079_vm0, %v1664_v54  ;;  %v1398_v6 = vsel %vm1145_vm1, %v1309_v57, 0.0  ;;  %v1665_v7 = vpack.c.bf16 %v675_v1, %v675_v1  ;;  %v1199_v8 = vsel %vm1145_vm1, %v675_v1, 0.0  ;;  %v1310_v9 = vmul.f32 %v675_v1, %v675_v1  ;;  %v677_v10 = vpop.f32.mrb[55].mxu0  ;;  %v805_v11 = vpop.f32.mrb[55].mxu1 }
 0x180   :  { %1138 = vst.msk [vmem:[%s2779_s2 + $0xe8] sm:$0xf] %vm1079_vm0, %v1696_v59  ;;  %v1399_v12 = vadd.f32 %v1398_v6, %v1397_v49  ;;  %v1200_v14 = vadd.f32 %v1199_v8, %v1198_v0  ;;  %v1697_v17 = vpack.c.bf16 %v2524_v4, %v2524_v4  ;;  %v1315_v11 = vmul.f32 %v2147_v18, %v2147_v18 }
 0x181   :  { %1107 = vst.msk [vmem:[%s2779_s2 + $0x6c] sm:$0xf] %vm1079_vm0, %v1665_v7  ;;  %v1400_v20 = vsel %vm1145_vm1, %v1310_v9, 0.0 }
 0x182   :  { %v1401_v22 = vadd.f32 %v1400_v20, %v1399_v12  ;;  %1139 = vst.msk [vmem:[%s2779_s2 + $0xec] sm:$0xf] %vm1079_vm0, %v1697_v17 }
 0x184   :  { %v680_v23 = vpop.f32.mrb[56].mxu0  ;;  %v2547_v24 = vpop.f32.mrb[56].mxu1 }
 0x185   :  { %v1666_v26 = vpack.c.bf16 %v680_v23, %v680_v23  ;;  %v1201_v27 = vsel %vm1145_vm1, %v680_v23, 0.0  ;;  %v1311_v31 = vmul.f32 %v680_v23, %v680_v23  ;;  %v682_v34 = vpop.f32.mrb[57].mxu0  ;;  %v1698_v35 = vpack.c.bf16 %v2547_v24, %v2547_v24  ;;  %v810_v36 = vpop.f32.mrb[57].mxu1 }
 0x186   :  { %v1202_v37 = vadd.f32 %v1201_v27, %v1200_v14  ;;  %v683_v39 = vpop.f32.mrb[58].mxu0  ;;  %v2552_v41 = vpop.f32.mrb[58].mxu1 }
 0x187   :  { %1108 = vst.msk [vmem:[%s2779_s2 + $0x70] sm:$0xf] %vm1079_vm0, %v1666_v26  ;;  %v1402_v42 = vsel %vm1145_vm1, %v1311_v31, 0.0  ;;  %v1667_v44 = vpack.c.bf16 %v683_v39, %v683_v39  ;;  %v1203_v45 = vsel %vm1145_vm1, %v683_v39, 0.0  ;;  %v1312_v46 = vmul.f32 %v683_v39, %v683_v39  ;;  %v685_v49 = vpop.f32.mrb[59].mxu0  ;;  %v813_v51 = vpop.f32.mrb[59].mxu1 }
 0x188   :  { %1140 = vst.msk [vmem:[%s2779_s2 + $0xf0] sm:$0xf] %vm1079_vm0, %v1698_v35  ;;  %v1403_v54 = vadd.f32 %v1402_v42, %v1401_v22  ;;  %v1204_v55 = vadd.f32 %v1203_v45, %v1202_v37  ;;  %v1699_v57 = vpack.c.bf16 %v2552_v41, %v2552_v41  ;;  %v1209_v37 = vsel %vm1145_vm1, %v2147_v18, 0.0 }
 0x189   :  { %1109 = vst.msk [vmem:[%s2779_s2 + $0x74] sm:$0xf] %vm1079_vm0, %v1667_v44  ;;  %v1404_v58 = vsel %vm1145_vm1, %v1312_v46, 0.0  ;;  %v1316_v39 = vmul.f32 %v2151_v25, %v2151_v25  ;;  %v1410_v46 = vsel %vm1145_vm1, %v1315_v11, 0.0  ;;  %v1211_v18 = vsel %vm1145_vm1, %v2151_v25, 0.0 }
 0x18a   :  { %v1405_v59 = vadd.f32 %v1404_v58, %v1403_v54  ;;  %1141 = vst.msk [vmem:[%s2779_s2 + $0xf4] sm:$0xf] %vm1079_vm0, %v1699_v57  ;;  %v1317_v49 = vmul.f32 %v2175_v38, %v2175_v38  ;;  %v1213_v57 = vsel %vm1145_vm1, %v2175_v38, 0.0  ;;  %v1318_v58 = vmul.f32 %v2180_v47, %v2180_v47 }
 0x18b   :  { %v1215_v25 = vsel %vm1145_vm1, %v2180_v47, 0.0  ;;  %v1217_v38 = vsel %vm1145_vm1, %v2203_v60, 0.0  ;;  %v1219_v47 = vsel %vm1145_vm1, %v2208_v5, 0.0 }
 0x18c   :  { %v688_v63 = vpop.f32.mrb[60].mxu0  ;;  %v2575_v0 = vpop.f32.mrb[60].mxu1 }
 0x18d   :  { %v1668_v1 = vpack.c.bf16 %v688_v63, %v688_v63  ;;  %v1205_v6 = vsel %vm1145_vm1, %v688_v63, 0.0  ;;  %v1313_v7 = vmul.f32 %v688_v63, %v688_v63  ;;  %v690_v8 = vpop.f32.mrb[61].mxu0  ;;  %v1700_v9 = vpack.c.bf16 %v2575_v0, %v2575_v0  ;;  %v818_v10 = vpop.f32.mrb[61].mxu1 }
 0x18e   :  { %v1206_v12 = vadd.f32 %v1205_v6, %v1204_v55  ;;  %v691_v14 = vpop.f32.mrb[62].mxu0  ;;  %v2582_v17 = vpop.f32.mrb[62].mxu1  ;;  %v1412_v55 = vsel %vm1145_vm1, %v1316_v39, 0.0  ;;  %v1319_v6 = vmul.f32 %v2203_v60, %v2203_v60  ;;  %v1320_v10 = vmul.f32 %v2208_v5, %v2208_v5 }
 0x18f   :  { %1110 = vst.msk [vmem:[%s2779_s2 + $0x78] sm:$0xf] %vm1079_vm0, %v1668_v1  ;;  %v1406_v20 = vsel %vm1145_vm1, %v1313_v7, 0.0  ;;  %v1669_v22 = vpack.c.bf16 %v691_v14, %v691_v14  ;;  %v1207_v23 = vsel %vm1145_vm1, %v691_v14, 0.0  ;;  %v1314_v26 = vmul.f32 %v691_v14, %v691_v14  ;;  %v693_v27 = vpop.f32.mrb[63].mxu0  ;;  %v821_v31 = vpop.f32.mrb[63].mxu1 }
 0x190   :  { %1142 = vst.msk [vmem:[%s2779_s2 + $0xf8] sm:$0xf] %vm1079_vm0, %v1700_v9  ;;  %v1407_v34 = vadd.f32 %v1406_v20, %v1405_v59  ;;  %v1208_v35 = vadd.f32 %v1207_v23, %v1206_v12  ;;  %v1701_v36 = vpack.c.bf16 %v2582_v17, %v2582_v17  ;;  %v1414_v1 = vsel %vm1145_vm1, %v1317_v49, 0.0 }
 0x191   :  { %1111 = vst.msk [vmem:[%s2779_s2 + $0x7c] sm:$0xf] %vm1079_vm0, %v1669_v22  ;;  %v1408_v42 = vsel %vm1145_vm1, %v1314_v26, 0.0  ;;  %v1416_v9 = vsel %vm1145_vm1, %v1318_v58, 0.0  ;;  %v1418_v14 = vsel %vm1145_vm1, %v1319_v6, 0.0  ;;  %v1321_v20 = vmul.f32 %v2231_v19, %v2231_v19 }
 0x192   :  { %v1210_v44 = vadd.f32 %v1209_v37, %v1208_v35  ;;  %v1409_v45 = vadd.f32 %v1408_v42, %v1407_v34  ;;  %1143 = vst.msk [vmem:[%s2779_s2 + $0xfc] sm:$0xf] %vm1079_vm0, %v1701_v36  ;;  %v1420_v26 = vsel %vm1145_vm1, %v1320_v10, 0.0  ;;  %v1221_v60 = vsel %vm1145_vm1, %v2231_v19, 0.0 }
 0x193   :  { %v1322_v27 = vmul.f32 %v2236_v29, %v2236_v29  ;;  %v1422_v35 = vsel %vm1145_vm1, %v1321_v20, 0.0  ;;  %v1223_v5 = vsel %vm1145_vm1, %v2236_v29, 0.0  ;;  %v1323_v36 = vmul.f32 %v2259_v43, %v2259_v43 }
 0x194   :  { %v1212_v51 = vadd.f32 %v1211_v18, %v1210_v44  ;;  %v1411_v54 = vadd.f32 %v1410_v46, %v1409_v45  ;;  %v1225_v19 = vsel %vm1145_vm1, %v2259_v43, 0.0  ;;  %v1324_v44 = vmul.f32 %v2264_v53, %v2264_v53 }
 0x195   :  { %v1424_v42 = vsel %vm1145_vm1, %v1322_v27, 0.0  ;;  %v1426_v18 = vsel %vm1145_vm1, %v1323_v36, 0.0  ;;  %v1227_v29 = vsel %vm1145_vm1, %v2264_v53, 0.0  ;;  %v1325_v49 = vmul.f32 %v2287_v3, %v2287_v3 }
 0x196   :  { %v1214_v59 = vadd.f32 %v1213_v57, %v1212_v51  ;;  %v1413_v63 = vadd.f32 %v1412_v55, %v1411_v54  ;;  %v1428_v55 = vsel %vm1145_vm1, %v1324_v44, 0.0  ;;  %v1229_v43 = vsel %vm1145_vm1, %v2287_v3, 0.0 }
 0x197   :  { %v1326_v57 = vmul.f32 %v2292_v13, %v2292_v13  ;;  %v1231_v53 = vsel %vm1145_vm1, %v2292_v13, 0.0  ;;  %v1233_v3 = vsel %vm1145_vm1, %v2315_v30, 0.0  ;;  %v1235_v13 = vsel %vm1145_vm1, %v2320_v40, 0.0 }
 0x198   :  { %v1216_v7 = vadd.f32 %v1215_v25, %v1214_v59  ;;  %v1415_v8 = vadd.f32 %v1414_v1, %v1413_v63  ;;  %v1430_v63 = vsel %vm1145_vm1, %v1325_v49, 0.0  ;;  %v1327_v1 = vmul.f32 %v2315_v30, %v2315_v30 }
 0x199   :  { %v1237_v30 = vsel %vm1145_vm1, %v2343_v56, 0.0  ;;  %v1330_v20 = vmul.f32 %v2348_v2, %v2348_v2  ;;  %v1335_v49 = vmul.f32 %v2435_v15, %v2435_v15 }
 0x19a   :  { %v1218_v11 = vadd.f32 %v1217_v38, %v1216_v7  ;;  %v1417_v12 = vadd.f32 %v1416_v9, %v1415_v8  ;;  %v1432_v7 = vsel %vm1145_vm1, %v1326_v57, 0.0  ;;  %v1328_v8 = vmul.f32 %v2320_v40, %v2320_v40 }
 0x19b   :  { %v1434_v10 = vsel %vm1145_vm1, %v1327_v1, 0.0  ;;  %v1239_v40 = vsel %vm1145_vm1, %v2348_v2, 0.0  ;;  %v1243_v2 = vsel %vm1145_vm1, %v2384_v33, 0.0 }
 0x19c   :  { %v1220_v22 = vadd.f32 %v1219_v47, %v1218_v11  ;;  %v1419_v23 = vadd.f32 %v1418_v14, %v1417_v12  ;;  %v1329_v11 = vmul.f32 %v2343_v56, %v2343_v56  ;;  %v1436_v47 = vsel %vm1145_vm1, %v1328_v8, 0.0 }
 0x19d   :  { %v1241_v56 = vsel %vm1145_vm1, %v2379_v21, 0.0 }
 0x19e   :  { %v1222_v31 = vadd.f32 %v1221_v60, %v1220_v22  ;;  %v1421_v34 = vadd.f32 %v1420_v26, %v1419_v23  ;;  %v1438_v26 = vsel %vm1145_vm1, %v1329_v11, 0.0  ;;  %v1331_v60 = vmul.f32 %v2379_v21, %v2379_v21 }
 0x19f   :  { %v1245_v21 = vsel %vm1145_vm1, %v2407_v50, 0.0  ;;  %v1340_v11 = vmul.f32 %v2496_v32, %v2496_v32 }
 0x1a0   :  { %v1224_v37 = vadd.f32 %v1223_v5, %v1222_v31  ;;  %v1423_v39 = vadd.f32 %v1422_v35, %v1421_v34  ;;  %v1440_v34 = vsel %vm1145_vm1, %v1330_v20, 0.0  ;;  %v1332_v35 = vmul.f32 %v2384_v33, %v2384_v33 }
 0x1a1   :  { %v1247_v33 = vsel %vm1145_vm1, %v2412_v62, 0.0 }
 0x1a2   :  { %v1425_v45 = vadd.f32 %v1424_v42, %v1423_v39  ;;  %v1226_v46 = vadd.f32 %v1225_v19, %v1224_v37  ;;  %v1442_v37 = vsel %vm1145_vm1, %v1331_v60, 0.0  ;;  %v1333_v39 = vmul.f32 %v2407_v50, %v2407_v50 }
 0x1a3   :  { %v1444_v44 = vsel %vm1145_vm1, %v1332_v35, 0.0  ;;  %v1249_v50 = vsel %vm1145_vm1, %v2435_v15, 0.0  ;;  %v1253_v15 = vsel %vm1145_vm1, %v2463_v48, 0.0 }
 0x1a4   :  { %v1228_v51 = vadd.f32 %v1227_v29, %v1226_v46  ;;  %v1427_v54 = vadd.f32 %v1426_v18, %v1425_v45  ;;  %v1334_v45 = vmul.f32 %v2412_v62, %v2412_v62  ;;  %v1446_v29 = vsel %vm1145_vm1, %v1333_v39, 0.0 }
 0x1a5   :  { %v1251_v62 = vsel %vm1145_vm1, %v2440_v28, 0.0  ;;  %v1267_v39 = vsel %vm1145_vm1, %v2552_v41, 0.0 }
 0x1a6   :  { %v1230_v58 = vadd.f32 %v1229_v43, %v1228_v51  ;;  %v1429_v59 = vadd.f32 %v1428_v55, %v1427_v54  ;;  %v1448_v55 = vsel %vm1145_vm1, %v1334_v45, 0.0  ;;  %v1336_v43 = vmul.f32 %v2440_v28, %v2440_v28 }
 0x1a7   :  { %v1255_v28 = vsel %vm1145_vm1, %v2468_v61, 0.0  ;;  %v1346_v45 = vmul.f32 %v2582_v17, %v2582_v17 }
 0x1a8   :  { %v1232_v25 = vadd.f32 %v1231_v53, %v1230_v58  ;;  %v1431_v6 = vadd.f32 %v1430_v63, %v1429_v59  ;;  %v1450_v59 = vsel %vm1145_vm1, %v1335_v49, 0.0  ;;  %v1337_v63 = vmul.f32 %v2463_v48, %v2463_v48 }
 0x1a9   :  { %v1257_v48 = vsel %vm1145_vm1, %v2491_v16, 0.0 }
 0x1aa   :  { %v1234_v9 = vadd.f32 %v1233_v3, %v1232_v25  ;;  %v1433_v38 = vadd.f32 %v1432_v7, %v1431_v6  ;;  %v1452_v25 = vsel %vm1145_vm1, %v1336_v43, 0.0  ;;  %v1338_v6 = vmul.f32 %v2468_v61, %v2468_v61 }
 0x1ab   :  { %v1454_v8 = vsel %vm1145_vm1, %v1337_v63, 0.0  ;;  %v1259_v61 = vsel %vm1145_vm1, %v2496_v32, 0.0  ;;  %v1263_v32 = vsel %vm1145_vm1, %v2524_v4, 0.0  ;;  %v1144_v63 = vld [vmem:[%s2780_s3] sm:$0x1] }
 0x1ac   :  { %v1236_v12 = vadd.f32 %v1235_v13, %v1234_v9  ;;  %v1435_v14 = vadd.f32 %v1434_v10, %v1433_v38  ;;  %v1339_v9 = vmul.f32 %v2491_v16, %v2491_v16  ;;  %v1456_v13 = vsel %vm1145_vm1, %v1338_v6, 0.0 }
 0x1ad   :  { %v1261_v16 = vsel %vm1145_vm1, %v2519_v52, 0.0 }
 0x1ae   :  { %v1238_v22 = vadd.f32 %v1237_v30, %v1236_v12  ;;  %v1437_v23 = vadd.f32 %v1436_v47, %v1435_v14  ;;  %v1458_v47 = vsel %vm1145_vm1, %v1339_v9, 0.0  ;;  %v1341_v30 = vmul.f32 %v2519_v52, %v2519_v52 }
 0x1af   :  { %v1265_v52 = vsel %vm1145_vm1, %v2547_v24, 0.0 }
 0x1b0   :  { %v1240_v27 = vadd.f32 %v1239_v40, %v1238_v22  ;;  %v1439_v31 = vadd.f32 %v1438_v26, %v1437_v23  ;;  %v1460_v23 = vsel %vm1145_vm1, %v1340_v11, 0.0  ;;  %v1342_v26 = vmul.f32 %v2524_v4, %v2524_v4 }
 0x1b2   :  { %v1242_v5 = vadd.f32 %v1241_v56, %v1240_v27  ;;  %v1441_v36 = vadd.f32 %v1440_v34, %v1439_v31  ;;  %v1462_v27 = vsel %vm1145_vm1, %v1341_v30, 0.0  ;;  %v1343_v31 = vmul.f32 %v2547_v24, %v2547_v24 }
 0x1b3   :  { %v1464_v35 = vsel %vm1145_vm1, %v1342_v26, 0.0 }
 0x1b4   :  { %v1443_v42 = vadd.f32 %v1442_v37, %v1441_v36  ;;  %v1244_v19 = vadd.f32 %v1243_v2, %v1242_v5  ;;  %v1344_v5 = vmul.f32 %v2552_v41, %v2552_v41  ;;  %v1345_v36 = vmul.f32 %v2575_v0, %v2575_v0 }
 0x1b5   :  { %v1466_v4 = vsel %vm1145_vm1, %v1343_v31, 0.0  ;;  %v1472_v41 = vsel %vm1145_vm1, %v1346_v45, 0.0 }
 0x1b6   :  { %v1445_v46 = vadd.f32 %v1444_v44, %v1443_v42  ;;  %v1246_v18 = vadd.f32 %v1245_v21, %v1244_v19  ;;  %v1269_v42 = vsel %vm1145_vm1, %v2575_v0, 0.0  ;;  %v1468_v24 = vsel %vm1145_vm1, %v1344_v5, 0.0 }
 0x1b7   :  { %v1470_v21 = vsel %vm1145_vm1, %v1345_v36, 0.0 }
 0x1b8   :  { %v1447_v51 = vadd.f32 %v1446_v29, %v1445_v46  ;;  %v1248_v54 = vadd.f32 %v1247_v33, %v1246_v18  ;;  %v1271_v29 = vsel %vm1145_vm1, %v2582_v17, 0.0 }
 0x1ba   :  { %v1449_v57 = vadd.f32 %v1448_v55, %v1447_v51  ;;  %v1250_v58 = vadd.f32 %v1249_v50, %v1248_v54 }
 0x1bc   :  { %v1451_v53 = vadd.f32 %v1450_v59, %v1449_v57  ;;  %v1252_v1 = vadd.f32 %v1251_v62, %v1250_v58 }
 0x1be   :  { %v1453_v7 = vadd.f32 %v1452_v25, %v1451_v53  ;;  %v1254_v3 = vadd.f32 %v1253_v15, %v1252_v1  ;;  %v1282_v1 = vld [vmem:[%s2781_s4] sm:$0x1] }
 0x1c0   :  { %v1455_v38 = vadd.f32 %v1454_v8, %v1453_v7  ;;  %v1256_v10 = vadd.f32 %v1255_v28, %v1254_v3 }
 0x1c2   :  { %v1457_v12 = vadd.f32 %v1456_v13, %v1455_v38  ;;  %v1258_v14 = vadd.f32 %v1257_v48, %v1256_v10 }
 0x1c4   :  { %v1459_v20 = vadd.f32 %v1458_v47, %v1457_v12  ;;  %v1260_v22 = vadd.f32 %v1259_v61, %v1258_v14 }
 0x1c6   :  { %v1461_v40 = vadd.f32 %v1460_v23, %v1459_v20  ;;  %v1262_v60 = vadd.f32 %v1261_v16, %v1260_v22 }
 0x1c8   :  { %v1463_v34 = vadd.f32 %v1462_v27, %v1461_v40  ;;  %v1264_v56 = vadd.f32 %v1263_v32, %v1262_v60 }
 0x1ca   :  { %v1465_v37 = vadd.f32 %v1464_v35, %v1463_v34  ;;  %v1266_v2 = vadd.f32 %v1265_v52, %v1264_v56 }
 0x1cc   :  { %v1467_v19 = vadd.f32 %v1466_v4, %v1465_v37  ;;  %v1268_v44 = vadd.f32 %v1267_v39, %v1266_v2 }
 0x1ce   :  { %v1469_v46 = vadd.f32 %v1468_v24, %v1467_v19  ;;  %v1270_v18 = vadd.f32 %v1269_v42, %v1268_v44 }
 0x1d0   :  { %v1471_v33 = vadd.f32 %v1470_v21, %v1469_v46  ;;  %v1272_v49 = vadd.f32 %v1271_v29, %v1270_v18 }
 0x1d2   :  { %v1273_v51 = vrot.slane %v1272_v49, 4  ;;  %v1473_v0 = vadd.f32 %v1472_v41, %v1471_v33 }
 0x1d4   :  { %v1274_v54 = vadd.f32 %v1273_v51, %v1272_v49  ;;  %v1474_v55 = vrot.slane %v1473_v0, 4 }
 0x1d6   :  { %v1275_v50 = vrot.slane %v1274_v54, 2  ;;  %v1475_v43 = vadd.f32 %v1474_v55, %v1473_v0 }
 0x1d8   :  { %v1276_v57 = vadd.f32 %v1275_v50, %v1274_v54  ;;  %v1476_v58 = vrot.slane %v1475_v43, 2 }
 0x1da   :  { %v1277_v59 = vrot.slane %v1276_v57, 1  ;;  %v1477_v62 = vadd.f32 %v1476_v58, %v1475_v43 }
 0x1dc   :  { %v1278_v53 = vadd.f32 %v1277_v59, %v1276_v57  ;;  %v1478_v17 = vrot.slane %v1477_v62, 1 }
 0x1de   :  { %v1279_v25 = vadd.f32 %v1278_v53, %v1144_v63  ;;  %v1479_v15 = vadd.f32 %v1478_v17, %v1477_v62 }
 0x1e0   :  { %1281 = vst.msk [vmem:[%s2780_s3] sm:$0x1] %vm19_vm2, %v1279_v25  ;;  %v1480_v6 = vadd.f32 %v1479_v15, %v1282_v1 }
 0x1e2   :  { %1481 = vst.msk [vmem:[%s2781_s4] sm:$0x1] %vm19_vm2, %v1480_v6 }

// kernel: ac_discriminator_forward.12
= control target key start
LH: loop header
LB: loop body
LE: loop exit
PB: predicated region body
PF: predicated region fallthrough
CT: control target
= control target key end

     0   :  { %s455_s0 = inlined_call_operand.vmem [shape: bf16[128,128], index: 0, kind: input, shape index: {}]   ;;  %s456_s1 = inlined_call_operand.vmem [shape: f32[1,128], index: 1, kind: input, shape index: {}]   ;;  %s457_s2 = inlined_call_operand.vmem [shape: f32[1,128], index: 2, kind: input, shape index: {}]   ;;  %s458_s3 = inlined_call_operand.vmem [shape: bf16[128,128], index: 3, kind: output, shape index: {}]  }
   0x1   :  { %v259_v0 = vld [vmem:[%s455_s0] sm:$0xff]   ;;  %v330_v4 = vld [vmem:[%s455_s0 + $0x8] sm:$0xff]   ;;  %v331_v5 = vld [vmem:[%s455_s0 + $0x10] sm:$0xff]  }
   0x2   :  { %v370_v1 = vld [vmem:[%s456_s1] ss:$0 sm:$0xff]  ;;  %v260_v2 = vunpack.c.l.bf16 %v259_v0  ;;  %v261_v3 = vunpack.c.h.bf16 %v259_v0  ;;  %v332_v6 = vld [vmem:[%s455_s0 + $0x18] sm:$0xff]   ;;  %v264_v8 = vunpack.c.l.bf16 %v330_v4  ;;  %v265_v9 = vunpack.c.h.bf16 %v330_v4  ;;  %v334_v35 = vld [vmem:[%s455_s0 + $0x28] sm:$0xff]  }
   0x3   :  { %v384_v7 = vld [vmem:[%s457_s2] ss:$0 sm:$0xff]  ;;  %v268_v10 = vunpack.c.l.bf16 %v331_v5  ;;  %v269_v11 = vunpack.c.h.bf16 %v331_v5  ;;  %v272_v14 = vunpack.c.l.bf16 %v332_v6  ;;  %v273_v15 = vunpack.c.h.bf16 %v332_v6  ;;  %v335_v48 = vld [vmem:[%s455_s0 + $0x30] sm:$0xff]   ;;  %v336_v4 = vld [vmem:[%s455_s0 + $0x38] sm:$0xff]  }
   0x4   :  { %v53_v12 = vmul.f32 %v260_v2, %v370_v1  ;;  %v54_v13 = vmul.f32 %v261_v3, %v370_v1  ;;  %v55_v16 = vmul.f32 %v264_v8, %v370_v1  ;;  %v56_v17 = vmul.f32 %v265_v9, %v370_v1  ;;  %v333_v34 = vld [vmem:[%s455_s0 + $0x20] sm:$0xff]  }
   0x5   :  { %v57_v18 = vmul.f32 %v268_v10, %v370_v1  ;;  %v58_v19 = vmul.f32 %v269_v11, %v370_v1  ;;  %v59_v22 = vmul.f32 %v272_v14, %v370_v1  ;;  %v60_v23 = vmul.f32 %v273_v15, %v370_v1 }
   0x6   :  { %v76_v20 = vadd.f32 %v384_v7, %v53_v12  ;;  %v77_v21 = vadd.f32 %v384_v7, %v54_v13  ;;  %v78_v24 = vadd.f32 %v384_v7, %v55_v16  ;;  %v79_v25 = vadd.f32 %v384_v7, %v56_v17 }
   0x7   :  { %v80_v26 = vadd.f32 %v384_v7, %v57_v18  ;;  %v81_v27 = vadd.f32 %v384_v7, %v58_v19  ;;  %v82_v42 = vadd.f32 %v384_v7, %v59_v22  ;;  %v83_v43 = vadd.f32 %v384_v7, %v60_v23 }
   0x8   :  { %vm92_vm0 = vcmp.gt.f32.partialorder %v76_v20, 0.0  ;;  %vm93_vm1 = vcmp.gt.f32.partialorder %v77_v21, 0.0  ;;  %v108_v28 = vmul.f32 0.2, %v76_v20  ;;  %v109_v29 = vmul.f32 0.2, %v77_v21 }
   0x9   :  { %vm94_vm2 = vcmp.gt.f32.partialorder %v78_v24, 0.0  ;;  %vm95_vm3 = vcmp.gt.f32.partialorder %v79_v25, 0.0  ;;  %v110_v30 = vmul.f32 0.2, %v78_v24  ;;  %v111_v31 = vmul.f32 0.2, %v79_v25 }
   0xa   :  { %v124_v32 = vsel %vm92_vm0, %v76_v20, %v108_v28  ;;  %v125_v33 = vsel %vm93_vm1, %v77_v21, %v109_v29  ;;  %vm96_vm4 = vcmp.gt.f32.partialorder %v80_v26, 0.0  ;;  %vm97_vm5 = vcmp.gt.f32.partialorder %v81_v27, 0.0 }
   0xb   :  { %v293_v36 = vpack.c.bf16 %v125_v33, %v124_v32  ;;  %v126_v37 = vsel %vm94_vm2, %v78_v24, %v110_v30  ;;  %v127_v38 = vsel %vm95_vm3, %v79_v25, %v111_v31  ;;  %v112_v39 = vmul.f32 0.2, %v80_v26 }
   0xc   :  { %v298_v40 = vpack.c.bf16 %v127_v38, %v126_v37  ;;  %v113_v41 = vmul.f32 0.2, %v81_v27  ;;  %v276_v45 = vunpack.c.l.bf16 %v333_v34  ;;  %v277_v46 = vunpack.c.h.bf16 %v333_v34 }
   0xd   :  { %294 = vst [vmem:[%s458_s3] sm:$0xff] %v293_v36   ;;  %v128_v44 = vsel %vm96_vm4, %v80_v26, %v112_v39  ;;  %v280_v47 = vunpack.c.l.bf16 %v334_v35  ;;  %vm98_vm6 = vcmp.gt.f32.partialorder %v82_v42, 0.0  ;;  %vm99_vm7 = vcmp.gt.f32.partialorder %v83_v43, 0.0 }
   0xe   :  { %337 = vst [vmem:[%s458_s3 + $0x8] sm:$0xff] %v298_v40   ;;  %v129_v49 = vsel %vm97_vm5, %v81_v27, %v113_v41  ;;  %v114_v50 = vmul.f32 0.2, %v82_v42  ;;  %v115_v52 = vmul.f32 0.2, %v83_v43  ;;  %v61_v53 = vmul.f32 %v276_v45, %v370_v1 }
   0xf   :  { %v303_v51 = vpack.c.bf16 %v129_v49, %v128_v44  ;;  %v62_v54 = vmul.f32 %v277_v46, %v370_v1  ;;  %v281_v56 = vunpack.c.h.bf16 %v334_v35  ;;  %v63_v57 = vmul.f32 %v280_v47, %v370_v1 }
  0x10   :  { %v130_v55 = vsel %vm98_vm6, %v82_v42, %v114_v50  ;;  %v284_v58 = vunpack.c.l.bf16 %v335_v48  ;;  %v131_v59 = vsel %vm99_vm7, %v83_v43, %v115_v52  ;;  %v84_v60 = vadd.f32 %v384_v7, %v61_v53 }
  0x11   :  { %338 = vst [vmem:[%s458_s3 + $0x10] sm:$0xff] %v303_v51   ;;  %v85_v61 = vadd.f32 %v384_v7, %v62_v54  ;;  %v285_v62 = vunpack.c.h.bf16 %v335_v48  ;;  %v308_v63 = vpack.c.bf16 %v131_v59, %v130_v55  ;;  %v64_v0 = vmul.f32 %v281_v56, %v370_v1 }
  0x12   :  { %v86_v2 = vadd.f32 %v384_v7, %v63_v57  ;;  %v65_v3 = vmul.f32 %v284_v58, %v370_v1  ;;  %vm100_vm8 = vcmp.gt.f32.partialorder %v84_v60, 0.0  ;;  %v116_v5 = vmul.f32 0.2, %v84_v60 }
  0x13   :  { %vm101_vm9 = vcmp.gt.f32.partialorder %v85_v61, 0.0  ;;  %v117_v6 = vmul.f32 0.2, %v85_v61  ;;  %339 = vst [vmem:[%s458_s3 + $0x18] sm:$0xff] %v308_v63   ;;  %v87_v8 = vadd.f32 %v384_v7, %v64_v0  ;;  %v66_v10 = vmul.f32 %v285_v62, %v370_v1 }
  0x14   :  { %vm102_vm10 = vcmp.gt.f32.partialorder %v86_v2, 0.0  ;;  %v118_v9 = vmul.f32 0.2, %v86_v2  ;;  %v132_v11 = vsel %vm100_vm8, %v84_v60, %v116_v5  ;;  %v88_v13 = vadd.f32 %v384_v7, %v65_v3 }
  0x15   :  { %v133_v12 = vsel %vm101_vm9, %v85_v61, %v117_v6  ;;  %v288_v14 = vunpack.c.l.bf16 %v336_v4  ;;  %vm103_vm11 = vcmp.gt.f32.partialorder %v87_v8, 0.0  ;;  %v119_v16 = vmul.f32 0.2, %v87_v8 }
  0x16   :  { %v313_v15 = vpack.c.bf16 %v133_v12, %v132_v11  ;;  %v134_v17 = vsel %vm102_vm10, %v86_v2, %v118_v9  ;;  %v89_v18 = vadd.f32 %v384_v7, %v66_v10  ;;  %vm104_vm12 = vcmp.gt.f32.partialorder %v88_v13, 0.0 }
  0x17   :  { %v120_v19 = vmul.f32 0.2, %v88_v13  ;;  %v289_v20 = vunpack.c.h.bf16 %v336_v4  ;;  %v135_v21 = vsel %vm103_vm11, %v87_v8, %v119_v16  ;;  %v67_v22 = vmul.f32 %v288_v14, %v370_v1 }
  0x18   :  { %340 = vst [vmem:[%s458_s3 + $0x20] sm:$0xff] %v313_v15   ;;  %v318_v23 = vpack.c.bf16 %v135_v21, %v134_v17  ;;  %vm105_vm13 = vcmp.gt.f32.partialorder %v89_v18, 0.0  ;;  %v121_v24 = vmul.f32 0.2, %v89_v18 }
  0x19   :  { %v136_v25 = vsel %vm104_vm12, %v88_v13, %v120_v19  ;;  %v68_v26 = vmul.f32 %v289_v20, %v370_v1  ;;  %v90_v27 = vadd.f32 %v384_v7, %v67_v22 }
  0x1a   :  { %341 = vst [vmem:[%s458_s3 + $0x28] sm:$0xff] %v318_v23   ;;  %v137_v28 = vsel %vm105_vm13, %v89_v18, %v121_v24 }
  0x1b   :  { %v323_v29 = vpack.c.bf16 %v137_v28, %v136_v25  ;;  %v91_v30 = vadd.f32 %v384_v7, %v68_v26  ;;  %vm106_vm14 = vcmp.gt.f32.partialorder %v90_v27, 0.0  ;;  %v122_v31 = vmul.f32 0.2, %v90_v27 }
  0x1d   :  { %342 = vst [vmem:[%s458_s3 + $0x30] sm:$0xff] %v323_v29   ;;  %vm107_vm15 = vcmp.gt.f32.partialorder %v91_v30, 0.0  ;;  %v123_v32 = vmul.f32 0.2, %v91_v30  ;;  %v138_v33 = vsel %vm106_vm14, %v90_v27, %v122_v31 }
  0x1f   :  { %v139_v1 = vsel %vm107_vm15, %v91_v30, %v123_v32 }
  0x20   :  { %v328_v34 = vpack.c.bf16 %v139_v1, %v138_v33 }
  0x22   :  { %343 = vst [vmem:[%s458_s3 + $0x38] sm:$0xff] %v328_v34  }

// kernel: ac_discriminator_forward.13
= control target key start
LH: loop header
LB: loop body
LE: loop exit
PB: predicated region body
PF: predicated region fallthrough
CT: control target
= control target key end

     0   :  { %vm19_vm0 = vcmask 516096   ;;  %vm728_vm1 = vcmask 519168   ;;  %vm746_vm2 = vcmask 523264   ;;  %s1496_s1 = inlined_call_operand.vmem [shape: bf16[512,64], index: 1, kind: input, shape index: {}]   ;;  %s1497_s0 = inlined_call_operand.vmem [shape: bf16[128,512], index: 0, kind: input, shape index: {}]   ;;  %s1498_s3 = inlined_call_operand.vmem [shape: f32[1,64], index: 3, kind: output, shape index: {1}]   ;;  %s1499_s4 = inlined_call_operand.vmem [shape: f32[1,64], index: 4, kind: output, shape index: {2}]   ;;  %s1500_s2 = inlined_call_operand.vmem [shape: bf16[128,64], index: 2, kind: output, shape index: {0}]  }
   0x1   :  { %v1080_v0 = vld [vmem:[%s1496_s1 + $0x40] sm:$0xff]   ;;  %v1084_v4 = vld [vmem:[%s1496_s1 + $0x48] sm:$0xff]   ;;  %v1088_v8 = vld [vmem:[%s1496_s1 + $0x50] sm:$0xff]  }
   0x2   :  { %v1081_v1 = vld [vmem:[%s1496_s1 + $0xc0] sm:$0xff]   ;;  %951 = vmatprep.subr.bf16.mxu0 %v1080_v0  ;;  %v1085_v5 = vld [vmem:[%s1496_s1 + $0xc8] sm:$0xff]   ;;  %v1089_v9 = vld [vmem:[%s1496_s1 + $0xd0] sm:$0xff]   ;;  %v1160_v0 = vmov 0.0  }
   0x3   :  { %v1082_v2 = vld [vmem:[%s1496_s1] sm:$0xff]   ;;  %1015 = vmatprep.subr.bf16.mxu1 %v1081_v1  ;;  %v1086_v6 = vld [vmem:[%s1496_s1 + $0x8] sm:$0xff]   ;;  %v1090_v10 = vld [vmem:[%s1496_s1 + $0x10] sm:$0xff]   ;;  %20 = vst.msk [vmem:[%s1498_s3] sm:$0x1] %vm19_vm0, %v1160_v0 }
   0x4   :  { %v1083_v3 = vld [vmem:[%s1496_s1 + $0x80] sm:$0xff]   ;;  %952 = vmatpush3.bf16.msra.mxu0 %v1082_v2  ;;  %v1087_v7 = vld [vmem:[%s1496_s1 + $0x88] sm:$0xff]   ;;  %v1091_v11 = vld [vmem:[%s1496_s1 + $0x90] sm:$0xff]   ;;  %21 = vst.msk [vmem:[%s1499_s4] sm:$0x1] %vm19_vm0, %v1160_v0 }
   0x5   :  { %1016 = vmatpush3.bf16.msra.mxu1 %v1083_v3  ;;  %953 = vmatprep.subr.bf16.mxu0 %v1084_v4  ;;  %v1092_v12 = vld [vmem:[%s1496_s1 + $0x58] sm:$0xff]   ;;  %v1096_v16 = vld [vmem:[%s1496_s1 + $0x60] sm:$0xff]   ;;  %v1100_v20 = vld [vmem:[%s1496_s1 + $0x68] sm:$0xff]  }
   0x6   :  { %1017 = vmatprep.subr.bf16.mxu1 %v1085_v5  ;;  %v1093_v13 = vld [vmem:[%s1496_s1 + $0xd8] sm:$0xff]   ;;  %v1097_v17 = vld [vmem:[%s1496_s1 + $0xe0] sm:$0xff]   ;;  %v1101_v21 = vld [vmem:[%s1496_s1 + $0xe8] sm:$0xff]  }
   0x7   :  { %v1094_v14 = vld [vmem:[%s1496_s1 + $0x18] sm:$0xff]   ;;  %v1098_v18 = vld [vmem:[%s1496_s1 + $0x20] sm:$0xff]   ;;  %v1102_v22 = vld [vmem:[%s1496_s1 + $0x28] sm:$0xff]  }
   0x8   :  { %954 = vmatpush3.bf16.msra.mxu0 %v1086_v6  ;;  %v1095_v15 = vld [vmem:[%s1496_s1 + $0x98] sm:$0xff]   ;;  %v1099_v19 = vld [vmem:[%s1496_s1 + $0xa0] sm:$0xff]   ;;  %v1103_v23 = vld [vmem:[%s1496_s1 + $0xa8] sm:$0xff]  }
   0x9   :  { %1018 = vmatpush3.bf16.msra.mxu1 %v1087_v7  ;;  %955 = vmatprep.subr.bf16.mxu0 %v1088_v8  ;;  %v1104_v24 = vld [vmem:[%s1496_s1 + $0x70] sm:$0xff]   ;;  %v1108_v28 = vld [vmem:[%s1496_s1 + $0x78] sm:$0xff]  }
   0xa   :  { %1019 = vmatprep.subr.bf16.mxu1 %v1089_v9  ;;  %v1105_v25 = vld [vmem:[%s1496_s1 + $0xf0] sm:$0xff]   ;;  %v1109_v29 = vld [vmem:[%s1496_s1 + $0xf8] sm:$0xff]  }
   0xb   :  { %v1106_v26 = vld [vmem:[%s1496_s1 + $0x30] sm:$0xff]   ;;  %v1110_v30 = vld [vmem:[%s1496_s1 + $0x38] sm:$0xff]  }
   0xc   :  { %956 = vmatpush3.bf16.msra.mxu0 %v1090_v10  ;;  %v1107_v27 = vld [vmem:[%s1496_s1 + $0xb0] sm:$0xff]   ;;  %v1111_v31 = vld [vmem:[%s1496_s1 + $0xb8] sm:$0xff]  }
   0xd   :  { %1020 = vmatpush3.bf16.msra.mxu1 %v1091_v11  ;;  %957 = vmatprep.subr.bf16.mxu0 %v1092_v12  ;;  %v1112_v32 = vld [vmem:[%s1497_s0] ss:$16 sps:$4 sm:$0xff]   ;;  %v1114_v33 = vld [vmem:[%s1497_s0 + $0x4] ss:$16 sps:$4 sm:$0xff]   ;;  %v1115_v34 = vld [vmem:[%s1497_s0 + $0x8] ss:$16 sps:$4 sm:$0xff]  }
   0xe   :  { %1021 = vmatprep.subr.bf16.mxu1 %v1093_v13  ;;  %v1117_v35 = vld [vmem:[%s1497_s0 + $0xc] ss:$16 sps:$4 sm:$0xff]   ;;  %502 = vmatprep.mubr.bf16.mxu0 %v1114_v33  ;;  %v1118_v36 = vld [vmem:[%s1497_s0 + $0x24] ss:$16 sps:$4 sm:$0xff]   ;;  %v1122_v38 = vld [vmem:[%s1497_s0 + $0x20] ss:$16 sps:$4 sm:$0xff]  }
   0xf   :  { %599 = vmatprep.mubr.bf16.mxu1 %v1117_v35  ;;  %v1120_v37 = vld [vmem:[%s1497_s0 + $0x2c] ss:$16 sps:$4 sm:$0xff]   ;;  %v1123_v39 = vld [vmem:[%s1497_s0 + $0x28] ss:$16 sps:$4 sm:$0xff]   ;;  %v1124_v40 = vld [vmem:[%s1497_s0 + $0x44] ss:$16 sps:$4 sm:$0xff]  }
  0x10   :  { %958 = vmatpush3.bf16.msra.mxu0 %v1094_v14  ;;  %v1126_v41 = vld [vmem:[%s1497_s0 + $0x4c] ss:$16 sps:$4 sm:$0xff]   ;;  %v1128_v42 = vld [vmem:[%s1497_s0 + $0x40] ss:$16 sps:$4 sm:$0xff]   ;;  %v1129_v43 = vld [vmem:[%s1497_s0 + $0x48] ss:$16 sps:$4 sm:$0xff]  }
  0x11   :  { %1022 = vmatpush3.bf16.msra.mxu1 %v1095_v15  ;;  %959 = vmatprep.subr.bf16.mxu0 %v1096_v16  ;;  %v1130_v44 = vld [vmem:[%s1497_s0 + $0x64] ss:$16 sps:$4 sm:$0xff]   ;;  %v1132_v45 = vld [vmem:[%s1497_s0 + $0x6c] ss:$16 sps:$4 sm:$0xff]   ;;  %v1134_v46 = vld [vmem:[%s1497_s0 + $0x60] ss:$16 sps:$4 sm:$0xff]  }
  0x12   :  { %1023 = vmatprep.subr.bf16.mxu1 %v1097_v17  ;;  %v1135_v47 = vld [vmem:[%s1497_s0 + $0x68] ss:$16 sps:$4 sm:$0xff]   ;;  %v1136_v48 = vld [vmem:[%s1497_s0 + $0x84] ss:$16 sps:$4 sm:$0xff]   ;;  %v1138_v49 = vld [vmem:[%s1497_s0 + $0x8c] ss:$16 sps:$4 sm:$0xff]  }
  0x13   :  { %v1140_v50 = vld [vmem:[%s1497_s0 + $0x80] ss:$16 sps:$4 sm:$0xff]   ;;  %v1141_v51 = vld [vmem:[%s1497_s0 + $0x88] ss:$16 sps:$4 sm:$0xff]   ;;  %v1142_v52 = vld [vmem:[%s1497_s0 + $0xa4] ss:$16 sps:$4 sm:$0xff]  }
  0x14   :  { %960 = vmatpush3.bf16.msra.mxu0 %v1098_v18  ;;  %v1144_v53 = vld [vmem:[%s1497_s0 + $0xac] ss:$16 sps:$4 sm:$0xff]   ;;  %v1146_v54 = vld [vmem:[%s1497_s0 + $0xa0] ss:$16 sps:$4 sm:$0xff]   ;;  %v1147_v55 = vld [vmem:[%s1497_s0 + $0xa8] ss:$16 sps:$4 sm:$0xff]  }
  0x15   :  { %1024 = vmatpush3.bf16.msra.mxu1 %v1099_v19  ;;  %961 = vmatprep.subr.bf16.mxu0 %v1100_v20  ;;  %v1148_v56 = vld [vmem:[%s1497_s0 + $0xc4] ss:$16 sps:$4 sm:$0xff]   ;;  %v1150_v57 = vld [vmem:[%s1497_s0 + $0xcc] ss:$16 sps:$4 sm:$0xff]   ;;  %v1152_v58 = vld [vmem:[%s1497_s0 + $0xc0] ss:$16 sps:$4 sm:$0xff]  }
  0x16   :  { %1025 = vmatprep.subr.bf16.mxu1 %v1101_v21  ;;  %v1153_v59 = vld [vmem:[%s1497_s0 + $0xc8] ss:$16 sps:$4 sm:$0xff]   ;;  %v1154_v60 = vld [vmem:[%s1497_s0 + $0xe4] ss:$16 sps:$4 sm:$0xff]   ;;  %v1156_v61 = vld [vmem:[%s1497_s0 + $0xec] ss:$16 sps:$4 sm:$0xff]  }
  0x17   :  { %v1158_v62 = vld [vmem:[%s1497_s0 + $0xe0] ss:$16 sps:$4 sm:$0xff]   ;;  %v1159_v63 = vld [vmem:[%s1497_s0 + $0xe8] ss:$16 sps:$4 sm:$0xff]  }
  0x18   :  { %962 = vmatpush3.bf16.msra.mxu0 %v1102_v22 }
  0x19   :  { %1026 = vmatpush3.bf16.msra.mxu1 %v1103_v23  ;;  %963 = vmatprep.subr.bf16.mxu0 %v1104_v24 }
  0x1a   :  { %1027 = vmatprep.subr.bf16.mxu1 %v1105_v25 }
  0x1c   :  { %964 = vmatpush3.bf16.msra.mxu0 %v1106_v26 }
  0x1d   :  { %1028 = vmatpush3.bf16.msra.mxu1 %v1107_v27  ;;  %965 = vmatprep.subr.bf16.mxu0 %v1108_v28 }
  0x1e   :  { %1029 = vmatprep.subr.bf16.mxu1 %v1109_v29 }
  0x20   :  { %966 = vmatpush3.bf16.msra.mxu0 %v1110_v30 }
  0x21   :  { %1030 = vmatpush3.bf16.msra.mxu1 %v1111_v31 }
  0x23   :  { %503 = vmatmul.mubr.bf16.vlgmr.msra.gmra.mrb[0].mxu0 %v1112_v32 }
  0x24   :  { %600 = vmatmul.mubr.bf16.vlgmr.msra.gmra.mrb[0].mxu1 %v1115_v34  ;;  %510 = vmatprep.mubr.bf16.mxu0 %v1118_v36 }
  0x25   :  { %607 = vmatprep.mubr.bf16.mxu1 %v1120_v37 }
  0x2b   :  { %511 = vmatmul.mubr.bf16.gmra.mrb[4].mxu0 %v1122_v38 }
  0x2c   :  { %608 = vmatmul.mubr.bf16.gmra.mrb[4].mxu1 %v1123_v39  ;;  %518 = vmatprep.mubr.bf16.mxu0 %v1124_v40 }
  0x2d   :  { %615 = vmatprep.mubr.bf16.mxu1 %v1126_v41 }
  0x33   :  { %519 = vmatmul.mubr.bf16.gmra.mrb[8].mxu0 %v1128_v42 }
  0x34   :  { %616 = vmatmul.mubr.bf16.gmra.mrb[8].mxu1 %v1129_v43  ;;  %526 = vmatprep.mubr.bf16.mxu0 %v1130_v44 }
  0x35   :  { %623 = vmatprep.mubr.bf16.mxu1 %v1132_v45 }
  0x3b   :  { %527 = vmatmul.mubr.bf16.gmra.mrb[12].mxu0 %v1134_v46 }
  0x3c   :  { %624 = vmatmul.mubr.bf16.gmra.mrb[12].mxu1 %v1135_v47  ;;  %534 = vmatprep.mubr.bf16.mxu0 %v1136_v48 }
  0x3d   :  { %631 = vmatprep.mubr.bf16.mxu1 %v1138_v49 }
  0x43   :  { %535 = vmatmul.mubr.bf16.gmra.mrb[16].mxu0 %v1140_v50 }
  0x44   :  { %632 = vmatmul.mubr.bf16.gmra.mrb[16].mxu1 %v1141_v51  ;;  %542 = vmatprep.mubr.bf16.mxu0 %v1142_v52 }
  0x45   :  { %639 = vmatprep.mubr.bf16.mxu1 %v1144_v53 }
  0x4b   :  { %543 = vmatmul.mubr.bf16.gmra.mrb[20].mxu0 %v1146_v54 }
  0x4c   :  { %640 = vmatmul.mubr.bf16.gmra.mrb[20].mxu1 %v1147_v55  ;;  %550 = vmatprep.mubr.bf16.mxu0 %v1148_v56 }
  0x4d   :  { %647 = vmatprep.mubr.bf16.mxu1 %v1150_v57 }
  0x53   :  { %551 = vmatmul.mubr.bf16.gmra.mrb[24].mxu0 %v1152_v58 }
  0x54   :  { %648 = vmatmul.mubr.bf16.gmra.mrb[24].mxu1 %v1153_v59  ;;  %558 = vmatprep.mubr.bf16.mxu0 %v1154_v60 }
  0x55   :  { %655 = vmatprep.mubr.bf16.mxu1 %v1156_v61 }
  0x5b   :  { %559 = vmatmul.mubr.bf16.gmra.mrb[28].mxu0 %v1158_v62 }
  0x5c   :  { %656 = vmatmul.mubr.bf16.gmra.mrb[28].mxu1 %v1159_v63 }
  0xf6   :  { %v967_v1 = vpop.f32.mrb[0].mxu0 }
  0xf7   :  { %v1031_v2 = vpop.f32.mrb[0].mxu1  ;;  %v968_v3 = vpop.f32.mrb[1].mxu0 }
  0xf8   :  { %v969_v4 = vadd.f32 %v968_v3, %v967_v1  ;;  %v1032_v5 = vpop.f32.mrb[1].mxu1  ;;  %v970_v6 = vpop.f32.mrb[2].mxu0 }
  0xf9   :  { %v1033_v7 = vadd.f32 %v1032_v5, %v1031_v2  ;;  %v1034_v8 = vpop.f32.mrb[2].mxu1  ;;  %v971_v9 = vpop.f32.mrb[3].mxu0 }
  0xfa   :  { %v972_v10 = vadd.f32 %v971_v9, %v970_v6  ;;  %v1035_v11 = vpop.f32.mrb[3].mxu1 }
  0xfb   :  { %v602_v12 = vadd.f32 %v1033_v7, %v969_v4  ;;  %v1036_v13 = vadd.f32 %v1035_v11, %v1034_v8 }
  0xfd   :  { %v935_v14 = vpack.c.bf16 %v602_v12, %v602_v12  ;;  %v788_v15 = vmul.f32 %v602_v12, %v602_v12  ;;  %v605_v16 = vadd.f32 %v1036_v13, %v972_v10  ;;  %v747_v18 = vsel %vm746_vm2, %v602_v12, 0.0 }
  0xfe   :  { %v973_v17 = vpop.f32.mrb[4].mxu0 }
  0xff   :  { %729 = vst.msk [vmem:[%s1500_s2] sm:$0xf] %vm728_vm1, %v935_v14  ;;  %v936_v19 = vpack.c.bf16 %v605_v16, %v605_v16  ;;  %v748_v20 = vsel %vm746_vm2, %v605_v16, 0.0  ;;  %v789_v21 = vmul.f32 %v605_v16, %v605_v16  ;;  %v1037_v22 = vpop.f32.mrb[4].mxu1  ;;  %v974_v23 = vpop.f32.mrb[5].mxu0  ;;  %v804_v28 = vsel %vm746_vm2, %v788_v15, 0.0 }
 0x100   :  { %v749_v24 = vadd.f32 %v748_v20, %v747_v18  ;;  %v975_v25 = vadd.f32 %v974_v23, %v973_v17  ;;  %v1038_v26 = vpop.f32.mrb[5].mxu1  ;;  %v976_v27 = vpop.f32.mrb[6].mxu0 }
 0x101   :  { %730 = vst.msk [vmem:[%s1500_s2 + $0x4] sm:$0xf] %vm728_vm1, %v936_v19  ;;  %v805_v29 = vsel %vm746_vm2, %v789_v21, 0.0  ;;  %v1039_v30 = vadd.f32 %v1038_v26, %v1037_v22  ;;  %v1040_v31 = vpop.f32.mrb[6].mxu1  ;;  %v977_v32 = vpop.f32.mrb[7].mxu0 }
 0x102   :  { %v806_v33 = vadd.f32 %v805_v29, %v804_v28  ;;  %v978_v34 = vadd.f32 %v977_v32, %v976_v27  ;;  %v1041_v35 = vpop.f32.mrb[7].mxu1 }
 0x103   :  { %v610_v36 = vadd.f32 %v1039_v30, %v975_v25  ;;  %v1042_v37 = vadd.f32 %v1041_v35, %v1040_v31 }
 0x105   :  { %v937_v38 = vpack.c.bf16 %v610_v36, %v610_v36  ;;  %v750_v39 = vsel %vm746_vm2, %v610_v36, 0.0  ;;  %v790_v40 = vmul.f32 %v610_v36, %v610_v36  ;;  %v613_v41 = vadd.f32 %v1042_v37, %v978_v34 }
 0x106   :  { %v751_v42 = vadd.f32 %v750_v39, %v749_v24  ;;  %v979_v43 = vpop.f32.mrb[8].mxu0 }
 0x107   :  { %731 = vst.msk [vmem:[%s1500_s2 + $0x8] sm:$0xf] %vm728_vm1, %v937_v38  ;;  %v807_v44 = vsel %vm746_vm2, %v790_v40, 0.0  ;;  %v938_v45 = vpack.c.bf16 %v613_v41, %v613_v41  ;;  %v752_v46 = vsel %vm746_vm2, %v613_v41, 0.0  ;;  %v791_v47 = vmul.f32 %v613_v41, %v613_v41  ;;  %v1043_v48 = vpop.f32.mrb[8].mxu1  ;;  %v980_v49 = vpop.f32.mrb[9].mxu0 }
 0x108   :  { %v808_v50 = vadd.f32 %v807_v44, %v806_v33  ;;  %v753_v51 = vadd.f32 %v752_v46, %v751_v42  ;;  %v981_v52 = vadd.f32 %v980_v49, %v979_v43  ;;  %v1044_v53 = vpop.f32.mrb[9].mxu1  ;;  %v982_v54 = vpop.f32.mrb[10].mxu0 }
 0x109   :  { %732 = vst.msk [vmem:[%s1500_s2 + $0xc] sm:$0xf] %vm728_vm1, %v938_v45  ;;  %v809_v55 = vsel %vm746_vm2, %v791_v47, 0.0  ;;  %v1045_v56 = vadd.f32 %v1044_v53, %v1043_v48  ;;  %v1046_v57 = vpop.f32.mrb[10].mxu1  ;;  %v983_v58 = vpop.f32.mrb[11].mxu0 }
 0x10a   :  { %v810_v59 = vadd.f32 %v809_v55, %v808_v50  ;;  %v984_v60 = vadd.f32 %v983_v58, %v982_v54  ;;  %v1047_v61 = vpop.f32.mrb[11].mxu1 }
 0x10b   :  { %v618_v62 = vadd.f32 %v1045_v56, %v981_v52  ;;  %v1048_v63 = vadd.f32 %v1047_v61, %v1046_v57 }
 0x10d   :  { %v939_v0 = vpack.c.bf16 %v618_v62, %v618_v62  ;;  %v754_v1 = vsel %vm746_vm2, %v618_v62, 0.0  ;;  %v792_v2 = vmul.f32 %v618_v62, %v618_v62  ;;  %v621_v3 = vadd.f32 %v1048_v63, %v984_v60 }
 0x10e   :  { %v755_v4 = vadd.f32 %v754_v1, %v753_v51  ;;  %v985_v5 = vpop.f32.mrb[12].mxu0 }
 0x10f   :  { %733 = vst.msk [vmem:[%s1500_s2 + $0x10] sm:$0xf] %vm728_vm1, %v939_v0  ;;  %v811_v6 = vsel %vm746_vm2, %v792_v2, 0.0  ;;  %v940_v7 = vpack.c.bf16 %v621_v3, %v621_v3  ;;  %v756_v8 = vsel %vm746_vm2, %v621_v3, 0.0  ;;  %v793_v9 = vmul.f32 %v621_v3, %v621_v3  ;;  %v1049_v10 = vpop.f32.mrb[12].mxu1  ;;  %v986_v11 = vpop.f32.mrb[13].mxu0 }
 0x110   :  { %v812_v12 = vadd.f32 %v811_v6, %v810_v59  ;;  %v757_v13 = vadd.f32 %v756_v8, %v755_v4  ;;  %v987_v14 = vadd.f32 %v986_v11, %v985_v5  ;;  %v1050_v15 = vpop.f32.mrb[13].mxu1  ;;  %v988_v16 = vpop.f32.mrb[14].mxu0 }
 0x111   :  { %734 = vst.msk [vmem:[%s1500_s2 + $0x14] sm:$0xf] %vm728_vm1, %v940_v7  ;;  %v813_v17 = vsel %vm746_vm2, %v793_v9, 0.0  ;;  %v1051_v18 = vadd.f32 %v1050_v15, %v1049_v10  ;;  %v1052_v19 = vpop.f32.mrb[14].mxu1  ;;  %v989_v20 = vpop.f32.mrb[15].mxu0 }
 0x112   :  { %v814_v21 = vadd.f32 %v813_v17, %v812_v12  ;;  %v990_v22 = vadd.f32 %v989_v20, %v988_v16  ;;  %v1053_v23 = vpop.f32.mrb[15].mxu1 }
 0x113   :  { %v626_v24 = vadd.f32 %v1051_v18, %v987_v14  ;;  %v1054_v25 = vadd.f32 %v1053_v23, %v1052_v19 }
 0x115   :  { %v941_v26 = vpack.c.bf16 %v626_v24, %v626_v24  ;;  %v758_v27 = vsel %vm746_vm2, %v626_v24, 0.0  ;;  %v794_v28 = vmul.f32 %v626_v24, %v626_v24  ;;  %v629_v29 = vadd.f32 %v1054_v25, %v990_v22 }
 0x116   :  { %v759_v30 = vadd.f32 %v758_v27, %v757_v13  ;;  %v991_v31 = vpop.f32.mrb[16].mxu0 }
 0x117   :  { %735 = vst.msk [vmem:[%s1500_s2 + $0x18] sm:$0xf] %vm728_vm1, %v941_v26  ;;  %v815_v32 = vsel %vm746_vm2, %v794_v28, 0.0  ;;  %v942_v33 = vpack.c.bf16 %v629_v29, %v629_v29  ;;  %v760_v34 = vsel %vm746_vm2, %v629_v29, 0.0  ;;  %v795_v35 = vmul.f32 %v629_v29, %v629_v29  ;;  %v1055_v36 = vpop.f32.mrb[16].mxu1  ;;  %v992_v37 = vpop.f32.mrb[17].mxu0 }
 0x118   :  { %v816_v38 = vadd.f32 %v815_v32, %v814_v21  ;;  %v761_v39 = vadd.f32 %v760_v34, %v759_v30  ;;  %v993_v40 = vadd.f32 %v992_v37, %v991_v31  ;;  %v1056_v41 = vpop.f32.mrb[17].mxu1  ;;  %v994_v42 = vpop.f32.mrb[18].mxu0 }
 0x119   :  { %736 = vst.msk [vmem:[%s1500_s2 + $0x1c] sm:$0xf] %vm728_vm1, %v942_v33  ;;  %v817_v43 = vsel %vm746_vm2, %v795_v35, 0.0  ;;  %v1057_v44 = vadd.f32 %v1056_v41, %v1055_v36  ;;  %v1058_v45 = vpop.f32.mrb[18].mxu1  ;;  %v995_v46 = vpop.f32.mrb[19].mxu0 }
 0x11a   :  { %v818_v47 = vadd.f32 %v817_v43, %v816_v38  ;;  %v996_v48 = vadd.f32 %v995_v46, %v994_v42  ;;  %v1059_v49 = vpop.f32.mrb[19].mxu1 }
 0x11b   :  { %v634_v50 = vadd.f32 %v1057_v44, %v993_v40  ;;  %v1060_v51 = vadd.f32 %v1059_v49, %v1058_v45 }
 0x11d   :  { %v943_v52 = vpack.c.bf16 %v634_v50, %v634_v50  ;;  %v762_v53 = vsel %vm746_vm2, %v634_v50, 0.0  ;;  %v796_v54 = vmul.f32 %v634_v50, %v634_v50  ;;  %v637_v55 = vadd.f32 %v1060_v51, %v996_v48 }
 0x11e   :  { %v763_v56 = vadd.f32 %v762_v53, %v761_v39  ;;  %v997_v57 = vpop.f32.mrb[20].mxu0 }
 0x11f   :  { %737 = vst.msk [vmem:[%s1500_s2 + $0x20] sm:$0xf] %vm728_vm1, %v943_v52  ;;  %v819_v58 = vsel %vm746_vm2, %v796_v54, 0.0  ;;  %v944_v59 = vpack.c.bf16 %v637_v55, %v637_v55  ;;  %v764_v60 = vsel %vm746_vm2, %v637_v55, 0.0  ;;  %v797_v61 = vmul.f32 %v637_v55, %v637_v55  ;;  %v1061_v62 = vpop.f32.mrb[20].mxu1  ;;  %v998_v63 = vpop.f32.mrb[21].mxu0 }
 0x120   :  { %v820_v0 = vadd.f32 %v819_v58, %v818_v47  ;;  %v765_v1 = vadd.f32 %v764_v60, %v763_v56  ;;  %v999_v2 = vadd.f32 %v998_v63, %v997_v57  ;;  %v1062_v3 = vpop.f32.mrb[21].mxu1  ;;  %v1000_v4 = vpop.f32.mrb[22].mxu0 }
 0x121   :  { %738 = vst.msk [vmem:[%s1500_s2 + $0x24] sm:$0xf] %vm728_vm1, %v944_v59  ;;  %v821_v5 = vsel %vm746_vm2, %v797_v61, 0.0  ;;  %v1063_v6 = vadd.f32 %v1062_v3, %v1061_v62  ;;  %v1064_v7 = vpop.f32.mrb[22].mxu1  ;;  %v1001_v8 = vpop.f32.mrb[23].mxu0 }
 0x122   :  { %v822_v9 = vadd.f32 %v821_v5, %v820_v0  ;;  %v1002_v10 = vadd.f32 %v1001_v8, %v1000_v4  ;;  %v1065_v11 = vpop.f32.mrb[23].mxu1 }
 0x123   :  { %v642_v12 = vadd.f32 %v1063_v6, %v999_v2  ;;  %v1066_v13 = vadd.f32 %v1065_v11, %v1064_v7 }
 0x125   :  { %v945_v14 = vpack.c.bf16 %v642_v12, %v642_v12  ;;  %v766_v15 = vsel %vm746_vm2, %v642_v12, 0.0  ;;  %v798_v16 = vmul.f32 %v642_v12, %v642_v12  ;;  %v645_v17 = vadd.f32 %v1066_v13, %v1002_v10 }
 0x126   :  { %v767_v18 = vadd.f32 %v766_v15, %v765_v1  ;;  %v1003_v19 = vpop.f32.mrb[24].mxu0 }
 0x127   :  { %739 = vst.msk [vmem:[%s1500_s2 + $0x28] sm:$0xf] %vm728_vm1, %v945_v14  ;;  %v823_v20 = vsel %vm746_vm2, %v798_v16, 0.0  ;;  %v946_v21 = vpack.c.bf16 %v645_v17, %v645_v17  ;;  %v768_v22 = vsel %vm746_vm2, %v645_v17, 0.0  ;;  %v799_v23 = vmul.f32 %v645_v17, %v645_v17  ;;  %v1067_v24 = vpop.f32.mrb[24].mxu1  ;;  %v1004_v25 = vpop.f32.mrb[25].mxu0 }
 0x128   :  { %v824_v26 = vadd.f32 %v823_v20, %v822_v9  ;;  %v769_v27 = vadd.f32 %v768_v22, %v767_v18  ;;  %v1005_v28 = vadd.f32 %v1004_v25, %v1003_v19  ;;  %v1068_v29 = vpop.f32.mrb[25].mxu1  ;;  %v1006_v30 = vpop.f32.mrb[26].mxu0 }
 0x129   :  { %740 = vst.msk [vmem:[%s1500_s2 + $0x2c] sm:$0xf] %vm728_vm1, %v946_v21  ;;  %v825_v31 = vsel %vm746_vm2, %v799_v23, 0.0  ;;  %v1069_v32 = vadd.f32 %v1068_v29, %v1067_v24  ;;  %v1070_v33 = vpop.f32.mrb[26].mxu1  ;;  %v1007_v34 = vpop.f32.mrb[27].mxu0 }
 0x12a   :  { %v826_v35 = vadd.f32 %v825_v31, %v824_v26  ;;  %v1008_v36 = vadd.f32 %v1007_v34, %v1006_v30  ;;  %v1071_v37 = vpop.f32.mrb[27].mxu1  ;;  %v745_v24 = vld [vmem:[%s1498_s3] sm:$0x1] }
 0x12b   :  { %v650_v38 = vadd.f32 %v1069_v32, %v1005_v28  ;;  %v1072_v39 = vadd.f32 %v1071_v37, %v1070_v33 }
 0x12d   :  { %v947_v40 = vpack.c.bf16 %v650_v38, %v650_v38  ;;  %v770_v41 = vsel %vm746_vm2, %v650_v38, 0.0  ;;  %v800_v42 = vmul.f32 %v650_v38, %v650_v38  ;;  %v653_v43 = vadd.f32 %v1072_v39, %v1008_v36 }
 0x12e   :  { %v771_v44 = vadd.f32 %v770_v41, %v769_v27  ;;  %v1009_v45 = vpop.f32.mrb[28].mxu0  ;;  %v787_v27 = vld [vmem:[%s1499_s4] sm:$0x1] }
 0x12f   :  { %741 = vst.msk [vmem:[%s1500_s2 + $0x30] sm:$0xf] %vm728_vm1, %v947_v40  ;;  %v827_v46 = vsel %vm746_vm2, %v800_v42, 0.0  ;;  %v948_v47 = vpack.c.bf16 %v653_v43, %v653_v43  ;;  %v772_v48 = vsel %vm746_vm2, %v653_v43, 0.0  ;;  %v801_v49 = vmul.f32 %v653_v43, %v653_v43  ;;  %v1073_v50 = vpop.f32.mrb[28].mxu1  ;;  %v1010_v51 = vpop.f32.mrb[29].mxu0 }
 0x130   :  { %v828_v52 = vadd.f32 %v827_v46, %v826_v35  ;;  %v773_v53 = vadd.f32 %v772_v48, %v771_v44  ;;  %v1011_v54 = vadd.f32 %v1010_v51, %v1009_v45  ;;  %v1074_v55 = vpop.f32.mrb[29].mxu1  ;;  %v1012_v56 = vpop.f32.mrb[30].mxu0 }
 0x131   :  { %742 = vst.msk [vmem:[%s1500_s2 + $0x34] sm:$0xf] %vm728_vm1, %v948_v47  ;;  %v829_v57 = vsel %vm746_vm2, %v801_v49, 0.0  ;;  %v1075_v58 = vadd.f32 %v1074_v55, %v1073_v50  ;;  %v1076_v59 = vpop.f32.mrb[30].mxu1  ;;  %v1013_v60 = vpop.f32.mrb[31].mxu0 }
 0x132   :  { %v830_v61 = vadd.f32 %v829_v57, %v828_v52  ;;  %v1014_v62 = vadd.f32 %v1013_v60, %v1012_v56  ;;  %v1077_v63 = vpop.f32.mrb[31].mxu1 }
 0x133   :  { %v658_v0 = vadd.f32 %v1075_v58, %v1011_v54  ;;  %v1078_v1 = vadd.f32 %v1077_v63, %v1076_v59 }
 0x135   :  { %v949_v2 = vpack.c.bf16 %v658_v0, %v658_v0  ;;  %v774_v3 = vsel %vm746_vm2, %v658_v0, 0.0  ;;  %v802_v4 = vmul.f32 %v658_v0, %v658_v0  ;;  %v661_v5 = vadd.f32 %v1078_v1, %v1014_v62 }
 0x136   :  { %v775_v6 = vadd.f32 %v774_v3, %v773_v53 }
 0x137   :  { %743 = vst.msk [vmem:[%s1500_s2 + $0x38] sm:$0xf] %vm728_vm1, %v949_v2  ;;  %v831_v7 = vsel %vm746_vm2, %v802_v4, 0.0  ;;  %v950_v8 = vpack.c.bf16 %v661_v5, %v661_v5  ;;  %v776_v9 = vsel %vm746_vm2, %v661_v5, 0.0  ;;  %v803_v10 = vmul.f32 %v661_v5, %v661_v5 }
 0x138   :  { %v832_v11 = vadd.f32 %v831_v7, %v830_v61  ;;  %v777_v12 = vadd.f32 %v776_v9, %v775_v6 }
 0x139   :  { %744 = vst.msk [vmem:[%s1500_s2 + $0x3c] sm:$0xf] %vm728_vm1, %v950_v8  ;;  %v833_v13 = vsel %vm746_vm2, %v803_v10, 0.0 }
 0x13a   :  { %v778_v14 = vrot.slane %v777_v12, 4  ;;  %v834_v15 = vadd.f32 %v833_v13, %v832_v11 }
 0x13c   :  { %v779_v16 = vadd.f32 %v778_v14, %v777_v12  ;;  %v835_v17 = vrot.slane %v834_v15, 4 }
 0x13e   :  { %v780_v18 = vrot.slane %v779_v16, 2  ;;  %v836_v19 = vadd.f32 %v835_v17, %v834_v15 }
 0x140   :  { %v781_v20 = vadd.f32 %v780_v18, %v779_v16  ;;  %v837_v21 = vrot.slane %v836_v19, 2 }
 0x142   :  { %v782_v22 = vrot.slane %v781_v20, 1  ;;  %v838_v23 = vadd.f32 %v837_v21, %v836_v19 }
 0x144   :  { %v783_v25 = vadd.f32 %v782_v22, %v781_v20  ;;  %v839_v26 = vrot.slane %v838_v23, 1 }
 0x146   :  { %v784_v28 = vadd.f32 %v783_v25, %v745_v24  ;;  %v840_v29 = vadd.f32 %v839_v26, %v838_v23 }
 0x148   :  { %786 = vst.msk [vmem:[%s1498_s3] sm:$0x1] %vm19_vm0, %v784_v28  ;;  %v841_v30 = vadd.f32 %v840_v29, %v787_v27 }
 0x14a   :  { %842 = vst.msk [vmem:[%s1499_s4] sm:$0x1] %vm19_vm0, %v841_v30 }

// kernel: ac_discriminator_forward.14
= control target key start
LH: loop header
LB: loop body
LE: loop exit
PB: predicated region body
PF: predicated region fallthrough
CT: control target
= control target key end

     0   :  { %s238_s0 = inlined_call_operand.vmem [shape: bf16[64,128], index: 0, kind: input, shape index: {}]   ;;  %s239_s1 = inlined_call_operand.vmem [shape: f32[1,128], index: 1, kind: input, shape index: {}]   ;;  %s240_s2 = inlined_call_operand.vmem [shape: f32[1,128], index: 2, kind: input, shape index: {}]   ;;  %s241_s3 = inlined_call_operand.vmem [shape: bf16[64,128], index: 3, kind: output, shape index: {}]  }
   0x1   :  { %v147_v0 = vld [vmem:[%s238_s0] sm:$0xff]   ;;  %v182_v4 = vld [vmem:[%s238_s0 + $0x8] sm:$0xff]   ;;  %v183_v5 = vld [vmem:[%s238_s0 + $0x10] sm:$0xff]  }
   0x2   :  { %v128_v1 = vld [vmem:[%s239_s1] ss:$0 sm:$0xff]  ;;  %v148_v2 = vunpack.c.l.bf16 %v147_v0  ;;  %v149_v3 = vunpack.c.h.bf16 %v147_v0  ;;  %v184_v6 = vld [vmem:[%s238_s0 + $0x18] sm:$0xff]   ;;  %v152_v8 = vunpack.c.l.bf16 %v182_v4  ;;  %v153_v9 = vunpack.c.h.bf16 %v182_v4 }
   0x3   :  { %v129_v7 = vld [vmem:[%s240_s2] ss:$0 sm:$0xff]  ;;  %v156_v10 = vunpack.c.l.bf16 %v183_v5  ;;  %v157_v11 = vunpack.c.h.bf16 %v183_v5  ;;  %v160_v14 = vunpack.c.l.bf16 %v184_v6  ;;  %v161_v15 = vunpack.c.h.bf16 %v184_v6 }
   0x4   :  { %v37_v12 = vmul.f32 %v148_v2, %v128_v1  ;;  %v38_v13 = vmul.f32 %v149_v3, %v128_v1  ;;  %v39_v16 = vmul.f32 %v152_v8, %v128_v1  ;;  %v40_v17 = vmul.f32 %v153_v9, %v128_v1 }
   0x5   :  { %v41_v18 = vmul.f32 %v156_v10, %v128_v1  ;;  %v42_v19 = vmul.f32 %v157_v11, %v128_v1  ;;  %v43_v22 = vmul.f32 %v160_v14, %v128_v1  ;;  %v44_v23 = vmul.f32 %v161_v15, %v128_v1 }
   0x6   :  { %v52_v20 = vadd.f32 %v129_v7, %v37_v12  ;;  %v53_v21 = vadd.f32 %v129_v7, %v38_v13  ;;  %v54_v24 = vadd.f32 %v129_v7, %v39_v16  ;;  %v55_v25 = vadd.f32 %v129_v7, %v40_v17 }
   0x7   :  { %v56_v26 = vadd.f32 %v129_v7, %v41_v18  ;;  %v57_v27 = vadd.f32 %v129_v7, %v42_v19  ;;  %v58_v40 = vadd.f32 %v129_v7, %v43_v22  ;;  %v59_v41 = vadd.f32 %v129_v7, %v44_v23 }
   0x8   :  { %vm60_vm0 = vcmp.gt.f32.partialorder %v52_v20, 0.0  ;;  %vm61_vm1 = vcmp.gt.f32.partialorder %v53_v21, 0.0  ;;  %v68_v28 = vmul.f32 0.2, %v52_v20  ;;  %v69_v29 = vmul.f32 0.2, %v53_v21 }
   0x9   :  { %vm62_vm2 = vcmp.gt.f32.partialorder %v54_v24, 0.0  ;;  %vm63_vm3 = vcmp.gt.f32.partialorder %v55_v25, 0.0  ;;  %v70_v30 = vmul.f32 0.2, %v54_v24  ;;  %v71_v31 = vmul.f32 0.2, %v55_v25 }
   0xa   :  { %v76_v32 = vsel %vm60_vm0, %v52_v20, %v68_v28  ;;  %v77_v33 = vsel %vm61_vm1, %v53_v21, %v69_v29  ;;  %vm64_vm4 = vcmp.gt.f32.partialorder %v56_v26, 0.0  ;;  %vm65_vm5 = vcmp.gt.f32.partialorder %v57_v27, 0.0 }
   0xb   :  { %v165_v34 = vpack.c.bf16 %v77_v33, %v76_v32  ;;  %v78_v35 = vsel %vm62_vm2, %v54_v24, %v70_v30  ;;  %v79_v36 = vsel %vm63_vm3, %v55_v25, %v71_v31  ;;  %v72_v37 = vmul.f32 0.2, %v56_v26 }
   0xc   :  { %v170_v38 = vpack.c.bf16 %v79_v36, %v78_v35  ;;  %v73_v39 = vmul.f32 0.2, %v57_v27  ;;  %vm66_vm6 = vcmp.gt.f32.partialorder %v58_v40, 0.0  ;;  %vm67_vm7 = vcmp.gt.f32.partialorder %v59_v41, 0.0 }
   0xd   :  { %166 = vst [vmem:[%s241_s3] sm:$0xff] %v165_v34   ;;  %v80_v42 = vsel %vm64_vm4, %v56_v26, %v72_v37  ;;  %v74_v44 = vmul.f32 0.2, %v58_v40  ;;  %v75_v46 = vmul.f32 0.2, %v59_v41 }
   0xe   :  { %185 = vst [vmem:[%s241_s3 + $0x8] sm:$0xff] %v170_v38   ;;  %v81_v43 = vsel %vm65_vm5, %v57_v27, %v73_v39 }
   0xf   :  { %v175_v45 = vpack.c.bf16 %v81_v43, %v80_v42  ;;  %v82_v47 = vsel %vm66_vm6, %v58_v40, %v74_v44  ;;  %v83_v48 = vsel %vm67_vm7, %v59_v41, %v75_v46 }
  0x10   :  { %v180_v49 = vpack.c.bf16 %v83_v48, %v82_v47 }
  0x11   :  { %186 = vst [vmem:[%s241_s3 + $0x10] sm:$0xff] %v175_v45  }
  0x12   :  { %187 = vst [vmem:[%s241_s3 + $0x18] sm:$0xff] %v180_v49  }

// kernel: ac_discriminator_forward.16
= control target key start
LH: loop header
LB: loop body
LE: loop exit
PB: predicated region body
PF: predicated region fallthrough
CT: control target
= control target key end

     0   :  { %s148_s0 = inlined_call_operand.vmem [shape: bf16[32,128], index: 0, kind: input, shape index: {}]   ;;  %s149_s1 = inlined_call_operand.vmem [shape: f32[1,128], index: 1, kind: input, shape index: {}]   ;;  %s150_s2 = inlined_call_operand.vmem [shape: f32[1,128], index: 2, kind: input, shape index: {}]   ;;  %s151_s3 = inlined_call_operand.vmem [shape: bf16[32,128], index: 3, kind: output, shape index: {}]  }
   0x1   :  { %v91_v0 = vld [vmem:[%s148_s0] sm:$0xff]   ;;  %v108_v4 = vld [vmem:[%s148_s0 + $0x8] sm:$0xff]  }
   0x2   :  { %v80_v1 = vld [vmem:[%s149_s1] ss:$0 sm:$0xff]  ;;  %v92_v2 = vunpack.c.l.bf16 %v91_v0  ;;  %v93_v3 = vunpack.c.h.bf16 %v91_v0  ;;  %v96_v6 = vunpack.c.l.bf16 %v108_v4  ;;  %v97_v7 = vunpack.c.h.bf16 %v108_v4 }
   0x3   :  { %v81_v5 = vld [vmem:[%s150_s2] ss:$0 sm:$0xff] }
   0x4   :  { %v29_v8 = vmul.f32 %v92_v2, %v80_v1  ;;  %v30_v9 = vmul.f32 %v93_v3, %v80_v1  ;;  %v31_v10 = vmul.f32 %v96_v6, %v80_v1  ;;  %v32_v11 = vmul.f32 %v97_v7, %v80_v1 }
   0x6   :  { %v40_v12 = vadd.f32 %v81_v5, %v29_v8  ;;  %v41_v13 = vadd.f32 %v81_v5, %v30_v9  ;;  %v42_v14 = vadd.f32 %v81_v5, %v31_v10  ;;  %v43_v15 = vadd.f32 %v81_v5, %v32_v11 }
   0x8   :  { %vm44_vm0 = vcmp.gt.f32.partialorder %v40_v12, 0.0  ;;  %vm45_vm1 = vcmp.gt.f32.partialorder %v41_v13, 0.0  ;;  %v48_v16 = vmul.f32 0.2, %v40_v12  ;;  %v49_v17 = vmul.f32 0.2, %v41_v13 }
   0x9   :  { %vm46_vm2 = vcmp.gt.f32.partialorder %v42_v14, 0.0  ;;  %vm47_vm3 = vcmp.gt.f32.partialorder %v43_v15, 0.0  ;;  %v50_v18 = vmul.f32 0.2, %v42_v14  ;;  %v51_v19 = vmul.f32 0.2, %v43_v15 }
   0xa   :  { %v52_v20 = vsel %vm44_vm0, %v40_v12, %v48_v16  ;;  %v53_v21 = vsel %vm45_vm1, %v41_v13, %v49_v17 }
   0xb   :  { %v101_v22 = vpack.c.bf16 %v53_v21, %v52_v20  ;;  %v54_v23 = vsel %vm46_vm2, %v42_v14, %v50_v18  ;;  %v55_v24 = vsel %vm47_vm3, %v43_v15, %v51_v19 }
   0xc   :  { %v106_v25 = vpack.c.bf16 %v55_v24, %v54_v23 }
   0xd   :  { %102 = vst [vmem:[%s151_s3] sm:$0xff] %v101_v22  }
   0xe   :  { %109 = vst [vmem:[%s151_s3 + $0x8] sm:$0xff] %v106_v25  }

// kernel: ac_discriminator_forward.15
= control target key start
LH: loop header
LB: loop body
LE: loop exit
PB: predicated region body
PF: predicated region fallthrough
CT: control target
= control target key end

     0   :  { %s1451_s1 = inlined_call_operand.vmem [shape: bf16[1024,128], index: 1, kind: input, shape index: {}]   ;;  %s1452_s0 = inlined_call_operand.vmem [shape: bf16[32,1024], index: 0, kind: input, shape index: {}]   ;;  %s1453_s3 = inlined_call_operand.vmem [shape: f32[1,128], index: 3, kind: output, shape index: {1}]   ;;  %s1454_s4 = inlined_call_operand.vmem [shape: f32[1,128], index: 4, kind: output, shape index: {2}]   ;;  %s1455_s2 = inlined_call_operand.vmem [shape: bf16[32,128], index: 2, kind: output, shape index: {0}]  }
   0x1   :  { %v1097_v0 = vld [vmem:[%s1451_s1 + $0x40] sm:$0xff]   ;;  %v1101_v4 = vld [vmem:[%s1451_s1 + $0x48] sm:$0xff]   ;;  %v1105_v8 = vld [vmem:[%s1451_s1 + $0x50] sm:$0xff]  }
   0x2   :  { %v1098_v1 = vld [vmem:[%s1451_s1 + $0xc0] sm:$0xff]   ;;  %984 = vmatprep.subr.bf16.mxu0 %v1097_v0  ;;  %v1102_v5 = vld [vmem:[%s1451_s1 + $0xc8] sm:$0xff]   ;;  %v1106_v9 = vld [vmem:[%s1451_s1 + $0xd0] sm:$0xff]  }
   0x3   :  { %v1099_v2 = vld [vmem:[%s1451_s1] sm:$0xff]   ;;  %1012 = vmatprep.subr.bf16.mxu1 %v1098_v1  ;;  %v1103_v6 = vld [vmem:[%s1451_s1 + $0x8] sm:$0xff]   ;;  %v1107_v10 = vld [vmem:[%s1451_s1 + $0x10] sm:$0xff]  }
   0x4   :  { %v1100_v3 = vld [vmem:[%s1451_s1 + $0x80] sm:$0xff]   ;;  %985 = vmatpush3.bf16.msra.mxu0 %v1099_v2  ;;  %v1104_v7 = vld [vmem:[%s1451_s1 + $0x88] sm:$0xff]   ;;  %v1108_v11 = vld [vmem:[%s1451_s1 + $0x90] sm:$0xff]  }
   0x5   :  { %1013 = vmatpush3.bf16.msra.mxu1 %v1100_v3  ;;  %986 = vmatprep.subr.bf16.mxu0 %v1101_v4  ;;  %v1109_v12 = vld [vmem:[%s1451_s1 + $0x58] sm:$0xff]   ;;  %v1113_v16 = vld [vmem:[%s1451_s1 + $0x60] sm:$0xff]   ;;  %v1117_v20 = vld [vmem:[%s1451_s1 + $0x68] sm:$0xff]  }
   0x6   :  { %1014 = vmatprep.subr.bf16.mxu1 %v1102_v5  ;;  %v1110_v13 = vld [vmem:[%s1451_s1 + $0xd8] sm:$0xff]   ;;  %v1114_v17 = vld [vmem:[%s1451_s1 + $0xe0] sm:$0xff]   ;;  %v1118_v21 = vld [vmem:[%s1451_s1 + $0xe8] sm:$0xff]  }
   0x7   :  { %v1111_v14 = vld [vmem:[%s1451_s1 + $0x18] sm:$0xff]   ;;  %v1115_v18 = vld [vmem:[%s1451_s1 + $0x20] sm:$0xff]   ;;  %v1119_v22 = vld [vmem:[%s1451_s1 + $0x28] sm:$0xff]  }
   0x8   :  { %987 = vmatpush3.bf16.msra.mxu0 %v1103_v6  ;;  %v1112_v15 = vld [vmem:[%s1451_s1 + $0x98] sm:$0xff]   ;;  %v1116_v19 = vld [vmem:[%s1451_s1 + $0xa0] sm:$0xff]   ;;  %v1120_v23 = vld [vmem:[%s1451_s1 + $0xa8] sm:$0xff]  }
   0x9   :  { %1015 = vmatpush3.bf16.msra.mxu1 %v1104_v7  ;;  %988 = vmatprep.subr.bf16.mxu0 %v1105_v8  ;;  %v1121_v24 = vld [vmem:[%s1451_s1 + $0x70] sm:$0xff]   ;;  %v1125_v28 = vld [vmem:[%s1451_s1 + $0x78] sm:$0xff]   ;;  %v21_v32 = vld [vmem:[%s1452_s0] sm:$0xff] }
   0xa   :  { %1016 = vmatprep.subr.bf16.mxu1 %v1106_v9  ;;  %v1122_v25 = vld [vmem:[%s1451_s1 + $0xf0] sm:$0xff]   ;;  %v1126_v29 = vld [vmem:[%s1451_s1 + $0xf8] sm:$0xff]   ;;  %v25_v33 = vld [vmem:[%s1452_s0 + $0x20] sm:$0xff] }
   0xb   :  { %v1123_v26 = vld [vmem:[%s1451_s1 + $0x30] sm:$0xff]   ;;  %v1127_v30 = vld [vmem:[%s1451_s1 + $0x38] sm:$0xff]   ;;  %v22_v34 = vld [vmem:[%s1452_s0 + $0x8] sm:$0xff]  ;;  %v885_v35 = vcombine.low %v21_v32, %v25_v33  ;;  %v886_v36 = vcombine.high %v21_v32, %v25_v33  ;;  %v1161_v32 = vmov 0.0  }
   0xc   :  { %989 = vmatpush3.bf16.msra.mxu0 %v1107_v10  ;;  %v1124_v27 = vld [vmem:[%s1451_s1 + $0xb0] sm:$0xff]   ;;  %v1128_v31 = vld [vmem:[%s1451_s1 + $0xb8] sm:$0xff]   ;;  %v26_v37 = vld [vmem:[%s1452_s0 + $0x28] sm:$0xff]  ;;  %19 = vst [vmem:[%s1453_s3] sm:$0x1] %v1161_v32 }
   0xd   :  { %1017 = vmatpush3.bf16.msra.mxu1 %v1108_v11  ;;  %990 = vmatprep.subr.bf16.mxu0 %v1109_v12  ;;  %v887_v38 = vcombine.low %v22_v34, %v26_v37  ;;  %v888_v39 = vcombine.high %v22_v34, %v26_v37  ;;  %v1129_v40 = vld [vmem:[%s1451_s1 + $0x140] sm:$0xff]   ;;  %v1133_v44 = vld [vmem:[%s1451_s1 + $0x148] sm:$0xff]   ;;  %v1137_v48 = vld [vmem:[%s1451_s1 + $0x150] sm:$0xff]   ;;  %20 = vst [vmem:[%s1454_s4] sm:$0x1] %v1161_v32 }
   0xe   :  { %1018 = vmatprep.subr.bf16.mxu1 %v1110_v13  ;;  %661 = vmatprep.mubr.bf16.mxu0 %v886_v36  ;;  %v1130_v41 = vld [vmem:[%s1451_s1 + $0x1c0] sm:$0xff]   ;;  %v1134_v45 = vld [vmem:[%s1451_s1 + $0x1c8] sm:$0xff]   ;;  %v1138_v49 = vld [vmem:[%s1451_s1 + $0x1d0] sm:$0xff]  }
   0xf   :  { %710 = vmatprep.mubr.bf16.mxu1 %v888_v39  ;;  %v1131_v42 = vld [vmem:[%s1451_s1 + $0x100] sm:$0xff]   ;;  %v1135_v46 = vld [vmem:[%s1451_s1 + $0x108] sm:$0xff]   ;;  %v1139_v50 = vld [vmem:[%s1451_s1 + $0x110] sm:$0xff]  }
  0x10   :  { %991 = vmatpush3.bf16.msra.mxu0 %v1111_v14  ;;  %v1132_v43 = vld [vmem:[%s1451_s1 + $0x180] sm:$0xff]   ;;  %v1136_v47 = vld [vmem:[%s1451_s1 + $0x188] sm:$0xff]   ;;  %v1140_v51 = vld [vmem:[%s1451_s1 + $0x190] sm:$0xff]  }
  0x11   :  { %1019 = vmatpush3.bf16.msra.mxu1 %v1112_v15  ;;  %992 = vmatprep.subr.bf16.mxu0 %v1113_v16  ;;  %v1141_v52 = vld [vmem:[%s1451_s1 + $0x158] sm:$0xff]   ;;  %v1145_v56 = vld [vmem:[%s1451_s1 + $0x160] sm:$0xff]   ;;  %v30_v63 = vld [vmem:[%s1452_s0 + $0x48] sm:$0xff] }
  0x12   :  { %1020 = vmatprep.subr.bf16.mxu1 %v1114_v17  ;;  %v1142_v53 = vld [vmem:[%s1451_s1 + $0x1d8] sm:$0xff]   ;;  %v1146_v57 = vld [vmem:[%s1451_s1 + $0x1e0] sm:$0xff]   ;;  %v34_v0 = vld [vmem:[%s1452_s0 + $0x68] sm:$0xff] }
  0x13   :  { %v1143_v54 = vld [vmem:[%s1451_s1 + $0x118] sm:$0xff]   ;;  %v1147_v58 = vld [vmem:[%s1451_s1 + $0x120] sm:$0xff]   ;;  %v896_v2 = vcombine.high %v30_v63, %v34_v0  ;;  %v1149_v3 = vld [vmem:[%s1451_s1 + $0x168] sm:$0xff]   ;;  %v895_v4 = vcombine.low %v30_v63, %v34_v0 }
  0x14   :  { %993 = vmatpush3.bf16.msra.mxu0 %v1115_v18  ;;  %v1144_v55 = vld [vmem:[%s1451_s1 + $0x198] sm:$0xff]   ;;  %v1148_v59 = vld [vmem:[%s1451_s1 + $0x1a0] sm:$0xff]   ;;  %v1150_v5 = vld [vmem:[%s1451_s1 + $0x1e8] sm:$0xff]  }
  0x15   :  { %1021 = vmatpush3.bf16.msra.mxu1 %v1116_v19  ;;  %994 = vmatprep.subr.bf16.mxu0 %v1117_v20  ;;  %v29_v60 = vld [vmem:[%s1452_s0 + $0x40] sm:$0xff]  ;;  %v1151_v6 = vld [vmem:[%s1451_s1 + $0x128] sm:$0xff]   ;;  %v1153_v8 = vld [vmem:[%s1451_s1 + $0x170] sm:$0xff]  }
  0x16   :  { %1022 = vmatprep.subr.bf16.mxu1 %v1118_v21  ;;  %v33_v61 = vld [vmem:[%s1452_s0 + $0x60] sm:$0xff]  ;;  %v1152_v7 = vld [vmem:[%s1451_s1 + $0x1a8] sm:$0xff]   ;;  %v1154_v9 = vld [vmem:[%s1451_s1 + $0x1f0] sm:$0xff]  }
  0x17   :  { %v894_v62 = vcombine.high %v29_v60, %v33_v61  ;;  %v893_v1 = vcombine.low %v29_v60, %v33_v61  ;;  %v1155_v10 = vld [vmem:[%s1451_s1 + $0x130] sm:$0xff]   ;;  %v1157_v12 = vld [vmem:[%s1451_s1 + $0x178] sm:$0xff]  }
  0x18   :  { %995 = vmatpush3.bf16.msra.mxu0 %v1119_v22  ;;  %v1156_v11 = vld [vmem:[%s1451_s1 + $0x1b0] sm:$0xff]   ;;  %v1158_v13 = vld [vmem:[%s1451_s1 + $0x1f8] sm:$0xff]  }
  0x19   :  { %1023 = vmatpush3.bf16.msra.mxu1 %v1120_v23  ;;  %996 = vmatprep.subr.bf16.mxu0 %v1121_v24  ;;  %v1159_v14 = vld [vmem:[%s1451_s1 + $0x138] sm:$0xff]   ;;  %v23_v16 = vld [vmem:[%s1452_s0 + $0x10] sm:$0xff] }
  0x1a   :  { %1024 = vmatprep.subr.bf16.mxu1 %v1122_v25  ;;  %v1160_v15 = vld [vmem:[%s1451_s1 + $0x1b8] sm:$0xff]   ;;  %v27_v17 = vld [vmem:[%s1452_s0 + $0x30] sm:$0xff] }
  0x1b   :  { %v24_v18 = vld [vmem:[%s1452_s0 + $0x18] sm:$0xff]  ;;  %v889_v20 = vcombine.low %v23_v16, %v27_v17  ;;  %v890_v21 = vcombine.high %v23_v16, %v27_v17  ;;  %v31_v24 = vld [vmem:[%s1452_s0 + $0x50] sm:$0xff] }
  0x1c   :  { %997 = vmatpush3.bf16.msra.mxu0 %v1123_v26  ;;  %v28_v19 = vld [vmem:[%s1452_s0 + $0x38] sm:$0xff]  ;;  %v35_v25 = vld [vmem:[%s1452_s0 + $0x70] sm:$0xff] }
  0x1d   :  { %1025 = vmatpush3.bf16.msra.mxu1 %v1124_v27  ;;  %998 = vmatprep.subr.bf16.mxu0 %v1125_v28  ;;  %v891_v22 = vcombine.low %v24_v18, %v28_v19  ;;  %v892_v23 = vcombine.high %v24_v18, %v28_v19  ;;  %v32_v26 = vld [vmem:[%s1452_s0 + $0x58] sm:$0xff]  ;;  %v898_v27 = vcombine.high %v31_v24, %v35_v25 }
  0x1e   :  { %1026 = vmatprep.subr.bf16.mxu1 %v1126_v29  ;;  %v36_v28 = vld [vmem:[%s1452_s0 + $0x78] sm:$0xff] }
  0x1f   :  { %v900_v29 = vcombine.high %v32_v26, %v36_v28 }
  0x20   :  { %999 = vmatpush3.bf16.msra.mxu0 %v1127_v30  ;;  %v897_v30 = vcombine.low %v31_v24, %v35_v25 }
  0x21   :  { %1027 = vmatpush3.bf16.msra.mxu1 %v1128_v31  ;;  %1040 = vmatprep.subr.bf16.mxu0 %v1129_v40  ;;  %v899_v31 = vcombine.low %v32_v26, %v36_v28 }
  0x22   :  { %1068 = vmatprep.subr.bf16.mxu1 %v1130_v41 }
  0x23   :  { %662 = vmatmul.mubr.bf16.vlgmr.msra.gmra.mrb[0].mxu0 %v885_v35 }
  0x24   :  { %711 = vmatmul.mubr.bf16.vlgmr.msra.gmra.mrb[0].mxu1 %v887_v38  ;;  %1041 = vmatpush3.bf16.msra.mxu0 %v1131_v42 }
  0x25   :  { %1069 = vmatpush3.bf16.msra.mxu1 %v1132_v43  ;;  %1042 = vmatprep.subr.bf16.mxu0 %v1133_v44 }
  0x26   :  { %1070 = vmatprep.subr.bf16.mxu1 %v1134_v45  ;;  %669 = vmatprep.mubr.bf16.mxu0 %v894_v62 }
  0x27   :  { %718 = vmatprep.mubr.bf16.mxu1 %v896_v2 }
  0x28   :  { %1043 = vmatpush3.bf16.msra.mxu0 %v1135_v46 }
  0x29   :  { %1071 = vmatpush3.bf16.msra.mxu1 %v1136_v47  ;;  %1044 = vmatprep.subr.bf16.mxu0 %v1137_v48 }
  0x2a   :  { %1072 = vmatprep.subr.bf16.mxu1 %v1138_v49 }
  0x2b   :  { %670 = vmatmul.mubr.bf16.gmra.mrb[4].mxu0 %v893_v1 }
  0x2c   :  { %1045 = vmatpush3.bf16.msra.mxu0 %v1139_v50  ;;  %719 = vmatmul.mubr.bf16.gmra.mrb[4].mxu1 %v895_v4 }
  0x2d   :  { %1073 = vmatpush3.bf16.msra.mxu1 %v1140_v51  ;;  %1046 = vmatprep.subr.bf16.mxu0 %v1141_v52 }
  0x2e   :  { %1074 = vmatprep.subr.bf16.mxu1 %v1142_v53  ;;  %759 = vmatprep.mubr.bf16.mxu0 %v890_v21 }
  0x2f   :  { %808 = vmatprep.mubr.bf16.mxu1 %v892_v23 }
  0x30   :  { %1047 = vmatpush3.bf16.msra.mxu0 %v1143_v54 }
  0x31   :  { %1075 = vmatpush3.bf16.msra.mxu1 %v1144_v55  ;;  %1048 = vmatprep.subr.bf16.mxu0 %v1145_v56 }
  0x32   :  { %1076 = vmatprep.subr.bf16.mxu1 %v1146_v57 }
  0x34   :  { %1049 = vmatpush3.bf16.msra.mxu0 %v1147_v58 }
  0x35   :  { %1077 = vmatpush3.bf16.msra.mxu1 %v1148_v59  ;;  %1050 = vmatprep.subr.bf16.mxu0 %v1149_v3 }
  0x36   :  { %1078 = vmatprep.subr.bf16.mxu1 %v1150_v5 }
  0x38   :  { %1051 = vmatpush3.bf16.msra.mxu0 %v1151_v6 }
  0x39   :  { %1079 = vmatpush3.bf16.msra.mxu1 %v1152_v7  ;;  %1052 = vmatprep.subr.bf16.mxu0 %v1153_v8 }
  0x3a   :  { %1080 = vmatprep.subr.bf16.mxu1 %v1154_v9 }
  0x3c   :  { %1053 = vmatpush3.bf16.msra.mxu0 %v1155_v10 }
  0x3d   :  { %1081 = vmatpush3.bf16.msra.mxu1 %v1156_v11  ;;  %1054 = vmatprep.subr.bf16.mxu0 %v1157_v12 }
  0x3e   :  { %1082 = vmatprep.subr.bf16.mxu1 %v1158_v13 }
  0x40   :  { %1055 = vmatpush3.bf16.msra.mxu0 %v1159_v14 }
  0x41   :  { %1083 = vmatpush3.bf16.msra.mxu1 %v1160_v15 }
  0x43   :  { %760 = vmatmul.mubr.bf16.vlgmr.msra.gmra.mrb[8].mxu0 %v889_v20 }
  0x44   :  { %809 = vmatmul.mubr.bf16.vlgmr.msra.gmra.mrb[8].mxu1 %v891_v22  ;;  %767 = vmatprep.mubr.bf16.mxu0 %v898_v27 }
  0x45   :  { %816 = vmatprep.mubr.bf16.mxu1 %v900_v29 }
  0x4b   :  { %768 = vmatmul.mubr.bf16.gmra.mrb[12].mxu0 %v897_v30 }
  0x4c   :  { %817 = vmatmul.mubr.bf16.gmra.mrb[12].mxu1 %v899_v31 }
  0xf6   :  { %v1000_v33 = vpop.f32.mrb[0].mxu0 }
  0xf7   :  { %v1028_v34 = vpop.f32.mrb[0].mxu1  ;;  %v1001_v35 = vpop.f32.mrb[1].mxu0 }
  0xf8   :  { %v1002_v36 = vadd.f32 %v1001_v35, %v1000_v33  ;;  %v1029_v37 = vpop.f32.mrb[1].mxu1  ;;  %v1003_v38 = vpop.f32.mrb[2].mxu0 }
  0xf9   :  { %v1030_v39 = vadd.f32 %v1029_v37, %v1028_v34  ;;  %v1031_v40 = vpop.f32.mrb[2].mxu1  ;;  %v1004_v41 = vpop.f32.mrb[3].mxu0 }
  0xfa   :  { %v1005_v42 = vadd.f32 %v1004_v41, %v1003_v38  ;;  %v1032_v43 = vpop.f32.mrb[3].mxu1 }
  0xfb   :  { %v713_v44 = vadd.f32 %v1030_v39, %v1002_v36  ;;  %v1033_v45 = vadd.f32 %v1032_v43, %v1031_v40 }
  0xfd   :  { %v716_v46 = vadd.f32 %v1033_v45, %v1005_v42 }
  0xfe   :  { %v1006_v47 = vpop.f32.mrb[4].mxu0 }
  0xff   :  { %v1034_v48 = vpop.f32.mrb[4].mxu1  ;;  %v1007_v49 = vpop.f32.mrb[5].mxu0 }
 0x100   :  { %v1008_v50 = vadd.f32 %v1007_v49, %v1006_v47  ;;  %v1035_v51 = vpop.f32.mrb[5].mxu1  ;;  %v1009_v52 = vpop.f32.mrb[6].mxu0 }
 0x101   :  { %v1036_v53 = vadd.f32 %v1035_v51, %v1034_v48  ;;  %v1037_v54 = vpop.f32.mrb[6].mxu1  ;;  %v1010_v55 = vpop.f32.mrb[7].mxu0 }
 0x102   :  { %v1011_v56 = vadd.f32 %v1010_v55, %v1009_v52  ;;  %v1038_v57 = vpop.f32.mrb[7].mxu1 }
 0x103   :  { %v721_v58 = vadd.f32 %v1036_v53, %v1008_v50  ;;  %v1039_v59 = vadd.f32 %v1038_v57, %v1037_v54  ;;  %v845_v50 = vld [vmem:[%s1453_s3] sm:$0x1] }
 0x104   :  { %v857_v53 = vld [vmem:[%s1454_s4] sm:$0x1] }
 0x105   :  { %v724_v60 = vadd.f32 %v1039_v59, %v1011_v56 }
 0x116   :  { %v1056_v61 = vpop.f32.mrb[8].mxu0 }
 0x117   :  { %v1084_v62 = vpop.f32.mrb[8].mxu1  ;;  %v1057_v63 = vpop.f32.mrb[9].mxu0 }
 0x118   :  { %v1085_v0 = vpop.f32.mrb[9].mxu1  ;;  %v1058_v1 = vadd.f32 %v1057_v63, %v1056_v61  ;;  %v1059_v3 = vpop.f32.mrb[10].mxu0 }
 0x119   :  { %v1086_v2 = vadd.f32 %v1085_v0, %v1084_v62  ;;  %v1087_v4 = vpop.f32.mrb[10].mxu1  ;;  %v1060_v5 = vpop.f32.mrb[11].mxu0 }
 0x11a   :  { %v1088_v6 = vpop.f32.mrb[11].mxu1  ;;  %v762_v7 = vadd.f32 %v1058_v1, %v713_v44  ;;  %v1061_v8 = vadd.f32 %v1060_v5, %v1059_v3 }
 0x11b   :  { %v1089_v9 = vadd.f32 %v1088_v6, %v1087_v4 }
 0x11c   :  { %v811_v10 = vadd.f32 %v1086_v2, %v762_v7  ;;  %v765_v11 = vadd.f32 %v1061_v8, %v716_v46 }
 0x11e   :  { %v814_v12 = vadd.f32 %v1089_v9, %v765_v11  ;;  %v1062_v13 = vpop.f32.mrb[12].mxu0  ;;  %v858_v15 = vmul.f32 %v811_v10, %v811_v10 }
 0x11f   :  { %v1090_v14 = vpop.f32.mrb[12].mxu1  ;;  %v1063_v16 = vpop.f32.mrb[13].mxu0 }
 0x120   :  { %v1091_v17 = vpop.f32.mrb[13].mxu1  ;;  %v976_v18 = vpack.c.bf16 %v814_v12, %v811_v10  ;;  %v846_v19 = vadd.f32 %v814_v12, %v811_v10  ;;  %v859_v20 = vmul.f32 %v814_v12, %v814_v12  ;;  %v1064_v21 = vadd.f32 %v1063_v16, %v1062_v13  ;;  %v1065_v22 = vpop.f32.mrb[14].mxu0 }
 0x121   :  { %v1093_v23 = vpop.f32.mrb[14].mxu1  ;;  %v1092_v24 = vadd.f32 %v1091_v17, %v1090_v14  ;;  %v1066_v25 = vpop.f32.mrb[15].mxu0 }
 0x122   :  { %v1094_v26 = vpop.f32.mrb[15].mxu1  ;;  %977 = vst [vmem:[%s1455_s2] sm:$0xff] %v976_v18   ;;  %v862_v27 = vadd.f32 %v859_v20, %v858_v15  ;;  %v770_v28 = vadd.f32 %v1064_v21, %v721_v58  ;;  %v1067_v29 = vadd.f32 %v1066_v25, %v1065_v22 }
 0x123   :  { %v1095_v30 = vadd.f32 %v1094_v26, %v1093_v23 }
 0x124   :  { %v819_v31 = vadd.f32 %v1092_v24, %v770_v28  ;;  %v773_v32 = vadd.f32 %v1067_v29, %v724_v60 }
 0x126   :  { %v847_v33 = vadd.f32 %v846_v19, %v819_v31  ;;  %v860_v34 = vmul.f32 %v819_v31, %v819_v31  ;;  %v822_v35 = vadd.f32 %v1095_v30, %v773_v32 }
 0x128   :  { %v863_v36 = vadd.f32 %v862_v27, %v860_v34  ;;  %v981_v37 = vpack.c.bf16 %v822_v35, %v819_v31  ;;  %v848_v38 = vadd.f32 %v847_v33, %v822_v35  ;;  %v861_v39 = vmul.f32 %v822_v35, %v822_v35 }
 0x12a   :  { %983 = vst [vmem:[%s1455_s2 + $0x8] sm:$0xff] %v981_v37   ;;  %v849_v40 = vrot.slane %v848_v38, 4  ;;  %v864_v41 = vadd.f32 %v863_v36, %v861_v39 }
 0x12c   :  { %v850_v42 = vadd.f32 %v849_v40, %v848_v38  ;;  %v865_v43 = vrot.slane %v864_v41, 4 }
 0x12e   :  { %v851_v44 = vrot.slane %v850_v42, 2  ;;  %v866_v45 = vadd.f32 %v865_v43, %v864_v41 }
 0x130   :  { %v852_v46 = vadd.f32 %v851_v44, %v850_v42  ;;  %v867_v47 = vrot.slane %v866_v45, 2 }
 0x132   :  { %v853_v48 = vrot.slane %v852_v46, 1  ;;  %v868_v49 = vadd.f32 %v867_v47, %v866_v45 }
 0x134   :  { %v854_v51 = vadd.f32 %v853_v48, %v852_v46  ;;  %v869_v52 = vrot.slane %v868_v49, 1 }
 0x136   :  { %v855_v54 = vadd.f32 %v854_v51, %v845_v50  ;;  %v870_v55 = vadd.f32 %v869_v52, %v868_v49 }
 0x138   :  { %856 = vst [vmem:[%s1453_s3] sm:$0x1] %v855_v54  ;;  %v871_v56 = vadd.f32 %v870_v55, %v857_v53 }
 0x13a   :  { %872 = vst [vmem:[%s1454_s4] sm:$0x1] %v871_v56 }

// kernel: ac_discriminator_forward.17
= control target key start
LH: loop header
LB: loop body
LE: loop exit
PB: predicated region body
PF: predicated region fallthrough
CT: control target
= control target key end

     0   :  { %v1924_v22 = vmov 1966171168   ;;  %v276_v24 = vlaneseq  ;;  %vm1479_vm0 = vcmask 9216   ;;  %s2367_s1 = inlined_call_operand.vmem [shape: bf16[2048,2], index: 1, kind: input, shape index: {}]   ;;  %s2368_s0 = inlined_call_operand.vmem [shape: bf16[2,2048], index: 0, kind: input, shape index: {}]   ;;  %s2369_s2 = inlined_call_operand.vmem [shape: f32[2,2], index: 2, kind: output, shape index: {}]  }
   0x1   :  { %v1790_v0 = vld [vmem:[%s2367_s1 + $0x40] sm:$0xff]   ;;  %v1794_v4 = vld [vmem:[%s2367_s1 + $0x48] sm:$0xff]   ;;  %v1798_v8 = vld [vmem:[%s2367_s1 + $0x50] sm:$0xff]   ;;  %v274_v23 = vunpack.c.l.s4 %v1924_v22 }
   0x2   :  { %v1791_v1 = vld [vmem:[%s2367_s1 + $0xc0] sm:$0xff]   ;;  %1613 = vmatprep.subr.bf16.mxu0 %v1790_v0  ;;  %v1795_v5 = vld [vmem:[%s2367_s1 + $0xc8] sm:$0xff]   ;;  %v1799_v9 = vld [vmem:[%s2367_s1 + $0xd0] sm:$0xff]   ;;  %v277_v30 = vshrl.u32 %v276_v24, 7 }
   0x3   :  { %v1792_v2 = vld [vmem:[%s2367_s1] sm:$0xff]   ;;  %1635 = vmatprep.subr.bf16.mxu1 %v1791_v1  ;;  %v1796_v6 = vld [vmem:[%s2367_s1 + $0x8] sm:$0xff]   ;;  %v1800_v10 = vld [vmem:[%s2367_s1 + $0x10] sm:$0xff]   ;;  %v275_v29 = vunpack.c.0.s8 %v274_v23 }
   0x4   :  { %v1793_v3 = vld [vmem:[%s2367_s1 + $0x80] sm:$0xff]   ;;  %1614 = vmatpush3.bf16.msra.mxu0 %v1792_v2  ;;  %v1797_v7 = vld [vmem:[%s2367_s1 + $0x88] sm:$0xff]   ;;  %v1801_v11 = vld [vmem:[%s2367_s1 + $0x90] sm:$0xff]  }
   0x5   :  { %1636 = vmatpush3.bf16.msra.mxu1 %v1793_v3  ;;  %1615 = vmatprep.subr.bf16.mxu0 %v1794_v4  ;;  %v1802_v12 = vld [vmem:[%s2367_s1 + $0x58] sm:$0xff]   ;;  %v1806_v16 = vld [vmem:[%s2367_s1 + $0x60] sm:$0xff]   ;;  %v1810_v20 = vld [vmem:[%s2367_s1 + $0x68] sm:$0xff]   ;;  %v2030_v35 = vsub.s32 %v275_v29, %v277_v30 }
   0x6   :  { %1637 = vmatprep.subr.bf16.mxu1 %v1795_v5  ;;  %v1803_v13 = vld [vmem:[%s2367_s1 + $0xd8] sm:$0xff]   ;;  %v1807_v17 = vld [vmem:[%s2367_s1 + $0xe0] sm:$0xff]   ;;  %v1811_v21 = vld [vmem:[%s2367_s1 + $0xe8] sm:$0xff]  }
   0x7   :  { %v1804_v14 = vld [vmem:[%s2367_s1 + $0x18] sm:$0xff]   ;;  %v1808_v18 = vld [vmem:[%s2367_s1 + $0x20] sm:$0xff]   ;;  %v1812_v25 = vld [vmem:[%s2367_s1 + $0x28] sm:$0xff]  }
   0x8   :  { %1616 = vmatpush3.bf16.msra.mxu0 %v1796_v6  ;;  %v1805_v15 = vld [vmem:[%s2367_s1 + $0x98] sm:$0xff]   ;;  %v1809_v19 = vld [vmem:[%s2367_s1 + $0xa0] sm:$0xff]   ;;  %v1813_v26 = vld [vmem:[%s2367_s1 + $0xa8] sm:$0xff]  }
   0x9   :  { %1638 = vmatpush3.bf16.msra.mxu1 %v1797_v7  ;;  %1617 = vmatprep.subr.bf16.mxu0 %v1798_v8  ;;  %v1814_v27 = vld [vmem:[%s2367_s1 + $0x70] sm:$0xff]   ;;  %v1818_v33 = vld [vmem:[%s2367_s1 + $0x78] sm:$0xff]   ;;  %v12_v38 = vld [vmem:[%s2368_s0] sm:$0xff] }
   0xa   :  { %1639 = vmatprep.subr.bf16.mxu1 %v1799_v9  ;;  %v1815_v28 = vld [vmem:[%s2367_s1 + $0xf0] sm:$0xff]   ;;  %v1819_v34 = vld [vmem:[%s2367_s1 + $0xf8] sm:$0xff]   ;;  %v272_v39 = vcombine.high %v12_v38, %v12_v38  ;;  %v279_v40 = vrot.slane %v12_v38, %v2030_v35  ;;  %v1824_v41 = vld [vmem:[%s2367_s1 + $0x140] sm:$0xff]  }
   0xb   :  { %v1816_v31 = vld [vmem:[%s2367_s1 + $0x30] sm:$0xff]   ;;  %v1820_v36 = vld [vmem:[%s2367_s1 + $0x38] sm:$0xff]   ;;  %v1825_v42 = vld [vmem:[%s2367_s1 + $0x1c0] sm:$0xff]  }
   0xc   :  { %1618 = vmatpush3.bf16.msra.mxu0 %v1800_v10  ;;  %v1817_v32 = vld [vmem:[%s2367_s1 + $0xb0] sm:$0xff]   ;;  %v1821_v37 = vld [vmem:[%s2367_s1 + $0xb8] sm:$0xff]   ;;  %v287_v43 = vcombine.high %v279_v40, %v279_v40  ;;  %v295_v44 = vrot.slane %v279_v40, %v2030_v35  ;;  %v2050_v45 = vrot.slane %v272_v39, %v2030_v35  ;;  %v1826_v47 = vld [vmem:[%s2367_s1 + $0x100] sm:$0xff]  }
   0xd   :  { %1640 = vmatpush3.bf16.msra.mxu1 %v1801_v11  ;;  %1619 = vmatprep.subr.bf16.mxu0 %v1802_v12  ;;  %v1828_v50 = vld [vmem:[%s2367_s1 + $0x148] sm:$0xff]   ;;  %v1827_v52 = vld [vmem:[%s2367_s1 + $0x180] sm:$0xff]   ;;  %v1832_v57 = vld [vmem:[%s2367_s1 + $0x150] sm:$0xff]  }
   0xe   :  { %1641 = vmatprep.subr.bf16.mxu1 %v1803_v13  ;;  %v309_v46 = vrot.slane %v287_v43, %v2030_v35  ;;  %v288_v48 = vcombine.high %v2050_v45, %v2050_v45  ;;  %v317_v49 = vcombine.high %v295_v44, %v295_v44  ;;  %v1829_v54 = vld [vmem:[%s2367_s1 + $0x1c8] sm:$0xff]   ;;  %v1833_v59 = vld [vmem:[%s2367_s1 + $0x1d0] sm:$0xff]   ;;  %v1836_v61 = vld [vmem:[%s2367_s1 + $0x158] sm:$0xff]  }
   0xf   :  { %v1830_v55 = vld [vmem:[%s2367_s1 + $0x108] sm:$0xff]   ;;  %v1834_v60 = vld [vmem:[%s2367_s1 + $0x110] sm:$0xff]   ;;  %v1837_v63 = vld [vmem:[%s2367_s1 + $0x1d8] sm:$0xff]  }
  0x10   :  { %1620 = vmatpush3.bf16.msra.mxu0 %v1804_v14  ;;  %1186 = vmatprep.mubr.bf16.mxu0 %v309_v46  ;;  %v319_v51 = vcombine.high %v309_v46, %v309_v46  ;;  %v316_v53 = vrot.slane %v288_v48, %v2030_v35  ;;  %v1831_v58 = vld [vmem:[%s2367_s1 + $0x188] sm:$0xff]   ;;  %v1835_v62 = vld [vmem:[%s2367_s1 + $0x190] sm:$0xff]   ;;  %v1838_v0 = vld [vmem:[%s2367_s1 + $0x118] sm:$0xff]  }
  0x11   :  { %1642 = vmatpush3.bf16.msra.mxu1 %v1805_v15  ;;  %1621 = vmatprep.subr.bf16.mxu0 %v1806_v16  ;;  %v1840_v1 = vld [vmem:[%s2367_s1 + $0x160] sm:$0xff]   ;;  %v1839_v2 = vld [vmem:[%s2367_s1 + $0x198] sm:$0xff]   ;;  %v2110_v5 = vld [vmem:[%s2368_s0 + $0x8] sm:$0xff] }
  0x12   :  { %1643 = vmatprep.subr.bf16.mxu1 %v1807_v17  ;;  %1226 = vmatprep.mubr.bf16.mxu1 %v319_v51  ;;  %v320_v56 = vcombine.high %v316_v53, %v316_v53  ;;  %v1841_v3 = vld [vmem:[%s2367_s1 + $0x1e0] sm:$0xff]   ;;  %v1844_v6 = vld [vmem:[%s2367_s1 + $0x168] sm:$0xff]   ;;  %v1848_v10 = vld [vmem:[%s2367_s1 + $0x170] sm:$0xff]   ;;  %v2132_v12 = vrot.slane %v2110_v5, %v2030_v35  ;;  %v321_v46 = vcombine.high %v2110_v5, %v2110_v5 }
  0x13   :  { %v1842_v4 = vld [vmem:[%s2367_s1 + $0x120] sm:$0xff]   ;;  %v1845_v8 = vld [vmem:[%s2367_s1 + $0x1e8] sm:$0xff]   ;;  %v1849_v13 = vld [vmem:[%s2367_s1 + $0x1f0] sm:$0xff]  }
  0x14   :  { %1622 = vmatpush3.bf16.msra.mxu0 %v1808_v18  ;;  %v1843_v7 = vld [vmem:[%s2367_s1 + $0x1a0] sm:$0xff]   ;;  %v1846_v9 = vld [vmem:[%s2367_s1 + $0x128] sm:$0xff]   ;;  %v1850_v14 = vld [vmem:[%s2367_s1 + $0x130] sm:$0xff]   ;;  %v336_v17 = vcombine.high %v2132_v12, %v2132_v12 }
  0x15   :  { %1644 = vmatpush3.bf16.msra.mxu1 %v1809_v19  ;;  %1623 = vmatprep.subr.bf16.mxu0 %v1810_v20  ;;  %v1847_v11 = vld [vmem:[%s2367_s1 + $0x1a8] sm:$0xff]   ;;  %v1852_v15 = vld [vmem:[%s2367_s1 + $0x178] sm:$0xff]   ;;  %v1851_v16 = vld [vmem:[%s2367_s1 + $0x1b0] sm:$0xff]   ;;  %v302_v20 = vrot.slane %v2050_v45, %v2030_v35 }
  0x16   :  { %1645 = vmatprep.subr.bf16.mxu1 %v1811_v21  ;;  %v1853_v18 = vld [vmem:[%s2367_s1 + $0x1f8] sm:$0xff]   ;;  %v1856_v21 = vld [vmem:[%s2367_s1 + $0x240] sm:$0xff]   ;;  %v358_v23 = vrot.slane %v336_v17, %v2030_v35  ;;  %v1861_v30 = vld [vmem:[%s2367_s1 + $0x2c8] sm:$0xff]  }
  0x17   :  { %v1854_v19 = vld [vmem:[%s2367_s1 + $0x138] sm:$0xff]   ;;  %v1857_v24 = vld [vmem:[%s2367_s1 + $0x2c0] sm:$0xff]   ;;  %v1867_v38 = vld [vmem:[%s2367_s1 + $0x290] sm:$0xff]  }
  0x18   :  { %1624 = vmatpush3.bf16.msra.mxu0 %v1812_v25  ;;  %v1855_v22 = vld [vmem:[%s2367_s1 + $0x1b8] sm:$0xff]   ;;  %v1858_v25 = vld [vmem:[%s2367_s1 + $0x200] sm:$0xff]   ;;  %v368_v29 = vcombine.high %v358_v23, %v358_v23  ;;  %v1876_v45 = vld [vmem:[%s2367_s1 + $0x268] sm:$0xff]  }
  0x19   :  { %1646 = vmatpush3.bf16.msra.mxu1 %v1813_v26  ;;  %1625 = vmatprep.subr.bf16.mxu0 %v1814_v27  ;;  %v318_v26 = vcombine.high %v302_v20, %v302_v20  ;;  %v1860_v27 = vld [vmem:[%s2367_s1 + $0x248] sm:$0xff]   ;;  %v1869_v39 = vld [vmem:[%s2367_s1 + $0x2d8] sm:$0xff]   ;;  %v1873_v43 = vld [vmem:[%s2367_s1 + $0x2e0] sm:$0xff]  }
  0x1a   :  { %1647 = vmatprep.subr.bf16.mxu1 %v1815_v28  ;;  %v1859_v28 = vld [vmem:[%s2367_s1 + $0x280] sm:$0xff]   ;;  %v1870_v40 = vld [vmem:[%s2367_s1 + $0x218] sm:$0xff]   ;;  %v1877_v48 = vld [vmem:[%s2367_s1 + $0x2e8] sm:$0xff]  }
  0x1b   :  { %v1879_v51 = vld [vmem:[%s2367_s1 + $0x2a8] sm:$0xff]   ;;  %v1903_v17 = vld [vmem:[%s2367_s1 + $0x398] sm:$0xff]  }
  0x1c   :  { %1626 = vmatpush3.bf16.msra.mxu0 %v1816_v31  ;;  %v1862_v31 = vld [vmem:[%s2367_s1 + $0x208] sm:$0xff]  }
  0x1d   :  { %1648 = vmatpush3.bf16.msra.mxu1 %v1817_v32  ;;  %1627 = vmatprep.subr.bf16.mxu0 %v1818_v33  ;;  %v1864_v32 = vld [vmem:[%s2367_s1 + $0x250] sm:$0xff]   ;;  %v1863_v33 = vld [vmem:[%s2367_s1 + $0x288] sm:$0xff]  }
  0x1e   :  { %1649 = vmatprep.subr.bf16.mxu1 %v1819_v34  ;;  %v1865_v34 = vld [vmem:[%s2367_s1 + $0x2d0] sm:$0xff]  }
  0x20   :  { %1628 = vmatpush3.bf16.msra.mxu0 %v1820_v36  ;;  %v1866_v36 = vld [vmem:[%s2367_s1 + $0x210] sm:$0xff]  }
  0x21   :  { %1650 = vmatpush3.bf16.msra.mxu1 %v1821_v37  ;;  %1657 = vmatprep.subr.bf16.mxu0 %v1824_v41  ;;  %v1868_v37 = vld [vmem:[%s2367_s1 + $0x258] sm:$0xff]   ;;  %v1872_v41 = vld [vmem:[%s2367_s1 + $0x260] sm:$0xff]  }
  0x22   :  { %1679 = vmatprep.subr.bf16.mxu1 %v1825_v42  ;;  %v1871_v42 = vld [vmem:[%s2367_s1 + $0x298] sm:$0xff]  }
  0x23   :  { %1187 = vmatmul.mubr.bf16.vlgmr.msra.gmra.mrb[0].mxu0 %v295_v44  ;;  %v1874_v44 = vld [vmem:[%s2367_s1 + $0x220] sm:$0xff]  }
  0x24   :  { %1658 = vmatpush3.bf16.msra.mxu0 %v1826_v47  ;;  %1227 = vmatmul.mubr.bf16.vlgmr.msra.gmra.mrb[0].mxu1 %v317_v49  ;;  %v1875_v47 = vld [vmem:[%s2367_s1 + $0x2a0] sm:$0xff]   ;;  %v1878_v49 = vld [vmem:[%s2367_s1 + $0x228] sm:$0xff]  }
  0x25   :  { %1659 = vmatprep.subr.bf16.mxu0 %v1828_v50  ;;  %1680 = vmatpush3.bf16.msra.mxu1 %v1827_v52  ;;  %v1880_v50 = vld [vmem:[%s2367_s1 + $0x270] sm:$0xff]   ;;  %v2238_v52 = vrot.slane %v321_v46, %v2030_v35 }
  0x26   :  { %1266 = vmatprep.mubr.bf16.mxu0 %v316_v53  ;;  %1681 = vmatprep.subr.bf16.mxu1 %v1829_v54  ;;  %v1881_v53 = vld [vmem:[%s2367_s1 + $0x2f0] sm:$0xff]  }
  0x27   :  { %1306 = vmatprep.mubr.bf16.mxu1 %v320_v56  ;;  %v1882_v54 = vld [vmem:[%s2367_s1 + $0x230] sm:$0xff]  }
  0x28   :  { %1660 = vmatpush3.bf16.msra.mxu0 %v1830_v55  ;;  %v1884_v55 = vld [vmem:[%s2367_s1 + $0x278] sm:$0xff]   ;;  %v1883_v56 = vld [vmem:[%s2367_s1 + $0x2b0] sm:$0xff]  }
  0x29   :  { %1661 = vmatprep.subr.bf16.mxu0 %v1832_v57  ;;  %1682 = vmatpush3.bf16.msra.mxu1 %v1831_v58  ;;  %v337_v57 = vcombine.high %v2238_v52, %v2238_v52  ;;  %v1885_v58 = vld [vmem:[%s2367_s1 + $0x2f8] sm:$0xff]  }
  0x2a   :  { %1683 = vmatprep.subr.bf16.mxu1 %v1833_v59  ;;  %v1886_v59 = vld [vmem:[%s2367_s1 + $0x238] sm:$0xff]  }
  0x2c   :  { %1662 = vmatpush3.bf16.msra.mxu0 %v1834_v60  ;;  %v344_v60 = vrot.slane %v2132_v12, %v2030_v35  ;;  %v1900_v12 = vld [vmem:[%s2367_s1 + $0x358] sm:$0xff]  }
  0x2d   :  { %1663 = vmatprep.subr.bf16.mxu0 %v1836_v61  ;;  %1684 = vmatpush3.bf16.msra.mxu1 %v1835_v62  ;;  %v1888_v61 = vld [vmem:[%s2367_s1 + $0x340] sm:$0xff]   ;;  %v1887_v62 = vld [vmem:[%s2367_s1 + $0x2b8] sm:$0xff]  }
  0x2e   :  { %1685 = vmatprep.subr.bf16.mxu1 %v1837_v63  ;;  %v365_v63 = vrot.slane %v337_v57, %v2030_v35 }
  0x30   :  { %1664 = vmatpush3.bf16.msra.mxu0 %v1838_v0  ;;  %v1889_v0 = vld [vmem:[%s2367_s1 + $0x3c0] sm:$0xff]   ;;  %v369_v5 = vcombine.high %v365_v63, %v365_v63 }
  0x31   :  { %1665 = vmatprep.subr.bf16.mxu0 %v1840_v1  ;;  %1686 = vmatpush3.bf16.msra.mxu1 %v1839_v2  ;;  %v1890_v1 = vld [vmem:[%s2367_s1 + $0x300] sm:$0xff]   ;;  %v366_v2 = vcombine.high %v344_v60, %v344_v60 }
  0x32   :  { %1687 = vmatprep.subr.bf16.mxu1 %v1841_v3  ;;  %v1892_v3 = vld [vmem:[%s2367_s1 + $0x348] sm:$0xff]  }
  0x34   :  { %1666 = vmatpush3.bf16.msra.mxu0 %v1842_v4  ;;  %v1891_v4 = vld [vmem:[%s2367_s1 + $0x380] sm:$0xff]  }
  0x35   :  { %1667 = vmatprep.subr.bf16.mxu0 %v1844_v6  ;;  %1688 = vmatpush3.bf16.msra.mxu1 %v1843_v7  ;;  %v1893_v6 = vld [vmem:[%s2367_s1 + $0x3c8] sm:$0xff]  }
  0x36   :  { %1689 = vmatprep.subr.bf16.mxu1 %v1845_v8  ;;  %v1894_v7 = vld [vmem:[%s2367_s1 + $0x308] sm:$0xff]   ;;  %v1896_v8 = vld [vmem:[%s2367_s1 + $0x350] sm:$0xff]  }
  0x38   :  { %1668 = vmatpush3.bf16.msra.mxu0 %v1846_v9  ;;  %v1895_v9 = vld [vmem:[%s2367_s1 + $0x388] sm:$0xff]  }
  0x39   :  { %1669 = vmatprep.subr.bf16.mxu0 %v1848_v10  ;;  %1690 = vmatpush3.bf16.msra.mxu1 %v1847_v11  ;;  %v1897_v10 = vld [vmem:[%s2367_s1 + $0x3d0] sm:$0xff]  }
  0x3a   :  { %1691 = vmatprep.subr.bf16.mxu1 %v1849_v13  ;;  %v1898_v11 = vld [vmem:[%s2367_s1 + $0x310] sm:$0xff]  }
  0x3b   :  { %v1899_v13 = vld [vmem:[%s2367_s1 + $0x390] sm:$0xff]  }
  0x3c   :  { %1670 = vmatpush3.bf16.msra.mxu0 %v1850_v14  ;;  %v1901_v14 = vld [vmem:[%s2367_s1 + $0x3d8] sm:$0xff]  }
  0x3d   :  { %1671 = vmatprep.subr.bf16.mxu0 %v1852_v15  ;;  %1692 = vmatpush3.bf16.msra.mxu1 %v1851_v16  ;;  %v1902_v15 = vld [vmem:[%s2367_s1 + $0x318] sm:$0xff]   ;;  %v1904_v16 = vld [vmem:[%s2367_s1 + $0x360] sm:$0xff]  }
  0x3e   :  { %1693 = vmatprep.subr.bf16.mxu1 %v1853_v18  ;;  %v1905_v18 = vld [vmem:[%s2367_s1 + $0x3e0] sm:$0xff]  }
  0x40   :  { %1672 = vmatpush3.bf16.msra.mxu0 %v1854_v19  ;;  %v1906_v19 = vld [vmem:[%s2367_s1 + $0x320] sm:$0xff]  }
  0x41   :  { %1701 = vmatprep.subr.bf16.mxu0 %v1856_v21  ;;  %1694 = vmatpush3.bf16.msra.mxu1 %v1855_v22  ;;  %v1907_v21 = vld [vmem:[%s2367_s1 + $0x3a0] sm:$0xff]   ;;  %v1909_v22 = vld [vmem:[%s2367_s1 + $0x3e8] sm:$0xff]  }
  0x42   :  { %1723 = vmatprep.subr.bf16.mxu1 %v1857_v24  ;;  %v1912_v24 = vld [vmem:[%s2367_s1 + $0x370] sm:$0xff]  }
  0x43   :  { %1267 = vmatmul.mubr.bf16.vlgmr.msra.gmra.mrb[4].mxu0 %v302_v20  ;;  %v1908_v20 = vld [vmem:[%s2367_s1 + $0x368] sm:$0xff]  }
  0x44   :  { %1702 = vmatpush3.bf16.msra.mxu0 %v1858_v25  ;;  %1346 = vmatprep.mubr.bf16.mxu0 %v358_v23  ;;  %v1910_v23 = vld [vmem:[%s2367_s1 + $0x328] sm:$0xff]  }
  0x45   :  { %1307 = vmatmul.mubr.bf16.vlgmr.msra.gmra.mrb[4].mxu1 %v318_v26  ;;  %1703 = vmatprep.subr.bf16.mxu0 %v1860_v27  ;;  %v1911_v25 = vld [vmem:[%s2367_s1 + $0x3a8] sm:$0xff]   ;;  %v1913_v26 = vld [vmem:[%s2367_s1 + $0x3f0] sm:$0xff]  }
  0x46   :  { %1724 = vmatpush3.bf16.msra.mxu1 %v1859_v28  ;;  %1386 = vmatprep.mubr.bf16.mxu1 %v368_v29  ;;  %v1914_v27 = vld [vmem:[%s2367_s1 + $0x330] sm:$0xff]   ;;  %v1916_v28 = vld [vmem:[%s2367_s1 + $0x378] sm:$0xff]  }
  0x47   :  { %1725 = vmatprep.subr.bf16.mxu1 %v1861_v30  ;;  %v1915_v29 = vld [vmem:[%s2367_s1 + $0x3b0] sm:$0xff]   ;;  %v1917_v30 = vld [vmem:[%s2367_s1 + $0x3f8] sm:$0xff]  }
  0x48   :  { %1704 = vmatpush3.bf16.msra.mxu0 %v1862_v31  ;;  %v1918_v31 = vld [vmem:[%s2367_s1 + $0x338] sm:$0xff]  }
  0x49   :  { %1705 = vmatprep.subr.bf16.mxu0 %v1864_v32  ;;  %v351_v32 = vrot.slane %v2238_v52, %v2030_v35 }
  0x4a   :  { %1726 = vmatpush3.bf16.msra.mxu1 %v1863_v33  ;;  %v1919_v33 = vld [vmem:[%s2367_s1 + $0x3b8] sm:$0xff]  }
  0x4b   :  { %1727 = vmatprep.subr.bf16.mxu1 %v1865_v34  ;;  %v367_v34 = vcombine.high %v351_v32, %v351_v32 }
  0x4c   :  { %1706 = vmatpush3.bf16.msra.mxu0 %v1866_v36 }
  0x4d   :  { %1707 = vmatprep.subr.bf16.mxu0 %v1868_v37 }
  0x4e   :  { %1728 = vmatpush3.bf16.msra.mxu1 %v1867_v38 }
  0x4f   :  { %1729 = vmatprep.subr.bf16.mxu1 %v1869_v39 }
  0x50   :  { %1708 = vmatpush3.bf16.msra.mxu0 %v1870_v40 }
  0x51   :  { %1709 = vmatprep.subr.bf16.mxu0 %v1872_v41 }
  0x52   :  { %1730 = vmatpush3.bf16.msra.mxu1 %v1871_v42 }
  0x53   :  { %1731 = vmatprep.subr.bf16.mxu1 %v1873_v43 }
  0x54   :  { %1710 = vmatpush3.bf16.msra.mxu0 %v1874_v44 }
  0x55   :  { %1711 = vmatprep.subr.bf16.mxu0 %v1876_v45 }
  0x56   :  { %1732 = vmatpush3.bf16.msra.mxu1 %v1875_v47 }
  0x57   :  { %1733 = vmatprep.subr.bf16.mxu1 %v1877_v48 }
  0x58   :  { %1712 = vmatpush3.bf16.msra.mxu0 %v1878_v49 }
  0x59   :  { %1713 = vmatprep.subr.bf16.mxu0 %v1880_v50 }
  0x5a   :  { %1734 = vmatpush3.bf16.msra.mxu1 %v1879_v51 }
  0x5b   :  { %1735 = vmatprep.subr.bf16.mxu1 %v1881_v53 }
  0x5c   :  { %1714 = vmatpush3.bf16.msra.mxu0 %v1882_v54 }
  0x5d   :  { %1715 = vmatprep.subr.bf16.mxu0 %v1884_v55 }
  0x5e   :  { %1736 = vmatpush3.bf16.msra.mxu1 %v1883_v56 }
  0x5f   :  { %1737 = vmatprep.subr.bf16.mxu1 %v1885_v58 }
  0x60   :  { %1716 = vmatpush3.bf16.msra.mxu0 %v1886_v59 }
  0x61   :  { %1745 = vmatprep.subr.bf16.mxu0 %v1888_v61 }
  0x62   :  { %1738 = vmatpush3.bf16.msra.mxu1 %v1887_v62 }
  0x63   :  { %1347 = vmatmul.mubr.bf16.vlgmr.msra.gmra.mrb[8].mxu0 %v344_v60  ;;  %1767 = vmatprep.subr.bf16.mxu1 %v1889_v0 }
  0x64   :  { %1746 = vmatpush3.bf16.msra.mxu0 %v1890_v1  ;;  %1426 = vmatprep.mubr.bf16.mxu0 %v365_v63 }
  0x65   :  { %1387 = vmatmul.mubr.bf16.vlgmr.msra.gmra.mrb[8].mxu1 %v366_v2  ;;  %1747 = vmatprep.subr.bf16.mxu0 %v1892_v3 }
  0x66   :  { %1768 = vmatpush3.bf16.msra.mxu1 %v1891_v4  ;;  %1466 = vmatprep.mubr.bf16.mxu1 %v369_v5 }
  0x67   :  { %1769 = vmatprep.subr.bf16.mxu1 %v1893_v6 }
  0x68   :  { %1748 = vmatpush3.bf16.msra.mxu0 %v1894_v7 }
  0x69   :  { %1749 = vmatprep.subr.bf16.mxu0 %v1896_v8 }
  0x6a   :  { %1770 = vmatpush3.bf16.msra.mxu1 %v1895_v9 }
  0x6b   :  { %1771 = vmatprep.subr.bf16.mxu1 %v1897_v10 }
  0x6c   :  { %1750 = vmatpush3.bf16.msra.mxu0 %v1898_v11 }
  0x6d   :  { %1751 = vmatprep.subr.bf16.mxu0 %v1900_v12 }
  0x6e   :  { %1772 = vmatpush3.bf16.msra.mxu1 %v1899_v13 }
  0x6f   :  { %1773 = vmatprep.subr.bf16.mxu1 %v1901_v14 }
  0x70   :  { %1752 = vmatpush3.bf16.msra.mxu0 %v1902_v15 }
  0x71   :  { %1753 = vmatprep.subr.bf16.mxu0 %v1904_v16 }
  0x72   :  { %1774 = vmatpush3.bf16.msra.mxu1 %v1903_v17 }
  0x73   :  { %1775 = vmatprep.subr.bf16.mxu1 %v1905_v18 }
  0x74   :  { %1754 = vmatpush3.bf16.msra.mxu0 %v1906_v19 }
  0x75   :  { %1755 = vmatprep.subr.bf16.mxu0 %v1908_v20 }
  0x76   :  { %1776 = vmatpush3.bf16.msra.mxu1 %v1907_v21 }
  0x77   :  { %1777 = vmatprep.subr.bf16.mxu1 %v1909_v22 }
  0x78   :  { %1756 = vmatpush3.bf16.msra.mxu0 %v1910_v23 }
  0x79   :  { %1757 = vmatprep.subr.bf16.mxu0 %v1912_v24 }
  0x7a   :  { %1778 = vmatpush3.bf16.msra.mxu1 %v1911_v25 }
  0x7b   :  { %1779 = vmatprep.subr.bf16.mxu1 %v1913_v26 }
  0x7c   :  { %1758 = vmatpush3.bf16.msra.mxu0 %v1914_v27 }
  0x7d   :  { %1759 = vmatprep.subr.bf16.mxu0 %v1916_v28 }
  0x7e   :  { %1780 = vmatpush3.bf16.msra.mxu1 %v1915_v29 }
  0x7f   :  { %1781 = vmatprep.subr.bf16.mxu1 %v1917_v30 }
  0x80   :  { %1760 = vmatpush3.bf16.msra.mxu0 %v1918_v31 }
  0x82   :  { %1782 = vmatpush3.bf16.msra.mxu1 %v1919_v33 }
  0x83   :  { %1427 = vmatmul.mubr.bf16.vlgmr.msra.gmra.mrb[12].mxu0 %v351_v32 }
  0x85   :  { %1467 = vmatmul.mubr.bf16.vlgmr.msra.gmra.mrb[12].mxu1 %v367_v34 }
  0xf6   :  { %v1629_v36 = vpop.f32.mrb[0].mxu0 }
  0xf7   :  { %v1630_v37 = vpop.f32.mrb[1].mxu0  ;;  %v1651_v38 = vpop.f32.mrb[0].mxu1 }
  0xf8   :  { %v1631_v39 = vadd.f32 %v1630_v37, %v1629_v36  ;;  %v1632_v40 = vpop.f32.mrb[2].mxu0  ;;  %v1652_v41 = vpop.f32.mrb[1].mxu1 }
  0xf9   :  { %v1633_v42 = vpop.f32.mrb[3].mxu0  ;;  %v1653_v43 = vadd.f32 %v1652_v41, %v1651_v38  ;;  %v1654_v35 = vpop.f32.mrb[2].mxu1 }
  0xfa   :  { %v1655_v44 = vpop.f32.mrb[3].mxu1 }
  0xfb   :  { %v1229_v45 = vadd.f32 %v1653_v43, %v1631_v39 }
 0x116   :  { %v1673_v46 = vpop.f32.mrb[4].mxu0 }
 0x117   :  { %v1674_v47 = vpop.f32.mrb[5].mxu0 }
 0x118   :  { %v1695_v48 = vpop.f32.mrb[4].mxu1  ;;  %v1675_v49 = vadd.f32 %v1674_v47, %v1673_v46  ;;  %v1676_v50 = vpop.f32.mrb[6].mxu0 }
 0x119   :  { %v1696_v51 = vpop.f32.mrb[5].mxu1  ;;  %v1677_v52 = vpop.f32.mrb[7].mxu0 }
 0x11a   :  { %v1269_v53 = vadd.f32 %v1675_v49, %v1229_v45  ;;  %v1697_v54 = vadd.f32 %v1696_v51, %v1695_v48  ;;  %v1698_v55 = vpop.f32.mrb[6].mxu1 }
 0x11b   :  { %v1699_v56 = vpop.f32.mrb[7].mxu1 }
 0x11c   :  { %v1309_v57 = vadd.f32 %v1697_v54, %v1269_v53 }
 0x136   :  { %v1717_v58 = vpop.f32.mrb[8].mxu0 }
 0x137   :  { %v1718_v59 = vpop.f32.mrb[9].mxu0 }
 0x138   :  { %v1739_v60 = vpop.f32.mrb[8].mxu1  ;;  %v1719_v61 = vadd.f32 %v1718_v59, %v1717_v58  ;;  %v1720_v62 = vpop.f32.mrb[10].mxu0 }
 0x139   :  { %v1740_v63 = vpop.f32.mrb[9].mxu1  ;;  %v1721_v0 = vpop.f32.mrb[11].mxu0 }
 0x13a   :  { %v1349_v1 = vadd.f32 %v1719_v61, %v1309_v57  ;;  %v1741_v2 = vadd.f32 %v1740_v63, %v1739_v60  ;;  %v1742_v3 = vpop.f32.mrb[10].mxu1 }
 0x13b   :  { %v1743_v4 = vpop.f32.mrb[11].mxu1 }
 0x13c   :  { %v1389_v5 = vadd.f32 %v1741_v2, %v1349_v1 }
 0x156   :  { %v1761_v6 = vpop.f32.mrb[12].mxu0 }
 0x157   :  { %v1762_v7 = vpop.f32.mrb[13].mxu0 }
 0x158   :  { %v1783_v8 = vpop.f32.mrb[12].mxu1  ;;  %v1763_v9 = vadd.f32 %v1762_v7, %v1761_v6  ;;  %v1764_v10 = vpop.f32.mrb[14].mxu0 }
 0x159   :  { %v1784_v11 = vpop.f32.mrb[13].mxu1  ;;  %v1765_v12 = vpop.f32.mrb[15].mxu0 }
 0x15a   :  { %v1429_v13 = vadd.f32 %v1763_v9, %v1389_v5  ;;  %v1785_v14 = vadd.f32 %v1784_v11, %v1783_v8  ;;  %v1786_v15 = vpop.f32.mrb[14].mxu1 }
 0x15b   :  { %v1787_v16 = vpop.f32.mrb[15].mxu1 }
 0x15c   :  { %v1469_v17 = vadd.f32 %v1785_v14, %v1429_v13 }
 0x15e   :  { %v1474_v18 = vsub.f32 0.0, %v1469_v17 }
 0x160   :  { %v1475_v19 = vmul.f32 1.442695, %v1474_v18 }
 0x162   :  { %1920 = vpow2.f32 %v1475_v19 }
 0x16c   :  { %v1921_v20 = vpop.eup %1920 }
 0x16d   :  { %v1477_v21 = vadd.f32 1.0, %v1921_v20 }
 0x16f   :  { %1922 = vrcp.f32 %v1477_v21 }
 0x179   :  { %v1923_v22 = vpop.eup %1922 }
 0x17a   :  { %1480 = vst.msk [vmem:[%s2369_s2] sm:$0x3] %vm1479_vm0, %v1923_v22 }

</bundles_post_ra>
